<compile_context>
chip_gen: v6e
topology: v6e:2x2x1
jax: 0.10.0
libtpu: 0.0.40
codegen_flags: <defaults>
</compile_context>

<pallas_src>
import jax
import jax.numpy as jnp
import numpy as np
from jax import lax
from jax.experimental import pallas as pl
from jax.experimental.pallas import tpu as pltpu


def _round_up(x, m):
    return ((x + m - 1) // m) * m


def _sig(x):
    # sigmoid(x) == 0.5*(tanh(0.5*x)+1): one EUP push (tanh) instead of two.
    return 0.5 * jnp.tanh(0.5 * x) + 0.5


# ----------------------------------------------------------------------------
# Fused kernel: both LSTM layers + fc head in one grid-less invocation.
# ----------------------------------------------------------------------------
def _fused_lstm_forecast_kernel(
    x2d_ref,      # (T*Bp, D)     time-major input, pre-flattened in the wrapper
    wih1_ref,     # (D, 4*H1)
    whh1_ref,     # (H1, 4*H1)
    b1_ref,       # (1, 4*H1)     b_ih + b_hh
    wih2_ref,     # (H1, 4*H2p)   H2 padded to a multiple of 128 lanes
    whh2_ref,     # (H2p, 4*H2p)
    b2_ref,       # (1, 4*H2p)
    fcw_ref,      # (H2p, 1)
    fcb_ref,      # (1, 1)
    out_ref,      # (Bp, 1)
    xg1_scr,      # (T, Bp, 4*H1) hoisted layer-1 input projection
):
    T, Bp, _ = xg1_scr.shape
    H1 = whh1_ref.shape[0]
    H2 = whh2_ref.shape[0]

    # ---- Hoisted layer-1 input projection: one (T*Bp, D) @ (D, 4H1) matmul ----
    g1 = (jnp.dot(x2d_ref[...], wih1_ref[...], preferred_element_type=jnp.float32)
          + b1_ref[...])
    xg1_scr[...] = g1.reshape(T, Bp, 4 * H1)   # sublane-aligned split (Bp % 8 == 0)

    def cell(gates, c, H):
        # All slices are multiples of 128 lanes (H1 = 128, H2 padded to 128).
        i_g = _sig(gates[:, 0 * H:1 * H])
        f_g = _sig(gates[:, 1 * H:2 * H])
        g_g = jnp.tanh(gates[:, 2 * H:3 * H])
        o_g = _sig(gates[:, 3 * H:4 * H])
        c_new = f_g * c + i_g * g_g
        h_new = o_g * jnp.tanh(c_new)
        return h_new, c_new

    def l1_step(t, h1, c1):
        gates = xg1_scr[t] + jnp.dot(h1, whh1_ref[...],
                                     preferred_element_type=jnp.float32)
        return cell(gates, c1, H1)

    def l2_step(h1_in, h2, c2):
        gates = (jnp.dot(h1_in, wih2_ref[...], preferred_element_type=jnp.float32)
                 + b2_ref[...]
                 + jnp.dot(h2, whh2_ref[...], preferred_element_type=jnp.float32))
        return cell(gates, c2, H2)

    z1 = jnp.zeros((Bp, H1), jnp.float32)
    z2 = jnp.zeros((Bp, H2), jnp.float32)

    # Prologue: layer-1 step 0.
    h1, c1 = l1_step(0, z1, z1)

    # Wavefront: iteration t runs layer-1 step t and layer-2 step t-1; both
    # consume h1_{t-1}, so they are independent and can overlap.
    def body(t, carry):
        h1, c1, h2, c2 = carry
        h1n, c1n = l1_step(t, h1, c1)
        h2n, c2n = l2_step(h1, h2, c2)
        return h1n, c1n, h2n, c2n

    h1, c1, h2, c2 = lax.fori_loop(1, T, body, (h1, c1, z2, z2), unroll=True)

    # Epilogue: layer-2 step T-1 (only its hidden state is needed).
    h2_last, _ = l2_step(h1, h2, c2)

    # ---- FC head: (Bp, H2p) @ (H2p, 1) + b ------------------------------------
    out_ref[...] = (jnp.dot(h2_last, fcw_ref[...], preferred_element_type=jnp.float32)
                    + fcb_ref[...])


def _fused_call(x2d, kparams, T, Bp):
    H1 = kparams["whh1"].shape[0]
    vmem = pl.BlockSpec(memory_space=pltpu.MemorySpace.VMEM)
    return pl.pallas_call(
        _fused_lstm_forecast_kernel,
        out_shape=jax.ShapeDtypeStruct((Bp, 1), jnp.float32),
        in_specs=[vmem] * 9,
        out_specs=vmem,
        scratch_shapes=[pltpu.VMEM((T, Bp, 4 * H1), jnp.float32)],
        compiler_params=pltpu.CompilerParams(vmem_limit_bytes=32 * 1024 * 1024),
    )(
        x2d,
        kparams["wih1"], kparams["whh1"], kparams["b1"],
        kparams["wih2"], kparams["whh2"], kparams["b2"],
        kparams["fcw"], kparams["fcb"],
    )


# ----------------------------------------------------------------------------
# Public forward pass matching LSTMForecast.forward (x is batch_first (B,T,D)).
# Takes the *kernel* params produced by prepare_kernel_params().
# ----------------------------------------------------------------------------
@jax.jit
def lstm_forecast_forward(kparams, x_btd):
    B, T, D = x_btd.shape
    Bp = max(8, _round_up(B, 8))                       # pad batch to sublane width
    x_tbd = jnp.transpose(x_btd, (1, 0, 2))            # (T, B, D) time-major
    if Bp != B:
        x_tbd = jnp.pad(x_tbd, ((0, 0), (0, Bp - B), (0, 0)))
    x2d = x_tbd.reshape(T * Bp, D)                     # flatten on the XLA side
    out = _fused_call(x2d, kparams, T, Bp)             # (Bp, 1)
    return out[:B]                                     # (B, 1)


# ----------------------------------------------------------------------------
# Parameter construction (PyTorch-style uniform(-1/sqrt(H), 1/sqrt(H))),
# gate order i, f, g, o; b_ih + b_hh fused.  These are the *canonical* params;
# prepare_kernel_params() derives the lane-aligned kernel-side copies.
# ----------------------------------------------------------------------------
def init_params(key, input_dim, hidden_dim1=128, hidden_dim2=64):
    def lstm_params(key, d_in, h, prefix):
        k = 1.0 / np.sqrt(h)
        k1, k2, k3, k4 = jax.random.split(key, 4)
        w_ih = jax.random.uniform(k1, (4 * h, d_in), jnp.float32, -k, k)
        w_hh = jax.random.uniform(k2, (4 * h, h), jnp.float32, -k, k)
        b_ih = jax.random.uniform(k3, (4 * h,), jnp.float32, -k, k)
        b_hh = jax.random.uniform(k4, (4 * h,), jnp.float32, -k, k)
        return {
            f"wih{prefix}_t": jnp.transpose(w_ih),              # (d_in, 4H)
            f"whh{prefix}_t": jnp.transpose(w_hh),              # (H, 4H)
            f"b{prefix}": (b_ih + b_hh).reshape(1, 4 * h),      # (1, 4H)
        }

    k1, k2, k3 = jax.random.split(key, 3)
    kf = 1.0 / np.sqrt(hidden_dim2)
    kw, kb = jax.random.split(k3)
    params = {}
    params.update(lstm_params(k1, input_dim, hidden_dim1, "1"))
    params.update(lstm_params(k2, hidden_dim1, hidden_dim2, "2"))
    params["fc_w_t"] = jax.random.uniform(kw, (hidden_dim2, 1), jnp.float32, -kf, kf)
    params["fc_b"] = jax.random.uniform(kb, (1, 1), jnp.float32, -kf, kf)
    return params


def _pad_lstm_layer(wih_t, whh_t, b, h, hp):
    """Zero-pad an LSTM layer's hidden dim h -> hp (per-gate column padding).

    Padded gate columns have zero weights & bias, so padded hidden units stay
    exactly 0 through the recurrence: the math is unchanged, but every gate
    slice inside the kernel becomes a multiple of 128 lanes.
    """
    if hp == h:
        return wih_t, whh_t, b

    def pad_cols(w):                                    # (rows, 4*h) -> (rows, 4*hp)
        r = w.shape[0]
        w4 = w.reshape(r, 4, h)
        return jnp.pad(w4, ((0, 0), (0, 0), (0, hp - h))).reshape(r, 4 * hp)

    wih_p = pad_cols(wih_t)
    whh_p = pad_cols(jnp.pad(whh_t, ((0, hp - h), (0, 0))))
    b_p = pad_cols(b)
    return wih_p, whh_p, b_p


def prepare_kernel_params(params):
    """Build the kernel-side (lane-aligned) parameter dict from canonical params."""
    H1 = params["whh1_t"].shape[0]
    H2 = params["whh2_t"].shape[0]
    H1p = _round_up(H1, 128)
    H2p = _round_up(H2, 128)

    wih1, whh1, b1 = _pad_lstm_layer(params["wih1_t"], params["whh1_t"],
                                     params["b1"], H1, H1p)
    wih2, whh2, b2 = _pad_lstm_layer(params["wih2_t"], params["whh2_t"],
                                     params["b2"], H2, H2p)
    if H1p != H1:   # layer-2 input dim grows with layer-1's padding (zeros)
        wih2 = jnp.pad(wih2, ((0, H1p - H1), (0, 0)))
    fcw = params["fc_w_t"]
    if H2p != H2:
        fcw = jnp.pad(fcw, ((0, H2p - H2), (0, 0)))

    return {"wih1": wih1, "whh1": whh1, "b1": b1,
            "wih2": wih2, "whh2": whh2, "b2": b2,
            "fcw": fcw, "fcb": params["fc_b"]}


# ----------------------------------------------------------------------------
# Pure-JAX reference (same math, canonical unpadded params) for correctness.
# ----------------------------------------------------------------------------
def _ref_lstm(x_tbd, wih_t, whh_t, b):
    B = x_tbd.shape[1]
    H = whh_t.shape[0]

    def step(carry, x_t):
        h, c = carry
        gates = x_t @ wih_t + h @ whh_t + b
        i, f, g, o = jnp.split(gates, 4, axis=-1)
        c = jax.nn.sigmoid(f) * c + jax.nn.sigmoid(i) * jnp.tanh(g)
        h = jax.nn.sigmoid(o) * jnp.tanh(c)
        return (h, c), h

    h0 = jnp.zeros((B, H), jnp.float32)
    (_, _), hs = jax.lax.scan(step, (h0, h0), x_tbd)
    return hs


def _ref_forward(params, x_btd):
    x_tbd = jnp.transpose(x_btd, (1, 0, 2))
    out1 = _ref_lstm(x_tbd, params["wih1_t"], params["whh1_t"], params["b1"])
    out2 = _ref_lstm(out1, params["wih2_t"], params["whh2_t"], params["b2"])
    return out2[-1] @ params["fc_w_t"] + params["fc_b"]


if __name__ == "__main__":
    B, T, D = 2, 8, 8          # small shapes; module defaults H1=128, H2=64
    key = jax.random.PRNGKey(0)
    kp, kx = jax.random.split(key)
    params = init_params(kp, input_dim=D)
    kparams = prepare_kernel_params(params)
    x = jax.random.normal(kx, (B, T, D), jnp.float32)

    out = lstm_forecast_forward(kparams, x)
    out = jax.block_until_ready(out)
    assert out.shape == (B, 1)

    ref = _ref_forward(params, x)
    np.testing.assert_allclose(np.asarray(out), np.asarray(ref),
                               rtol=2e-3, atol=2e-3)
    print("KERNEL_OK")
</pallas_src>

<mosaic_0001>
module attributes {stable_mosaic.version = 11 : i64} {
  func.func @_fused_lstm_forecast_kernel(%arg0: memref<64x8xf32, #tpu.memory_space<vmem>>, %arg1: memref<8x512xf32, #tpu.memory_space<vmem>>, %arg2: memref<128x512xf32, #tpu.memory_space<vmem>>, %arg3: memref<1x512xf32, #tpu.memory_space<vmem>>, %arg4: memref<128x512xf32, #tpu.memory_space<vmem>>, %arg5: memref<128x512xf32, #tpu.memory_space<vmem>>, %arg6: memref<1x512xf32, #tpu.memory_space<vmem>>, %arg7: memref<128x1xf32, #tpu.memory_space<vmem>>, %arg8: memref<1x1xf32, #tpu.memory_space<vmem>>, %arg9: memref<8x1xf32, #tpu.memory_space<vmem>>, %arg10: memref<8x8x512xf32, #tpu.memory_space<vmem>>) attributes {dimension_semantics = [], scalar_prefetch = 0 : i64, scratch_operands = 1 : i64, tpu.core_type = #tpu.core_type<tc>} {
    %c0 = arith.constant 0 : index
    %c0_0 = arith.constant 0 : index
    %0 = vector.load %arg0[%c0, %c0_0] : memref<64x8xf32, #tpu.memory_space<vmem>>, vector<64x8xf32>
    %c0_1 = arith.constant 0 : index
    %c0_2 = arith.constant 0 : index
    %1 = vector.load %arg1[%c0_1, %c0_2] : memref<8x512xf32, #tpu.memory_space<vmem>>, vector<8x512xf32>
    %cst = arith.constant dense<0.000000e+00> : vector<64x512xf32>
    %2 = tpu.matmul %0, %1, %cst {dimension_numbers = #tpu.dot_dimension_numbers<[1], [0], [0], [1], [0, 0, 1, 1], [], []>} : vector<64x8xf32>, vector<8x512xf32>, vector<64x512xf32> -> vector<64x512xf32>
    %c0_3 = arith.constant 0 : index
    %c0_4 = arith.constant 0 : index
    %3 = vector.load %arg3[%c0_3, %c0_4] : memref<1x512xf32, #tpu.memory_space<vmem>>, vector<1x512xf32>
    %4 = vector.broadcast %3 : vector<1x512xf32> to vector<64x512xf32>
    %5 = arith.addf %2, %4 : vector<64x512xf32>
    %6 = vector.shape_cast %5 : vector<64x512xf32> to vector<8x8x512xf32>
    %c0_5 = arith.constant 0 : index
    %c0_6 = arith.constant 0 : index
    %c0_7 = arith.constant 0 : index
    %7 = vector.load %arg10[%c0_5, %c0_6, %c0_7] : memref<8x8x512xf32, #tpu.memory_space<vmem>>, vector<8x8x512xf32>
    tpu.vector_store %arg10[%c0_5, %c0_6, %c0_7], %6 {strides = array<i32>} : memref<8x8x512xf32, #tpu.memory_space<vmem>>, vector<8x8x512xf32>,
    %cst_8 = arith.constant 0.000000e+00 : f32
    %8 = vector.broadcast %cst_8 : f32 to vector<8x128xf32>
    %cst_9 = arith.constant 0.000000e+00 : f32
    %9 = vector.broadcast %cst_9 : f32 to vector<8x128xf32>
    %c0_10 = arith.constant 0 : index
    %c0_11 = arith.constant 0 : index
    %c0_12 = arith.constant 0 : index
    %10 = vector.load %arg10[%c0_10, %c0_11, %c0_12] : memref<8x8x512xf32, #tpu.memory_space<vmem>>, vector<1x8x512xf32>
    %11 = vector.shape_cast %10 : vector<1x8x512xf32> to vector<8x512xf32>
    %c0_13 = arith.constant 0 : index
    %c0_14 = arith.constant 0 : index
    %12 = vector.load %arg2[%c0_13, %c0_14] : memref<128x512xf32, #tpu.memory_space<vmem>>, vector<128x512xf32>
    %cst_15 = arith.constant dense<0.000000e+00> : vector<8x512xf32>
    %13 = tpu.matmul %8, %12, %cst_15 {dimension_numbers = #tpu.dot_dimension_numbers<[1], [0], [0], [1], [0, 0, 1, 1], [], []>} : vector<8x128xf32>, vector<128x512xf32>, vector<8x512xf32> -> vector<8x512xf32>
    %14 = arith.addf %11, %13 : vector<8x512xf32>
    %15 = vector.extract_strided_slice %14 {offsets = [0, 0], sizes = [8, 128], strides = [1, 1]} : vector<8x512xf32> to vector<8x128xf32>
    %cst_16 = arith.constant 5.000000e-01 : f32
    %16 = vector.broadcast %cst_16 : f32 to vector<8x128xf32>
    %17 = arith.mulf %16, %15 : vector<8x128xf32>
    %18 = math.tanh %17 : vector<8x128xf32>
    %cst_17 = arith.constant 5.000000e-01 : f32
    %19 = vector.broadcast %cst_17 : f32 to vector<8x128xf32>
    %20 = arith.mulf %19, %18 : vector<8x128xf32>
    %cst_18 = arith.constant 5.000000e-01 : f32
    %21 = vector.broadcast %cst_18 : f32 to vector<8x128xf32>
    %22 = arith.addf %20, %21 : vector<8x128xf32>
    %23 = vector.extract_strided_slice %14 {offsets = [0, 128], sizes = [8, 128], strides = [1, 1]} : vector<8x512xf32> to vector<8x128xf32>
    %cst_19 = arith.constant 5.000000e-01 : f32
    %24 = vector.broadcast %cst_19 : f32 to vector<8x128xf32>
    %25 = arith.mulf %24, %23 : vector<8x128xf32>
    %26 = math.tanh %25 : vector<8x128xf32>
    %cst_20 = arith.constant 5.000000e-01 : f32
    %27 = vector.broadcast %cst_20 : f32 to vector<8x128xf32>
    %28 = arith.mulf %27, %26 : vector<8x128xf32>
    %cst_21 = arith.constant 5.000000e-01 : f32
    %29 = vector.broadcast %cst_21 : f32 to vector<8x128xf32>
    %30 = arith.addf %28, %29 : vector<8x128xf32>
    %31 = vector.extract_strided_slice %14 {offsets = [0, 256], sizes = [8, 128], strides = [1, 1]} : vector<8x512xf32> to vector<8x128xf32>
    %32 = math.tanh %31 : vector<8x128xf32>
    %33 = vector.extract_strided_slice %14 {offsets = [0, 384], sizes = [8, 128], strides = [1, 1]} : vector<8x512xf32> to vector<8x128xf32>
    %cst_22 = arith.constant 5.000000e-01 : f32
    %34 = vector.broadcast %cst_22 : f32 to vector<8x128xf32>
    %35 = arith.mulf %34, %33 : vector<8x128xf32>
    %36 = math.tanh %35 : vector<8x128xf32>
    %cst_23 = arith.constant 5.000000e-01 : f32
    %37 = vector.broadcast %cst_23 : f32 to vector<8x128xf32>
    %38 = arith.mulf %37, %36 : vector<8x128xf32>
    %cst_24 = arith.constant 5.000000e-01 : f32
    %39 = vector.broadcast %cst_24 : f32 to vector<8x128xf32>
    %40 = arith.addf %38, %39 : vector<8x128xf32>
    %41 = arith.mulf %30, %8 : vector<8x128xf32>
    %42 = arith.mulf %22, %32 : vector<8x128xf32>
    %43 = arith.addf %41, %42 : vector<8x128xf32>
    %44 = math.tanh %43 : vector<8x128xf32>
    %45 = arith.mulf %40, %44 : vector<8x128xf32>
    %c1_i32 = arith.constant 1 : i32
    %46 = arith.index_cast %c1_i32 : i32 to index
    %c0_25 = arith.constant 0 : index
    %c0_26 = arith.constant 0 : index
    %47 = vector.load %arg10[%46, %c0_25, %c0_26] : memref<8x8x512xf32, #tpu.memory_space<vmem>>, vector<1x8x512xf32>
    %48 = vector.shape_cast %47 : vector<1x8x512xf32> to vector<8x512xf32>
    %c0_27 = arith.constant 0 : index
    %c0_28 = arith.constant 0 : index
    %49 = vector.load %arg2[%c0_27, %c0_28] : memref<128x512xf32, #tpu.memory_space<vmem>>, vector<128x512xf32>
    %cst_29 = arith.constant dense<0.000000e+00> : vector<8x512xf32>
    %50 = tpu.matmul %45, %49, %cst_29 {dimension_numbers = #tpu.dot_dimension_numbers<[1], [0], [0], [1], [0, 0, 1, 1], [], []>} : vector<8x128xf32>, vector<128x512xf32>, vector<8x512xf32> -> vector<8x512xf32>
    %51 = arith.addf %48, %50 : vector<8x512xf32>
    %52 = vector.extract_strided_slice %51 {offsets = [0, 0], sizes = [8, 128], strides = [1, 1]} : vector<8x512xf32> to vector<8x128xf32>
    %cst_30 = arith.constant 5.000000e-01 : f32
    %53 = vector.broadcast %cst_30 : f32 to vector<8x128xf32>
    %54 = arith.mulf %53, %52 : vector<8x128xf32>
    %55 = math.tanh %54 : vector<8x128xf32>
    %cst_31 = arith.constant 5.000000e-01 : f32
    %56 = vector.broadcast %cst_31 : f32 to vector<8x128xf32>
    %57 = arith.mulf %56, %55 : vector<8x128xf32>
    %cst_32 = arith.constant 5.000000e-01 : f32
    %58 = vector.broadcast %cst_32 : f32 to vector<8x128xf32>
    %59 = arith.addf %57, %58 : vector<8x128xf32>
    %60 = vector.extract_strided_slice %51 {offsets = [0, 128], sizes = [8, 128], strides = [1, 1]} : vector<8x512xf32> to vector<8x128xf32>
    %cst_33 = arith.constant 5.000000e-01 : f32
    %61 = vector.broadcast %cst_33 : f32 to vector<8x128xf32>
    %62 = arith.mulf %61, %60 : vector<8x128xf32>
    %63 = math.tanh %62 : vector<8x128xf32>
    %cst_34 = arith.constant 5.000000e-01 : f32
    %64 = vector.broadcast %cst_34 : f32 to vector<8x128xf32>
    %65 = arith.mulf %64, %63 : vector<8x128xf32>
    %cst_35 = arith.constant 5.000000e-01 : f32
    %66 = vector.broadcast %cst_35 : f32 to vector<8x128xf32>
    %67 = arith.addf %65, %66 : vector<8x128xf32>
    %68 = vector.extract_strided_slice %51 {offsets = [0, 256], sizes = [8, 128], strides = [1, 1]} : vector<8x512xf32> to vector<8x128xf32>
    %69 = math.tanh %68 : vector<8x128xf32>
    %70 = vector.extract_strided_slice %51 {offsets = [0, 384], sizes = [8, 128], strides = [1, 1]} : vector<8x512xf32> to vector<8x128xf32>
    %cst_36 = arith.constant 5.000000e-01 : f32
    %71 = vector.broadcast %cst_36 : f32 to vector<8x128xf32>
    %72 = arith.mulf %71, %70 : vector<8x128xf32>
    %73 = math.tanh %72 : vector<8x128xf32>
    %cst_37 = arith.constant 5.000000e-01 : f32
    %74 = vector.broadcast %cst_37 : f32 to vector<8x128xf32>
    %75 = arith.mulf %74, %73 : vector<8x128xf32>
    %cst_38 = arith.constant 5.000000e-01 : f32
    %76 = vector.broadcast %cst_38 : f32 to vector<8x128xf32>
    %77 = arith.addf %75, %76 : vector<8x128xf32>
    %78 = arith.mulf %67, %43 : vector<8x128xf32>
    %79 = arith.mulf %59, %69 : vector<8x128xf32>
    %80 = arith.addf %78, %79 : vector<8x128xf32>
    %81 = math.tanh %80 : vector<8x128xf32>
    %82 = arith.mulf %77, %81 : vector<8x128xf32>
    %c0_39 = arith.constant 0 : index
    %c0_40 = arith.constant 0 : index
    %83 = vector.load %arg4[%c0_39, %c0_40] : memref<128x512xf32, #tpu.memory_space<vmem>>, vector<128x512xf32>
    %cst_41 = arith.constant dense<0.000000e+00> : vector<8x512xf32>
    %84 = tpu.matmul %45, %83, %cst_41 {dimension_numbers = #tpu.dot_dimension_numbers<[1], [0], [0], [1], [0, 0, 1, 1], [], []>} : vector<8x128xf32>, vector<128x512xf32>, vector<8x512xf32> -> vector<8x512xf32>
    %c0_42 = arith.constant 0 : index
    %c0_43 = arith.constant 0 : index
    %85 = vector.load %arg6[%c0_42, %c0_43] : memref<1x512xf32, #tpu.memory_space<vmem>>, vector<1x512xf32>
    %86 = vector.broadcast %85 : vector<1x512xf32> to vector<8x512xf32>
    %87 = arith.addf %84, %86 : vector<8x512xf32>
    %c0_44 = arith.constant 0 : index
    %c0_45 = arith.constant 0 : index
    %88 = vector.load %arg5[%c0_44, %c0_45] : memref<128x512xf32, #tpu.memory_space<vmem>>, vector<128x512xf32>
    %cst_46 = arith.constant dense<0.000000e+00> : vector<8x512xf32>
    %89 = tpu.matmul %9, %88, %cst_46 {dimension_numbers = #tpu.dot_dimension_numbers<[1], [0], [0], [1], [0, 0, 1, 1], [], []>} : vector<8x128xf32>, vector<128x512xf32>, vector<8x512xf32> -> vector<8x512xf32>
    %90 = arith.addf %87, %89 : vector<8x512xf32>
    %91 = vector.extract_strided_slice %90 {offsets = [0, 0], sizes = [8, 128], strides = [1, 1]} : vector<8x512xf32> to vector<8x128xf32>
    %cst_47 = arith.constant 5.000000e-01 : f32
    %92 = vector.broadcast %cst_47 : f32 to vector<8x128xf32>
    %93 = arith.mulf %92, %91 : vector<8x128xf32>
    %94 = math.tanh %93 : vector<8x128xf32>
    %cst_48 = arith.constant 5.000000e-01 : f32
    %95 = vector.broadcast %cst_48 : f32 to vector<8x128xf32>
    %96 = arith.mulf %95, %94 : vector<8x128xf32>
    %cst_49 = arith.constant 5.000000e-01 : f32
    %97 = vector.broadcast %cst_49 : f32 to vector<8x128xf32>
    %98 = arith.addf %96, %97 : vector<8x128xf32>
    %99 = vector.extract_strided_slice %90 {offsets = [0, 128], sizes = [8, 128], strides = [1, 1]} : vector<8x512xf32> to vector<8x128xf32>
    %cst_50 = arith.constant 5.000000e-01 : f32
    %100 = vector.broadcast %cst_50 : f32 to vector<8x128xf32>
    %101 = arith.mulf %100, %99 : vector<8x128xf32>
    %102 = math.tanh %101 : vector<8x128xf32>
    %cst_51 = arith.constant 5.000000e-01 : f32
    %103 = vector.broadcast %cst_51 : f32 to vector<8x128xf32>
    %104 = arith.mulf %103, %102 : vector<8x128xf32>
    %cst_52 = arith.constant 5.000000e-01 : f32
    %105 = vector.broadcast %cst_52 : f32 to vector<8x128xf32>
    %106 = arith.addf %104, %105 : vector<8x128xf32>
    %107 = vector.extract_strided_slice %90 {offsets = [0, 256], sizes = [8, 128], strides = [1, 1]} : vector<8x512xf32> to vector<8x128xf32>
    %108 = math.tanh %107 : vector<8x128xf32>
    %109 = vector.extract_strided_slice %90 {offsets = [0, 384], sizes = [8, 128], strides = [1, 1]} : vector<8x512xf32> to vector<8x128xf32>
    %cst_53 = arith.constant 5.000000e-01 : f32
    %110 = vector.broadcast %cst_53 : f32 to vector<8x128xf32>
    %111 = arith.mulf %110, %109 : vector<8x128xf32>
    %112 = math.tanh %111 : vector<8x128xf32>
    %cst_54 = arith.constant 5.000000e-01 : f32
    %113 = vector.broadcast %cst_54 : f32 to vector<8x128xf32>
    %114 = arith.mulf %113, %112 : vector<8x128xf32>
    %cst_55 = arith.constant 5.000000e-01 : f32
    %115 = vector.broadcast %cst_55 : f32 to vector<8x128xf32>
    %116 = arith.addf %114, %115 : vector<8x128xf32>
    %117 = arith.mulf %106, %9 : vector<8x128xf32>
    %118 = arith.mulf %98, %108 : vector<8x128xf32>
    %119 = arith.addf %117, %118 : vector<8x128xf32>
    %120 = math.tanh %119 : vector<8x128xf32>
    %121 = arith.mulf %116, %120 : vector<8x128xf32>
    %c2_i32 = arith.constant 2 : i32
    %122 = arith.index_cast %c2_i32 : i32 to index
    %c0_56 = arith.constant 0 : index
    %c0_57 = arith.constant 0 : index
    %123 = vector.load %arg10[%122, %c0_56, %c0_57] : memref<8x8x512xf32, #tpu.memory_space<vmem>>, vector<1x8x512xf32>
    %124 = vector.shape_cast %123 : vector<1x8x512xf32> to vector<8x512xf32>
    %c0_58 = arith.constant 0 : index
    %c0_59 = arith.constant 0 : index
    %125 = vector.load %arg2[%c0_58, %c0_59] : memref<128x512xf32, #tpu.memory_space<vmem>>, vector<128x512xf32>
    %cst_60 = arith.constant dense<0.000000e+00> : vector<8x512xf32>
    %126 = tpu.matmul %82, %125, %cst_60 {dimension_numbers = #tpu.dot_dimension_numbers<[1], [0], [0], [1], [0, 0, 1, 1], [], []>} : vector<8x128xf32>, vector<128x512xf32>, vector<8x512xf32> -> vector<8x512xf32>
    %127 = arith.addf %124, %126 : vector<8x512xf32>
    %128 = vector.extract_strided_slice %127 {offsets = [0, 0], sizes = [8, 128], strides = [1, 1]} : vector<8x512xf32> to vector<8x128xf32>
    %cst_61 = arith.constant 5.000000e-01 : f32
    %129 = vector.broadcast %cst_61 : f32 to vector<8x128xf32>
    %130 = arith.mulf %129, %128 : vector<8x128xf32>
    %131 = math.tanh %130 : vector<8x128xf32>
    %cst_62 = arith.constant 5.000000e-01 : f32
    %132 = vector.broadcast %cst_62 : f32 to vector<8x128xf32>
    %133 = arith.mulf %132, %131 : vector<8x128xf32>
    %cst_63 = arith.constant 5.000000e-01 : f32
    %134 = vector.broadcast %cst_63 : f32 to vector<8x128xf32>
    %135 = arith.addf %133, %134 : vector<8x128xf32>
    %136 = vector.extract_strided_slice %127 {offsets = [0, 128], sizes = [8, 128], strides = [1, 1]} : vector<8x512xf32> to vector<8x128xf32>
    %cst_64 = arith.constant 5.000000e-01 : f32
    %137 = vector.broadcast %cst_64 : f32 to vector<8x128xf32>
    %138 = arith.mulf %137, %136 : vector<8x128xf32>
    %139 = math.tanh %138 : vector<8x128xf32>
    %cst_65 = arith.constant 5.000000e-01 : f32
    %140 = vector.broadcast %cst_65 : f32 to vector<8x128xf32>
    %141 = arith.mulf %140, %139 : vector<8x128xf32>
    %cst_66 = arith.constant 5.000000e-01 : f32
    %142 = vector.broadcast %cst_66 : f32 to vector<8x128xf32>
    %143 = arith.addf %141, %142 : vector<8x128xf32>
    %144 = vector.extract_strided_slice %127 {offsets = [0, 256], sizes = [8, 128], strides = [1, 1]} : vector<8x512xf32> to vector<8x128xf32>
    %145 = math.tanh %144 : vector<8x128xf32>
    %146 = vector.extract_strided_slice %127 {offsets = [0, 384], sizes = [8, 128], strides = [1, 1]} : vector<8x512xf32> to vector<8x128xf32>
    %cst_67 = arith.constant 5.000000e-01 : f32
    %147 = vector.broadcast %cst_67 : f32 to vector<8x128xf32>
    %148 = arith.mulf %147, %146 : vector<8x128xf32>
    %149 = math.tanh %148 : vector<8x128xf32>
    %cst_68 = arith.constant 5.000000e-01 : f32
    %150 = vector.broadcast %cst_68 : f32 to vector<8x128xf32>
    %151 = arith.mulf %150, %149 : vector<8x128xf32>
    %cst_69 = arith.constant 5.000000e-01 : f32
    %152 = vector.broadcast %cst_69 : f32 to vector<8x128xf32>
    %153 = arith.addf %151, %152 : vector<8x128xf32>
    %154 = arith.mulf %143, %80 : vector<8x128xf32>
    %155 = arith.mulf %135, %145 : vector<8x128xf32>
    %156 = arith.addf %154, %155 : vector<8x128xf32>
    %157 = math.tanh %156 : vector<8x128xf32>
    %158 = arith.mulf %153, %157 : vector<8x128xf32>
    %c0_70 = arith.constant 0 : index
    %c0_71 = arith.constant 0 : index
    %159 = vector.load %arg4[%c0_70, %c0_71] : memref<128x512xf32, #tpu.memory_space<vmem>>, vector<128x512xf32>
    %cst_72 = arith.constant dense<0.000000e+00> : vector<8x512xf32>
    %160 = tpu.matmul %82, %159, %cst_72 {dimension_numbers = #tpu.dot_dimension_numbers<[1], [0], [0], [1], [0, 0, 1, 1], [], []>} : vector<8x128xf32>, vector<128x512xf32>, vector<8x512xf32> -> vector<8x512xf32>
    %c0_73 = arith.constant 0 : index
    %c0_74 = arith.constant 0 : index
    %161 = vector.load %arg6[%c0_73, %c0_74] : memref<1x512xf32, #tpu.memory_space<vmem>>, vector<1x512xf32>
    %162 = vector.broadcast %161 : vector<1x512xf32> to vector<8x512xf32>
    %163 = arith.addf %160, %162 : vector<8x512xf32>
    %c0_75 = arith.constant 0 : index
    %c0_76 = arith.constant 0 : index
    %164 = vector.load %arg5[%c0_75, %c0_76] : memref<128x512xf32, #tpu.memory_space<vmem>>, vector<128x512xf32>
    %cst_77 = arith.constant dense<0.000000e+00> : vector<8x512xf32>
    %165 = tpu.matmul %121, %164, %cst_77 {dimension_numbers = #tpu.dot_dimension_numbers<[1], [0], [0], [1], [0, 0, 1, 1], [], []>} : vector<8x128xf32>, vector<128x512xf32>, vector<8x512xf32> -> vector<8x512xf32>
    %166 = arith.addf %163, %165 : vector<8x512xf32>
    %167 = vector.extract_strided_slice %166 {offsets = [0, 0], sizes = [8, 128], strides = [1, 1]} : vector<8x512xf32> to vector<8x128xf32>
    %cst_78 = arith.constant 5.000000e-01 : f32
    %168 = vector.broadcast %cst_78 : f32 to vector<8x128xf32>
    %169 = arith.mulf %168, %167 : vector<8x128xf32>
    %170 = math.tanh %169 : vector<8x128xf32>
    %cst_79 = arith.constant 5.000000e-01 : f32
    %171 = vector.broadcast %cst_79 : f32 to vector<8x128xf32>
    %172 = arith.mulf %171, %170 : vector<8x128xf32>
    %cst_80 = arith.constant 5.000000e-01 : f32
    %173 = vector.broadcast %cst_80 : f32 to vector<8x128xf32>
    %174 = arith.addf %172, %173 : vector<8x128xf32>
    %175 = vector.extract_strided_slice %166 {offsets = [0, 128], sizes = [8, 128], strides = [1, 1]} : vector<8x512xf32> to vector<8x128xf32>
    %cst_81 = arith.constant 5.000000e-01 : f32
    %176 = vector.broadcast %cst_81 : f32 to vector<8x128xf32>
    %177 = arith.mulf %176, %175 : vector<8x128xf32>
    %178 = math.tanh %177 : vector<8x128xf32>
    %cst_82 = arith.constant 5.000000e-01 : f32
    %179 = vector.broadcast %cst_82 : f32 to vector<8x128xf32>
    %180 = arith.mulf %179, %178 : vector<8x128xf32>
    %cst_83 = arith.constant 5.000000e-01 : f32
    %181 = vector.broadcast %cst_83 : f32 to vector<8x128xf32>
    %182 = arith.addf %180, %181 : vector<8x128xf32>
    %183 = vector.extract_strided_slice %166 {offsets = [0, 256], sizes = [8, 128], strides = [1, 1]} : vector<8x512xf32> to vector<8x128xf32>
    %184 = math.tanh %183 : vector<8x128xf32>
    %185 = vector.extract_strided_slice %166 {offsets = [0, 384], sizes = [8, 128], strides = [1, 1]} : vector<8x512xf32> to vector<8x128xf32>
    %cst_84 = arith.constant 5.000000e-01 : f32
    %186 = vector.broadcast %cst_84 : f32 to vector<8x128xf32>
    %187 = arith.mulf %186, %185 : vector<8x128xf32>
    %188 = math.tanh %187 : vector<8x128xf32>
    %cst_85 = arith.constant 5.000000e-01 : f32
    %189 = vector.broadcast %cst_85 : f32 to vector<8x128xf32>
    %190 = arith.mulf %189, %188 : vector<8x128xf32>
    %cst_86 = arith.constant 5.000000e-01 : f32
    %191 = vector.broadcast %cst_86 : f32 to vector<8x128xf32>
    %192 = arith.addf %190, %191 : vector<8x128xf32>
    %193 = arith.mulf %182, %119 : vector<8x128xf32>
    %194 = arith.mulf %174, %184 : vector<8x128xf32>
    %195 = arith.addf %193, %194 : vector<8x128xf32>
    %196 = math.tanh %195 : vector<8x128xf32>
    %197 = arith.mulf %192, %196 : vector<8x128xf32>
    %c3_i32 = arith.constant 3 : i32
    %198 = arith.index_cast %c3_i32 : i32 to index
    %c0_87 = arith.constant 0 : index
    %c0_88 = arith.constant 0 : index
    %199 = vector.load %arg10[%198, %c0_87, %c0_88] : memref<8x8x512xf32, #tpu.memory_space<vmem>>, vector<1x8x512xf32>
    %200 = vector.shape_cast %199 : vector<1x8x512xf32> to vector<8x512xf32>
    %c0_89 = arith.constant 0 : index
    %c0_90 = arith.constant 0 : index
    %201 = vector.load %arg2[%c0_89, %c0_90] : memref<128x512xf32, #tpu.memory_space<vmem>>, vector<128x512xf32>
    %cst_91 = arith.constant dense<0.000000e+00> : vector<8x512xf32>
    %202 = tpu.matmul %158, %201, %cst_91 {dimension_numbers = #tpu.dot_dimension_numbers<[1], [0], [0], [1], [0, 0, 1, 1], [], []>} : vector<8x128xf32>, vector<128x512xf32>, vector<8x512xf32> -> vector<8x512xf32>
    %203 = arith.addf %200, %202 : vector<8x512xf32>
    %204 = vector.extract_strided_slice %203 {offsets = [0, 0], sizes = [8, 128], strides = [1, 1]} : vector<8x512xf32> to vector<8x128xf32>
    %cst_92 = arith.constant 5.000000e-01 : f32
    %205 = vector.broadcast %cst_92 : f32 to vector<8x128xf32>
    %206 = arith.mulf %205, %204 : vector<8x128xf32>
    %207 = math.tanh %206 : vector<8x128xf32>
    %cst_93 = arith.constant 5.000000e-01 : f32
    %208 = vector.broadcast %cst_93 : f32 to vector<8x128xf32>
    %209 = arith.mulf %208, %207 : vector<8x128xf32>
    %cst_94 = arith.constant 5.000000e-01 : f32
    %210 = vector.broadcast %cst_94 : f32 to vector<8x128xf32>
    %211 = arith.addf %209, %210 : vector<8x128xf32>
    %212 = vector.extract_strided_slice %203 {offsets = [0, 128], sizes = [8, 128], strides = [1, 1]} : vector<8x512xf32> to vector<8x128xf32>
    %cst_95 = arith.constant 5.000000e-01 : f32
    %213 = vector.broadcast %cst_95 : f32 to vector<8x128xf32>
    %214 = arith.mulf %213, %212 : vector<8x128xf32>
    %215 = math.tanh %214 : vector<8x128xf32>
    %cst_96 = arith.constant 5.000000e-01 : f32
    %216 = vector.broadcast %cst_96 : f32 to vector<8x128xf32>
    %217 = arith.mulf %216, %215 : vector<8x128xf32>
    %cst_97 = arith.constant 5.000000e-01 : f32
    %218 = vector.broadcast %cst_97 : f32 to vector<8x128xf32>
    %219 = arith.addf %217, %218 : vector<8x128xf32>
    %220 = vector.extract_strided_slice %203 {offsets = [0, 256], sizes = [8, 128], strides = [1, 1]} : vector<8x512xf32> to vector<8x128xf32>
    %221 = math.tanh %220 : vector<8x128xf32>
    %222 = vector.extract_strided_slice %203 {offsets = [0, 384], sizes = [8, 128], strides = [1, 1]} : vector<8x512xf32> to vector<8x128xf32>
    %cst_98 = arith.constant 5.000000e-01 : f32
    %223 = vector.broadcast %cst_98 : f32 to vector<8x128xf32>
    %224 = arith.mulf %223, %222 : vector<8x128xf32>
    %225 = math.tanh %224 : vector<8x128xf32>
    %cst_99 = arith.constant 5.000000e-01 : f32
    %226 = vector.broadcast %cst_99 : f32 to vector<8x128xf32>
    %227 = arith.mulf %226, %225 : vector<8x128xf32>
    %cst_100 = arith.constant 5.000000e-01 : f32
    %228 = vector.broadcast %cst_100 : f32 to vector<8x128xf32>
    %229 = arith.addf %227, %228 : vector<8x128xf32>
    %230 = arith.mulf %219, %156 : vector<8x128xf32>
    %231 = arith.mulf %211, %221 : vector<8x128xf32>
    %232 = arith.addf %230, %231 : vector<8x128xf32>
    %233 = math.tanh %232 : vector<8x128xf32>
    %234 = arith.mulf %229, %233 : vector<8x128xf32>
    %c0_101 = arith.constant 0 : index
    %c0_102 = arith.constant 0 : index
    %235 = vector.load %arg4[%c0_101, %c0_102] : memref<128x512xf32, #tpu.memory_space<vmem>>, vector<128x512xf32>
    %cst_103 = arith.constant dense<0.000000e+00> : vector<8x512xf32>
    %236 = tpu.matmul %158, %235, %cst_103 {dimension_numbers = #tpu.dot_dimension_numbers<[1], [0], [0], [1], [0, 0, 1, 1], [], []>} : vector<8x128xf32>, vector<128x512xf32>, vector<8x512xf32> -> vector<8x512xf32>
    %c0_104 = arith.constant 0 : index
    %c0_105 = arith.constant 0 : index
    %237 = vector.load %arg6[%c0_104, %c0_105] : memref<1x512xf32, #tpu.memory_space<vmem>>, vector<1x512xf32>
    %238 = vector.broadcast %237 : vector<1x512xf32> to vector<8x512xf32>
    %239 = arith.addf %236, %238 : vector<8x512xf32>
    %c0_106 = arith.constant 0 : index
    %c0_107 = arith.constant 0 : index
    %240 = vector.load %arg5[%c0_106, %c0_107] : memref<128x512xf32, #tpu.memory_space<vmem>>, vector<128x512xf32>
    %cst_108 = arith.constant dense<0.000000e+00> : vector<8x512xf32>
    %241 = tpu.matmul %197, %240, %cst_108 {dimension_numbers = #tpu.dot_dimension_numbers<[1], [0], [0], [1], [0, 0, 1, 1], [], []>} : vector<8x128xf32>, vector<128x512xf32>, vector<8x512xf32> -> vector<8x512xf32>
    %242 = arith.addf %239, %241 : vector<8x512xf32>
    %243 = vector.extract_strided_slice %242 {offsets = [0, 0], sizes = [8, 128], strides = [1, 1]} : vector<8x512xf32> to vector<8x128xf32>
    %cst_109 = arith.constant 5.000000e-01 : f32
    %244 = vector.broadcast %cst_109 : f32 to vector<8x128xf32>
    %245 = arith.mulf %244, %243 : vector<8x128xf32>
    %246 = math.tanh %245 : vector<8x128xf32>
    %cst_110 = arith.constant 5.000000e-01 : f32
    %247 = vector.broadcast %cst_110 : f32 to vector<8x128xf32>
    %248 = arith.mulf %247, %246 : vector<8x128xf32>
    %cst_111 = arith.constant 5.000000e-01 : f32
    %249 = vector.broadcast %cst_111 : f32 to vector<8x128xf32>
    %250 = arith.addf %248, %249 : vector<8x128xf32>
    %251 = vector.extract_strided_slice %242 {offsets = [0, 128], sizes = [8, 128], strides = [1, 1]} : vector<8x512xf32> to vector<8x128xf32>
    %cst_112 = arith.constant 5.000000e-01 : f32
    %252 = vector.broadcast %cst_112 : f32 to vector<8x128xf32>
    %253 = arith.mulf %252, %251 : vector<8x128xf32>
    %254 = math.tanh %253 : vector<8x128xf32>
    %cst_113 = arith.constant 5.000000e-01 : f32
    %255 = vector.broadcast %cst_113 : f32 to vector<8x128xf32>
    %256 = arith.mulf %255, %254 : vector<8x128xf32>
    %cst_114 = arith.constant 5.000000e-01 : f32
    %257 = vector.broadcast %cst_114 : f32 to vector<8x128xf32>
    %258 = arith.addf %256, %257 : vector<8x128xf32>
    %259 = vector.extract_strided_slice %242 {offsets = [0, 256], sizes = [8, 128], strides = [1, 1]} : vector<8x512xf32> to vector<8x128xf32>
    %260 = math.tanh %259 : vector<8x128xf32>
    %261 = vector.extract_strided_slice %242 {offsets = [0, 384], sizes = [8, 128], strides = [1, 1]} : vector<8x512xf32> to vector<8x128xf32>
    %cst_115 = arith.constant 5.000000e-01 : f32
    %262 = vector.broadcast %cst_115 : f32 to vector<8x128xf32>
    %263 = arith.mulf %262, %261 : vector<8x128xf32>
    %264 = math.tanh %263 : vector<8x128xf32>
    %cst_116 = arith.constant 5.000000e-01 : f32
    %265 = vector.broadcast %cst_116 : f32 to vector<8x128xf32>
    %266 = arith.mulf %265, %264 : vector<8x128xf32>
    %cst_117 = arith.constant 5.000000e-01 : f32
    %267 = vector.broadcast %cst_117 : f32 to vector<8x128xf32>
    %268 = arith.addf %266, %267 : vector<8x128xf32>
    %269 = arith.mulf %258, %195 : vector<8x128xf32>
    %270 = arith.mulf %250, %260 : vector<8x128xf32>
    %271 = arith.addf %269, %270 : vector<8x128xf32>
    %272 = math.tanh %271 : vector<8x128xf32>
    %273 = arith.mulf %268, %272 : vector<8x128xf32>
    %c4_i32 = arith.constant 4 : i32
    %274 = arith.index_cast %c4_i32 : i32 to index
    %c0_118 = arith.constant 0 : index
    %c0_119 = arith.constant 0 : index
    %275 = vector.load %arg10[%274, %c0_118, %c0_119] : memref<8x8x512xf32, #tpu.memory_space<vmem>>, vector<1x8x512xf32>
    %276 = vector.shape_cast %275 : vector<1x8x512xf32> to vector<8x512xf32>
    %c0_120 = arith.constant 0 : index
    %c0_121 = arith.constant 0 : index
    %277 = vector.load %arg2[%c0_120, %c0_121] : memref<128x512xf32, #tpu.memory_space<vmem>>, vector<128x512xf32>
    %cst_122 = arith.constant dense<0.000000e+00> : vector<8x512xf32>
    %278 = tpu.matmul %234, %277, %cst_122 {dimension_numbers = #tpu.dot_dimension_numbers<[1], [0], [0], [1], [0, 0, 1, 1], [], []>} : vector<8x128xf32>, vector<128x512xf32>, vector<8x512xf32> -> vector<8x512xf32>
    %279 = arith.addf %276, %278 : vector<8x512xf32>
    %280 = vector.extract_strided_slice %279 {offsets = [0, 0], sizes = [8, 128], strides = [1, 1]} : vector<8x512xf32> to vector<8x128xf32>
    %cst_123 = arith.constant 5.000000e-01 : f32
    %281 = vector.broadcast %cst_123 : f32 to vector<8x128xf32>
    %282 = arith.mulf %281, %280 : vector<8x128xf32>
    %283 = math.tanh %282 : vector<8x128xf32>
    %cst_124 = arith.constant 5.000000e-01 : f32
    %284 = vector.broadcast %cst_124 : f32 to vector<8x128xf32>
    %285 = arith.mulf %284, %283 : vector<8x128xf32>
    %cst_125 = arith.constant 5.000000e-01 : f32
    %286 = vector.broadcast %cst_125 : f32 to vector<8x128xf32>
    %287 = arith.addf %285, %286 : vector<8x128xf32>
    %288 = vector.extract_strided_slice %279 {offsets = [0, 128], sizes = [8, 128], strides = [1, 1]} : vector<8x512xf32> to vector<8x128xf32>
    %cst_126 = arith.constant 5.000000e-01 : f32
    %289 = vector.broadcast %cst_126 : f32 to vector<8x128xf32>
    %290 = arith.mulf %289, %288 : vector<8x128xf32>
    %291 = math.tanh %290 : vector<8x128xf32>
    %cst_127 = arith.constant 5.000000e-01 : f32
    %292 = vector.broadcast %cst_127 : f32 to vector<8x128xf32>
    %293 = arith.mulf %292, %291 : vector<8x128xf32>
    %cst_128 = arith.constant 5.000000e-01 : f32
    %294 = vector.broadcast %cst_128 : f32 to vector<8x128xf32>
    %295 = arith.addf %293, %294 : vector<8x128xf32>
    %296 = vector.extract_strided_slice %279 {offsets = [0, 256], sizes = [8, 128], strides = [1, 1]} : vector<8x512xf32> to vector<8x128xf32>
    %297 = math.tanh %296 : vector<8x128xf32>
    %298 = vector.extract_strided_slice %279 {offsets = [0, 384], sizes = [8, 128], strides = [1, 1]} : vector<8x512xf32> to vector<8x128xf32>
    %cst_129 = arith.constant 5.000000e-01 : f32
    %299 = vector.broadcast %cst_129 : f32 to vector<8x128xf32>
    %300 = arith.mulf %299, %298 : vector<8x128xf32>
    %301 = math.tanh %300 : vector<8x128xf32>
    %cst_130 = arith.constant 5.000000e-01 : f32
    %302 = vector.broadcast %cst_130 : f32 to vector<8x128xf32>
    %303 = arith.mulf %302, %301 : vector<8x128xf32>
    %cst_131 = arith.constant 5.000000e-01 : f32
    %304 = vector.broadcast %cst_131 : f32 to vector<8x128xf32>
    %305 = arith.addf %303, %304 : vector<8x128xf32>
    %306 = arith.mulf %295, %232 : vector<8x128xf32>
    %307 = arith.mulf %287, %297 : vector<8x128xf32>
    %308 = arith.addf %306, %307 : vector<8x128xf32>
    %309 = math.tanh %308 : vector<8x128xf32>
    %310 = arith.mulf %305, %309 : vector<8x128xf32>
    %c0_132 = arith.constant 0 : index
    %c0_133 = arith.constant 0 : index
    %311 = vector.load %arg4[%c0_132, %c0_133] : memref<128x512xf32, #tpu.memory_space<vmem>>, vector<128x512xf32>
    %cst_134 = arith.constant dense<0.000000e+00> : vector<8x512xf32>
    %312 = tpu.matmul %234, %311, %cst_134 {dimension_numbers = #tpu.dot_dimension_numbers<[1], [0], [0], [1], [0, 0, 1, 1], [], []>} : vector<8x128xf32>, vector<128x512xf32>, vector<8x512xf32> -> vector<8x512xf32>
    %c0_135 = arith.constant 0 : index
    %c0_136 = arith.constant 0 : index
    %313 = vector.load %arg6[%c0_135, %c0_136] : memref<1x512xf32, #tpu.memory_space<vmem>>, vector<1x512xf32>
    %314 = vector.broadcast %313 : vector<1x512xf32> to vector<8x512xf32>
    %315 = arith.addf %312, %314 : vector<8x512xf32>
    %c0_137 = arith.constant 0 : index
    %c0_138 = arith.constant 0 : index
    %316 = vector.load %arg5[%c0_137, %c0_138] : memref<128x512xf32, #tpu.memory_space<vmem>>, vector<128x512xf32>
    %cst_139 = arith.constant dense<0.000000e+00> : vector<8x512xf32>
    %317 = tpu.matmul %273, %316, %cst_139 {dimension_numbers = #tpu.dot_dimension_numbers<[1], [0], [0], [1], [0, 0, 1, 1], [], []>} : vector<8x128xf32>, vector<128x512xf32>, vector<8x512xf32> -> vector<8x512xf32>
    %318 = arith.addf %315, %317 : vector<8x512xf32>
    %319 = vector.extract_strided_slice %318 {offsets = [0, 0], sizes = [8, 128], strides = [1, 1]} : vector<8x512xf32> to vector<8x128xf32>
    %cst_140 = arith.constant 5.000000e-01 : f32
    %320 = vector.broadcast %cst_140 : f32 to vector<8x128xf32>
    %321 = arith.mulf %320, %319 : vector<8x128xf32>
    %322 = math.tanh %321 : vector<8x128xf32>
    %cst_141 = arith.constant 5.000000e-01 : f32
    %323 = vector.broadcast %cst_141 : f32 to vector<8x128xf32>
    %324 = arith.mulf %323, %322 : vector<8x128xf32>
    %cst_142 = arith.constant 5.000000e-01 : f32
    %325 = vector.broadcast %cst_142 : f32 to vector<8x128xf32>
    %326 = arith.addf %324, %325 : vector<8x128xf32>
    %327 = vector.extract_strided_slice %318 {offsets = [0, 128], sizes = [8, 128], strides = [1, 1]} : vector<8x512xf32> to vector<8x128xf32>
    %cst_143 = arith.constant 5.000000e-01 : f32
    %328 = vector.broadcast %cst_143 : f32 to vector<8x128xf32>
    %329 = arith.mulf %328, %327 : vector<8x128xf32>
    %330 = math.tanh %329 : vector<8x128xf32>
    %cst_144 = arith.constant 5.000000e-01 : f32
    %331 = vector.broadcast %cst_144 : f32 to vector<8x128xf32>
    %332 = arith.mulf %331, %330 : vector<8x128xf32>
    %cst_145 = arith.constant 5.000000e-01 : f32
    %333 = vector.broadcast %cst_145 : f32 to vector<8x128xf32>
    %334 = arith.addf %332, %333 : vector<8x128xf32>
    %335 = vector.extract_strided_slice %318 {offsets = [0, 256], sizes = [8, 128], strides = [1, 1]} : vector<8x512xf32> to vector<8x128xf32>
    %336 = math.tanh %335 : vector<8x128xf32>
    %337 = vector.extract_strided_slice %318 {offsets = [0, 384], sizes = [8, 128], strides = [1, 1]} : vector<8x512xf32> to vector<8x128xf32>
    %cst_146 = arith.constant 5.000000e-01 : f32
    %338 = vector.broadcast %cst_146 : f32 to vector<8x128xf32>
    %339 = arith.mulf %338, %337 : vector<8x128xf32>
    %340 = math.tanh %339 : vector<8x128xf32>
    %cst_147 = arith.constant 5.000000e-01 : f32
    %341 = vector.broadcast %cst_147 : f32 to vector<8x128xf32>
    %342 = arith.mulf %341, %340 : vector<8x128xf32>
    %cst_148 = arith.constant 5.000000e-01 : f32
    %343 = vector.broadcast %cst_148 : f32 to vector<8x128xf32>
    %344 = arith.addf %342, %343 : vector<8x128xf32>
    %345 = arith.mulf %334, %271 : vector<8x128xf32>
    %346 = arith.mulf %326, %336 : vector<8x128xf32>
    %347 = arith.addf %345, %346 : vector<8x128xf32>
    %348 = math.tanh %347 : vector<8x128xf32>
    %349 = arith.mulf %344, %348 : vector<8x128xf32>
    %c5_i32 = arith.constant 5 : i32
    %350 = arith.index_cast %c5_i32 : i32 to index
    %c0_149 = arith.constant 0 : index
    %c0_150 = arith.constant 0 : index
    %351 = vector.load %arg10[%350, %c0_149, %c0_150] : memref<8x8x512xf32, #tpu.memory_space<vmem>>, vector<1x8x512xf32>
    %352 = vector.shape_cast %351 : vector<1x8x512xf32> to vector<8x512xf32>
    %c0_151 = arith.constant 0 : index
    %c0_152 = arith.constant 0 : index
    %353 = vector.load %arg2[%c0_151, %c0_152] : memref<128x512xf32, #tpu.memory_space<vmem>>, vector<128x512xf32>
    %cst_153 = arith.constant dense<0.000000e+00> : vector<8x512xf32>
    %354 = tpu.matmul %310, %353, %cst_153 {dimension_numbers = #tpu.dot_dimension_numbers<[1], [0], [0], [1], [0, 0, 1, 1], [], []>} : vector<8x128xf32>, vector<128x512xf32>, vector<8x512xf32> -> vector<8x512xf32>
    %355 = arith.addf %352, %354 : vector<8x512xf32>
    %356 = vector.extract_strided_slice %355 {offsets = [0, 0], sizes = [8, 128], strides = [1, 1]} : vector<8x512xf32> to vector<8x128xf32>
    %cst_154 = arith.constant 5.000000e-01 : f32
    %357 = vector.broadcast %cst_154 : f32 to vector<8x128xf32>
    %358 = arith.mulf %357, %356 : vector<8x128xf32>
    %359 = math.tanh %358 : vector<8x128xf32>
    %cst_155 = arith.constant 5.000000e-01 : f32
    %360 = vector.broadcast %cst_155 : f32 to vector<8x128xf32>
    %361 = arith.mulf %360, %359 : vector<8x128xf32>
    %cst_156 = arith.constant 5.000000e-01 : f32
    %362 = vector.broadcast %cst_156 : f32 to vector<8x128xf32>
    %363 = arith.addf %361, %362 : vector<8x128xf32>
    %364 = vector.extract_strided_slice %355 {offsets = [0, 128], sizes = [8, 128], strides = [1, 1]} : vector<8x512xf32> to vector<8x128xf32>
    %cst_157 = arith.constant 5.000000e-01 : f32
    %365 = vector.broadcast %cst_157 : f32 to vector<8x128xf32>
    %366 = arith.mulf %365, %364 : vector<8x128xf32>
    %367 = math.tanh %366 : vector<8x128xf32>
    %cst_158 = arith.constant 5.000000e-01 : f32
    %368 = vector.broadcast %cst_158 : f32 to vector<8x128xf32>
    %369 = arith.mulf %368, %367 : vector<8x128xf32>
    %cst_159 = arith.constant 5.000000e-01 : f32
    %370 = vector.broadcast %cst_159 : f32 to vector<8x128xf32>
    %371 = arith.addf %369, %370 : vector<8x128xf32>
    %372 = vector.extract_strided_slice %355 {offsets = [0, 256], sizes = [8, 128], strides = [1, 1]} : vector<8x512xf32> to vector<8x128xf32>
    %373 = math.tanh %372 : vector<8x128xf32>
    %374 = vector.extract_strided_slice %355 {offsets = [0, 384], sizes = [8, 128], strides = [1, 1]} : vector<8x512xf32> to vector<8x128xf32>
    %cst_160 = arith.constant 5.000000e-01 : f32
    %375 = vector.broadcast %cst_160 : f32 to vector<8x128xf32>
    %376 = arith.mulf %375, %374 : vector<8x128xf32>
    %377 = math.tanh %376 : vector<8x128xf32>
    %cst_161 = arith.constant 5.000000e-01 : f32
    %378 = vector.broadcast %cst_161 : f32 to vector<8x128xf32>
    %379 = arith.mulf %378, %377 : vector<8x128xf32>
    %cst_162 = arith.constant 5.000000e-01 : f32
    %380 = vector.broadcast %cst_162 : f32 to vector<8x128xf32>
    %381 = arith.addf %379, %380 : vector<8x128xf32>
    %382 = arith.mulf %371, %308 : vector<8x128xf32>
    %383 = arith.mulf %363, %373 : vector<8x128xf32>
    %384 = arith.addf %382, %383 : vector<8x128xf32>
    %385 = math.tanh %384 : vector<8x128xf32>
    %386 = arith.mulf %381, %385 : vector<8x128xf32>
    %c0_163 = arith.constant 0 : index
    %c0_164 = arith.constant 0 : index
    %387 = vector.load %arg4[%c0_163, %c0_164] : memref<128x512xf32, #tpu.memory_space<vmem>>, vector<128x512xf32>
    %cst_165 = arith.constant dense<0.000000e+00> : vector<8x512xf32>
    %388 = tpu.matmul %310, %387, %cst_165 {dimension_numbers = #tpu.dot_dimension_numbers<[1], [0], [0], [1], [0, 0, 1, 1], [], []>} : vector<8x128xf32>, vector<128x512xf32>, vector<8x512xf32> -> vector<8x512xf32>
    %c0_166 = arith.constant 0 : index
    %c0_167 = arith.constant 0 : index
    %389 = vector.load %arg6[%c0_166, %c0_167] : memref<1x512xf32, #tpu.memory_space<vmem>>, vector<1x512xf32>
    %390 = vector.broadcast %389 : vector<1x512xf32> to vector<8x512xf32>
    %391 = arith.addf %388, %390 : vector<8x512xf32>
    %c0_168 = arith.constant 0 : index
    %c0_169 = arith.constant 0 : index
    %392 = vector.load %arg5[%c0_168, %c0_169] : memref<128x512xf32, #tpu.memory_space<vmem>>, vector<128x512xf32>
    %cst_170 = arith.constant dense<0.000000e+00> : vector<8x512xf32>
    %393 = tpu.matmul %349, %392, %cst_170 {dimension_numbers = #tpu.dot_dimension_numbers<[1], [0], [0], [1], [0, 0, 1, 1], [], []>} : vector<8x128xf32>, vector<128x512xf32>, vector<8x512xf32> -> vector<8x512xf32>
    %394 = arith.addf %391, %393 : vector<8x512xf32>
    %395 = vector.extract_strided_slice %394 {offsets = [0, 0], sizes = [8, 128], strides = [1, 1]} : vector<8x512xf32> to vector<8x128xf32>
    %cst_171 = arith.constant 5.000000e-01 : f32
    %396 = vector.broadcast %cst_171 : f32 to vector<8x128xf32>
    %397 = arith.mulf %396, %395 : vector<8x128xf32>
    %398 = math.tanh %397 : vector<8x128xf32>
    %cst_172 = arith.constant 5.000000e-01 : f32
    %399 = vector.broadcast %cst_172 : f32 to vector<8x128xf32>
    %400 = arith.mulf %399, %398 : vector<8x128xf32>
    %cst_173 = arith.constant 5.000000e-01 : f32
    %401 = vector.broadcast %cst_173 : f32 to vector<8x128xf32>
    %402 = arith.addf %400, %401 : vector<8x128xf32>
    %403 = vector.extract_strided_slice %394 {offsets = [0, 128], sizes = [8, 128], strides = [1, 1]} : vector<8x512xf32> to vector<8x128xf32>
    %cst_174 = arith.constant 5.000000e-01 : f32
    %404 = vector.broadcast %cst_174 : f32 to vector<8x128xf32>
    %405 = arith.mulf %404, %403 : vector<8x128xf32>
    %406 = math.tanh %405 : vector<8x128xf32>
    %cst_175 = arith.constant 5.000000e-01 : f32
    %407 = vector.broadcast %cst_175 : f32 to vector<8x128xf32>
    %408 = arith.mulf %407, %406 : vector<8x128xf32>
    %cst_176 = arith.constant 5.000000e-01 : f32
    %409 = vector.broadcast %cst_176 : f32 to vector<8x128xf32>
    %410 = arith.addf %408, %409 : vector<8x128xf32>
    %411 = vector.extract_strided_slice %394 {offsets = [0, 256], sizes = [8, 128], strides = [1, 1]} : vector<8x512xf32> to vector<8x128xf32>
    %412 = math.tanh %411 : vector<8x128xf32>
    %413 = vector.extract_strided_slice %394 {offsets = [0, 384], sizes = [8, 128], strides = [1, 1]} : vector<8x512xf32> to vector<8x128xf32>
    %cst_177 = arith.constant 5.000000e-01 : f32
    %414 = vector.broadcast %cst_177 : f32 to vector<8x128xf32>
    %415 = arith.mulf %414, %413 : vector<8x128xf32>
    %416 = math.tanh %415 : vector<8x128xf32>
    %cst_178 = arith.constant 5.000000e-01 : f32
    %417 = vector.broadcast %cst_178 : f32 to vector<8x128xf32>
    %418 = arith.mulf %417, %416 : vector<8x128xf32>
    %cst_179 = arith.constant 5.000000e-01 : f32
    %419 = vector.broadcast %cst_179 : f32 to vector<8x128xf32>
    %420 = arith.addf %418, %419 : vector<8x128xf32>
    %421 = arith.mulf %410, %347 : vector<8x128xf32>
    %422 = arith.mulf %402, %412 : vector<8x128xf32>
    %423 = arith.addf %421, %422 : vector<8x128xf32>
    %424 = math.tanh %423 : vector<8x128xf32>
    %425 = arith.mulf %420, %424 : vector<8x128xf32>
    %c6_i32 = arith.constant 6 : i32
    %426 = arith.index_cast %c6_i32 : i32 to index
    %c0_180 = arith.constant 0 : index
    %c0_181 = arith.constant 0 : index
    %427 = vector.load %arg10[%426, %c0_180, %c0_181] : memref<8x8x512xf32, #tpu.memory_space<vmem>>, vector<1x8x512xf32>
    %428 = vector.shape_cast %427 : vector<1x8x512xf32> to vector<8x512xf32>
    %c0_182 = arith.constant 0 : index
    %c0_183 = arith.constant 0 : index
    %429 = vector.load %arg2[%c0_182, %c0_183] : memref<128x512xf32, #tpu.memory_space<vmem>>, vector<128x512xf32>
    %cst_184 = arith.constant dense<0.000000e+00> : vector<8x512xf32>
    %430 = tpu.matmul %386, %429, %cst_184 {dimension_numbers = #tpu.dot_dimension_numbers<[1], [0], [0], [1], [0, 0, 1, 1], [], []>} : vector<8x128xf32>, vector<128x512xf32>, vector<8x512xf32> -> vector<8x512xf32>
    %431 = arith.addf %428, %430 : vector<8x512xf32>
    %432 = vector.extract_strided_slice %431 {offsets = [0, 0], sizes = [8, 128], strides = [1, 1]} : vector<8x512xf32> to vector<8x128xf32>
    %cst_185 = arith.constant 5.000000e-01 : f32
    %433 = vector.broadcast %cst_185 : f32 to vector<8x128xf32>
    %434 = arith.mulf %433, %432 : vector<8x128xf32>
    %435 = math.tanh %434 : vector<8x128xf32>
    %cst_186 = arith.constant 5.000000e-01 : f32
    %436 = vector.broadcast %cst_186 : f32 to vector<8x128xf32>
    %437 = arith.mulf %436, %435 : vector<8x128xf32>
    %cst_187 = arith.constant 5.000000e-01 : f32
    %438 = vector.broadcast %cst_187 : f32 to vector<8x128xf32>
    %439 = arith.addf %437, %438 : vector<8x128xf32>
    %440 = vector.extract_strided_slice %431 {offsets = [0, 128], sizes = [8, 128], strides = [1, 1]} : vector<8x512xf32> to vector<8x128xf32>
    %cst_188 = arith.constant 5.000000e-01 : f32
    %441 = vector.broadcast %cst_188 : f32 to vector<8x128xf32>
    %442 = arith.mulf %441, %440 : vector<8x128xf32>
    %443 = math.tanh %442 : vector<8x128xf32>
    %cst_189 = arith.constant 5.000000e-01 : f32
    %444 = vector.broadcast %cst_189 : f32 to vector<8x128xf32>
    %445 = arith.mulf %444, %443 : vector<8x128xf32>
    %cst_190 = arith.constant 5.000000e-01 : f32
    %446 = vector.broadcast %cst_190 : f32 to vector<8x128xf32>
    %447 = arith.addf %445, %446 : vector<8x128xf32>
    %448 = vector.extract_strided_slice %431 {offsets = [0, 256], sizes = [8, 128], strides = [1, 1]} : vector<8x512xf32> to vector<8x128xf32>
    %449 = math.tanh %448 : vector<8x128xf32>
    %450 = vector.extract_strided_slice %431 {offsets = [0, 384], sizes = [8, 128], strides = [1, 1]} : vector<8x512xf32> to vector<8x128xf32>
    %cst_191 = arith.constant 5.000000e-01 : f32
    %451 = vector.broadcast %cst_191 : f32 to vector<8x128xf32>
    %452 = arith.mulf %451, %450 : vector<8x128xf32>
    %453 = math.tanh %452 : vector<8x128xf32>
    %cst_192 = arith.constant 5.000000e-01 : f32
    %454 = vector.broadcast %cst_192 : f32 to vector<8x128xf32>
    %455 = arith.mulf %454, %453 : vector<8x128xf32>
    %cst_193 = arith.constant 5.000000e-01 : f32
    %456 = vector.broadcast %cst_193 : f32 to vector<8x128xf32>
    %457 = arith.addf %455, %456 : vector<8x128xf32>
    %458 = arith.mulf %447, %384 : vector<8x128xf32>
    %459 = arith.mulf %439, %449 : vector<8x128xf32>
    %460 = arith.addf %458, %459 : vector<8x128xf32>
    %461 = math.tanh %460 : vector<8x128xf32>
    %462 = arith.mulf %457, %461 : vector<8x128xf32>
    %c0_194 = arith.constant 0 : index
    %c0_195 = arith.constant 0 : index
    %463 = vector.load %arg4[%c0_194, %c0_195] : memref<128x512xf32, #tpu.memory_space<vmem>>, vector<128x512xf32>
    %cst_196 = arith.constant dense<0.000000e+00> : vector<8x512xf32>
    %464 = tpu.matmul %386, %463, %cst_196 {dimension_numbers = #tpu.dot_dimension_numbers<[1], [0], [0], [1], [0, 0, 1, 1], [], []>} : vector<8x128xf32>, vector<128x512xf32>, vector<8x512xf32> -> vector<8x512xf32>
    %c0_197 = arith.constant 0 : index
    %c0_198 = arith.constant 0 : index
    %465 = vector.load %arg6[%c0_197, %c0_198] : memref<1x512xf32, #tpu.memory_space<vmem>>, vector<1x512xf32>
    %466 = vector.broadcast %465 : vector<1x512xf32> to vector<8x512xf32>
    %467 = arith.addf %464, %466 : vector<8x512xf32>
    %c0_199 = arith.constant 0 : index
    %c0_200 = arith.constant 0 : index
    %468 = vector.load %arg5[%c0_199, %c0_200] : memref<128x512xf32, #tpu.memory_space<vmem>>, vector<128x512xf32>
    %cst_201 = arith.constant dense<0.000000e+00> : vector<8x512xf32>
    %469 = tpu.matmul %425, %468, %cst_201 {dimension_numbers = #tpu.dot_dimension_numbers<[1], [0], [0], [1], [0, 0, 1, 1], [], []>} : vector<8x128xf32>, vector<128x512xf32>, vector<8x512xf32> -> vector<8x512xf32>
    %470 = arith.addf %467, %469 : vector<8x512xf32>
    %471 = vector.extract_strided_slice %470 {offsets = [0, 0], sizes = [8, 128], strides = [1, 1]} : vector<8x512xf32> to vector<8x128xf32>
    %cst_202 = arith.constant 5.000000e-01 : f32
    %472 = vector.broadcast %cst_202 : f32 to vector<8x128xf32>
    %473 = arith.mulf %472, %471 : vector<8x128xf32>
    %474 = math.tanh %473 : vector<8x128xf32>
    %cst_203 = arith.constant 5.000000e-01 : f32
    %475 = vector.broadcast %cst_203 : f32 to vector<8x128xf32>
    %476 = arith.mulf %475, %474 : vector<8x128xf32>
    %cst_204 = arith.constant 5.000000e-01 : f32
    %477 = vector.broadcast %cst_204 : f32 to vector<8x128xf32>
    %478 = arith.addf %476, %477 : vector<8x128xf32>
    %479 = vector.extract_strided_slice %470 {offsets = [0, 128], sizes = [8, 128], strides = [1, 1]} : vector<8x512xf32> to vector<8x128xf32>
    %cst_205 = arith.constant 5.000000e-01 : f32
    %480 = vector.broadcast %cst_205 : f32 to vector<8x128xf32>
    %481 = arith.mulf %480, %479 : vector<8x128xf32>
    %482 = math.tanh %481 : vector<8x128xf32>
    %cst_206 = arith.constant 5.000000e-01 : f32
    %483 = vector.broadcast %cst_206 : f32 to vector<8x128xf32>
    %484 = arith.mulf %483, %482 : vector<8x128xf32>
    %cst_207 = arith.constant 5.000000e-01 : f32
    %485 = vector.broadcast %cst_207 : f32 to vector<8x128xf32>
    %486 = arith.addf %484, %485 : vector<8x128xf32>
    %487 = vector.extract_strided_slice %470 {offsets = [0, 256], sizes = [8, 128], strides = [1, 1]} : vector<8x512xf32> to vector<8x128xf32>
    %488 = math.tanh %487 : vector<8x128xf32>
    %489 = vector.extract_strided_slice %470 {offsets = [0, 384], sizes = [8, 128], strides = [1, 1]} : vector<8x512xf32> to vector<8x128xf32>
    %cst_208 = arith.constant 5.000000e-01 : f32
    %490 = vector.broadcast %cst_208 : f32 to vector<8x128xf32>
    %491 = arith.mulf %490, %489 : vector<8x128xf32>
    %492 = math.tanh %491 : vector<8x128xf32>
    %cst_209 = arith.constant 5.000000e-01 : f32
    %493 = vector.broadcast %cst_209 : f32 to vector<8x128xf32>
    %494 = arith.mulf %493, %492 : vector<8x128xf32>
    %cst_210 = arith.constant 5.000000e-01 : f32
    %495 = vector.broadcast %cst_210 : f32 to vector<8x128xf32>
    %496 = arith.addf %494, %495 : vector<8x128xf32>
    %497 = arith.mulf %486, %423 : vector<8x128xf32>
    %498 = arith.mulf %478, %488 : vector<8x128xf32>
    %499 = arith.addf %497, %498 : vector<8x128xf32>
    %500 = math.tanh %499 : vector<8x128xf32>
    %501 = arith.mulf %496, %500 : vector<8x128xf32>
    %c7_i32 = arith.constant 7 : i32
    %502 = arith.index_cast %c7_i32 : i32 to index
    %c0_211 = arith.constant 0 : index
    %c0_212 = arith.constant 0 : index
    %503 = vector.load %arg10[%502, %c0_211, %c0_212] : memref<8x8x512xf32, #tpu.memory_space<vmem>>, vector<1x8x512xf32>
    %504 = vector.shape_cast %503 : vector<1x8x512xf32> to vector<8x512xf32>
    %c0_213 = arith.constant 0 : index
    %c0_214 = arith.constant 0 : index
    %505 = vector.load %arg2[%c0_213, %c0_214] : memref<128x512xf32, #tpu.memory_space<vmem>>, vector<128x512xf32>
    %cst_215 = arith.constant dense<0.000000e+00> : vector<8x512xf32>
    %506 = tpu.matmul %462, %505, %cst_215 {dimension_numbers = #tpu.dot_dimension_numbers<[1], [0], [0], [1], [0, 0, 1, 1], [], []>} : vector<8x128xf32>, vector<128x512xf32>, vector<8x512xf32> -> vector<8x512xf32>
    %507 = arith.addf %504, %506 : vector<8x512xf32>
    %508 = vector.extract_strided_slice %507 {offsets = [0, 0], sizes = [8, 128], strides = [1, 1]} : vector<8x512xf32> to vector<8x128xf32>
    %cst_216 = arith.constant 5.000000e-01 : f32
    %509 = vector.broadcast %cst_216 : f32 to vector<8x128xf32>
    %510 = arith.mulf %509, %508 : vector<8x128xf32>
    %511 = math.tanh %510 : vector<8x128xf32>
    %cst_217 = arith.constant 5.000000e-01 : f32
    %512 = vector.broadcast %cst_217 : f32 to vector<8x128xf32>
    %513 = arith.mulf %512, %511 : vector<8x128xf32>
    %cst_218 = arith.constant 5.000000e-01 : f32
    %514 = vector.broadcast %cst_218 : f32 to vector<8x128xf32>
    %515 = arith.addf %513, %514 : vector<8x128xf32>
    %516 = vector.extract_strided_slice %507 {offsets = [0, 128], sizes = [8, 128], strides = [1, 1]} : vector<8x512xf32> to vector<8x128xf32>
    %cst_219 = arith.constant 5.000000e-01 : f32
    %517 = vector.broadcast %cst_219 : f32 to vector<8x128xf32>
    %518 = arith.mulf %517, %516 : vector<8x128xf32>
    %519 = math.tanh %518 : vector<8x128xf32>
    %cst_220 = arith.constant 5.000000e-01 : f32
    %520 = vector.broadcast %cst_220 : f32 to vector<8x128xf32>
    %521 = arith.mulf %520, %519 : vector<8x128xf32>
    %cst_221 = arith.constant 5.000000e-01 : f32
    %522 = vector.broadcast %cst_221 : f32 to vector<8x128xf32>
    %523 = arith.addf %521, %522 : vector<8x128xf32>
    %524 = vector.extract_strided_slice %507 {offsets = [0, 256], sizes = [8, 128], strides = [1, 1]} : vector<8x512xf32> to vector<8x128xf32>
    %525 = math.tanh %524 : vector<8x128xf32>
    %526 = vector.extract_strided_slice %507 {offsets = [0, 384], sizes = [8, 128], strides = [1, 1]} : vector<8x512xf32> to vector<8x128xf32>
    %cst_222 = arith.constant 5.000000e-01 : f32
    %527 = vector.broadcast %cst_222 : f32 to vector<8x128xf32>
    %528 = arith.mulf %527, %526 : vector<8x128xf32>
    %529 = math.tanh %528 : vector<8x128xf32>
    %cst_223 = arith.constant 5.000000e-01 : f32
    %530 = vector.broadcast %cst_223 : f32 to vector<8x128xf32>
    %531 = arith.mulf %530, %529 : vector<8x128xf32>
    %cst_224 = arith.constant 5.000000e-01 : f32
    %532 = vector.broadcast %cst_224 : f32 to vector<8x128xf32>
    %533 = arith.addf %531, %532 : vector<8x128xf32>
    %534 = arith.mulf %523, %460 : vector<8x128xf32>
    %535 = arith.mulf %515, %525 : vector<8x128xf32>
    %536 = arith.addf %534, %535 : vector<8x128xf32>
    %537 = math.tanh %536 : vector<8x128xf32>
    %538 = arith.mulf %533, %537 : vector<8x128xf32>
    %c0_225 = arith.constant 0 : index
    %c0_226 = arith.constant 0 : index
    %539 = vector.load %arg4[%c0_225, %c0_226] : memref<128x512xf32, #tpu.memory_space<vmem>>, vector<128x512xf32>
    %cst_227 = arith.constant dense<0.000000e+00> : vector<8x512xf32>
    %540 = tpu.matmul %462, %539, %cst_227 {dimension_numbers = #tpu.dot_dimension_numbers<[1], [0], [0], [1], [0, 0, 1, 1], [], []>} : vector<8x128xf32>, vector<128x512xf32>, vector<8x512xf32> -> vector<8x512xf32>
    %c0_228 = arith.constant 0 : index
    %c0_229 = arith.constant 0 : index
    %541 = vector.load %arg6[%c0_228, %c0_229] : memref<1x512xf32, #tpu.memory_space<vmem>>, vector<1x512xf32>
    %542 = vector.broadcast %541 : vector<1x512xf32> to vector<8x512xf32>
    %543 = arith.addf %540, %542 : vector<8x512xf32>
    %c0_230 = arith.constant 0 : index
    %c0_231 = arith.constant 0 : index
    %544 = vector.load %arg5[%c0_230, %c0_231] : memref<128x512xf32, #tpu.memory_space<vmem>>, vector<128x512xf32>
    %cst_232 = arith.constant dense<0.000000e+00> : vector<8x512xf32>
    %545 = tpu.matmul %501, %544, %cst_232 {dimension_numbers = #tpu.dot_dimension_numbers<[1], [0], [0], [1], [0, 0, 1, 1], [], []>} : vector<8x128xf32>, vector<128x512xf32>, vector<8x512xf32> -> vector<8x512xf32>
    %546 = arith.addf %543, %545 : vector<8x512xf32>
    %547 = vector.extract_strided_slice %546 {offsets = [0, 0], sizes = [8, 128], strides = [1, 1]} : vector<8x512xf32> to vector<8x128xf32>
    %cst_233 = arith.constant 5.000000e-01 : f32
    %548 = vector.broadcast %cst_233 : f32 to vector<8x128xf32>
    %549 = arith.mulf %548, %547 : vector<8x128xf32>
    %550 = math.tanh %549 : vector<8x128xf32>
    %cst_234 = arith.constant 5.000000e-01 : f32
    %551 = vector.broadcast %cst_234 : f32 to vector<8x128xf32>
    %552 = arith.mulf %551, %550 : vector<8x128xf32>
    %cst_235 = arith.constant 5.000000e-01 : f32
    %553 = vector.broadcast %cst_235 : f32 to vector<8x128xf32>
    %554 = arith.addf %552, %553 : vector<8x128xf32>
    %555 = vector.extract_strided_slice %546 {offsets = [0, 128], sizes = [8, 128], strides = [1, 1]} : vector<8x512xf32> to vector<8x128xf32>
    %cst_236 = arith.constant 5.000000e-01 : f32
    %556 = vector.broadcast %cst_236 : f32 to vector<8x128xf32>
    %557 = arith.mulf %556, %555 : vector<8x128xf32>
    %558 = math.tanh %557 : vector<8x128xf32>
    %cst_237 = arith.constant 5.000000e-01 : f32
    %559 = vector.broadcast %cst_237 : f32 to vector<8x128xf32>
    %560 = arith.mulf %559, %558 : vector<8x128xf32>
    %cst_238 = arith.constant 5.000000e-01 : f32
    %561 = vector.broadcast %cst_238 : f32 to vector<8x128xf32>
    %562 = arith.addf %560, %561 : vector<8x128xf32>
    %563 = vector.extract_strided_slice %546 {offsets = [0, 256], sizes = [8, 128], strides = [1, 1]} : vector<8x512xf32> to vector<8x128xf32>
    %564 = math.tanh %563 : vector<8x128xf32>
    %565 = vector.extract_strided_slice %546 {offsets = [0, 384], sizes = [8, 128], strides = [1, 1]} : vector<8x512xf32> to vector<8x128xf32>
    %cst_239 = arith.constant 5.000000e-01 : f32
    %566 = vector.broadcast %cst_239 : f32 to vector<8x128xf32>
    %567 = arith.mulf %566, %565 : vector<8x128xf32>
    %568 = math.tanh %567 : vector<8x128xf32>
    %cst_240 = arith.constant 5.000000e-01 : f32
    %569 = vector.broadcast %cst_240 : f32 to vector<8x128xf32>
    %570 = arith.mulf %569, %568 : vector<8x128xf32>
    %cst_241 = arith.constant 5.000000e-01 : f32
    %571 = vector.broadcast %cst_241 : f32 to vector<8x128xf32>
    %572 = arith.addf %570, %571 : vector<8x128xf32>
    %573 = arith.mulf %562, %499 : vector<8x128xf32>
    %574 = arith.mulf %554, %564 : vector<8x128xf32>
    %575 = arith.addf %573, %574 : vector<8x128xf32>
    %576 = math.tanh %575 : vector<8x128xf32>
    %577 = arith.mulf %572, %576 : vector<8x128xf32>
    %c7_i32_242 = arith.constant 7 : i32
    %c0_243 = arith.constant 0 : index
    %c0_244 = arith.constant 0 : index
    %578 = vector.load %arg4[%c0_243, %c0_244] : memref<128x512xf32, #tpu.memory_space<vmem>>, vector<128x512xf32>
    %cst_245 = arith.constant dense<0.000000e+00> : vector<8x512xf32>
    %579 = tpu.matmul %538, %578, %cst_245 {dimension_numbers = #tpu.dot_dimension_numbers<[1], [0], [0], [1], [0, 0, 1, 1], [], []>} : vector<8x128xf32>, vector<128x512xf32>, vector<8x512xf32> -> vector<8x512xf32>
    %c0_246 = arith.constant 0 : index
    %c0_247 = arith.constant 0 : index
    %580 = vector.load %arg6[%c0_246, %c0_247] : memref<1x512xf32, #tpu.memory_space<vmem>>, vector<1x512xf32>
    %581 = vector.broadcast %580 : vector<1x512xf32> to vector<8x512xf32>
    %582 = arith.addf %579, %581 : vector<8x512xf32>
    %c0_248 = arith.constant 0 : index
    %c0_249 = arith.constant 0 : index
    %583 = vector.load %arg5[%c0_248, %c0_249] : memref<128x512xf32, #tpu.memory_space<vmem>>, vector<128x512xf32>
    %cst_250 = arith.constant dense<0.000000e+00> : vector<8x512xf32>
    %584 = tpu.matmul %577, %583, %cst_250 {dimension_numbers = #tpu.dot_dimension_numbers<[1], [0], [0], [1], [0, 0, 1, 1], [], []>} : vector<8x128xf32>, vector<128x512xf32>, vector<8x512xf32> -> vector<8x512xf32>
    %585 = arith.addf %582, %584 : vector<8x512xf32>
    %586 = vector.extract_strided_slice %585 {offsets = [0, 0], sizes = [8, 128], strides = [1, 1]} : vector<8x512xf32> to vector<8x128xf32>
    %cst_251 = arith.constant 5.000000e-01 : f32
    %587 = vector.broadcast %cst_251 : f32 to vector<8x128xf32>
    %588 = arith.mulf %587, %586 : vector<8x128xf32>
    %589 = math.tanh %588 : vector<8x128xf32>
    %cst_252 = arith.constant 5.000000e-01 : f32
    %590 = vector.broadcast %cst_252 : f32 to vector<8x128xf32>
    %591 = arith.mulf %590, %589 : vector<8x128xf32>
    %cst_253 = arith.constant 5.000000e-01 : f32
    %592 = vector.broadcast %cst_253 : f32 to vector<8x128xf32>
    %593 = arith.addf %591, %592 : vector<8x128xf32>
    %594 = vector.extract_strided_slice %585 {offsets = [0, 128], sizes = [8, 128], strides = [1, 1]} : vector<8x512xf32> to vector<8x128xf32>
    %cst_254 = arith.constant 5.000000e-01 : f32
    %595 = vector.broadcast %cst_254 : f32 to vector<8x128xf32>
    %596 = arith.mulf %595, %594 : vector<8x128xf32>
    %597 = math.tanh %596 : vector<8x128xf32>
    %cst_255 = arith.constant 5.000000e-01 : f32
    %598 = vector.broadcast %cst_255 : f32 to vector<8x128xf32>
    %599 = arith.mulf %598, %597 : vector<8x128xf32>
    %cst_256 = arith.constant 5.000000e-01 : f32
    %600 = vector.broadcast %cst_256 : f32 to vector<8x128xf32>
    %601 = arith.addf %599, %600 : vector<8x128xf32>
    %602 = vector.extract_strided_slice %585 {offsets = [0, 256], sizes = [8, 128], strides = [1, 1]} : vector<8x512xf32> to vector<8x128xf32>
    %603 = math.tanh %602 : vector<8x128xf32>
    %604 = vector.extract_strided_slice %585 {offsets = [0, 384], sizes = [8, 128], strides = [1, 1]} : vector<8x512xf32> to vector<8x128xf32>
    %cst_257 = arith.constant 5.000000e-01 : f32
    %605 = vector.broadcast %cst_257 : f32 to vector<8x128xf32>
    %606 = arith.mulf %605, %604 : vector<8x128xf32>
    %607 = math.tanh %606 : vector<8x128xf32>
    %cst_258 = arith.constant 5.000000e-01 : f32
    %608 = vector.broadcast %cst_258 : f32 to vector<8x128xf32>
    %609 = arith.mulf %608, %607 : vector<8x128xf32>
    %cst_259 = arith.constant 5.000000e-01 : f32
    %610 = vector.broadcast %cst_259 : f32 to vector<8x128xf32>
    %611 = arith.addf %609, %610 : vector<8x128xf32>
    %612 = arith.mulf %601, %575 : vector<8x128xf32>
    %613 = arith.mulf %593, %603 : vector<8x128xf32>
    %614 = arith.addf %612, %613 : vector<8x128xf32>
    %615 = math.tanh %614 : vector<8x128xf32>
    %616 = arith.mulf %611, %615 : vector<8x128xf32>
    %c0_260 = arith.constant 0 : index
    %c0_261 = arith.constant 0 : index
    %617 = vector.load %arg7[%c0_260, %c0_261] : memref<128x1xf32, #tpu.memory_space<vmem>>, vector<128x1xf32>
    %cst_262 = arith.constant dense<0.000000e+00> : vector<8x1xf32>
    %618 = tpu.matmul %616, %617, %cst_262 {dimension_numbers = #tpu.dot_dimension_numbers<[1], [0], [0], [1], [0, 0, 1, 1], [], []>} : vector<8x128xf32>, vector<128x1xf32>, vector<8x1xf32> -> vector<8x1xf32>
    %c0_263 = arith.constant 0 : index
    %c0_264 = arith.constant 0 : index
    %619 = vector.load %arg8[%c0_263, %c0_264] : memref<1x1xf32, #tpu.memory_space<vmem>>, vector<1x1xf32>
    %620 = vector.broadcast %619 : vector<1x1xf32> to vector<8x1xf32>
    %621 = arith.addf %618, %620 : vector<8x1xf32>
    %c0_265 = arith.constant 0 : index
    %c0_266 = arith.constant 0 : index
    %622 = vector.load %arg9[%c0_265, %c0_266] : memref<8x1xf32, #tpu.memory_space<vmem>>, vector<8x1xf32>
    tpu.vector_store %arg9[%c0_265, %c0_266], %621 {strides = array<i32>} : memref<8x1xf32, #tpu.memory_space<vmem>>, vector<8x1xf32>,
    return
  }
}

</mosaic_0001>

<bundles_post_ra>
// kernel: lstm_forecast_forward.1
= control target key start
LH: loop header
LB: loop body
LE: loop exit
PB: predicated region body
PF: predicated region fallthrough
CT: control target
= control target key end

     0   :  { %s8990_s0 = inlined_call_operand.vmem [shape: f32[64,8], index: 0, kind: input, shape index: {}]   ;;  %s8991_s1 = inlined_call_operand.vmem [shape: f32[8,512], index: 1, kind: input, shape index: {}]   ;;  %s8992_s2 = inlined_call_operand.hbm [shape: f32[128,512], index: 2, kind: input, shape index: {}]   ;;  %s8993_s3 = inlined_call_operand.vmem [shape: f32[1,512], index: 3, kind: input, shape index: {}]   ;;  %s8994_s4 = inlined_call_operand.hbm [shape: f32[128,512], index: 4, kind: input, shape index: {}]   ;;  %s8995_s5 = inlined_call_operand.hbm [shape: f32[128,512], index: 5, kind: input, shape index: {}]   ;;  %s8996_s6 = inlined_call_operand.vmem [shape: f32[1,512], index: 6, kind: input, shape index: {}]   ;;  %s8997_s7 = inlined_call_operand.vmem [shape: f32[128,1], index: 7, kind: input, shape index: {}]   ;;  %s8998_s8 = inlined_call_operand.<no memory space> [shape: f32[1,1], index: 8, kind: input, shape index: {}]   ;;  %s8999_s9 = inlined_call_operand.vmem [shape: f32[8,1], index: 9, kind: output, shape index: {}]  }
   0x1   :  { %v14_v0 = vstv %s8998_s8 }
   0x2   :  { %15 = vst [vmem:[#allocation3] sm:$0x1] %v14_v0 }
   0x3   :  { %16 = vsyncpa [#allocation5], 0 }
   0x4   :  { %17 = vsyncpa [#allocation7], 0  ;;  %s5382_s11 = smov [#allocation6]   ;;  %s5383_s13 = smov [#allocation4]  }
   0x5   :  { %s41_s12 = sshll.u32 %s5382_s11, 4  ;;  %s27_s14 = sshll.u32 %s5383_s13, 4  ;;  %s42_s12 = int_to_ptr.vmem [resolvable:$true] %s41_s12  ;;  %s28_s14 = int_to_ptr.vmem [resolvable:$true] %s27_s14 }
   0x6   :  { %s5326_s15 = scalar_lea.vmem %s42_s12, 8192  ;;  %p5331_p1 = scmp.lt.s32.totalorder %s42_s12, %s42_s12 }
   0x7   :  { %p5327_p0 = scmp.ne.s32.totalorder %s42_s12, %s5326_s15  ;;  %p5332_p2 = scmp.lt.s32.totalorder %s5326_s15, %s5326_s15 }
   0x9   :  { %p5333_p3 = por %p5332_p2, %p5331_p1 }
   0xb   :  { %p5334_p4 = pnand %p5333_p3, %p5327_p0 }
   0xd   :  { %5337 = shalt.err (!%p5334_p4)
}
   0xe   :  { %s5384_s16 = smov 512   ;;  %s5385_s17 = smov 32  }
   0xf   :  { %47 = dma.hbm_to_vmem [thread:$0]  %s8994_s4, 8192, %s42_s12, [#allocation7], %s5384_s16, %s5384_s16, %s5385_s17  }
  0x10   :  { %s5346_s19 = scalar_lea.vmem %s28_s14, 8192  ;;  %p5351_p6 = scmp.lt.s32.totalorder %s28_s14, %s28_s14 }
  0x11   :  { %p5347_p5 = scmp.ne.s32.totalorder %s28_s14, %s5346_s19  ;;  %p5352_p7 = scmp.lt.s32.totalorder %s5346_s19, %s5346_s19 }
  0x13   :  { %p5353_p8 = por %p5352_p7, %p5351_p6 }
  0x15   :  { %p5354_p9 = pnand %p5353_p8, %p5347_p5 }
  0x17   :  { %5357 = shalt.err (!%p5354_p9)
}
  0x18   :  { %33 = dma.hbm_to_vmem [thread:$0]  %s8992_s2, 8192, %s28_s14, [#allocation5], %s5384_s16, %s5384_s16, %s5385_s17  }
  0x19   :  { %s5386_s22 = smov [#allocation8]  }
  0x1a   :  { %s53_s23 = sshll.u32 %s5386_s22, 4  ;;  %s54_s23 = int_to_ptr.vmem [resolvable:$true] %s53_s23 }
  0x1b   :  { %s5366_s24 = scalar_lea.vmem %s54_s23, 8192  ;;  %p5371_p11 = scmp.lt.s32.totalorder %s54_s23, %s54_s23 }
  0x1c   :  { %p5367_p10 = scmp.ne.s32.totalorder %s54_s23, %s5366_s24  ;;  %p5372_p12 = scmp.lt.s32.totalorder %s5366_s24, %s5366_s24 }
  0x1e   :  { %p5373_p13 = por %p5372_p12, %p5371_p11 }
  0x20   :  { %p5374_p0 = pnand %p5373_p13, %p5367_p10 }
  0x22   :  { %5377 = shalt.err (!%p5374_p0)
}
  0x23   :  { %59 = dma.hbm_to_vmem [thread:$0]  %s8995_s5, 8192, %s54_s23, [#allocation7], %s5384_s16, %s5384_s16, %s5385_s17  }
  0x24   :  { %5378 = dma.done.wait [#allocation5], 8192  }
  0x25   :  { %5379 = vsyncadd [#allocation5], 4294959104 }
  0x26   :  { %5380 = dma.done.wait [#allocation7], 16384  }
  0x27   :  { %5381 = vsyncadd [#allocation7], 4294950912  ;;  %v9000_v1 = vmov 0.0   ;;  %v84_v2 = vld [vmem:[%s8991_s1 + $0x8] sm:$0xff]  ;;  %v86_v3 = vld [vmem:[%s8991_s1 + $0x18] sm:$0xff]  ;;  %vm109_vm0 = vcmask 64512  }
  0x28   :  { %198 = vmatprep.mubr.f32.mxu0 %v9000_v1  ;;  %311 = vmatprep.mubr.f32.mxu1 %v9000_v1  ;;  %v83_v4 = vld [vmem:[%s8991_s1] sm:$0xff]  ;;  %v85_v5 = vld [vmem:[%s8991_s1 + $0x10] sm:$0xff]  ;;  %v76_v15 = vld [vmem:[%s8990_s0 + $0x8] sm:$0xff]  ;;  %vm5388_vm1 = vmmov 0   ;;  %vm4498_vm2 = vcmask 7168  }
  0x29   :  { %164 = vmatprep.subr.mxu0 %v84_v2  ;;  %277 = vmatprep.subr.mxu1 %v86_v3  ;;  %v75_v6 = vld [vmem:[%s8990_s0] sm:$0xff]  ;;  %v5468_v7 = vld [vmem:[#allocation4 + $0x1e8] sm:$0xff]  ;;  %v5474_v10 = vld [vmem:[#allocation4 + $0x1f0] sm:$0xff] }
  0x2a   :  { %165 = vmatpush1.msra.mxu0 %v83_v4  ;;  %278 = vmatpush1.msra.mxu1 %v85_v5  ;;  %v5470_v8 = vld [vmem:[#allocation4 + $0x1f8] sm:$0xff]  ;;  %v5472_v9 = vld [vmem:[#allocation4 + $0x1e0] sm:$0xff]  ;;  %v5478_v11 = vld [vmem:[#allocation4 + $0x1c8] sm:$0xff] }
  0x2b   :  { %4506 = vmatmul.mubr.msk.f32.vlgmr.msra.gmra.mxu0 %vm109_vm0, %v75_v6  ;;  %4514 = vmatmul.mubr.msk.f32.vlgmr.msra.gmra.mxu1 %vm109_vm0, %v75_v6  ;;  %v5480_v12 = vld [vmem:[#allocation4 + $0x1d8] sm:$0xff]  ;;  %v5486_v13 = vld [vmem:[#allocation4 + $0x1c0] sm:$0xff]  ;;  %v5488_v14 = vld [vmem:[#allocation4 + $0x1d0] sm:$0xff] }
  0x2c   :  { %460 = vmatprep.subr.mxu0 %v5468_v7  ;;  %531 = vmatprep.subr.mxu1 %v5470_v8  ;;  %v5497_v16 = vld [vmem:[#allocation4 + $0x1a8] sm:$0xff]  ;;  %v5499_v17 = vld [vmem:[#allocation4 + $0x1b8] sm:$0xff]  ;;  %v5503_v18 = vld [vmem:[#allocation4 + $0x1a0] sm:$0xff] }
  0x2d   :  { %461 = vmatpush1.msra.mxu0 %v5472_v9  ;;  %532 = vmatpush1.msra.mxu1 %v5474_v10  ;;  %v5505_v19 = vld [vmem:[#allocation4 + $0x1b0] sm:$0xff]  ;;  %v5509_v20 = vld [vmem:[#allocation4 + $0x188] sm:$0xff]  ;;  %v5511_v21 = vld [vmem:[#allocation4 + $0x198] sm:$0xff] }
  0x2e   :  { %462 = vmatprep.subr.mxu0 %v5478_v11  ;;  %533 = vmatprep.subr.mxu1 %v5480_v12  ;;  %v5517_v22 = vld [vmem:[#allocation4 + $0x180] sm:$0xff]  ;;  %v5519_v23 = vld [vmem:[#allocation4 + $0x190] sm:$0xff]  ;;  %v5528_v25 = vld [vmem:[#allocation4 + $0x168] sm:$0xff] }
  0x2f   :  { %204 = vmatprep.mubr.f32.mxu0 %v9000_v1  ;;  %317 = vmatprep.mubr.f32.mxu1 %v9000_v1  ;;  %v77_v24 = vld [vmem:[%s8990_s0 + $0x10] sm:$0xff]  ;;  %v5530_v26 = vld [vmem:[#allocation4 + $0x178] sm:$0xff]  ;;  %v5534_v27 = vld [vmem:[#allocation4 + $0x160] sm:$0xff] }
  0x30   :  { %463 = vmatpush1.msra.mxu0 %v5486_v13  ;;  %534 = vmatpush1.msra.mxu1 %v5488_v14  ;;  %v5536_v28 = vld [vmem:[#allocation4 + $0x170] sm:$0xff]  ;;  %v5540_v29 = vld [vmem:[#allocation4 + $0x148] sm:$0xff]  ;;  %v5542_v30 = vld [vmem:[#allocation4 + $0x158] sm:$0xff] }
  0x31   :  { %4507 = vmatmul.mubr.msk.f32.gmra.mxu0 %vm109_vm0, %v76_v15  ;;  %4515 = vmatmul.mubr.msk.f32.gmra.mxu1 %vm109_vm0, %v76_v15  ;;  %v5548_v31 = vld [vmem:[#allocation4 + $0x140] sm:$0xff]  ;;  %v5550_v32 = vld [vmem:[#allocation4 + $0x150] sm:$0xff]  ;;  %v5559_v34 = vld [vmem:[#allocation4 + $0x128] sm:$0xff] }
  0x32   :  { %464 = vmatprep.subr.mxu0 %v5497_v16  ;;  %535 = vmatprep.subr.mxu1 %v5499_v17  ;;  %v78_v33 = vld [vmem:[%s8990_s0 + $0x18] sm:$0xff]  ;;  %v5565_v36 = vld [vmem:[#allocation4 + $0x120] sm:$0xff]  ;;  %v5571_v38 = vld [vmem:[#allocation4 + $0x108] sm:$0xff] }
  0x33   :  { %465 = vmatpush1.msra.mxu0 %v5503_v18  ;;  %536 = vmatpush1.msra.mxu1 %v5505_v19  ;;  %v5561_v35 = vld [vmem:[#allocation4 + $0x138] sm:$0xff]  ;;  %v5567_v37 = vld [vmem:[#allocation4 + $0x130] sm:$0xff]  ;;  %v5579_v40 = vld [vmem:[#allocation4 + $0x100] sm:$0xff] }
  0x34   :  { %466 = vmatprep.subr.mxu0 %v5509_v20  ;;  %537 = vmatprep.subr.mxu1 %v5511_v21  ;;  %v5573_v39 = vld [vmem:[#allocation4 + $0x118] sm:$0xff]  ;;  %v5581_v41 = vld [vmem:[#allocation4 + $0x110] sm:$0xff]  ;;  %v5590_v43 = vld [vmem:[#allocation4 + $0xe8] sm:$0xff] }
  0x35   :  { %210 = vmatprep.mubr.f32.mxu0 %v9000_v1  ;;  %323 = vmatprep.mubr.f32.mxu1 %v9000_v1  ;;  %v79_v42 = vld [vmem:[%s8990_s0 + $0x20] sm:$0xff]  ;;  %v5598_v46 = vld [vmem:[#allocation4 + $0xf0] sm:$0xff]  ;;  %v5602_v47 = vld [vmem:[#allocation4 + $0xc8] sm:$0xff] }
  0x36   :  { %467 = vmatpush1.msra.mxu0 %v5517_v22  ;;  %538 = vmatpush1.msra.mxu1 %v5519_v23  ;;  %v5592_v44 = vld [vmem:[#allocation4 + $0xf8] sm:$0xff]  ;;  %v5596_v45 = vld [vmem:[#allocation4 + $0xe0] sm:$0xff]  ;;  %v5612_v50 = vld [vmem:[#allocation4 + $0xd0] sm:$0xff] }
  0x37   :  { %4508 = vmatmul.mubr.msk.f32.gmra.mxu0 %vm109_vm0, %v77_v24  ;;  %4516 = vmatmul.mubr.msk.f32.gmra.mxu1 %vm109_vm0, %v77_v24  ;;  %v5604_v48 = vld [vmem:[#allocation4 + $0xd8] sm:$0xff]  ;;  %v5610_v49 = vld [vmem:[#allocation4 + $0xc0] sm:$0xff]  ;;  %v5621_v52 = vld [vmem:[#allocation4 + $0xa8] sm:$0xff] }
  0x38   :  { %468 = vmatprep.subr.mxu0 %v5528_v25  ;;  %539 = vmatprep.subr.mxu1 %v5530_v26  ;;  %v80_v51 = vld [vmem:[%s8990_s0 + $0x28] sm:$0xff]  ;;  %v5623_v53 = vld [vmem:[#allocation4 + $0xb8] sm:$0xff]  ;;  %v5629_v55 = vld [vmem:[#allocation4 + $0xb0] sm:$0xff] }
  0x39   :  { %469 = vmatpush1.msra.mxu0 %v5534_v27  ;;  %540 = vmatpush1.msra.mxu1 %v5536_v28  ;;  %v5627_v54 = vld [vmem:[#allocation4 + $0xa0] sm:$0xff]  ;;  %v5633_v56 = vld [vmem:[#allocation4 + $0x88] sm:$0xff]  ;;  %v5635_v57 = vld [vmem:[#allocation4 + $0x98] sm:$0xff] }
  0x3a   :  { %470 = vmatprep.subr.mxu0 %v5540_v29  ;;  %541 = vmatprep.subr.mxu1 %v5542_v30  ;;  %v5641_v58 = vld [vmem:[#allocation4 + $0x80] sm:$0xff]  ;;  %v5643_v59 = vld [vmem:[#allocation4 + $0x90] sm:$0xff]  ;;  %v5652_v61 = vld [vmem:[#allocation4 + $0x68] sm:$0xff] }
  0x3b   :  { %216 = vmatprep.mubr.f32.mxu0 %v9000_v1  ;;  %329 = vmatprep.mubr.f32.mxu1 %v9000_v1  ;;  %v81_v60 = vld [vmem:[%s8990_s0 + $0x30] sm:$0xff]  ;;  %v5654_v62 = vld [vmem:[#allocation4 + $0x78] sm:$0xff]  ;;  %v5658_v63 = vld [vmem:[#allocation4 + $0x60] sm:$0xff] }
  0x3c   :  { %471 = vmatpush1.msra.mxu0 %v5548_v31  ;;  %542 = vmatpush1.msra.mxu1 %v5550_v32  ;;  %v5660_v0 = vld [vmem:[#allocation4 + $0x70] sm:$0xff]  ;;  %v5664_v2 = vld [vmem:[#allocation4 + $0x48] sm:$0xff]  ;;  %v5666_v3 = vld [vmem:[#allocation4 + $0x58] sm:$0xff] }
  0x3d   :  { %4509 = vmatmul.mubr.msk.f32.gmra.mxu0 %vm109_vm0, %v78_v33  ;;  %4517 = vmatmul.mubr.msk.f32.gmra.mxu1 %vm109_vm0, %v78_v33  ;;  %v5672_v4 = vld [vmem:[#allocation4 + $0x40] sm:$0xff]  ;;  %v5674_v5 = vld [vmem:[#allocation4 + $0x50] sm:$0xff]  ;;  %v5683_v15 = vld [vmem:[#allocation4 + $0x28] sm:$0xff] }
  0x3e   :  { %472 = vmatprep.subr.mxu0 %v5559_v34  ;;  %543 = vmatprep.subr.mxu1 %v5561_v35  ;;  %9537 = vst [vmem:[#allocation11_spill] sm:$0xff] %v5674_v5  ;;  %v82_v6 = vld [vmem:[%s8990_s0 + $0x38] sm:$0xff]  ;;  %v5689_v33 = vld [vmem:[#allocation4 + $0x20] sm:$0xff] }
  0x3f   :  { %473 = vmatpush1.msra.mxu0 %v5565_v36  ;;  %544 = vmatpush1.msra.mxu1 %v5567_v37  ;;  %v5685_v24 = vld [vmem:[#allocation4 + $0x38] sm:$0xff] }
  0x40   :  { %474 = vmatprep.subr.mxu0 %v5571_v38  ;;  %545 = vmatprep.subr.mxu1 %v5573_v39 }
  0x41   :  { %222 = vmatprep.mubr.f32.mxu0 %v9000_v1  ;;  %335 = vmatprep.mubr.f32.mxu1 %v9000_v1 }
  0x42   :  { %475 = vmatpush1.msra.mxu0 %v5579_v40  ;;  %546 = vmatpush1.msra.mxu1 %v5581_v41 }
  0x43   :  { %4510 = vmatmul.mubr.msk.f32.gmra.mxu0 %vm109_vm0, %v79_v42  ;;  %4518 = vmatmul.mubr.msk.f32.gmra.mxu1 %vm109_vm0, %v79_v42  ;;  %v5691_v42 = vld [vmem:[#allocation4 + $0x30] sm:$0xff] }
  0x44   :  { %476 = vmatprep.subr.mxu0 %v5590_v43  ;;  %547 = vmatprep.subr.mxu1 %v5592_v44 }
  0x45   :  { %477 = vmatpush1.msra.mxu0 %v5596_v45  ;;  %548 = vmatpush1.msra.mxu1 %v5598_v46 }
  0x46   :  { %478 = vmatprep.subr.mxu0 %v5602_v47  ;;  %549 = vmatprep.subr.mxu1 %v5604_v48 }
  0x47   :  { %228 = vmatprep.mubr.f32.mxu0 %v9000_v1  ;;  %341 = vmatprep.mubr.f32.mxu1 %v9000_v1 }
  0x48   :  { %479 = vmatpush1.msra.mxu0 %v5610_v49  ;;  %550 = vmatpush1.msra.mxu1 %v5612_v50 }
  0x49   :  { %4511 = vmatmul.mubr.msk.f32.gmra.mxu0 %vm109_vm0, %v80_v51  ;;  %4519 = vmatmul.mubr.msk.f32.gmra.mxu1 %vm109_vm0, %v80_v51  ;;  %v5695_v51 = vld [vmem:[#allocation4 + $0x8] sm:$0xff] }
  0x4a   :  { %480 = vmatprep.subr.mxu0 %v5621_v52  ;;  %551 = vmatprep.subr.mxu1 %v5623_v53 }
  0x4b   :  { %481 = vmatpush1.msra.mxu0 %v5627_v54  ;;  %552 = vmatpush1.msra.mxu1 %v5629_v55 }
  0x4c   :  { %482 = vmatprep.subr.mxu0 %v5633_v56  ;;  %553 = vmatprep.subr.mxu1 %v5635_v57 }
  0x4d   :  { %234 = vmatprep.mubr.f32.mxu0 %v9000_v1  ;;  %347 = vmatprep.mubr.f32.mxu1 %v9000_v1 }
  0x4e   :  { %483 = vmatpush1.msra.mxu0 %v5641_v58  ;;  %554 = vmatpush1.msra.mxu1 %v5643_v59 }
  0x4f   :  { %4512 = vmatmul.mubr.msk.f32.gmra.mxu0 %vm109_vm0, %v81_v60  ;;  %4520 = vmatmul.mubr.msk.f32.gmra.mxu1 %vm109_vm0, %v81_v60  ;;  %v5697_v60 = vld [vmem:[#allocation4 + $0x18] sm:$0xff] }
  0x50   :  { %484 = vmatprep.subr.mxu0 %v5652_v61  ;;  %555 = vmatprep.subr.mxu1 %v5654_v62 }
  0x51   :  { %485 = vmatpush1.msra.mxu0 %v5658_v63  ;;  %556 = vmatpush1.msra.mxu1 %v5660_v0 }
  0x52   :  { %486 = vmatprep.subr.mxu0 %v5664_v2  ;;  %557 = vmatprep.subr.mxu1 %v5666_v3 }
  0x53   :  { %240 = vmatprep.mubr.f32.mxu0 %v9000_v1  ;;  %353 = vmatprep.mubr.f32.mxu1 %v9000_v1  ;;  %v5701_v1 = vld [vmem:[#allocation4] sm:$0xff] }
  0x54   :  { %487 = vmatpush1.msra.mxu0 %v5672_v4  ;;  %558 = vmatpush1.msra.mxu1 %v5674_v5  ;;  %v5705_v5 = vld [vmem:[#allocation4 + $0x10] sm:$0xff] }
  0x55   :  { %4513 = vmatmul.mubr.msk.f32.gmra.mxu0 %vm109_vm0, %v82_v6  ;;  %4521 = vmatmul.mubr.msk.f32.gmra.mxu1 %vm109_vm0, %v82_v6  ;;  %v9538_v6 = vmov 0.0  }
  0x56   :  { %488 = vmatprep.subr.mxu0 %v5683_v15  ;;  %559 = vmatprep.subr.mxu1 %v5685_v24 }
  0x57   :  { %489 = vmatpush1.msra.mxu0 %v5689_v33  ;;  %560 = vmatpush1.msra.mxu1 %v5691_v42 }
  0x58   :  { %490 = vmatprep.subr.mxu0 %v5695_v51  ;;  %561 = vmatprep.subr.mxu1 %v5697_v60 }
  0x59   :  { %491 = vmatpush1.msra.mxu0 %v5701_v1  ;;  %524 = vmatprep.mubr.f32.mxu0 %v9538_v6 }
  0x5a   :  { %562 = vmatpush1.msra.mxu1 %v5705_v5  ;;  %595 = vmatprep.mubr.f32.mxu1 %v9538_v6 }
  0x5b   :  { %525 = vmatmul.mubr.f32.vlgmr.msra.gmra.mxu0 %v9538_v6  ;;  %596 = vmatmul.mubr.f32.vlgmr.msra.gmra.mxu1 %v9538_v6 }
  0x5c   :  { %629 = vmatprep.subr.mxu0 %v5468_v7  ;;  %700 = vmatprep.subr.mxu1 %v5470_v8  ;;  %v9539_v7 = vld [vmem:[#allocation11_spill] sm:$0xff]  ;;  %v5781_v8 = vld [vmem:[#allocation6 + $0x1e8] sm:$0xff] }
  0x5d   :  { %630 = vmatpush1.msra.mxu0 %v5472_v9  ;;  %701 = vmatpush1.msra.mxu1 %v5474_v10  ;;  %v5783_v9 = vld [vmem:[#allocation6 + $0x1f8] sm:$0xff]  ;;  %v89_v10 = vlaneseq }
  0x5e   :  { %631 = vmatprep.subr.mxu0 %v5478_v11  ;;  %702 = vmatprep.subr.mxu1 %v5480_v12 }
  0x5f   :  { %632 = vmatpush1.msra.mxu0 %v5486_v13  ;;  %703 = vmatpush1.msra.mxu1 %v5488_v14  ;;  %v5787_v11 = vshrl.u32 %v89_v10, 7 }
  0x60   :  { %633 = vmatprep.subr.mxu0 %v5497_v16  ;;  %704 = vmatprep.subr.mxu1 %v5499_v17  ;;  %v87_v16 = vld [vmem:[%s8993_s3] sm:$0xf] }
  0x61   :  { %634 = vmatpush1.msra.mxu0 %v5503_v18  ;;  %705 = vmatpush1.msra.mxu1 %v5505_v19  ;;  %v9006_v13 = vsub.s32 0, %v5787_v11  ;;  %v9004_v14 = vsub.s32 2, %v5787_v11  ;;  %v9005_v19 = vsub.s32 1, %v5787_v11 }
  0x62   :  { %635 = vmatprep.subr.mxu0 %v5509_v20  ;;  %706 = vmatprep.subr.mxu1 %v5511_v21  ;;  %v9003_v20 = vsub.s32 3, %v5787_v11 }
  0x63   :  { %636 = vmatpush1.msra.mxu0 %v5517_v22  ;;  %707 = vmatpush1.msra.mxu1 %v5519_v23  ;;  %v92_v21 = vrot.slane %v87_v16, %v9006_v13  ;;  %v5808_v22 = vrot.slane %v87_v16, %v9004_v14  ;;  %v5973_v14 = vld [vmem:[#allocation6 + $0x108] sm:$0xff]  ;;  %v5979_v13 = vld [vmem:[#allocation6 + $0x100] sm:$0xff] }
  0x64   :  { %637 = vmatprep.subr.mxu0 %v5528_v25  ;;  %708 = vmatprep.subr.mxu1 %v5530_v26  ;;  %v96_v26 = vrot.slane %v87_v16, %v9005_v19  ;;  %v5975_v19 = vld [vmem:[#allocation6 + $0x118] sm:$0xff] }
  0x65   :  { %638 = vmatpush1.msra.mxu0 %v5534_v27  ;;  %709 = vmatpush1.msra.mxu1 %v5536_v28  ;;  %v5814_v27 = vrot.slane %v87_v16, %v9003_v20  ;;  %v5969_v20 = vld [vmem:[#allocation6 + $0x130] sm:$0xff] }
  0x66   :  { %639 = vmatprep.subr.mxu0 %v5540_v29  ;;  %710 = vmatprep.subr.mxu1 %v5542_v30 }
  0x67   :  { %640 = vmatpush1.msra.mxu0 %v5548_v31  ;;  %711 = vmatpush1.msra.mxu1 %v5550_v32 }
  0x68   :  { %641 = vmatprep.subr.mxu0 %v5559_v34  ;;  %712 = vmatprep.subr.mxu1 %v5561_v35 }
  0x69   :  { %642 = vmatpush1.msra.mxu0 %v5565_v36  ;;  %713 = vmatpush1.msra.mxu1 %v5567_v37 }
  0x6a   :  { %643 = vmatprep.subr.mxu0 %v5571_v38  ;;  %714 = vmatprep.subr.mxu1 %v5573_v39 }
  0x6b   :  { %644 = vmatpush1.msra.mxu0 %v5579_v40  ;;  %715 = vmatpush1.msra.mxu1 %v5581_v41 }
  0x6c   :  { %645 = vmatprep.subr.mxu0 %v5590_v43  ;;  %716 = vmatprep.subr.mxu1 %v5592_v44 }
  0x6d   :  { %646 = vmatpush1.msra.mxu0 %v5596_v45  ;;  %717 = vmatpush1.msra.mxu1 %v5598_v46 }
  0x6e   :  { %647 = vmatprep.subr.mxu0 %v5602_v47  ;;  %718 = vmatprep.subr.mxu1 %v5604_v48 }
  0x6f   :  { %648 = vmatpush1.msra.mxu0 %v5610_v49  ;;  %719 = vmatpush1.msra.mxu1 %v5612_v50 }
  0x70   :  { %649 = vmatprep.subr.mxu0 %v5621_v52  ;;  %720 = vmatprep.subr.mxu1 %v5623_v53 }
  0x71   :  { %650 = vmatpush1.msra.mxu0 %v5627_v54  ;;  %721 = vmatpush1.msra.mxu1 %v5629_v55 }
  0x72   :  { %651 = vmatprep.subr.mxu0 %v5633_v56  ;;  %722 = vmatprep.subr.mxu1 %v5635_v57 }
  0x73   :  { %652 = vmatpush1.msra.mxu0 %v5641_v58  ;;  %723 = vmatpush1.msra.mxu1 %v5643_v59 }
  0x74   :  { %653 = vmatprep.subr.mxu0 %v5652_v61  ;;  %724 = vmatprep.subr.mxu1 %v5654_v62 }
  0x75   :  { %654 = vmatpush1.msra.mxu0 %v5658_v63  ;;  %725 = vmatpush1.msra.mxu1 %v5660_v0 }
  0x76   :  { %655 = vmatprep.subr.mxu0 %v5664_v2  ;;  %726 = vmatprep.subr.mxu1 %v5666_v3 }
  0x77   :  { %656 = vmatpush1.msra.mxu0 %v5672_v4  ;;  %727 = vmatpush1.msra.mxu1 %v9539_v7 }
  0x78   :  { %657 = vmatprep.subr.mxu0 %v5683_v15  ;;  %728 = vmatprep.subr.mxu1 %v5685_v24 }
  0x79   :  { %658 = vmatpush1.msra.mxu0 %v5689_v33  ;;  %729 = vmatpush1.msra.mxu1 %v5691_v42 }
  0x7a   :  { %659 = vmatprep.subr.mxu0 %v5695_v51  ;;  %730 = vmatprep.subr.mxu1 %v5697_v60 }
  0x7b   :  { %660 = vmatpush1.msra.mxu0 %v5701_v1  ;;  %731 = vmatpush1.msra.mxu1 %v5705_v5 }
  0x7c   :  { %693 = vmatprep.mubr.f32.mxu0 %v9538_v6  ;;  %764 = vmatprep.mubr.f32.mxu1 %v9538_v6 }
  0x7d   :  { %879 = vmatprep.subr.mxu0 %v5781_v8  ;;  %950 = vmatprep.subr.mxu1 %v5783_v9 }
  0xeb   :  { %v5789_v12 = vpop.f32.mrf.mxu0  ;;  %v5791_v1 = vpop.f32.mrf.mxu1 }
  0xed   :  { %v5798_v17 = vpop.f32.mrf.mxu0  ;;  %v5800_v18 = vpop.f32.mrf.mxu1 }
  0xf1   :  { %v206_v23 = vpop.f32.mrf.mxu0  ;;  %v319_v25 = vpop.f32.mrf.mxu1 }
  0xf2   :  { %v5816_v28 = vadd.f32 %v206_v23, %v92_v21  ;;  %v5819_v29 = vadd.f32 %v319_v25, %v5808_v22 }
  0xf3   :  { %v208_v30 = vpop.f32.mrf.mxu0  ;;  %v321_v31 = vpop.f32.mrf.mxu1 }
  0xf4   :  { %v5821_v32 = vadd.f32 %v208_v30, %v96_v26  ;;  %v5824_v34 = vadd.f32 %v321_v31, %v5814_v27 }
  0xf7   :  { %v212_v35 = vpop.f32.mrf.mxu0  ;;  %v325_v36 = vpop.f32.mrf.mxu1 }
  0xf8   :  { %v5826_v37 = vadd.f32 %v212_v35, %v92_v21  ;;  %v5829_v38 = vadd.f32 %v325_v36, %v5808_v22 }
  0xf9   :  { %v214_v39 = vpop.f32.mrf.mxu0  ;;  %v327_v40 = vpop.f32.mrf.mxu1 }
  0xfa   :  { %9540 = vst [vmem:[#allocation11_spill] sm:$0xff] %v5826_v37  ;;  %9541 = vst [vmem:[#allocation12_spill] sm:$0xff] %v5829_v38  ;;  %v5831_v41 = vadd.f32 %v214_v39, %v96_v26  ;;  %v5834_v43 = vadd.f32 %v327_v40, %v5814_v27  ;;  %v6045_v38 = vld [vmem:[#allocation6 + $0x48] sm:$0xff]  ;;  %v6051_v37 = vld [vmem:[#allocation6 + $0x40] sm:$0xff] }
  0xfb   :  { %9572 = vst [vmem:[#allocation43_spill] sm:$0xff] %v6045_v38  ;;  %9574 = vst [vmem:[#allocation45_spill] sm:$0xff] %v6051_v37 }
  0xfc   :  { %9542 = vst [vmem:[#allocation13_spill] sm:$0xff] %v5831_v41  ;;  %9543 = vst [vmem:[#allocation14_spill] sm:$0xff] %v5834_v43  ;;  %v6041_v43 = vld [vmem:[#allocation6 + $0x70] sm:$0xff]  ;;  %v6047_v41 = vld [vmem:[#allocation6 + $0x58] sm:$0xff] }
  0xfd   :  { %v218_v44 = vpop.f32.mrf.mxu0  ;;  %v331_v45 = vpop.f32.mrf.mxu1  ;;  %9571 = vst [vmem:[#allocation42_spill] sm:$0xff] %v6041_v43  ;;  %9573 = vst [vmem:[#allocation44_spill] sm:$0xff] %v6047_v41 }
  0xfe   :  { %v5836_v46 = vadd.f32 %v218_v44, %v92_v21  ;;  %v5839_v47 = vadd.f32 %v331_v45, %v5808_v22  ;;  %v201_v45 = vadd.f32 %v5789_v12, %v92_v21 }
  0xff   :  { %v220_v48 = vpop.f32.mrf.mxu0  ;;  %v333_v49 = vpop.f32.mrf.mxu1 }
 0x100   :  { %9544 = vst [vmem:[#allocation15_spill] sm:$0xff] %v5836_v46  ;;  %9545 = vst [vmem:[#allocation16_spill] sm:$0xff] %v5839_v47  ;;  %v5841_v50 = vadd.f32 %v220_v48, %v96_v26  ;;  %v5844_v52 = vadd.f32 %v333_v49, %v5814_v27  ;;  %v203_v49 = vadd.f32 %v5798_v17, %v96_v26  ;;  %v6033_v47 = vld [vmem:[#allocation6 + $0x68] sm:$0xff]  ;;  %v6039_v46 = vld [vmem:[#allocation6 + $0x60] sm:$0xff] }
 0x101   :  { %9568 = vst [vmem:[#allocation39_spill] sm:$0xff] %v6033_v47  ;;  %9570 = vst [vmem:[#allocation41_spill] sm:$0xff] %v6039_v46 }
 0x102   :  { %9546 = vst [vmem:[#allocation17_spill] sm:$0xff] %v5841_v50  ;;  %9547 = vst [vmem:[#allocation18_spill] sm:$0xff] %v5844_v52  ;;  %v6029_v52 = vld [vmem:[#allocation6 + $0x90] sm:$0xff]  ;;  %v6035_v50 = vld [vmem:[#allocation6 + $0x78] sm:$0xff] }
 0x103   :  { %v224_v53 = vpop.f32.mrf.mxu0  ;;  %v337_v54 = vpop.f32.mrf.mxu1  ;;  %9567 = vst [vmem:[#allocation38_spill] sm:$0xff] %v6029_v52  ;;  %9569 = vst [vmem:[#allocation40_spill] sm:$0xff] %v6035_v50 }
 0x104   :  { %v5846_v55 = vadd.f32 %v224_v53, %v92_v21  ;;  %v5849_v56 = vadd.f32 %v337_v54, %v5808_v22 }
 0x105   :  { %v226_v57 = vpop.f32.mrf.mxu0  ;;  %v339_v58 = vpop.f32.mrf.mxu1 }
 0x106   :  { %9548 = vst [vmem:[#allocation19_spill] sm:$0xff] %v5846_v55  ;;  %9549 = vst [vmem:[#allocation20_spill] sm:$0xff] %v5849_v56  ;;  %v5851_v59 = vadd.f32 %v226_v57, %v96_v26  ;;  %v5854_v61 = vadd.f32 %v339_v58, %v5814_v27  ;;  %v6021_v56 = vld [vmem:[#allocation6 + $0x88] sm:$0xff]  ;;  %v6027_v55 = vld [vmem:[#allocation6 + $0x80] sm:$0xff] }
 0x107   :  { %9564 = vst [vmem:[#allocation35_spill] sm:$0xff] %v6021_v56  ;;  %9566 = vst [vmem:[#allocation37_spill] sm:$0xff] %v6027_v55 }
 0x108   :  { %9550 = vst [vmem:[#allocation21_spill] sm:$0xff] %v5851_v59  ;;  %9551 = vst [vmem:[#allocation22_spill] sm:$0xff] %v5854_v61  ;;  %v6017_v61 = vld [vmem:[#allocation6 + $0xb0] sm:$0xff]  ;;  %v6023_v59 = vld [vmem:[#allocation6 + $0x98] sm:$0xff] }
 0x109   :  { %v230_v62 = vpop.f32.mrf.mxu0  ;;  %v343_v63 = vpop.f32.mrf.mxu1  ;;  %9565 = vst [vmem:[#allocation36_spill] sm:$0xff] %v6023_v59 }
 0x10a   :  { %v5856_v0 = vadd.f32 %v230_v62, %v92_v21  ;;  %v5859_v2 = vadd.f32 %v343_v63, %v5808_v22  ;;  %v314_v63 = vadd.f32 %v5791_v1, %v5808_v22 }
 0x10b   :  { %v232_v3 = vpop.f32.mrf.mxu0  ;;  %v345_v4 = vpop.f32.mrf.mxu1 }
 0x10c   :  { %9552 = vst [vmem:[#allocation23_spill] sm:$0xff] %v5856_v0  ;;  %9553 = vst [vmem:[#allocation24_spill] sm:$0xff] %v5859_v2  ;;  %v5861_v15 = vadd.f32 %v232_v3, %v96_v26  ;;  %v5864_v24 = vadd.f32 %v345_v4, %v5814_v27  ;;  %v6009_v2 = vld [vmem:[#allocation6 + $0xa8] sm:$0xff]  ;;  %v6015_v0 = vld [vmem:[#allocation6 + $0xa0] sm:$0xff] }
 0x10e   :  { %9554 = vst [vmem:[#allocation25_spill] sm:$0xff] %v5861_v15  ;;  %9555 = vst [vmem:[#allocation26_spill] sm:$0xff] %v5864_v24  ;;  %v6005_v24 = vld [vmem:[#allocation6 + $0xd0] sm:$0xff]  ;;  %v6011_v15 = vld [vmem:[#allocation6 + $0xb8] sm:$0xff] }
 0x10f   :  { %v236_v33 = vpop.f32.mrf.mxu0  ;;  %v349_v42 = vpop.f32.mrf.mxu1 }
 0x110   :  { %v5866_v51 = vadd.f32 %v236_v33, %v92_v21  ;;  %v5869_v60 = vadd.f32 %v349_v42, %v5808_v22  ;;  %v316_v42 = vadd.f32 %v5800_v18, %v5814_v27 }
 0x111   :  { %v238_v7 = vpop.f32.mrf.mxu0  ;;  %v351_v10 = vpop.f32.mrf.mxu1 }
 0x112   :  { %9556 = vst [vmem:[#allocation27_spill] sm:$0xff] %v5866_v51  ;;  %9557 = vst [vmem:[#allocation28_spill] sm:$0xff] %v5869_v60  ;;  %v5871_v16 = vadd.f32 %v238_v7, %v96_v26  ;;  %v5874_v23 = vadd.f32 %v351_v10, %v5814_v27  ;;  %v5997_v60 = vld [vmem:[#allocation6 + $0xc8] sm:$0xff]  ;;  %v6003_v51 = vld [vmem:[#allocation6 + $0xc0] sm:$0xff] }
 0x114   :  { %9558 = vst [vmem:[#allocation29_spill] sm:$0xff] %v5871_v16  ;;  %9559 = vst [vmem:[#allocation30_spill] sm:$0xff] %v5874_v23  ;;  %v5993_v23 = vld [vmem:[#allocation6 + $0xf0] sm:$0xff]  ;;  %v5999_v16 = vld [vmem:[#allocation6 + $0xd8] sm:$0xff] }
 0x115   :  { %v242_v25 = vpop.f32.mrf.mxu0  ;;  %v355_v30 = vpop.f32.mrf.mxu1 }
 0x116   :  { %v5876_v31 = vadd.f32 %v242_v25, %v92_v21  ;;  %v5879_v35 = vadd.f32 %v355_v30, %v5808_v22 }
 0x117   :  { %v244_v36 = vpop.f32.mrf.mxu0  ;;  %v357_v39 = vpop.f32.mrf.mxu1 }
 0x118   :  { %9560 = vst [vmem:[#allocation31_spill] sm:$0xff] %v5876_v31  ;;  %9561 = vst [vmem:[#allocation32_spill] sm:$0xff] %v5879_v35  ;;  %v5881_v40 = vadd.f32 %v244_v36, %v96_v26  ;;  %v5884_v44 = vadd.f32 %v357_v39, %v5814_v27  ;;  %v5985_v35 = vld [vmem:[#allocation6 + $0xe8] sm:$0xff]  ;;  %v5991_v31 = vld [vmem:[#allocation6 + $0xe0] sm:$0xff] }
 0x11a   :  { %9562 = vst [vmem:[#allocation33_spill] sm:$0xff] %v5881_v40  ;;  %9563 = vst [vmem:[#allocation34_spill] sm:$0xff] %v5884_v44  ;;  %v5981_v44 = vld [vmem:[#allocation6 + $0x110] sm:$0xff]  ;;  %v5987_v40 = vld [vmem:[#allocation6 + $0xf8] sm:$0xff] }
 0x11b   :  { %v526_v48 = vpop.f32.mrf.mxu0  ;;  %v597_v62 = vpop.f32.mrf.mxu1 }
 0x11c   :  { %v602_v53 = vadd.f32 %v526_v48, %v201_v45  ;;  %v604_v4 = vadd.f32 %v597_v62, %v314_v63  ;;  %v5907_v62 = vld [vmem:[#allocation6 + $0x1c0] sm:$0xff]  ;;  %v5909_v63 = vld [vmem:[#allocation6 + $0x1d0] sm:$0xff] }
 0x11d   :  { %v528_v54 = vpop.f32.mrf.mxu0  ;;  %v599_v33 = vpop.f32.mrf.mxu1 }
 0x11e   :  { %v606_v57 = vmul.f32 0.5, %v602_v53  ;;  %v603_v58 = vadd.f32 %v528_v54, %v203_v49  ;;  %v605_v12 = vadd.f32 %v599_v33, %v316_v42  ;;  %v5897_v53 = vld [vmem:[#allocation6 + $0x1e0] sm:$0xff]  ;;  %v5899_v54 = vld [vmem:[#allocation6 + $0x1f0] sm:$0xff] }
 0x11f   :  { %v5919_v33 = vld [vmem:[#allocation6 + $0x1a0] sm:$0xff]  ;;  %v5921_v42 = vld [vmem:[#allocation6 + $0x1b0] sm:$0xff] }
 0x120   :  { %4582 = vtanh.f32 %v606_v57  ;;  %v610_v3 = vmul.f32 0.5, %v603_v58  ;;  %v615_v21 = vmul.f32 0.5, %v605_v12  ;;  %v5901_v57 = vld [vmem:[#allocation6 + $0x1c8] sm:$0xff]  ;;  %v5903_v58 = vld [vmem:[#allocation6 + $0x1d8] sm:$0xff] }
 0x121   :  { %v5925_v12 = vld [vmem:[#allocation6 + $0x188] sm:$0xff] }
 0x122   :  { %4584 = vtanh.f32 %v610_v3  ;;  %v5913_v3 = vld [vmem:[#allocation6 + $0x1a8] sm:$0xff] }
 0x123   :  { %4586 = vtanh.f32 %v604_v4  ;;  %v5915_v4 = vld [vmem:[#allocation6 + $0x1b8] sm:$0xff] }
 0x124   :  { %4588 = vtanh.f32 %v615_v21  ;;  %v5927_v21 = vld [vmem:[#allocation6 + $0x198] sm:$0xff] }
 0x12d   :  { %v4583_v17 = vpop.eup %4582 }
 0x12e   :  { %v608_v26 = vmul.f32 0.5, %v4583_v17  ;;  %v5931_v17 = vld [vmem:[#allocation6 + $0x180] sm:$0xff] }
 0x12f   :  { %v4585_v7 = vpop.eup %4584 }
 0x130   :  { %v609_v10 = vadd.f32 0.5, %v608_v26  ;;  %v612_v25 = vmul.f32 0.5, %v4585_v7  ;;  %v4587_v36 = vpop.eup %4586  ;;  %v5933_v26 = vld [vmem:[#allocation6 + $0x190] sm:$0xff]  ;;  %v5937_v7 = vld [vmem:[#allocation6 + $0x168] sm:$0xff] }
 0x131   :  { %v4589_v45 = vpop.eup %4588 }
 0x132   :  { %v613_v30 = vadd.f32 0.5, %v612_v25  ;;  %v620_v22 = vmul.f32 %v4587_v36, %v609_v10  ;;  %v617_v48 = vmul.f32 0.5, %v4589_v45  ;;  %v5939_v10 = vld [vmem:[#allocation6 + $0x178] sm:$0xff]  ;;  %v5943_v25 = vld [vmem:[#allocation6 + $0x160] sm:$0xff]  ;;  %v5949_v36 = vld [vmem:[#allocation6 + $0x148] sm:$0xff] }
 0x133   :  { %v5957_v45 = vld [vmem:[#allocation6 + $0x150] sm:$0xff] }
 0x134   :  { %v619_v1 = vmul.f32 0.0, %v613_v30  ;;  %v618_v18 = vadd.f32 0.5, %v617_v48  ;;  %v5945_v30 = vld [vmem:[#allocation6 + $0x170] sm:$0xff]  ;;  %v5961_v48 = vld [vmem:[#allocation6 + $0x128] sm:$0xff] }
 0x136   :  { %v5892_v39 = vadd.f32 %v620_v22, %v619_v1  ;;  %v5951_v1 = vld [vmem:[#allocation6 + $0x158] sm:$0xff]  ;;  %v5955_v22 = vld [vmem:[#allocation6 + $0x140] sm:$0xff] }
 0x138   :  { %4590 = vtanh.f32 %v5892_v39 }
 0x145   :  { %v4591_v27 = vpop.eup %4590 }
 0x146   :  { %v5895_v49 = vmul.f32 %v4591_v27, %v618_v18  ;;  %v5963_v18 = vld [vmem:[#allocation6 + $0x138] sm:$0xff]  ;;  %v5967_v27 = vld [vmem:[#allocation6 + $0x120] sm:$0xff] }
 0x148   :  { %694 = vmatmul.mubr.f32.vlgmr.msra.gmra.mxu0 %v5895_v49  ;;  %765 = vmatmul.mubr.f32.vlgmr.msra.gmra.mxu1 %v5895_v49 }
 0x149   :  { %880 = vmatpush1.msra.mxu0 %v5897_v53  ;;  %951 = vmatpush1.msra.mxu1 %v5899_v54 }
 0x14a   :  { %881 = vmatprep.subr.mxu0 %v5901_v57  ;;  %952 = vmatprep.subr.mxu1 %v5903_v58 }
 0x14b   :  { %882 = vmatpush1.msra.mxu0 %v5907_v62  ;;  %953 = vmatpush1.msra.mxu1 %v5909_v63 }
 0x14c   :  { %883 = vmatprep.subr.mxu0 %v5913_v3  ;;  %954 = vmatprep.subr.mxu1 %v5915_v4 }
 0x14d   :  { %884 = vmatpush1.msra.mxu0 %v5919_v33  ;;  %955 = vmatpush1.msra.mxu1 %v5921_v42 }
 0x14e   :  { %885 = vmatprep.subr.mxu0 %v5925_v12  ;;  %956 = vmatprep.subr.mxu1 %v5927_v21 }
 0x14f   :  { %886 = vmatpush1.msra.mxu0 %v5931_v17  ;;  %957 = vmatpush1.msra.mxu1 %v5933_v26 }
 0x150   :  { %887 = vmatprep.subr.mxu0 %v5937_v7  ;;  %958 = vmatprep.subr.mxu1 %v5939_v10 }
 0x151   :  { %888 = vmatpush1.msra.mxu0 %v5943_v25  ;;  %959 = vmatpush1.msra.mxu1 %v5945_v30 }
 0x152   :  { %889 = vmatprep.subr.mxu0 %v5949_v36  ;;  %960 = vmatprep.subr.mxu1 %v5951_v1 }
 0x153   :  { %890 = vmatpush1.msra.mxu0 %v5955_v22  ;;  %961 = vmatpush1.msra.mxu1 %v5957_v45 }
 0x154   :  { %891 = vmatprep.subr.mxu0 %v5961_v48  ;;  %962 = vmatprep.subr.mxu1 %v5963_v18 }
 0x155   :  { %892 = vmatpush1.msra.mxu0 %v5967_v27  ;;  %963 = vmatpush1.msra.mxu1 %v5969_v20 }
 0x156   :  { %893 = vmatprep.subr.mxu0 %v5973_v14  ;;  %964 = vmatprep.subr.mxu1 %v5975_v19 }
 0x157   :  { %894 = vmatpush1.msra.mxu0 %v5979_v13  ;;  %965 = vmatpush1.msra.mxu1 %v5981_v44 }
 0x158   :  { %895 = vmatprep.subr.mxu0 %v5985_v35  ;;  %966 = vmatprep.subr.mxu1 %v5987_v40 }
 0x159   :  { %896 = vmatpush1.msra.mxu0 %v5991_v31  ;;  %967 = vmatpush1.msra.mxu1 %v5993_v23 }
 0x15a   :  { %897 = vmatprep.subr.mxu0 %v5997_v60  ;;  %968 = vmatprep.subr.mxu1 %v5999_v16 }
 0x15b   :  { %898 = vmatpush1.msra.mxu0 %v6003_v51  ;;  %969 = vmatpush1.msra.mxu1 %v6005_v24 }
 0x15c   :  { %899 = vmatprep.subr.mxu0 %v6009_v2  ;;  %970 = vmatprep.subr.mxu1 %v6011_v15 }
 0x15d   :  { %900 = vmatpush1.msra.mxu0 %v6015_v0  ;;  %971 = vmatpush1.msra.mxu1 %v6017_v61 }
 0x15e   :  { %901 = vmatprep.subr.mxu0 %v6021_v56  ;;  %972 = vmatprep.subr.mxu1 %v6023_v59  ;;  %v6053_v56 = vld [vmem:[#allocation6 + $0x50] sm:$0xff]  ;;  %v6057_v59 = vld [vmem:[#allocation6 + $0x28] sm:$0xff] }
 0x15f   :  { %902 = vmatpush1.msra.mxu0 %v6027_v55  ;;  %973 = vmatpush1.msra.mxu1 %v6029_v52  ;;  %9575 = vst [vmem:[#allocation46_spill] sm:$0xff] %v6053_v56  ;;  %9576 = vst [vmem:[#allocation47_spill] sm:$0xff] %v6057_v59  ;;  %v6059_v55 = vld [vmem:[#allocation6 + $0x38] sm:$0xff]  ;;  %v6063_v52 = vld [vmem:[#allocation6 + $0x20] sm:$0xff] }
 0x160   :  { %903 = vmatprep.subr.mxu0 %v6033_v47  ;;  %974 = vmatprep.subr.mxu1 %v6035_v50  ;;  %9577 = vst [vmem:[#allocation48_spill] sm:$0xff] %v6059_v55  ;;  %9578 = vst [vmem:[#allocation49_spill] sm:$0xff] %v6063_v52  ;;  %v6065_v47 = vld [vmem:[#allocation6 + $0x30] sm:$0xff]  ;;  %v6069_v50 = vld [vmem:[#allocation6 + $0x8] sm:$0xff] }
 0x161   :  { %904 = vmatpush1.msra.mxu0 %v6039_v46  ;;  %975 = vmatpush1.msra.mxu1 %v6041_v43  ;;  %9579 = vst [vmem:[#allocation50_spill] sm:$0xff] %v6065_v47  ;;  %9580 = vst [vmem:[#allocation51_spill] sm:$0xff] %v6069_v50  ;;  %v6071_v46 = vld [vmem:[#allocation6 + $0x18] sm:$0xff]  ;;  %v6075_v43 = vld [vmem:[#allocation6] sm:$0xff] }
 0x162   :  { %905 = vmatprep.subr.mxu0 %v6045_v38  ;;  %976 = vmatprep.subr.mxu1 %v6047_v41  ;;  %9581 = vst [vmem:[#allocation52_spill] sm:$0xff] %v6071_v46  ;;  %9582 = vst [vmem:[#allocation53_spill] sm:$0xff] %v6075_v43  ;;  %v6079_v41 = vld [vmem:[#allocation6 + $0x10] sm:$0xff] }
 0x163   :  { %906 = vmatpush1.msra.mxu0 %v6051_v37  ;;  %977 = vmatpush1.msra.mxu1 %v6053_v56  ;;  %9583 = vst [vmem:[#allocation54_spill] sm:$0xff] %v6079_v41  ;;  %v6085_v56 = vld [vmem:[#allocation8 + $0x1e8] sm:$0xff]  ;;  %v6111_v37 = vld [vmem:[#allocation8 + $0x1b8] sm:$0xff] }
 0x164   :  { %907 = vmatprep.subr.mxu0 %v6057_v59  ;;  %978 = vmatprep.subr.mxu1 %v6059_v55  ;;  %9584 = vst [vmem:[#allocation55_spill] sm:$0xff] %v6085_v56  ;;  %v6087_v59 = vld [vmem:[#allocation8 + $0x1f8] sm:$0xff]  ;;  %v6109_v55 = vld [vmem:[#allocation8 + $0x1a8] sm:$0xff]  ;;  %9593 = vst [vmem:[#allocation64_spill] sm:$0xff] %v6111_v37 }
 0x165   :  { %908 = vmatpush1.msra.mxu0 %v6063_v52  ;;  %979 = vmatpush1.msra.mxu1 %v6065_v47  ;;  %9585 = vst [vmem:[#allocation56_spill] sm:$0xff] %v6087_v59  ;;  %v6091_v52 = vld [vmem:[#allocation8 + $0x1e0] sm:$0xff]  ;;  %v6093_v47 = vld [vmem:[#allocation8 + $0x1f0] sm:$0xff]  ;;  %9592 = vst [vmem:[#allocation63_spill] sm:$0xff] %v6109_v55 }
 0x166   :  { %909 = vmatprep.subr.mxu0 %v6069_v50  ;;  %980 = vmatprep.subr.mxu1 %v6071_v46  ;;  %9586 = vst [vmem:[#allocation57_spill] sm:$0xff] %v6091_v52  ;;  %9587 = vst [vmem:[#allocation58_spill] sm:$0xff] %v6093_v47  ;;  %v6097_v46 = vld [vmem:[#allocation8 + $0x1c8] sm:$0xff]  ;;  %v6103_v50 = vld [vmem:[#allocation8 + $0x1c0] sm:$0xff] }
 0x167   :  { %910 = vmatpush1.msra.mxu0 %v6075_v43  ;;  %943 = vmatprep.mubr.f32.mxu0 %v9538_v6  ;;  %9588 = vst [vmem:[#allocation59_spill] sm:$0xff] %v6097_v46  ;;  %v6099_v43 = vld [vmem:[#allocation8 + $0x1d8] sm:$0xff]  ;;  %9590 = vst [vmem:[#allocation61_spill] sm:$0xff] %v6103_v50 }
 0x168   :  { %981 = vmatpush1.msra.mxu1 %v6079_v41  ;;  %1014 = vmatprep.mubr.f32.mxu1 %v9538_v6  ;;  %9589 = vst [vmem:[#allocation60_spill] sm:$0xff] %v6099_v43  ;;  %v6105_v41 = vld [vmem:[#allocation8 + $0x1d0] sm:$0xff] }
 0x169   :  { %944 = vmatmul.mubr.f32.vlgmr.msra.gmra.mxu0 %v5895_v49  ;;  %1015 = vmatmul.mubr.f32.vlgmr.msra.gmra.mxu1 %v5895_v49  ;;  %9591 = vst [vmem:[#allocation62_spill] sm:$0xff] %v6105_v41  ;;  %v6115_v49 = vld [vmem:[#allocation8 + $0x1a0] sm:$0xff] }
 0x16a   :  { %1085 = vmatprep.subr.mxu0 %v6085_v56  ;;  %1156 = vmatprep.subr.mxu1 %v6087_v59  ;;  %9594 = vst [vmem:[#allocation65_spill] sm:$0xff] %v6115_v49  ;;  %v6117_v56 = vld [vmem:[#allocation8 + $0x1b0] sm:$0xff]  ;;  %v6121_v59 = vld [vmem:[#allocation8 + $0x188] sm:$0xff] }
 0x16b   :  { %1086 = vmatpush1.msra.mxu0 %v6091_v52  ;;  %1157 = vmatpush1.msra.mxu1 %v6093_v47  ;;  %9595 = vst [vmem:[#allocation66_spill] sm:$0xff] %v6117_v56  ;;  %9596 = vst [vmem:[#allocation67_spill] sm:$0xff] %v6121_v59  ;;  %v6123_v52 = vld [vmem:[#allocation8 + $0x198] sm:$0xff]  ;;  %v6127_v47 = vld [vmem:[#allocation8 + $0x180] sm:$0xff] }
 0x16c   :  { %1087 = vmatprep.subr.mxu0 %v6097_v46  ;;  %1158 = vmatprep.subr.mxu1 %v6099_v43  ;;  %9597 = vst [vmem:[#allocation68_spill] sm:$0xff] %v6123_v52  ;;  %9598 = vst [vmem:[#allocation69_spill] sm:$0xff] %v6127_v47  ;;  %v6129_v46 = vld [vmem:[#allocation8 + $0x190] sm:$0xff]  ;;  %v6133_v43 = vld [vmem:[#allocation8 + $0x168] sm:$0xff] }
 0x16d   :  { %1088 = vmatpush1.msra.mxu0 %v6103_v50  ;;  %1159 = vmatpush1.msra.mxu1 %v6105_v41  ;;  %9599 = vst [vmem:[#allocation70_spill] sm:$0xff] %v6129_v46  ;;  %9600 = vst [vmem:[#allocation71_spill] sm:$0xff] %v6133_v43  ;;  %v6135_v50 = vld [vmem:[#allocation8 + $0x178] sm:$0xff]  ;;  %v6139_v41 = vld [vmem:[#allocation8 + $0x160] sm:$0xff] }
 0x16e   :  { %1089 = vmatprep.subr.mxu0 %v6109_v55  ;;  %1160 = vmatprep.subr.mxu1 %v6111_v37  ;;  %9601 = vst [vmem:[#allocation72_spill] sm:$0xff] %v6135_v50  ;;  %9602 = vst [vmem:[#allocation73_spill] sm:$0xff] %v6139_v41  ;;  %v6141_v55 = vld [vmem:[#allocation8 + $0x170] sm:$0xff]  ;;  %v6145_v37 = vld [vmem:[#allocation8 + $0x148] sm:$0xff] }
 0x16f   :  { %1090 = vmatpush1.msra.mxu0 %v6115_v49  ;;  %1161 = vmatpush1.msra.mxu1 %v6117_v56  ;;  %9603 = vst [vmem:[#allocation74_spill] sm:$0xff] %v6141_v55  ;;  %9604 = vst [vmem:[#allocation75_spill] sm:$0xff] %v6145_v37  ;;  %v6147_v49 = vld [vmem:[#allocation8 + $0x158] sm:$0xff]  ;;  %v6151_v56 = vld [vmem:[#allocation8 + $0x140] sm:$0xff] }
 0x170   :  { %1091 = vmatprep.subr.mxu0 %v6121_v59  ;;  %1162 = vmatprep.subr.mxu1 %v6123_v52  ;;  %9605 = vst [vmem:[#allocation76_spill] sm:$0xff] %v6147_v49  ;;  %9606 = vst [vmem:[#allocation77_spill] sm:$0xff] %v6151_v56  ;;  %v6153_v59 = vld [vmem:[#allocation8 + $0x150] sm:$0xff]  ;;  %v6157_v52 = vld [vmem:[#allocation8 + $0x128] sm:$0xff] }
 0x171   :  { %1092 = vmatpush1.msra.mxu0 %v6127_v47  ;;  %1163 = vmatpush1.msra.mxu1 %v6129_v46  ;;  %9607 = vst [vmem:[#allocation78_spill] sm:$0xff] %v6153_v59  ;;  %9608 = vst [vmem:[#allocation79_spill] sm:$0xff] %v6157_v52  ;;  %v6159_v47 = vld [vmem:[#allocation8 + $0x138] sm:$0xff]  ;;  %v6163_v46 = vld [vmem:[#allocation8 + $0x120] sm:$0xff] }
 0x172   :  { %1093 = vmatprep.subr.mxu0 %v6133_v43  ;;  %1164 = vmatprep.subr.mxu1 %v6135_v50  ;;  %9609 = vst [vmem:[#allocation80_spill] sm:$0xff] %v6159_v47  ;;  %9610 = vst [vmem:[#allocation81_spill] sm:$0xff] %v6163_v46  ;;  %v6165_v43 = vld [vmem:[#allocation8 + $0x130] sm:$0xff]  ;;  %v6169_v50 = vld [vmem:[#allocation8 + $0x108] sm:$0xff] }
 0x173   :  { %1094 = vmatpush1.msra.mxu0 %v6139_v41  ;;  %1165 = vmatpush1.msra.mxu1 %v6141_v55  ;;  %9611 = vst [vmem:[#allocation82_spill] sm:$0xff] %v6165_v43  ;;  %9612 = vst [vmem:[#allocation83_spill] sm:$0xff] %v6169_v50  ;;  %v6171_v41 = vld [vmem:[#allocation8 + $0x118] sm:$0xff]  ;;  %v6175_v55 = vld [vmem:[#allocation8 + $0x100] sm:$0xff] }
 0x174   :  { %1095 = vmatprep.subr.mxu0 %v6145_v37  ;;  %1166 = vmatprep.subr.mxu1 %v6147_v49  ;;  %9613 = vst [vmem:[#allocation84_spill] sm:$0xff] %v6171_v41  ;;  %9614 = vst [vmem:[#allocation85_spill] sm:$0xff] %v6175_v55  ;;  %v6177_v37 = vld [vmem:[#allocation8 + $0x110] sm:$0xff]  ;;  %v6181_v49 = vld [vmem:[#allocation8 + $0xe8] sm:$0xff] }
 0x175   :  { %1096 = vmatpush1.msra.mxu0 %v6151_v56  ;;  %1167 = vmatpush1.msra.mxu1 %v6153_v59  ;;  %9615 = vst [vmem:[#allocation86_spill] sm:$0xff] %v6177_v37  ;;  %9616 = vst [vmem:[#allocation87_spill] sm:$0xff] %v6181_v49  ;;  %v6183_v56 = vld [vmem:[#allocation8 + $0xf8] sm:$0xff]  ;;  %v6187_v59 = vld [vmem:[#allocation8 + $0xe0] sm:$0xff] }
 0x176   :  { %1097 = vmatprep.subr.mxu0 %v6157_v52  ;;  %1168 = vmatprep.subr.mxu1 %v6159_v47  ;;  %9617 = vst [vmem:[#allocation88_spill] sm:$0xff] %v6183_v56  ;;  %9618 = vst [vmem:[#allocation89_spill] sm:$0xff] %v6187_v59  ;;  %v6189_v52 = vld [vmem:[#allocation8 + $0xf0] sm:$0xff]  ;;  %v6193_v47 = vld [vmem:[#allocation8 + $0xc8] sm:$0xff] }
 0x177   :  { %1098 = vmatpush1.msra.mxu0 %v6163_v46  ;;  %1169 = vmatpush1.msra.mxu1 %v6165_v43  ;;  %9619 = vst [vmem:[#allocation90_spill] sm:$0xff] %v6189_v52  ;;  %9620 = vst [vmem:[#allocation91_spill] sm:$0xff] %v6193_v47  ;;  %v6195_v46 = vld [vmem:[#allocation8 + $0xd8] sm:$0xff]  ;;  %v6199_v43 = vld [vmem:[#allocation8 + $0xc0] sm:$0xff] }
 0x178   :  { %1099 = vmatprep.subr.mxu0 %v6169_v50  ;;  %1170 = vmatprep.subr.mxu1 %v6171_v41  ;;  %9621 = vst [vmem:[#allocation92_spill] sm:$0xff] %v6195_v46  ;;  %9622 = vst [vmem:[#allocation93_spill] sm:$0xff] %v6199_v43  ;;  %v6201_v50 = vld [vmem:[#allocation8 + $0xd0] sm:$0xff]  ;;  %v6205_v41 = vld [vmem:[#allocation8 + $0xa8] sm:$0xff] }
 0x179   :  { %1100 = vmatpush1.msra.mxu0 %v6175_v55  ;;  %1171 = vmatpush1.msra.mxu1 %v6177_v37  ;;  %9623 = vst [vmem:[#allocation94_spill] sm:$0xff] %v6201_v50  ;;  %9624 = vst [vmem:[#allocation95_spill] sm:$0xff] %v6205_v41  ;;  %v6207_v55 = vld [vmem:[#allocation8 + $0xb8] sm:$0xff]  ;;  %v6211_v37 = vld [vmem:[#allocation8 + $0xa0] sm:$0xff] }
 0x17a   :  { %1101 = vmatprep.subr.mxu0 %v6181_v49  ;;  %1172 = vmatprep.subr.mxu1 %v6183_v56  ;;  %9625 = vst [vmem:[#allocation96_spill] sm:$0xff] %v6207_v55  ;;  %9626 = vst [vmem:[#allocation97_spill] sm:$0xff] %v6211_v37  ;;  %v6213_v49 = vld [vmem:[#allocation8 + $0xb0] sm:$0xff]  ;;  %v6217_v56 = vld [vmem:[#allocation8 + $0x88] sm:$0xff] }
 0x17b   :  { %1102 = vmatpush1.msra.mxu0 %v6187_v59  ;;  %1173 = vmatpush1.msra.mxu1 %v6189_v52  ;;  %9627 = vst [vmem:[#allocation98_spill] sm:$0xff] %v6213_v49  ;;  %9628 = vst [vmem:[#allocation99_spill] sm:$0xff] %v6217_v56  ;;  %v6219_v59 = vld [vmem:[#allocation8 + $0x98] sm:$0xff]  ;;  %v6223_v52 = vld [vmem:[#allocation8 + $0x80] sm:$0xff] }
 0x17c   :  { %1103 = vmatprep.subr.mxu0 %v6193_v47  ;;  %1174 = vmatprep.subr.mxu1 %v6195_v46  ;;  %9629 = vst [vmem:[#allocation100_spill] sm:$0xff] %v6219_v59  ;;  %9630 = vst [vmem:[#allocation101_spill] sm:$0xff] %v6223_v52  ;;  %v6225_v47 = vld [vmem:[#allocation8 + $0x90] sm:$0xff]  ;;  %v6229_v46 = vld [vmem:[#allocation8 + $0x68] sm:$0xff] }
 0x17d   :  { %1104 = vmatpush1.msra.mxu0 %v6199_v43  ;;  %1175 = vmatpush1.msra.mxu1 %v6201_v50  ;;  %9631 = vst [vmem:[#allocation102_spill] sm:$0xff] %v6225_v47  ;;  %9632 = vst [vmem:[#allocation103_spill] sm:$0xff] %v6229_v46  ;;  %v6231_v43 = vld [vmem:[#allocation8 + $0x78] sm:$0xff]  ;;  %v6235_v50 = vld [vmem:[#allocation8 + $0x60] sm:$0xff] }
 0x17e   :  { %1105 = vmatprep.subr.mxu0 %v6205_v41  ;;  %1176 = vmatprep.subr.mxu1 %v6207_v55  ;;  %9633 = vst [vmem:[#allocation104_spill] sm:$0xff] %v6231_v43  ;;  %9634 = vst [vmem:[#allocation105_spill] sm:$0xff] %v6235_v50  ;;  %v6237_v41 = vld [vmem:[#allocation8 + $0x70] sm:$0xff]  ;;  %v6241_v55 = vld [vmem:[#allocation8 + $0x48] sm:$0xff] }
 0x17f   :  { %1106 = vmatpush1.msra.mxu0 %v6211_v37  ;;  %1177 = vmatpush1.msra.mxu1 %v6213_v49  ;;  %9635 = vst [vmem:[#allocation106_spill] sm:$0xff] %v6237_v41  ;;  %9636 = vst [vmem:[#allocation107_spill] sm:$0xff] %v6241_v55  ;;  %v6243_v37 = vld [vmem:[#allocation8 + $0x58] sm:$0xff]  ;;  %v6247_v49 = vld [vmem:[#allocation8 + $0x40] sm:$0xff] }
 0x180   :  { %1107 = vmatprep.subr.mxu0 %v6217_v56  ;;  %1178 = vmatprep.subr.mxu1 %v6219_v59  ;;  %9637 = vst [vmem:[#allocation108_spill] sm:$0xff] %v6243_v37  ;;  %9638 = vst [vmem:[#allocation109_spill] sm:$0xff] %v6247_v49  ;;  %v6249_v56 = vld [vmem:[#allocation8 + $0x50] sm:$0xff]  ;;  %v6253_v59 = vld [vmem:[#allocation8 + $0x28] sm:$0xff] }
 0x181   :  { %1108 = vmatpush1.msra.mxu0 %v6223_v52  ;;  %1179 = vmatpush1.msra.mxu1 %v6225_v47  ;;  %9639 = vst [vmem:[#allocation110_spill] sm:$0xff] %v6249_v56  ;;  %9640 = vst [vmem:[#allocation111_spill] sm:$0xff] %v6253_v59  ;;  %v6255_v52 = vld [vmem:[#allocation8 + $0x38] sm:$0xff]  ;;  %v6259_v47 = vld [vmem:[#allocation8 + $0x20] sm:$0xff] }
 0x182   :  { %1109 = vmatprep.subr.mxu0 %v6229_v46  ;;  %1180 = vmatprep.subr.mxu1 %v6231_v43  ;;  %9641 = vst [vmem:[#allocation112_spill] sm:$0xff] %v6255_v52  ;;  %9642 = vst [vmem:[#allocation113_spill] sm:$0xff] %v6259_v47  ;;  %v6261_v46 = vld [vmem:[#allocation8 + $0x30] sm:$0xff]  ;;  %v6265_v43 = vld [vmem:[#allocation8 + $0x8] sm:$0xff] }
 0x183   :  { %1110 = vmatpush1.msra.mxu0 %v6235_v50  ;;  %1181 = vmatpush1.msra.mxu1 %v6237_v41  ;;  %9643 = vst [vmem:[#allocation114_spill] sm:$0xff] %v6261_v46  ;;  %9644 = vst [vmem:[#allocation115_spill] sm:$0xff] %v6265_v43  ;;  %v6267_v50 = vld [vmem:[#allocation8 + $0x18] sm:$0xff]  ;;  %v6271_v41 = vld [vmem:[#allocation8] sm:$0xff] }
 0x184   :  { %1111 = vmatprep.subr.mxu0 %v6241_v55  ;;  %1182 = vmatprep.subr.mxu1 %v6243_v37  ;;  %9645 = vst [vmem:[#allocation116_spill] sm:$0xff] %v6267_v50  ;;  %9646 = vst [vmem:[#allocation117_spill] sm:$0xff] %v6271_v41  ;;  %v6275_v37 = vld [vmem:[#allocation8 + $0x10] sm:$0xff] }
 0x185   :  { %1112 = vmatpush1.msra.mxu0 %v6247_v49  ;;  %1183 = vmatpush1.msra.mxu1 %v6249_v56  ;;  %9647 = vst [vmem:[#allocation118_spill] sm:$0xff] %v6275_v37 }
 0x186   :  { %1113 = vmatprep.subr.mxu0 %v6253_v59  ;;  %1184 = vmatprep.subr.mxu1 %v6255_v52 }
 0x187   :  { %1114 = vmatpush1.msra.mxu0 %v6259_v47  ;;  %1185 = vmatpush1.msra.mxu1 %v6261_v46  ;;  %v6285_v47 = vld [vmem:[#allocation4 + $0x1e8] sm:$0xff]  ;;  %v6288_v46 = vld [vmem:[#allocation4 + $0x1f8] sm:$0xff] }
 0x188   :  { %1115 = vmatprep.subr.mxu0 %v6265_v43  ;;  %1186 = vmatprep.subr.mxu1 %v6267_v50  ;;  %9648 = vst [vmem:[#allocation119_spill] sm:$0xff] %v6285_v47  ;;  %9649 = vst [vmem:[#allocation120_spill] sm:$0xff] %v6288_v46  ;;  %v6291_v50 = vld [vmem:[#allocation4 + $0x1e0] sm:$0xff]  ;;  %v6300_v43 = vld [vmem:[#allocation4 + $0x1d8] sm:$0xff] }
 0x189   :  { %1116 = vmatpush1.msra.mxu0 %v6271_v41  ;;  %1149 = vmatprep.mubr.f32.mxu0 %v9538_v6  ;;  %9650 = vst [vmem:[#allocation121_spill] sm:$0xff] %v6291_v50  ;;  %v6294_v41 = vld [vmem:[#allocation4 + $0x1f0] sm:$0xff]  ;;  %9653 = vst [vmem:[#allocation124_spill] sm:$0xff] %v6300_v43 }
 0x18a   :  { %1187 = vmatpush1.msra.mxu1 %v6275_v37  ;;  %1220 = vmatprep.mubr.f32.mxu1 %v9538_v6  ;;  %9651 = vst [vmem:[#allocation122_spill] sm:$0xff] %v6294_v41  ;;  %v6297_v37 = vld [vmem:[#allocation4 + $0x1c8] sm:$0xff] }
 0x18b   :  { %1150 = vmatmul.mubr.f32.vlgmr.msra.gmra.mxu0 %v9538_v6  ;;  %1221 = vmatmul.mubr.f32.vlgmr.msra.gmra.mxu1 %v9538_v6  ;;  %9652 = vst [vmem:[#allocation123_spill] sm:$0xff] %v6297_v37 }
 0x18c   :  { %1254 = vmatprep.subr.mxu0 %v6285_v47  ;;  %1325 = vmatprep.subr.mxu1 %v6288_v46  ;;  %v6303_v47 = vld [vmem:[#allocation4 + $0x1c0] sm:$0xff]  ;;  %v6306_v46 = vld [vmem:[#allocation4 + $0x1d0] sm:$0xff] }
 0x18d   :  { %1255 = vmatpush1.msra.mxu0 %v6291_v50  ;;  %1326 = vmatpush1.msra.mxu1 %v6294_v41  ;;  %9654 = vst [vmem:[#allocation125_spill] sm:$0xff] %v6303_v47  ;;  %9655 = vst [vmem:[#allocation126_spill] sm:$0xff] %v6306_v46  ;;  %v6309_v50 = vld [vmem:[#allocation4 + $0x1a8] sm:$0xff]  ;;  %v6312_v41 = vld [vmem:[#allocation4 + $0x1b8] sm:$0xff] }
 0x18e   :  { %1256 = vmatprep.subr.mxu0 %v6297_v37  ;;  %1327 = vmatprep.subr.mxu1 %v6300_v43  ;;  %9656 = vst [vmem:[#allocation127_spill] sm:$0xff] %v6309_v50  ;;  %9657 = vst [vmem:[#allocation128_spill] sm:$0xff] %v6312_v41  ;;  %v6315_v37 = vld [vmem:[#allocation4 + $0x1a0] sm:$0xff]  ;;  %v6318_v43 = vld [vmem:[#allocation4 + $0x1b0] sm:$0xff] }
 0x18f   :  { %1257 = vmatpush1.msra.mxu0 %v6303_v47  ;;  %1328 = vmatpush1.msra.mxu1 %v6306_v46  ;;  %9658 = vst [vmem:[#allocation129_spill] sm:$0xff] %v6315_v37  ;;  %9659 = vst [vmem:[#allocation130_spill] sm:$0xff] %v6318_v43  ;;  %v6321_v47 = vld [vmem:[#allocation4 + $0x188] sm:$0xff]  ;;  %v6324_v46 = vld [vmem:[#allocation4 + $0x198] sm:$0xff] }
 0x190   :  { %1258 = vmatprep.subr.mxu0 %v6309_v50  ;;  %1329 = vmatprep.subr.mxu1 %v6312_v41  ;;  %9660 = vst [vmem:[#allocation131_spill] sm:$0xff] %v6321_v47  ;;  %9661 = vst [vmem:[#allocation132_spill] sm:$0xff] %v6324_v46  ;;  %v6327_v50 = vld [vmem:[#allocation4 + $0x180] sm:$0xff]  ;;  %v6330_v41 = vld [vmem:[#allocation4 + $0x190] sm:$0xff] }
 0x191   :  { %1259 = vmatpush1.msra.mxu0 %v6315_v37  ;;  %1330 = vmatpush1.msra.mxu1 %v6318_v43  ;;  %9662 = vst [vmem:[#allocation133_spill] sm:$0xff] %v6327_v50  ;;  %9663 = vst [vmem:[#allocation134_spill] sm:$0xff] %v6330_v41  ;;  %v6333_v37 = vld [vmem:[#allocation4 + $0x168] sm:$0xff]  ;;  %v6336_v43 = vld [vmem:[#allocation4 + $0x178] sm:$0xff] }
 0x192   :  { %1260 = vmatprep.subr.mxu0 %v6321_v47  ;;  %1331 = vmatprep.subr.mxu1 %v6324_v46  ;;  %9664 = vst [vmem:[#allocation135_spill] sm:$0xff] %v6333_v37  ;;  %9665 = vst [vmem:[#allocation136_spill] sm:$0xff] %v6336_v43  ;;  %v6339_v47 = vld [vmem:[#allocation4 + $0x160] sm:$0xff]  ;;  %v6342_v46 = vld [vmem:[#allocation4 + $0x170] sm:$0xff] }
 0x193   :  { %1261 = vmatpush1.msra.mxu0 %v6327_v50  ;;  %1332 = vmatpush1.msra.mxu1 %v6330_v41  ;;  %9666 = vst [vmem:[#allocation137_spill] sm:$0xff] %v6339_v47  ;;  %9667 = vst [vmem:[#allocation138_spill] sm:$0xff] %v6342_v46  ;;  %v6345_v50 = vld [vmem:[#allocation4 + $0x148] sm:$0xff]  ;;  %v6348_v41 = vld [vmem:[#allocation4 + $0x158] sm:$0xff] }
 0x194   :  { %1262 = vmatprep.subr.mxu0 %v6333_v37  ;;  %1333 = vmatprep.subr.mxu1 %v6336_v43  ;;  %9668 = vst [vmem:[#allocation139_spill] sm:$0xff] %v6345_v50  ;;  %9669 = vst [vmem:[#allocation140_spill] sm:$0xff] %v6348_v41  ;;  %v6351_v37 = vld [vmem:[#allocation4 + $0x140] sm:$0xff]  ;;  %v6354_v43 = vld [vmem:[#allocation4 + $0x150] sm:$0xff] }
 0x195   :  { %1263 = vmatpush1.msra.mxu0 %v6339_v47  ;;  %1334 = vmatpush1.msra.mxu1 %v6342_v46  ;;  %9670 = vst [vmem:[#allocation141_spill] sm:$0xff] %v6351_v37  ;;  %9671 = vst [vmem:[#allocation142_spill] sm:$0xff] %v6354_v43  ;;  %v6357_v47 = vld [vmem:[#allocation4 + $0x128] sm:$0xff]  ;;  %v6360_v46 = vld [vmem:[#allocation4 + $0x138] sm:$0xff] }
 0x196   :  { %1264 = vmatprep.subr.mxu0 %v6345_v50  ;;  %1335 = vmatprep.subr.mxu1 %v6348_v41  ;;  %9672 = vst [vmem:[#allocation143_spill] sm:$0xff] %v6357_v47  ;;  %9673 = vst [vmem:[#allocation144_spill] sm:$0xff] %v6360_v46  ;;  %v6363_v50 = vld [vmem:[#allocation4 + $0x120] sm:$0xff]  ;;  %v6366_v41 = vld [vmem:[#allocation4 + $0x130] sm:$0xff] }
 0x197   :  { %1265 = vmatpush1.msra.mxu0 %v6351_v37  ;;  %1336 = vmatpush1.msra.mxu1 %v6354_v43  ;;  %9674 = vst [vmem:[#allocation145_spill] sm:$0xff] %v6363_v50  ;;  %9675 = vst [vmem:[#allocation146_spill] sm:$0xff] %v6366_v41  ;;  %v6369_v37 = vld [vmem:[#allocation4 + $0x108] sm:$0xff]  ;;  %v6372_v43 = vld [vmem:[#allocation4 + $0x118] sm:$0xff] }
 0x198   :  { %1266 = vmatprep.subr.mxu0 %v6357_v47  ;;  %1337 = vmatprep.subr.mxu1 %v6360_v46  ;;  %9676 = vst [vmem:[#allocation147_spill] sm:$0xff] %v6369_v37  ;;  %9677 = vst [vmem:[#allocation148_spill] sm:$0xff] %v6372_v43  ;;  %v6375_v47 = vld [vmem:[#allocation4 + $0x100] sm:$0xff]  ;;  %v6378_v46 = vld [vmem:[#allocation4 + $0x110] sm:$0xff] }
 0x199   :  { %1267 = vmatpush1.msra.mxu0 %v6363_v50  ;;  %1338 = vmatpush1.msra.mxu1 %v6366_v41  ;;  %9678 = vst [vmem:[#allocation149_spill] sm:$0xff] %v6375_v47  ;;  %9679 = vst [vmem:[#allocation150_spill] sm:$0xff] %v6378_v46  ;;  %v6381_v50 = vld [vmem:[#allocation4 + $0xe8] sm:$0xff]  ;;  %v6384_v41 = vld [vmem:[#allocation4 + $0xf8] sm:$0xff] }
 0x19a   :  { %1268 = vmatprep.subr.mxu0 %v6369_v37  ;;  %1339 = vmatprep.subr.mxu1 %v6372_v43  ;;  %9680 = vst [vmem:[#allocation151_spill] sm:$0xff] %v6381_v50  ;;  %9681 = vst [vmem:[#allocation152_spill] sm:$0xff] %v6384_v41  ;;  %v6387_v37 = vld [vmem:[#allocation4 + $0xe0] sm:$0xff]  ;;  %v6390_v43 = vld [vmem:[#allocation4 + $0xf0] sm:$0xff] }
 0x19b   :  { %1269 = vmatpush1.msra.mxu0 %v6375_v47  ;;  %1340 = vmatpush1.msra.mxu1 %v6378_v46  ;;  %9682 = vst [vmem:[#allocation153_spill] sm:$0xff] %v6387_v37  ;;  %9683 = vst [vmem:[#allocation154_spill] sm:$0xff] %v6390_v43  ;;  %v6393_v47 = vld [vmem:[#allocation4 + $0xc8] sm:$0xff]  ;;  %v6396_v46 = vld [vmem:[#allocation4 + $0xd8] sm:$0xff] }
 0x19c   :  { %1270 = vmatprep.subr.mxu0 %v6381_v50  ;;  %1341 = vmatprep.subr.mxu1 %v6384_v41  ;;  %9684 = vst [vmem:[#allocation155_spill] sm:$0xff] %v6393_v47  ;;  %9685 = vst [vmem:[#allocation156_spill] sm:$0xff] %v6396_v46  ;;  %v6399_v50 = vld [vmem:[#allocation4 + $0xc0] sm:$0xff]  ;;  %v6402_v41 = vld [vmem:[#allocation4 + $0xd0] sm:$0xff] }
 0x19d   :  { %1271 = vmatpush1.msra.mxu0 %v6387_v37  ;;  %1342 = vmatpush1.msra.mxu1 %v6390_v43  ;;  %9686 = vst [vmem:[#allocation157_spill] sm:$0xff] %v6399_v50  ;;  %9687 = vst [vmem:[#allocation158_spill] sm:$0xff] %v6402_v41  ;;  %v6405_v37 = vld [vmem:[#allocation4 + $0xa8] sm:$0xff]  ;;  %v6408_v43 = vld [vmem:[#allocation4 + $0xb8] sm:$0xff] }
 0x19e   :  { %1272 = vmatprep.subr.mxu0 %v6393_v47  ;;  %1343 = vmatprep.subr.mxu1 %v6396_v46  ;;  %9688 = vst [vmem:[#allocation159_spill] sm:$0xff] %v6405_v37  ;;  %9689 = vst [vmem:[#allocation160_spill] sm:$0xff] %v6408_v43  ;;  %v6411_v47 = vld [vmem:[#allocation4 + $0xa0] sm:$0xff]  ;;  %v6414_v46 = vld [vmem:[#allocation4 + $0xb0] sm:$0xff] }
 0x19f   :  { %1273 = vmatpush1.msra.mxu0 %v6399_v50  ;;  %1344 = vmatpush1.msra.mxu1 %v6402_v41  ;;  %9690 = vst [vmem:[#allocation161_spill] sm:$0xff] %v6411_v47  ;;  %9691 = vst [vmem:[#allocation162_spill] sm:$0xff] %v6414_v46  ;;  %v6417_v50 = vld [vmem:[#allocation4 + $0x88] sm:$0xff]  ;;  %v6420_v41 = vld [vmem:[#allocation4 + $0x98] sm:$0xff] }
 0x1a0   :  { %1274 = vmatprep.subr.mxu0 %v6405_v37  ;;  %1345 = vmatprep.subr.mxu1 %v6408_v43  ;;  %9692 = vst [vmem:[#allocation163_spill] sm:$0xff] %v6417_v50  ;;  %9693 = vst [vmem:[#allocation164_spill] sm:$0xff] %v6420_v41  ;;  %v6423_v37 = vld [vmem:[#allocation4 + $0x80] sm:$0xff]  ;;  %v6426_v43 = vld [vmem:[#allocation4 + $0x90] sm:$0xff] }
 0x1a1   :  { %1275 = vmatpush1.msra.mxu0 %v6411_v47  ;;  %1346 = vmatpush1.msra.mxu1 %v6414_v46  ;;  %9694 = vst [vmem:[#allocation165_spill] sm:$0xff] %v6423_v37  ;;  %9695 = vst [vmem:[#allocation166_spill] sm:$0xff] %v6426_v43  ;;  %v6429_v47 = vld [vmem:[#allocation4 + $0x68] sm:$0xff]  ;;  %v6432_v46 = vld [vmem:[#allocation4 + $0x78] sm:$0xff] }
 0x1a2   :  { %1276 = vmatprep.subr.mxu0 %v6417_v50  ;;  %1347 = vmatprep.subr.mxu1 %v6420_v41  ;;  %9696 = vst [vmem:[#allocation167_spill] sm:$0xff] %v6429_v47  ;;  %9697 = vst [vmem:[#allocation168_spill] sm:$0xff] %v6432_v46  ;;  %v6435_v50 = vld [vmem:[#allocation4 + $0x60] sm:$0xff]  ;;  %v6438_v41 = vld [vmem:[#allocation4 + $0x70] sm:$0xff] }
 0x1a3   :  { %1277 = vmatpush1.msra.mxu0 %v6423_v37  ;;  %1348 = vmatpush1.msra.mxu1 %v6426_v43  ;;  %9698 = vst [vmem:[#allocation169_spill] sm:$0xff] %v6435_v50  ;;  %9699 = vst [vmem:[#allocation170_spill] sm:$0xff] %v6438_v41  ;;  %v6441_v37 = vld [vmem:[#allocation4 + $0x48] sm:$0xff]  ;;  %v6444_v43 = vld [vmem:[#allocation4 + $0x58] sm:$0xff] }
 0x1a4   :  { %1278 = vmatprep.subr.mxu0 %v6429_v47  ;;  %1349 = vmatprep.subr.mxu1 %v6432_v46  ;;  %9700 = vst [vmem:[#allocation171_spill] sm:$0xff] %v6441_v37  ;;  %9701 = vst [vmem:[#allocation172_spill] sm:$0xff] %v6444_v43  ;;  %v6447_v47 = vld [vmem:[#allocation4 + $0x40] sm:$0xff]  ;;  %v6450_v46 = vld [vmem:[#allocation4 + $0x50] sm:$0xff] }
 0x1a5   :  { %1279 = vmatpush1.msra.mxu0 %v6435_v50  ;;  %1350 = vmatpush1.msra.mxu1 %v6438_v41  ;;  %9702 = vst [vmem:[#allocation173_spill] sm:$0xff] %v6447_v47  ;;  %9703 = vst [vmem:[#allocation174_spill] sm:$0xff] %v6450_v46  ;;  %v6453_v50 = vld [vmem:[#allocation4 + $0x28] sm:$0xff]  ;;  %v6456_v41 = vld [vmem:[#allocation4 + $0x38] sm:$0xff] }
 0x1a6   :  { %1280 = vmatprep.subr.mxu0 %v6441_v37  ;;  %1351 = vmatprep.subr.mxu1 %v6444_v43  ;;  %9704 = vst [vmem:[#allocation175_spill] sm:$0xff] %v6453_v50  ;;  %9705 = vst [vmem:[#allocation176_spill] sm:$0xff] %v6456_v41  ;;  %v6459_v37 = vld [vmem:[#allocation4 + $0x20] sm:$0xff]  ;;  %v6462_v43 = vld [vmem:[#allocation4 + $0x30] sm:$0xff] }
 0x1a7   :  { %1281 = vmatpush1.msra.mxu0 %v6447_v47  ;;  %1352 = vmatpush1.msra.mxu1 %v6450_v46  ;;  %9706 = vst [vmem:[#allocation177_spill] sm:$0xff] %v6459_v37  ;;  %9707 = vst [vmem:[#allocation178_spill] sm:$0xff] %v6462_v43  ;;  %v6465_v47 = vld [vmem:[#allocation4 + $0x8] sm:$0xff]  ;;  %v6468_v46 = vld [vmem:[#allocation4 + $0x18] sm:$0xff] }
 0x1a8   :  { %1282 = vmatprep.subr.mxu0 %v6453_v50  ;;  %1353 = vmatprep.subr.mxu1 %v6456_v41  ;;  %9708 = vst [vmem:[#allocation179_spill] sm:$0xff] %v6465_v47  ;;  %9709 = vst [vmem:[#allocation180_spill] sm:$0xff] %v6468_v46  ;;  %v6471_v50 = vld [vmem:[#allocation4] sm:$0xff] }
 0x1a9   :  { %1283 = vmatpush1.msra.mxu0 %v6459_v37  ;;  %1354 = vmatpush1.msra.mxu1 %v6462_v43  ;;  %9710 = vst [vmem:[#allocation181_spill] sm:$0xff] %v6471_v50 }
 0x1aa   :  { %1284 = vmatprep.subr.mxu0 %v6465_v47  ;;  %1355 = vmatprep.subr.mxu1 %v6468_v46 }
 0x1ab   :  { %1285 = vmatpush1.msra.mxu0 %v6471_v50  ;;  %1356 = vmatpush1.msra.mxu1 %v5705_v5 }
 0x1ac   :  { %1318 = vmatprep.mubr.f32.mxu0 %v9538_v6  ;;  %1389 = vmatprep.mubr.f32.mxu1 %v9538_v6 }
 0x1ad   :  { %1418 = vmatprep.subr.mxu0 %v5781_v8  ;;  %1489 = vmatprep.subr.mxu1 %v5783_v9 }
 0x208   :  { %v695_v43 = vpop.f32.mrf.mxu0  ;;  %v766_v37 = vpop.f32.mrf.mxu1 }
 0x209   :  { %v771_v47 = vadd.f32 %v695_v43, %v5816_v28  ;;  %v773_v50 = vadd.f32 %v766_v37, %v5819_v29 }
 0x20a   :  { %v697_v41 = vpop.f32.mrf.mxu0  ;;  %v768_v59 = vpop.f32.mrf.mxu1 }
 0x20b   :  { %v775_v46 = vmul.f32 0.5, %v771_v47  ;;  %v772_v52 = vadd.f32 %v697_v41, %v5821_v32  ;;  %v774_v56 = vadd.f32 %v768_v59, %v5824_v34 }
 0x20d   :  { %4592 = vtanh.f32 %v775_v46  ;;  %v779_v5 = vmul.f32 0.5, %v772_v52  ;;  %v784_v8 = vmul.f32 0.5, %v774_v56  ;;  %v9711_v52 = vsub.s32 0, %v5787_v11 }
 0x20f   :  { %4594 = vtanh.f32 %v779_v5  ;;  %v9743_v5 = vld [vmem:[#allocation58_spill] sm:$0xff] }
 0x210   :  { %4596 = vtanh.f32 %v773_v50 }
 0x211   :  { %4598 = vtanh.f32 %v784_v8  ;;  %v9744_v8 = vld [vmem:[#allocation59_spill] sm:$0xff] }
 0x21a   :  { %v4593_v49 = vpop.eup %4592 }
 0x21b   :  { %v777_v9 = vmul.f32 0.5, %v4593_v49  ;;  %v9742_v49 = vld [vmem:[#allocation57_spill] sm:$0xff] }
 0x21c   :  { %v4595_v55 = vpop.eup %4594 }
 0x21d   :  { %v778_v6 = vadd.f32 0.5, %v777_v9  ;;  %v781_v28 = vmul.f32 0.5, %v4595_v55  ;;  %v4597_v43 = vpop.eup %4596  ;;  %v9745_v9 = vld [vmem:[#allocation60_spill] sm:$0xff] }
 0x21e   :  { %v4599_v29 = vpop.eup %4598 }
 0x21f   :  { %v782_v47 = vadd.f32 0.5, %v781_v28  ;;  %v789_v38 = vmul.f32 %v4597_v43, %v778_v6  ;;  %v786_v37 = vmul.f32 0.5, %v4599_v29  ;;  %v857_v6 = vld [vmem:[%s8996_s6] sm:$0xf]  ;;  %v9746_v28 = vld [vmem:[#allocation61_spill] sm:$0xff] }
 0x220   :  { %v9747_v43 = vld [vmem:[#allocation62_spill] sm:$0xff] }
 0x221   :  { %v788_v32 = vmul.f32 %v782_v47, %v5892_v39  ;;  %v787_v46 = vadd.f32 0.5, %v786_v37  ;;  %v9748_v47 = vld [vmem:[#allocation63_spill] sm:$0xff]  ;;  %v9750_v37 = vld [vmem:[#allocation65_spill] sm:$0xff] }
 0x223   :  { %v6484_v41 = vadd.f32 %v789_v38, %v788_v32  ;;  %v9749_v32 = vld [vmem:[#allocation64_spill] sm:$0xff] }
 0x225   :  { %4600 = vtanh.f32 %v6484_v41 }
 0x229   :  { %v945_v38 = vpop.f32.mrf.mxu0 }
 0x22b   :  { %v947_v55 = vpop.f32.mrf.mxu0 }
 0x232   :  { %v4601_v34 = vpop.eup %4600 }
 0x233   :  { %v6487_v50 = vmul.f32 %v4601_v34, %v787_v46  ;;  %v9751_v46 = vld [vmem:[#allocation66_spill] sm:$0xff] }
 0x235   :  { %1319 = vmatmul.mubr.f32.vlgmr.msra.gmra.mxu0 %v6487_v50  ;;  %1390 = vmatmul.mubr.f32.vlgmr.msra.gmra.mxu1 %v6487_v50 }
 0x236   :  { %1419 = vmatpush1.msra.mxu0 %v5897_v53  ;;  %1490 = vmatpush1.msra.mxu1 %v5899_v54  ;;  %v9723_v53 = vld [vmem:[#allocation41_spill] sm:$0xff]  ;;  %v9724_v54 = vld [vmem:[#allocation42_spill] sm:$0xff] }
 0x237   :  { %1420 = vmatprep.subr.mxu0 %v5901_v57  ;;  %1491 = vmatprep.subr.mxu1 %v5903_v58  ;;  %v9725_v58 = vld [vmem:[#allocation43_spill] sm:$0xff] }
 0x238   :  { %1421 = vmatpush1.msra.mxu0 %v5907_v62  ;;  %1492 = vmatpush1.msra.mxu1 %v5909_v63  ;;  %v9726_v62 = vld [vmem:[#allocation44_spill] sm:$0xff] }
 0x239   :  { %1422 = vmatprep.subr.mxu0 %v5913_v3  ;;  %1493 = vmatprep.subr.mxu1 %v5915_v4  ;;  %v9727_v4 = vld [vmem:[#allocation45_spill] sm:$0xff] }
 0x23a   :  { %1423 = vmatpush1.msra.mxu0 %v5919_v33  ;;  %1494 = vmatpush1.msra.mxu1 %v5921_v42  ;;  %v9728_v33 = vld [vmem:[#allocation46_spill] sm:$0xff]  ;;  %v9729_v42 = vld [vmem:[#allocation47_spill] sm:$0xff] }
 0x23b   :  { %1424 = vmatprep.subr.mxu0 %v5925_v12  ;;  %1495 = vmatprep.subr.mxu1 %v5927_v21  ;;  %v9730_v12 = vld [vmem:[#allocation48_spill] sm:$0xff]  ;;  %v9731_v21 = vsub.s32 3, %v5787_v11 }
 0x23c   :  { %1425 = vmatpush1.msra.mxu0 %v5931_v17  ;;  %1496 = vmatpush1.msra.mxu1 %v5933_v26 }
 0x23d   :  { %1426 = vmatprep.subr.mxu0 %v5937_v7  ;;  %1497 = vmatprep.subr.mxu1 %v5939_v10  ;;  %v6567_v17 = vrot.slane %v857_v6, %v9731_v21  ;;  %v9733_v7 = vld [vmem:[#allocation49_spill] sm:$0xff]  ;;  %v9734_v10 = vld [vmem:[#allocation50_spill] sm:$0xff]  ;;  %v9776_v21 = vld [vmem:[#allocation91_spill] sm:$0xff] }
 0x23e   :  { %1427 = vmatpush1.msra.mxu0 %v5943_v25  ;;  %1498 = vmatpush1.msra.mxu1 %v5945_v30  ;;  %v9735_v25 = vld [vmem:[#allocation51_spill] sm:$0xff]  ;;  %v9736_v30 = vld [vmem:[#allocation52_spill] sm:$0xff] }
 0x23f   :  { %1428 = vmatprep.subr.mxu0 %v5949_v36  ;;  %1499 = vmatprep.subr.mxu1 %v5951_v1  ;;  %v9737_v36 = vld [vmem:[#allocation53_spill] sm:$0xff]  ;;  %v9738_v1 = vmov 0.0  }
 0x240   :  { %1429 = vmatpush1.msra.mxu0 %v5955_v22  ;;  %1500 = vmatpush1.msra.mxu1 %v5957_v45  ;;  %v9739_v45 = vld [vmem:[#allocation54_spill] sm:$0xff] }
 0x241   :  { %1430 = vmatprep.subr.mxu0 %v5961_v48  ;;  %1501 = vmatprep.subr.mxu1 %v5963_v18  ;;  %v9740_v48 = vld [vmem:[#allocation55_spill] sm:$0xff]  ;;  %v9741_v18 = vld [vmem:[#allocation56_spill] sm:$0xff] }
 0x242   :  { %1431 = vmatpush1.msra.mxu0 %v5967_v27  ;;  %1502 = vmatpush1.msra.mxu1 %v5969_v20  ;;  %v6528_v20 = vrot.slane %v857_v6, %v9711_v52  ;;  %v9754_v52 = vld [vmem:[#allocation69_spill] sm:$0xff] }
 0x243   :  { %1432 = vmatprep.subr.mxu0 %v5973_v14  ;;  %1503 = vmatprep.subr.mxu1 %v5975_v19  ;;  %v1016_v19 = vpop.f32.mrf.mxu1 }
 0x244   :  { %1433 = vmatpush1.msra.mxu0 %v5979_v13  ;;  %1504 = vmatpush1.msra.mxu1 %v5981_v44  ;;  %9712 = vst [vmem:[#allocation182_spill] sm:$0xff] %v6528_v20  ;;  %v9713_v13 = vsub.s32 1, %v5787_v11  ;;  %v946_v56 = vadd.f32 %v945_v38, %v6528_v20 }
 0x245   :  { %1434 = vmatprep.subr.mxu0 %v5985_v35  ;;  %1505 = vmatprep.subr.mxu1 %v5987_v40  ;;  %v1018_v35 = vpop.f32.mrf.mxu1  ;;  %v9721_v40 = vld [vmem:[#allocation39_spill] sm:$0xff] }
 0x246   :  { %1435 = vmatpush1.msra.mxu0 %v5991_v31  ;;  %1506 = vmatpush1.msra.mxu1 %v5993_v23  ;;  %v6536_v14 = vrot.slane %v857_v6, %v9713_v13  ;;  %v9719_v31 = vld [vmem:[#allocation37_spill] sm:$0xff]  ;;  %v9755_v13 = vld [vmem:[#allocation70_spill] sm:$0xff] }
 0x247   :  { %1436 = vmatprep.subr.mxu0 %v5997_v60  ;;  %1507 = vmatprep.subr.mxu1 %v5999_v16  ;;  %v9715_v60 = vld [vmem:[#allocation35_spill] sm:$0xff]  ;;  %v9716_v16 = vld [vmem:[#allocation36_spill] sm:$0xff] }
 0x248   :  { %9714 = vst [vmem:[#allocation183_spill] sm:$0xff] %v6536_v14  ;;  %1437 = vmatpush1.msra.mxu0 %v6003_v51  ;;  %1508 = vmatpush1.msra.mxu1 %v6005_v24  ;;  %v9717_v51 = vsub.s32 2, %v5787_v11  ;;  %v948_v23 = vadd.f32 %v947_v55, %v6536_v14  ;;  %9732 = vst [vmem:[#allocation36_spill] sm:$0xff] %v6567_v17  ;;  %v1019_v11 = vadd.f32 %v1018_v35, %v6567_v17  ;;  %v9756_v55 = vld [vmem:[#allocation71_spill] sm:$0xff]  ;;  %v9763_v35 = vld [vmem:[#allocation78_spill] sm:$0xff] }
 0x249   :  { %1438 = vmatprep.subr.mxu0 %v6009_v2  ;;  %1509 = vmatprep.subr.mxu1 %v6011_v15  ;;  %v9720_v15 = vld [vmem:[#allocation38_spill] sm:$0xff] }
 0x24a   :  { %1439 = vmatpush1.msra.mxu0 %v6015_v0  ;;  %1510 = vmatpush1.msra.mxu1 %v6017_v61  ;;  %v6549_v24 = vrot.slane %v857_v6, %v9717_v51  ;;  %v9722_v61 = vld [vmem:[#allocation40_spill] sm:$0xff]  ;;  %v9759_v51 = vld [vmem:[#allocation74_spill] sm:$0xff] }
 0x24b   :  { %v1151_v59 = vpop.f32.mrf.mxu0  ;;  %1440 = vmatprep.subr.mxu0 %v9715_v60  ;;  %1511 = vmatprep.subr.mxu1 %v9716_v16  ;;  %v1222_v57 = vpop.f32.mrf.mxu1  ;;  %v9753_v6 = vld [vmem:[#allocation68_spill] sm:$0xff]  ;;  %v9758_v16 = vld [vmem:[#allocation73_spill] sm:$0xff] }
 0x24c   :  { %9718 = vst [vmem:[#allocation35_spill] sm:$0xff] %v6549_v24  ;;  %v1227_v2 = vadd.f32 %v1151_v59, %v946_v56  ;;  %1441 = vmatpush1.msra.mxu0 %v9719_v31  ;;  %1512 = vmatpush1.msra.mxu1 %v9720_v15  ;;  %v1017_v63 = vadd.f32 %v1016_v19, %v6549_v24  ;;  %v9757_v56 = vld [vmem:[#allocation72_spill] sm:$0xff]  ;;  %v9762_v15 = vld [vmem:[#allocation77_spill] sm:$0xff] }
 0x24d   :  { %v1153_v0 = vpop.f32.mrf.mxu0  ;;  %1442 = vmatprep.subr.mxu0 %v9721_v40  ;;  %1513 = vmatprep.subr.mxu1 %v9722_v61  ;;  %v1224_v22 = vpop.f32.mrf.mxu1  ;;  %v9764_v40 = vld [vmem:[#allocation79_spill] sm:$0xff]  ;;  %v9765_v61 = vld [vmem:[#allocation80_spill] sm:$0xff] }
 0x24e   :  { %v1231_v44 = vmul.f32 0.5, %v1227_v2  ;;  %v1228_v39 = vadd.f32 %v1153_v0, %v948_v23  ;;  %1443 = vmatpush1.msra.mxu0 %v9723_v53  ;;  %1514 = vmatpush1.msra.mxu1 %v9724_v54  ;;  %v1229_v26 = vadd.f32 %v1222_v57, %v1017_v63  ;;  %v1230_v27 = vadd.f32 %v1224_v22, %v1019_v11  ;;  %v9760_v23 = vld [vmem:[#allocation75_spill] sm:$0xff]  ;;  %v9761_v2 = vld [vmem:[#allocation76_spill] sm:$0xff]  ;;  %v9766_v53 = vld [vmem:[#allocation81_spill] sm:$0xff] }
 0x24f   :  { %1444 = vmatprep.subr.mxu0 %v9725_v58  ;;  %1515 = vmatprep.subr.mxu1 %v9726_v62  ;;  %v9767_v54 = vld [vmem:[#allocation82_spill] sm:$0xff]  ;;  %v9768_v57 = vld [vmem:[#allocation83_spill] sm:$0xff]  ;;  %v9769_v58 = vld [vmem:[#allocation84_spill] sm:$0xff] }
 0x250   :  { %4602 = vtanh.f32 %v1231_v44  ;;  %v1235_v3 = vmul.f32 0.5, %v1228_v39  ;;  %1445 = vmatpush1.msra.mxu0 %v9727_v4  ;;  %1516 = vmatpush1.msra.mxu1 %v9728_v33  ;;  %v1240_v29 = vmul.f32 0.5, %v1230_v27  ;;  %v9770_v63 = vld [vmem:[#allocation85_spill] sm:$0xff]  ;;  %v9772_v4 = vld [vmem:[#allocation87_spill] sm:$0xff]  ;;  %v9773_v33 = vld [vmem:[#allocation88_spill] sm:$0xff] }
 0x251   :  { %1446 = vmatprep.subr.mxu0 %v9729_v42  ;;  %1517 = vmatprep.subr.mxu1 %v9730_v12  ;;  %v9774_v42 = vld [vmem:[#allocation89_spill] sm:$0xff]  ;;  %v9775_v12 = vld [vmem:[#allocation90_spill] sm:$0xff]  ;;  %v9784_v11 = vld [vmem:[#allocation99_spill] sm:$0xff] }
 0x252   :  { %4604 = vtanh.f32 %v1235_v3  ;;  %1447 = vmatpush1.msra.mxu0 %v9733_v7  ;;  %1518 = vmatpush1.msra.mxu1 %v9734_v10  ;;  %v9771_v3 = vld [vmem:[#allocation86_spill] sm:$0xff]  ;;  %v9778_v7 = vld [vmem:[#allocation93_spill] sm:$0xff] }
 0x253   :  { %1448 = vmatprep.subr.mxu0 %v9735_v25  ;;  %1519 = vmatprep.subr.mxu1 %v9736_v30  ;;  %4606 = vtanh.f32 %v1229_v26  ;;  %v9777_v26 = vld [vmem:[#allocation92_spill] sm:$0xff]  ;;  %v9779_v10 = vld [vmem:[#allocation94_spill] sm:$0xff]  ;;  %v9780_v25 = vld [vmem:[#allocation95_spill] sm:$0xff] }
 0x254   :  { %1449 = vmatpush1.msra.mxu0 %v9737_v36  ;;  %1482 = vmatprep.mubr.f32.mxu0 %v9738_v1  ;;  %4608 = vtanh.f32 %v1240_v29  ;;  %v9781_v30 = vld [vmem:[#allocation96_spill] sm:$0xff]  ;;  %v9782_v36 = vld [vmem:[#allocation97_spill] sm:$0xff]  ;;  %v9783_v22 = vld [vmem:[#allocation98_spill] sm:$0xff] }
 0x255   :  { %1520 = vmatpush1.msra.mxu1 %v9739_v45  ;;  %1553 = vmatprep.mubr.f32.mxu1 %v9738_v1  ;;  %v9787_v27 = vld [vmem:[#allocation102_spill] sm:$0xff] }
 0x256   :  { %1483 = vmatmul.mubr.f32.vlgmr.msra.gmra.mxu0 %v6487_v50  ;;  %1554 = vmatmul.mubr.f32.vlgmr.msra.gmra.mxu1 %v6487_v50  ;;  %v9752_v50 = vld [vmem:[#allocation67_spill] sm:$0xff]  ;;  %v9795_v29 = vld [vmem:[#allocation110_spill] sm:$0xff] }
 0x257   :  { %1560 = vmatprep.subr.mxu0 %v9740_v48  ;;  %1631 = vmatprep.subr.mxu1 %v9741_v18  ;;  %v9785_v48 = vld [vmem:[#allocation100_spill] sm:$0xff]  ;;  %v9786_v18 = vld [vmem:[#allocation101_spill] sm:$0xff] }
 0x258   :  { %1561 = vmatpush1.msra.mxu0 %v9742_v49  ;;  %1632 = vmatpush1.msra.mxu1 %v9743_v5  ;;  %v9788_v49 = vld [vmem:[#allocation103_spill] sm:$0xff]  ;;  %v9789_v5 = vld [vmem:[#allocation104_spill] sm:$0xff] }
 0x259   :  { %1562 = vmatprep.subr.mxu0 %v9744_v8  ;;  %1633 = vmatprep.subr.mxu1 %v9745_v9  ;;  %v9790_v9 = vld [vmem:[#allocation105_spill] sm:$0xff] }
 0x25a   :  { %1563 = vmatpush1.msra.mxu0 %v9746_v28  ;;  %1634 = vmatpush1.msra.mxu1 %v9747_v43  ;;  %v9791_v28 = vld [vmem:[#allocation106_spill] sm:$0xff]  ;;  %v9792_v43 = vld [vmem:[#allocation107_spill] sm:$0xff] }
 0x25b   :  { %1564 = vmatprep.subr.mxu0 %v9748_v47  ;;  %1635 = vmatprep.subr.mxu1 %v9749_v32  ;;  %v9793_v47 = vld [vmem:[#allocation108_spill] sm:$0xff]  ;;  %v9794_v32 = vld [vmem:[#allocation109_spill] sm:$0xff] }
 0x25c   :  { %1565 = vmatpush1.msra.mxu0 %v9750_v37  ;;  %1636 = vmatpush1.msra.mxu1 %v9751_v46  ;;  %v9796_v37 = vld [vmem:[#allocation111_spill] sm:$0xff]  ;;  %v9797_v46 = vld [vmem:[#allocation112_spill] sm:$0xff] }
 0x25d   :  { %v4603_v34 = vpop.eup %4602  ;;  %1566 = vmatprep.subr.mxu0 %v9752_v50  ;;  %1637 = vmatprep.subr.mxu1 %v9753_v6  ;;  %v9798_v50 = vld [vmem:[#allocation113_spill] sm:$0xff]  ;;  %v9799_v6 = vld [vmem:[#allocation114_spill] sm:$0xff] }
 0x25e   :  { %v1233_v38 = vmul.f32 0.5, %v4603_v34  ;;  %1567 = vmatpush1.msra.mxu0 %v9754_v52  ;;  %1638 = vmatpush1.msra.mxu1 %v9755_v13  ;;  %v9800_v52 = vld [vmem:[#allocation115_spill] sm:$0xff]  ;;  %v9801_v13 = vld [vmem:[#allocation116_spill] sm:$0xff] }
 0x25f   :  { %v4605_v19 = vpop.eup %4604  ;;  %1568 = vmatprep.subr.mxu0 %v9756_v55  ;;  %1639 = vmatprep.subr.mxu1 %v9757_v56  ;;  %v9803_v56 = vld [vmem:[#allocation118_spill] sm:$0xff] }
 0x260   :  { %v1234_v59 = vadd.f32 0.5, %v1233_v38  ;;  %v1237_v60 = vmul.f32 0.5, %v4605_v19  ;;  %1569 = vmatpush1.msra.mxu0 %v9758_v16  ;;  %1640 = vmatpush1.msra.mxu1 %v9759_v51  ;;  %v4607_v0 = vpop.eup %4606  ;;  %v9802_v19 = vld [vmem:[#allocation117_spill] sm:$0xff]  ;;  %v9807_v51 = vld [vmem:[#allocation122_spill] sm:$0xff] }
 0x261   :  { %1570 = vmatprep.subr.mxu0 %v9760_v23  ;;  %1641 = vmatprep.subr.mxu1 %v9761_v2  ;;  %v4609_v45 = vpop.eup %4608  ;;  %v9806_v16 = vld [vmem:[#allocation121_spill] sm:$0xff]  ;;  %v9808_v23 = vld [vmem:[#allocation123_spill] sm:$0xff]  ;;  %v9809_v2 = vld [vmem:[#allocation124_spill] sm:$0xff] }
 0x262   :  { %v1238_v31 = vadd.f32 0.5, %v1237_v60  ;;  %1571 = vmatpush1.msra.mxu0 %v9762_v15  ;;  %1642 = vmatpush1.msra.mxu1 %v9763_v35  ;;  %v1245_v39 = vmul.f32 %v4607_v0, %v1234_v59  ;;  %v1242_v8 = vmul.f32 0.5, %v4609_v45  ;;  %v9804_v59 = vld [vmem:[#allocation119_spill] sm:$0xff]  ;;  %v9805_v60 = vld [vmem:[#allocation120_spill] sm:$0xff]  ;;  %v9811_v15 = vld [vmem:[#allocation126_spill] sm:$0xff] }
 0x263   :  { %1572 = vmatprep.subr.mxu0 %v9764_v40  ;;  %1643 = vmatprep.subr.mxu1 %v9765_v61  ;;  %v9812_v35 = vld [vmem:[#allocation127_spill] sm:$0xff]  ;;  %v9813_v0 = vld [vmem:[#allocation128_spill] sm:$0xff]  ;;  %v9814_v40 = vld [vmem:[#allocation129_spill] sm:$0xff] }
 0x264   :  { %v1244_v44 = vmul.f32 0.0, %v1238_v31  ;;  %1573 = vmatpush1.msra.mxu0 %v9766_v53  ;;  %1644 = vmatpush1.msra.mxu1 %v9767_v54  ;;  %v1243_v34 = vadd.f32 0.5, %v1242_v8  ;;  %v9810_v31 = vld [vmem:[#allocation125_spill] sm:$0xff]  ;;  %v9815_v61 = vld [vmem:[#allocation130_spill] sm:$0xff]  ;;  %v9836_v45 = vld [vmem:[#allocation151_spill] sm:$0xff] }
 0x265   :  { %1574 = vmatprep.subr.mxu0 %v9768_v57  ;;  %1645 = vmatprep.subr.mxu1 %v9769_v58  ;;  %v9818_v53 = vld [vmem:[#allocation133_spill] sm:$0xff]  ;;  %v9819_v54 = vld [vmem:[#allocation134_spill] sm:$0xff]  ;;  %v9820_v57 = vld [vmem:[#allocation135_spill] sm:$0xff] }
 0x266   :  { %v6610_v62 = vadd.f32 %v1245_v39, %v1244_v44  ;;  %1575 = vmatpush1.msra.mxu0 %v9770_v63  ;;  %1646 = vmatpush1.msra.mxu1 %v9771_v3  ;;  %v9816_v44 = vld [vmem:[#allocation131_spill] sm:$0xff]  ;;  %v9817_v39 = vld [vmem:[#allocation132_spill] sm:$0xff]  ;;  %v9822_v63 = vld [vmem:[#allocation137_spill] sm:$0xff] }
 0x267   :  { %1576 = vmatprep.subr.mxu0 %v9772_v4  ;;  %1647 = vmatprep.subr.mxu1 %v9773_v33  ;;  %v9821_v58 = vld [vmem:[#allocation136_spill] sm:$0xff]  ;;  %v9823_v3 = vld [vmem:[#allocation138_spill] sm:$0xff]  ;;  %v9824_v4 = vld [vmem:[#allocation139_spill] sm:$0xff] }
 0x268   :  { %4610 = vtanh.f32 %v6610_v62  ;;  %1577 = vmatpush1.msra.mxu0 %v9774_v42  ;;  %1648 = vmatpush1.msra.mxu1 %v9775_v12  ;;  %v9825_v33 = vld [vmem:[#allocation140_spill] sm:$0xff]  ;;  %v9826_v42 = vld [vmem:[#allocation141_spill] sm:$0xff]  ;;  %v9827_v12 = vld [vmem:[#allocation142_spill] sm:$0xff] }
 0x269   :  { %1578 = vmatprep.subr.mxu0 %v9776_v21  ;;  %1649 = vmatprep.subr.mxu1 %v9777_v26  ;;  %v9828_v21 = vld [vmem:[#allocation143_spill] sm:$0xff]  ;;  %v9829_v26 = vld [vmem:[#allocation144_spill] sm:$0xff]  ;;  %v9843_v8 = vld [vmem:[#allocation158_spill] sm:$0xff] }
 0x26a   :  { %1579 = vmatpush1.msra.mxu0 %v9778_v7  ;;  %1650 = vmatpush1.msra.mxu1 %v9779_v10  ;;  %v9830_v7 = vld [vmem:[#allocation145_spill] sm:$0xff]  ;;  %v9831_v10 = vld [vmem:[#allocation146_spill] sm:$0xff] }
 0x26b   :  { %1580 = vmatprep.subr.mxu0 %v9780_v25  ;;  %1651 = vmatprep.subr.mxu1 %v9781_v30  ;;  %v9832_v25 = vld [vmem:[#allocation147_spill] sm:$0xff]  ;;  %v9833_v30 = vld [vmem:[#allocation148_spill] sm:$0xff] }
 0x26c   :  { %1581 = vmatpush1.msra.mxu0 %v9782_v36  ;;  %1652 = vmatpush1.msra.mxu1 %v9783_v22  ;;  %v9834_v36 = vld [vmem:[#allocation149_spill] sm:$0xff]  ;;  %v9835_v22 = vld [vmem:[#allocation150_spill] sm:$0xff] }
 0x26d   :  { %1582 = vmatprep.subr.mxu0 %v9784_v11  ;;  %1653 = vmatprep.subr.mxu1 %v9785_v48  ;;  %v9837_v11 = vld [vmem:[#allocation152_spill] sm:$0xff]  ;;  %v9838_v48 = vld [vmem:[#allocation153_spill] sm:$0xff] }
 0x26e   :  { %1583 = vmatpush1.msra.mxu0 %v9786_v18  ;;  %1654 = vmatpush1.msra.mxu1 %v9787_v27  ;;  %v9839_v18 = vld [vmem:[#allocation154_spill] sm:$0xff]  ;;  %v9840_v27 = vld [vmem:[#allocation155_spill] sm:$0xff] }
 0x26f   :  { %1584 = vmatprep.subr.mxu0 %v9788_v49  ;;  %1655 = vmatprep.subr.mxu1 %v9789_v5  ;;  %v9841_v49 = vld [vmem:[#allocation156_spill] sm:$0xff]  ;;  %v9842_v5 = vld [vmem:[#allocation157_spill] sm:$0xff] }
 0x270   :  { %1585 = vmatpush1.msra.mxu0 %v9790_v9  ;;  %1656 = vmatpush1.msra.mxu1 %v9791_v28  ;;  %v9844_v9 = vld [vmem:[#allocation159_spill] sm:$0xff]  ;;  %v9845_v28 = vld [vmem:[#allocation160_spill] sm:$0xff] }
 0x271   :  { %1586 = vmatprep.subr.mxu0 %v9792_v43  ;;  %1657 = vmatprep.subr.mxu1 %v9793_v47  ;;  %v9846_v43 = vld [vmem:[#allocation161_spill] sm:$0xff]  ;;  %v9847_v47 = vld [vmem:[#allocation162_spill] sm:$0xff] }
 0x272   :  { %1587 = vmatpush1.msra.mxu0 %v9794_v32  ;;  %1658 = vmatpush1.msra.mxu1 %v9795_v29  ;;  %v9848_v32 = vld [vmem:[#allocation163_spill] sm:$0xff]  ;;  %v9849_v29 = vld [vmem:[#allocation164_spill] sm:$0xff] }
 0x273   :  { %1588 = vmatprep.subr.mxu0 %v9796_v37  ;;  %1659 = vmatprep.subr.mxu1 %v9797_v46  ;;  %v9850_v37 = vld [vmem:[#allocation165_spill] sm:$0xff]  ;;  %v9851_v46 = vld [vmem:[#allocation166_spill] sm:$0xff] }
 0x274   :  { %1589 = vmatpush1.msra.mxu0 %v9798_v50  ;;  %1660 = vmatpush1.msra.mxu1 %v9799_v6  ;;  %v9853_v50 = vld [vmem:[#allocation168_spill] sm:$0xff]  ;;  %v9854_v6 = vld [vmem:[#allocation169_spill] sm:$0xff] }
 0x275   :  { %v4611_v38 = vpop.eup %4610  ;;  %1590 = vmatprep.subr.mxu0 %v9800_v52  ;;  %1661 = vmatprep.subr.mxu1 %v9801_v13  ;;  %v9856_v52 = vld [vmem:[#allocation171_spill] sm:$0xff]  ;;  %v9857_v13 = vld [vmem:[#allocation172_spill] sm:$0xff] }
 0x276   :  { %1591 = vmatpush1.msra.mxu0 %v9802_v19  ;;  %1624 = vmatprep.mubr.f32.mxu0 %v9738_v1  ;;  %v1248_v55 = vmul.f32 %v4611_v38, %v1243_v34  ;;  %v9852_v34 = vld [vmem:[#allocation167_spill] sm:$0xff]  ;;  %v9855_v38 = vld [vmem:[#allocation170_spill] sm:$0xff]  ;;  %v9858_v19 = vld [vmem:[#allocation173_spill] sm:$0xff] }
 0x277   :  { %1662 = vmatpush1.msra.mxu1 %v9803_v56  ;;  %1695 = vmatprep.mubr.f32.mxu1 %v9738_v1  ;;  %v9860_v56 = vld [vmem:[#allocation175_spill] sm:$0xff] }
 0x278   :  { %1625 = vmatmul.mubr.f32.vlgmr.msra.gmra.mxu0 %v1248_v55  ;;  %1696 = vmatmul.mubr.f32.vlgmr.msra.gmra.mxu1 %v1248_v55  ;;  %v9859_v55 = vld [vmem:[#allocation174_spill] sm:$0xff] }
 0x279   :  { %1729 = vmatprep.subr.mxu0 %v9804_v59  ;;  %1800 = vmatprep.subr.mxu1 %v9805_v60  ;;  %v9861_v59 = vld [vmem:[#allocation176_spill] sm:$0xff]  ;;  %v9862_v60 = vld [vmem:[#allocation177_spill] sm:$0xff] }
 0x27a   :  { %1730 = vmatpush1.msra.mxu0 %v9806_v16  ;;  %1801 = vmatpush1.msra.mxu1 %v9807_v51  ;;  %v9863_v16 = vld [vmem:[#allocation178_spill] sm:$0xff]  ;;  %v9864_v51 = vld [vmem:[#allocation179_spill] sm:$0xff] }
 0x27b   :  { %1731 = vmatprep.subr.mxu0 %v9808_v23  ;;  %1802 = vmatprep.subr.mxu1 %v9809_v2  ;;  %v9865_v23 = vld [vmem:[#allocation180_spill] sm:$0xff]  ;;  %v9866_v2 = vld [vmem:[#allocation181_spill] sm:$0xff] }
 0x27c   :  { %1732 = vmatpush1.msra.mxu0 %v9810_v31  ;;  %1803 = vmatpush1.msra.mxu1 %v9811_v15  ;;  %v6712_v31 = vld [vmem:[#allocation4 + $0x10] sm:$0xff]  ;;  %v6717_v15 = vld [vmem:[#allocation6 + $0x1e8] sm:$0xff] }
 0x27d   :  { %1733 = vmatprep.subr.mxu0 %v9812_v35  ;;  %1804 = vmatprep.subr.mxu1 %v9813_v0  ;;  %v6720_v35 = vld [vmem:[#allocation6 + $0x1f8] sm:$0xff] }
 0x27e   :  { %1734 = vmatpush1.msra.mxu0 %v9814_v40  ;;  %1805 = vmatpush1.msra.mxu1 %v9815_v61  ;;  %v9867_v40 = vld [vmem:[#allocation11_spill] sm:$0xff] }
 0x27f   :  { %1735 = vmatprep.subr.mxu0 %v9816_v44  ;;  %1806 = vmatprep.subr.mxu1 %v9817_v39 }
 0x280   :  { %1736 = vmatpush1.msra.mxu0 %v9818_v53  ;;  %1807 = vmatpush1.msra.mxu1 %v9819_v54  ;;  %v9868_v54 = vld [vmem:[#allocation13_spill] sm:$0xff] }
 0x281   :  { %1737 = vmatprep.subr.mxu0 %v9820_v57  ;;  %1808 = vmatprep.subr.mxu1 %v9821_v58  ;;  %v9869_v58 = vld [vmem:[#allocation12_spill] sm:$0xff] }
 0x282   :  { %1738 = vmatpush1.msra.mxu0 %v9822_v63  ;;  %1809 = vmatpush1.msra.mxu1 %v9823_v3 }
 0x283   :  { %1739 = vmatprep.subr.mxu0 %v9824_v4  ;;  %1810 = vmatprep.subr.mxu1 %v9825_v33  ;;  %v9870_v33 = vld [vmem:[#allocation14_spill] sm:$0xff] }
 0x284   :  { %1740 = vmatpush1.msra.mxu0 %v9826_v42  ;;  %1811 = vmatpush1.msra.mxu1 %v9827_v12 }
 0x285   :  { %1741 = vmatprep.subr.mxu0 %v9828_v21  ;;  %1812 = vmatprep.subr.mxu1 %v9829_v26 }
 0x286   :  { %1742 = vmatpush1.msra.mxu0 %v9830_v7  ;;  %1813 = vmatpush1.msra.mxu1 %v9831_v10 }
 0x287   :  { %1743 = vmatprep.subr.mxu0 %v9832_v25  ;;  %1814 = vmatprep.subr.mxu1 %v9833_v30 }
 0x288   :  { %1744 = vmatpush1.msra.mxu0 %v9834_v36  ;;  %1815 = vmatpush1.msra.mxu1 %v9835_v22 }
 0x289   :  { %1745 = vmatprep.subr.mxu0 %v9836_v45  ;;  %1816 = vmatprep.subr.mxu1 %v9837_v11 }
 0x28a   :  { %1746 = vmatpush1.msra.mxu0 %v9838_v48  ;;  %1817 = vmatpush1.msra.mxu1 %v9839_v18 }
 0x28b   :  { %1747 = vmatprep.subr.mxu0 %v9840_v27  ;;  %1818 = vmatprep.subr.mxu1 %v9841_v49 }
 0x28c   :  { %1748 = vmatpush1.msra.mxu0 %v9842_v5  ;;  %1819 = vmatpush1.msra.mxu1 %v9843_v8  ;;  %v6735_v8 = vld [vmem:[#allocation6 + $0x1e0] sm:$0xff] }
 0x28d   :  { %1749 = vmatprep.subr.mxu0 %v9844_v9  ;;  %1820 = vmatprep.subr.mxu1 %v9845_v28  ;;  %v6738_v9 = vld [vmem:[#allocation6 + $0x1f0] sm:$0xff]  ;;  %v6744_v28 = vld [vmem:[#allocation6 + $0x1d8] sm:$0xff] }
 0x28e   :  { %1750 = vmatpush1.msra.mxu0 %v9846_v43  ;;  %1821 = vmatpush1.msra.mxu1 %v9847_v47  ;;  %v6747_v43 = vld [vmem:[#allocation6 + $0x1c0] sm:$0xff]  ;;  %v6750_v47 = vld [vmem:[#allocation6 + $0x1d0] sm:$0xff] }
 0x28f   :  { %1751 = vmatprep.subr.mxu0 %v9848_v32  ;;  %1822 = vmatprep.subr.mxu1 %v9849_v29  ;;  %v6753_v32 = vld [vmem:[#allocation6 + $0x1a8] sm:$0xff]  ;;  %v6756_v29 = vld [vmem:[#allocation6 + $0x1b8] sm:$0xff] }
 0x290   :  { %1752 = vmatpush1.msra.mxu0 %v9850_v37  ;;  %1823 = vmatpush1.msra.mxu1 %v9851_v46  ;;  %v6759_v37 = vld [vmem:[#allocation6 + $0x1a0] sm:$0xff]  ;;  %v6762_v46 = vld [vmem:[#allocation6 + $0x1b0] sm:$0xff] }
 0x291   :  { %1753 = vmatprep.subr.mxu0 %v9852_v34  ;;  %1824 = vmatprep.subr.mxu1 %v9853_v50  ;;  %v6765_v34 = vld [vmem:[#allocation6 + $0x188] sm:$0xff]  ;;  %v6768_v50 = vld [vmem:[#allocation6 + $0x198] sm:$0xff] }
 0x292   :  { %1754 = vmatpush1.msra.mxu0 %v9854_v6  ;;  %1825 = vmatpush1.msra.mxu1 %v9855_v38  ;;  %v6771_v6 = vld [vmem:[#allocation6 + $0x180] sm:$0xff]  ;;  %v6774_v38 = vld [vmem:[#allocation6 + $0x190] sm:$0xff] }
 0x293   :  { %1755 = vmatprep.subr.mxu0 %v9856_v52  ;;  %1826 = vmatprep.subr.mxu1 %v9857_v13  ;;  %v6777_v52 = vld [vmem:[#allocation6 + $0x168] sm:$0xff]  ;;  %v6780_v13 = vld [vmem:[#allocation6 + $0x178] sm:$0xff] }
 0x294   :  { %1756 = vmatpush1.msra.mxu0 %v9858_v19  ;;  %1827 = vmatpush1.msra.mxu1 %v9859_v55  ;;  %v6783_v19 = vld [vmem:[#allocation6 + $0x160] sm:$0xff]  ;;  %v6786_v55 = vld [vmem:[#allocation6 + $0x170] sm:$0xff] }
 0x295   :  { %1757 = vmatprep.subr.mxu0 %v9860_v56  ;;  %1828 = vmatprep.subr.mxu1 %v9861_v59  ;;  %v6789_v56 = vld [vmem:[#allocation6 + $0x148] sm:$0xff]  ;;  %v6792_v59 = vld [vmem:[#allocation6 + $0x158] sm:$0xff] }
 0x296   :  { %1758 = vmatpush1.msra.mxu0 %v9862_v60  ;;  %1829 = vmatpush1.msra.mxu1 %v9863_v16  ;;  %v6795_v60 = vld [vmem:[#allocation6 + $0x140] sm:$0xff]  ;;  %v6798_v16 = vld [vmem:[#allocation6 + $0x150] sm:$0xff] }
 0x297   :  { %1759 = vmatprep.subr.mxu0 %v9864_v51  ;;  %1830 = vmatprep.subr.mxu1 %v9865_v23  ;;  %v6801_v51 = vld [vmem:[#allocation6 + $0x128] sm:$0xff]  ;;  %v6804_v23 = vld [vmem:[#allocation6 + $0x138] sm:$0xff] }
 0x298   :  { %1760 = vmatpush1.msra.mxu0 %v9866_v2  ;;  %1831 = vmatpush1.msra.mxu1 %v6712_v31  ;;  %v6807_v2 = vld [vmem:[#allocation6 + $0x120] sm:$0xff] }
 0x299   :  { %1793 = vmatprep.mubr.f32.mxu0 %v9738_v1  ;;  %1864 = vmatprep.mubr.f32.mxu1 %v9738_v1 }
 0x29a   :  { %1893 = vmatprep.subr.mxu0 %v6717_v15  ;;  %1964 = vmatprep.subr.mxu1 %v6720_v35 }
 0x2f5   :  { %v1320_v0 = vpop.f32.mrf.mxu0  ;;  %v1391_v44 = vpop.f32.mrf.mxu1 }
 0x2f6   :  { %v1396_v61 = vadd.f32 %v1320_v0, %v9867_v40  ;;  %v1398_v63 = vadd.f32 %v1391_v44, %v9869_v58  ;;  %v6810_v0 = vld [vmem:[#allocation6 + $0x130] sm:$0xff]  ;;  %v6813_v40 = vld [vmem:[#allocation6 + $0x108] sm:$0xff]  ;;  %v6819_v44 = vld [vmem:[#allocation6 + $0x100] sm:$0xff] }
 0x2f7   :  { %v1322_v39 = vpop.f32.mrf.mxu0  ;;  %v1393_v4 = vpop.f32.mrf.mxu1  ;;  %v6831_v58 = vld [vmem:[#allocation6 + $0xe0] sm:$0xff] }
 0x2f8   :  { %v1400_v53 = vmul.f32 0.5, %v1396_v61  ;;  %v1397_v57 = vadd.f32 %v1322_v39, %v9868_v54  ;;  %v1399_v42 = vadd.f32 %v1393_v4, %v9870_v33  ;;  %v6816_v61 = vld [vmem:[#allocation6 + $0x118] sm:$0xff]  ;;  %v6822_v39 = vld [vmem:[#allocation6 + $0x110] sm:$0xff]  ;;  %v6825_v54 = vld [vmem:[#allocation6 + $0xe8] sm:$0xff] }
 0x2f9   :  { %v6840_v4 = vld [vmem:[#allocation6 + $0xd8] sm:$0xff]  ;;  %v6843_v33 = vld [vmem:[#allocation6 + $0xc0] sm:$0xff] }
 0x2fa   :  { %4612 = vtanh.f32 %v1400_v53  ;;  %v1404_v3 = vmul.f32 0.5, %v1397_v57  ;;  %v1409_v12 = vmul.f32 0.5, %v1399_v42  ;;  %v6828_v57 = vld [vmem:[#allocation6 + $0xf8] sm:$0xff]  ;;  %v6846_v42 = vld [vmem:[#allocation6 + $0xd0] sm:$0xff] }
 0x2fc   :  { %4614 = vtanh.f32 %v1404_v3  ;;  %v6837_v3 = vld [vmem:[#allocation6 + $0xc8] sm:$0xff] }
 0x2fd   :  { %4616 = vtanh.f32 %v1398_v63  ;;  %v6834_v63 = vld [vmem:[#allocation6 + $0xf0] sm:$0xff] }
 0x2fe   :  { %4618 = vtanh.f32 %v1409_v12 }
 0x307   :  { %v4613_v21 = vpop.eup %4612 }
 0x308   :  { %v1402_v26 = vmul.f32 0.5, %v4613_v21 }
 0x309   :  { %v4615_v7 = vpop.eup %4614 }
 0x30a   :  { %v1403_v10 = vadd.f32 0.5, %v1402_v26  ;;  %v1406_v25 = vmul.f32 0.5, %v4615_v7  ;;  %v4617_v30 = vpop.eup %4616  ;;  %v6849_v26 = vld [vmem:[#allocation6 + $0xa8] sm:$0xff]  ;;  %v6852_v7 = vld [vmem:[#allocation6 + $0xb8] sm:$0xff] }
 0x30b   :  { %v4619_v48 = vpop.eup %4618 }
 0x30c   :  { %v1407_v36 = vadd.f32 0.5, %v1406_v25  ;;  %v1414_v22 = vmul.f32 %v4617_v30, %v1403_v10  ;;  %v1411_v18 = vmul.f32 0.5, %v4619_v48  ;;  %v6856_v25 = vld [vmem:[#allocation6 + $0xa0] sm:$0xff]  ;;  %v6859_v30 = vld [vmem:[#allocation6 + $0xb0] sm:$0xff] }
 0x30d   :  { %9871 = vst [vmem:[#allocation37_spill] sm:$0xff] %v6856_v25  ;;  %9872 = vst [vmem:[#allocation38_spill] sm:$0xff] %v6859_v30 }
 0x30e   :  { %v1413_v45 = vmul.f32 %v1407_v36, %v6484_v41  ;;  %v1412_v27 = vadd.f32 0.5, %v1411_v18  ;;  %v6741_v41 = vld [vmem:[#allocation6 + $0x1c8] sm:$0xff] }
 0x310   :  { %v6728_v11 = vadd.f32 %v1414_v22, %v1413_v45  ;;  %v6862_v22 = vld [vmem:[#allocation6 + $0x88] sm:$0xff]  ;;  %v6865_v45 = vld [vmem:[#allocation6 + $0x98] sm:$0xff] }
 0x311   :  { %9873 = vst [vmem:[#allocation39_spill] sm:$0xff] %v6862_v22 }
 0x312   :  { %4620 = vtanh.f32 %v6728_v11 }
 0x316   :  { %v1484_v53 = vpop.f32.mrf.mxu0  ;;  %v1555_v12 = vpop.f32.mrf.mxu1 }
 0x317   :  { %v1485_v10 = vadd.f32 %v1484_v53, %v6528_v20 }
 0x318   :  { %v1486_v21 = vpop.f32.mrf.mxu0  ;;  %v1557_v53 = vpop.f32.mrf.mxu1 }
 0x319   :  { %v1487_v48 = vadd.f32 %v1486_v21, %v6536_v14  ;;  %v6887_v14 = vld [vmem:[#allocation6 + $0x48] sm:$0xff] }
 0x31a   :  { %9879 = vst [vmem:[#allocation45_spill] sm:$0xff] %v6887_v14 }
 0x31f   :  { %v4621_v49 = vpop.eup %4620 }
 0x320   :  { %v6731_v5 = vmul.f32 %v4621_v49, %v1412_v27  ;;  %v6869_v27 = vld [vmem:[#allocation6 + $0x80] sm:$0xff]  ;;  %v6872_v49 = vld [vmem:[#allocation6 + $0x90] sm:$0xff] }
 0x321   :  { %9874 = vst [vmem:[#allocation40_spill] sm:$0xff] %v6869_v27  ;;  %9875 = vst [vmem:[#allocation41_spill] sm:$0xff] %v6872_v49 }
 0x322   :  { %1794 = vmatmul.mubr.f32.vlgmr.msra.gmra.mxu0 %v6731_v5  ;;  %1865 = vmatmul.mubr.f32.vlgmr.msra.gmra.mxu1 %v6731_v5 }
 0x323   :  { %1894 = vmatpush1.msra.mxu0 %v6735_v8  ;;  %1965 = vmatpush1.msra.mxu1 %v6738_v9 }
 0x324   :  { %1895 = vmatprep.subr.mxu0 %v6741_v41  ;;  %1966 = vmatprep.subr.mxu1 %v6744_v28 }
 0x325   :  { %1896 = vmatpush1.msra.mxu0 %v6747_v43  ;;  %1967 = vmatpush1.msra.mxu1 %v6750_v47 }
 0x326   :  { %1897 = vmatprep.subr.mxu0 %v6753_v32  ;;  %1968 = vmatprep.subr.mxu1 %v6756_v29 }
 0x327   :  { %1898 = vmatpush1.msra.mxu0 %v6759_v37  ;;  %1969 = vmatpush1.msra.mxu1 %v6762_v46 }
 0x328   :  { %1899 = vmatprep.subr.mxu0 %v6765_v34  ;;  %1970 = vmatprep.subr.mxu1 %v6768_v50 }
 0x329   :  { %1900 = vmatpush1.msra.mxu0 %v6771_v6  ;;  %1971 = vmatpush1.msra.mxu1 %v6774_v38 }
 0x32a   :  { %1901 = vmatprep.subr.mxu0 %v6777_v52  ;;  %1972 = vmatprep.subr.mxu1 %v6780_v13 }
 0x32b   :  { %1902 = vmatpush1.msra.mxu0 %v6783_v19  ;;  %1973 = vmatpush1.msra.mxu1 %v6786_v55 }
 0x32c   :  { %1903 = vmatprep.subr.mxu0 %v6789_v56  ;;  %1974 = vmatprep.subr.mxu1 %v6792_v59 }
 0x32d   :  { %1904 = vmatpush1.msra.mxu0 %v6795_v60  ;;  %1975 = vmatpush1.msra.mxu1 %v6798_v16 }
 0x32e   :  { %1905 = vmatprep.subr.mxu0 %v6801_v51  ;;  %1976 = vmatprep.subr.mxu1 %v6804_v23 }
 0x32f   :  { %1906 = vmatpush1.msra.mxu0 %v6807_v2  ;;  %1977 = vmatpush1.msra.mxu1 %v6810_v0 }
 0x330   :  { %1907 = vmatprep.subr.mxu0 %v6813_v40  ;;  %1978 = vmatprep.subr.mxu1 %v6816_v61 }
 0x331   :  { %1908 = vmatpush1.msra.mxu0 %v6819_v44  ;;  %1979 = vmatpush1.msra.mxu1 %v6822_v39 }
 0x332   :  { %1909 = vmatprep.subr.mxu0 %v6825_v54  ;;  %1980 = vmatprep.subr.mxu1 %v6828_v57 }
 0x333   :  { %1910 = vmatpush1.msra.mxu0 %v6831_v58  ;;  %1981 = vmatpush1.msra.mxu1 %v6834_v63 }
 0x334   :  { %1911 = vmatprep.subr.mxu0 %v6837_v3  ;;  %1982 = vmatprep.subr.mxu1 %v6840_v4 }
 0x335   :  { %1912 = vmatpush1.msra.mxu0 %v6843_v33  ;;  %1983 = vmatpush1.msra.mxu1 %v6846_v42 }
 0x336   :  { %1913 = vmatprep.subr.mxu0 %v6849_v26  ;;  %1984 = vmatprep.subr.mxu1 %v6852_v7 }
 0x337   :  { %1914 = vmatpush1.msra.mxu0 %v6856_v25  ;;  %1985 = vmatpush1.msra.mxu1 %v6859_v30  ;;  %v6875_v25 = vld [vmem:[#allocation6 + $0x68] sm:$0xff] }
 0x338   :  { %v1626_v36 = vpop.f32.mrf.mxu0  ;;  %1915 = vmatprep.subr.mxu0 %v6862_v22  ;;  %1986 = vmatprep.subr.mxu1 %v6865_v45  ;;  %9876 = vst [vmem:[#allocation42_spill] sm:$0xff] %v6875_v25  ;;  %v6878_v22 = vld [vmem:[#allocation6 + $0x78] sm:$0xff] }
 0x339   :  { %v1702_v18 = vadd.f32 %v1626_v36, %v1485_v10  ;;  %1916 = vmatpush1.msra.mxu0 %v6869_v27  ;;  %1987 = vmatpush1.msra.mxu1 %v6872_v49  ;;  %v6881_v36 = vld [vmem:[#allocation6 + $0x60] sm:$0xff]  ;;  %v6884_v27 = vld [vmem:[#allocation6 + $0x70] sm:$0xff]  ;;  %v1697_v49 = vpop.f32.mrf.mxu1 }
 0x33a   :  { %v1628_v30 = vpop.f32.mrf.mxu0  ;;  %1917 = vmatprep.subr.mxu0 %v6875_v25  ;;  %1988 = vmatprep.subr.mxu1 %v6878_v22  ;;  %9877 = vst [vmem:[#allocation43_spill] sm:$0xff] %v6881_v36  ;;  %9878 = vst [vmem:[#allocation44_spill] sm:$0xff] %v6884_v27  ;;  %v6890_v25 = vld [vmem:[#allocation6 + $0x58] sm:$0xff] }
 0x33b   :  { %v1706_v21 = vmul.f32 0.5, %v1702_v18  ;;  %v1703_v10 = vadd.f32 %v1628_v30, %v1487_v48  ;;  %1918 = vmatpush1.msra.mxu0 %v6881_v36  ;;  %1989 = vmatpush1.msra.mxu1 %v6884_v27  ;;  %9880 = vst [vmem:[#allocation46_spill] sm:$0xff] %v6890_v25  ;;  %v1556_v18 = vadd.f32 %v1555_v12, %v6549_v24  ;;  %v6894_v48 = vld [vmem:[#allocation6 + $0x40] sm:$0xff]  ;;  %v6897_v36 = vld [vmem:[#allocation6 + $0x50] sm:$0xff]  ;;  %v6900_v27 = vld [vmem:[#allocation6 + $0x28] sm:$0xff] }
 0x33c   :  { %1919 = vmatprep.subr.mxu0 %v6887_v14  ;;  %1990 = vmatprep.subr.mxu1 %v6890_v25  ;;  %9881 = vst [vmem:[#allocation47_spill] sm:$0xff] %v6894_v48  ;;  %9882 = vst [vmem:[#allocation48_spill] sm:$0xff] %v6897_v36  ;;  %v6903_v14 = vld [vmem:[#allocation6 + $0x38] sm:$0xff]  ;;  %v6906_v12 = vld [vmem:[#allocation6 + $0x20] sm:$0xff] }
 0x33d   :  { %4622 = vtanh.f32 %v1706_v21  ;;  %v1710_v30 = vmul.f32 0.5, %v1703_v10  ;;  %1920 = vmatpush1.msra.mxu0 %v6894_v48  ;;  %1991 = vmatpush1.msra.mxu1 %v6897_v36  ;;  %9883 = vst [vmem:[#allocation49_spill] sm:$0xff] %v6900_v27  ;;  %9884 = vst [vmem:[#allocation50_spill] sm:$0xff] %v6903_v14  ;;  %v1704_v25 = vadd.f32 %v1697_v49, %v1556_v18  ;;  %v6909_v21 = vld [vmem:[#allocation6 + $0x30] sm:$0xff]  ;;  %v6912_v10 = vld [vmem:[#allocation6 + $0x8] sm:$0xff]  ;;  %v1699_v49 = vpop.f32.mrf.mxu1 }
 0x33e   :  { %1921 = vmatprep.subr.mxu0 %v6900_v27  ;;  %1992 = vmatprep.subr.mxu1 %v6903_v14  ;;  %9885 = vst [vmem:[#allocation51_spill] sm:$0xff] %v6906_v12  ;;  %9886 = vst [vmem:[#allocation52_spill] sm:$0xff] %v6909_v21  ;;  %v6915_v36 = vld [vmem:[#allocation6 + $0x18] sm:$0xff]  ;;  %v6918_v27 = vld [vmem:[#allocation6] sm:$0xff] }
 0x33f   :  { %4624 = vtanh.f32 %v1710_v30  ;;  %1922 = vmatpush1.msra.mxu0 %v6906_v12  ;;  %1993 = vmatpush1.msra.mxu1 %v6909_v21  ;;  %9887 = vst [vmem:[#allocation53_spill] sm:$0xff] %v6912_v10  ;;  %9888 = vst [vmem:[#allocation54_spill] sm:$0xff] %v6915_v36  ;;  %v6922_v18 = vld [vmem:[#allocation6 + $0x10] sm:$0xff]  ;;  %v1558_v30 = vadd.f32 %v1557_v53, %v6567_v17  ;;  %v6935_v21 = vld [vmem:[#allocation8 + $0x1e0] sm:$0xff] }
 0x340   :  { %1923 = vmatprep.subr.mxu0 %v6912_v10  ;;  %1994 = vmatprep.subr.mxu1 %v6915_v36  ;;  %9889 = vst [vmem:[#allocation55_spill] sm:$0xff] %v6918_v27  ;;  %9890 = vst [vmem:[#allocation56_spill] sm:$0xff] %v6922_v18  ;;  %4626 = vtanh.f32 %v1704_v25  ;;  %v6929_v36 = vld [vmem:[#allocation8 + $0x1e8] sm:$0xff]  ;;  %v6947_v53 = vld [vmem:[#allocation8 + $0x1c0] sm:$0xff] }
 0x341   :  { %1924 = vmatpush1.msra.mxu0 %v6918_v27  ;;  %1957 = vmatprep.mubr.f32.mxu0 %v9738_v1  ;;  %9891 = vst [vmem:[#allocation57_spill] sm:$0xff] %v6929_v36  ;;  %v6932_v27 = vld [vmem:[#allocation8 + $0x1f8] sm:$0xff]  ;;  %v1705_v10 = vadd.f32 %v1699_v49, %v1558_v30  ;;  %9893 = vst [vmem:[#allocation59_spill] sm:$0xff] %v6935_v21  ;;  %v6941_v25 = vld [vmem:[#allocation8 + $0x1c8] sm:$0xff] }
 0x342   :  { %1995 = vmatpush1.msra.mxu1 %v6922_v18  ;;  %2028 = vmatprep.mubr.f32.mxu1 %v9738_v1  ;;  %9892 = vst [vmem:[#allocation58_spill] sm:$0xff] %v6932_v27  ;;  %v6938_v18 = vld [vmem:[#allocation8 + $0x1f0] sm:$0xff]  ;;  %9895 = vst [vmem:[#allocation61_spill] sm:$0xff] %v6941_v25  ;;  %v6953_v30 = vld [vmem:[#allocation8 + $0x1a8] sm:$0xff] }
 0x343   :  { %1958 = vmatmul.mubr.f32.vlgmr.msra.gmra.mxu0 %v6731_v5  ;;  %2029 = vmatmul.mubr.f32.vlgmr.msra.gmra.mxu1 %v6731_v5  ;;  %9894 = vst [vmem:[#allocation60_spill] sm:$0xff] %v6938_v18  ;;  %v6944_v5 = vld [vmem:[#allocation8 + $0x1d8] sm:$0xff]  ;;  %9897 = vst [vmem:[#allocation63_spill] sm:$0xff] %v6947_v53  ;;  %v6950_v49 = vld [vmem:[#allocation8 + $0x1d0] sm:$0xff] }
 0x344   :  { %2035 = vmatprep.subr.mxu0 %v6929_v36  ;;  %2106 = vmatprep.subr.mxu1 %v6932_v27  ;;  %9896 = vst [vmem:[#allocation62_spill] sm:$0xff] %v6944_v5  ;;  %9898 = vst [vmem:[#allocation64_spill] sm:$0xff] %v6950_v49  ;;  %v6965_v27 = vld [vmem:[#allocation8 + $0x188] sm:$0xff]  ;;  %v6980_v36 = vld [vmem:[#allocation8 + $0x178] sm:$0xff] }
 0x345   :  { %2036 = vmatpush1.msra.mxu0 %v6935_v21  ;;  %2107 = vmatpush1.msra.mxu1 %v6938_v18  ;;  %9899 = vst [vmem:[#allocation65_spill] sm:$0xff] %v6953_v30  ;;  %v6956_v18 = vld [vmem:[#allocation8 + $0x1b8] sm:$0xff]  ;;  %v6959_v21 = vld [vmem:[#allocation8 + $0x1a0] sm:$0xff]  ;;  %9903 = vst [vmem:[#allocation69_spill] sm:$0xff] %v6965_v27 }
 0x346   :  { %2037 = vmatprep.subr.mxu0 %v6941_v25  ;;  %2108 = vmatprep.subr.mxu1 %v6944_v5  ;;  %9900 = vst [vmem:[#allocation66_spill] sm:$0xff] %v6956_v18  ;;  %v1715_v25 = vmul.f32 0.5, %v1705_v10  ;;  %9901 = vst [vmem:[#allocation67_spill] sm:$0xff] %v6959_v21  ;;  %v6962_v5 = vld [vmem:[#allocation8 + $0x1b0] sm:$0xff]  ;;  %v10022_v17 = vld [vmem:[#allocation18_spill] sm:$0xff] }
 0x347   :  { %2038 = vmatpush1.msra.mxu0 %v6947_v53  ;;  %2109 = vmatpush1.msra.mxu1 %v6950_v49  ;;  %9902 = vst [vmem:[#allocation68_spill] sm:$0xff] %v6962_v5  ;;  %v6968_v49 = vld [vmem:[#allocation8 + $0x198] sm:$0xff]  ;;  %v6974_v10 = vld [vmem:[#allocation8 + $0x190] sm:$0xff]  ;;  %9908 = vst [vmem:[#allocation74_spill] sm:$0xff] %v6980_v36 }
 0x348   :  { %2039 = vmatprep.subr.mxu0 %v6953_v30  ;;  %2110 = vmatprep.subr.mxu1 %v6956_v18  ;;  %9904 = vst [vmem:[#allocation70_spill] sm:$0xff] %v6968_v49  ;;  %v6971_v18 = vld [vmem:[#allocation8 + $0x180] sm:$0xff]  ;;  %9906 = vst [vmem:[#allocation72_spill] sm:$0xff] %v6974_v10  ;;  %4628 = vtanh.f32 %v1715_v25 }
 0x349   :  { %2040 = vmatpush1.msra.mxu0 %v6959_v21  ;;  %2111 = vmatpush1.msra.mxu1 %v6962_v5  ;;  %9905 = vst [vmem:[#allocation71_spill] sm:$0xff] %v6971_v18  ;;  %v6977_v5 = vld [vmem:[#allocation8 + $0x168] sm:$0xff] }
 0x34a   :  { %v4623_v53 = vpop.eup %4622  ;;  %2041 = vmatprep.subr.mxu0 %v6965_v27  ;;  %2112 = vmatprep.subr.mxu1 %v6968_v49  ;;  %9907 = vst [vmem:[#allocation73_spill] sm:$0xff] %v6977_v5 }
 0x34b   :  { %v1708_v30 = vmul.f32 0.5, %v4623_v53  ;;  %2042 = vmatpush1.msra.mxu0 %v6971_v18  ;;  %2113 = vmatpush1.msra.mxu1 %v6974_v10  ;;  %v6983_v53 = vld [vmem:[#allocation8 + $0x160] sm:$0xff]  ;;  %v6986_v18 = vld [vmem:[#allocation8 + $0x170] sm:$0xff]  ;;  %v6989_v10 = vld [vmem:[#allocation8 + $0x148] sm:$0xff] }
 0x34c   :  { %v4625_v21 = vpop.eup %4624  ;;  %2043 = vmatprep.subr.mxu0 %v6977_v5  ;;  %2114 = vmatprep.subr.mxu1 %v6980_v36  ;;  %9909 = vst [vmem:[#allocation75_spill] sm:$0xff] %v6983_v53  ;;  %9910 = vst [vmem:[#allocation76_spill] sm:$0xff] %v6986_v18  ;;  %v6992_v5 = vld [vmem:[#allocation8 + $0x158] sm:$0xff] }
 0x34d   :  { %v1709_v27 = vadd.f32 0.5, %v1708_v30  ;;  %v1712_v49 = vmul.f32 0.5, %v4625_v21  ;;  %2044 = vmatpush1.msra.mxu0 %v6983_v53  ;;  %2115 = vmatpush1.msra.mxu1 %v6986_v18  ;;  %9911 = vst [vmem:[#allocation77_spill] sm:$0xff] %v6989_v10  ;;  %9912 = vst [vmem:[#allocation78_spill] sm:$0xff] %v6992_v5  ;;  %v6995_v30 = vld [vmem:[#allocation8 + $0x140] sm:$0xff]  ;;  %v6998_v21 = vld [vmem:[#allocation8 + $0x150] sm:$0xff]  ;;  %v4627_v25 = vpop.eup %4626 }
 0x34e   :  { %2045 = vmatprep.subr.mxu0 %v6989_v10  ;;  %2116 = vmatprep.subr.mxu1 %v6992_v5  ;;  %9913 = vst [vmem:[#allocation79_spill] sm:$0xff] %v6995_v30  ;;  %9914 = vst [vmem:[#allocation80_spill] sm:$0xff] %v6998_v21  ;;  %v7001_v53 = vld [vmem:[#allocation8 + $0x128] sm:$0xff]  ;;  %v7004_v18 = vld [vmem:[#allocation8 + $0x138] sm:$0xff] }
 0x34f   :  { %v1713_v36 = vadd.f32 0.5, %v1712_v49  ;;  %2046 = vmatpush1.msra.mxu0 %v6995_v30  ;;  %2117 = vmatpush1.msra.mxu1 %v6998_v21  ;;  %9915 = vst [vmem:[#allocation81_spill] sm:$0xff] %v7001_v53  ;;  %9916 = vst [vmem:[#allocation82_spill] sm:$0xff] %v7004_v18  ;;  %v1720_v49 = vmul.f32 %v4627_v25, %v1709_v27  ;;  %v7008_v10 = vld [vmem:[#allocation8 + $0x120] sm:$0xff]  ;;  %v7011_v30 = vld [vmem:[#allocation8 + $0x130] sm:$0xff] }
 0x350   :  { %2047 = vmatprep.subr.mxu0 %v7001_v53  ;;  %2118 = vmatprep.subr.mxu1 %v7004_v18  ;;  %9917 = vst [vmem:[#allocation83_spill] sm:$0xff] %v7008_v10  ;;  %9918 = vst [vmem:[#allocation84_spill] sm:$0xff] %v7011_v30  ;;  %v7014_v21 = vld [vmem:[#allocation8 + $0x108] sm:$0xff]  ;;  %v7017_v53 = vld [vmem:[#allocation8 + $0x118] sm:$0xff] }
 0x351   :  { %v1719_v5 = vmul.f32 %v1713_v36, %v6610_v62  ;;  %2048 = vmatpush1.msra.mxu0 %v7008_v10  ;;  %2119 = vmatpush1.msra.mxu1 %v7011_v30  ;;  %9919 = vst [vmem:[#allocation85_spill] sm:$0xff] %v7014_v21  ;;  %9920 = vst [vmem:[#allocation86_spill] sm:$0xff] %v7017_v53  ;;  %v7022_v62 = vld [vmem:[#allocation8 + $0x100] sm:$0xff]  ;;  %v7025_v27 = vld [vmem:[#allocation8 + $0x110] sm:$0xff] }
 0x352   :  { %2049 = vmatprep.subr.mxu0 %v7014_v21  ;;  %2120 = vmatprep.subr.mxu1 %v7017_v53  ;;  %9922 = vst [vmem:[#allocation88_spill] sm:$0xff] %v7022_v62  ;;  %9923 = vst [vmem:[#allocation89_spill] sm:$0xff] %v7025_v27  ;;  %v7028_v36 = vld [vmem:[#allocation8 + $0xe8] sm:$0xff]  ;;  %v7031_v25 = vld [vmem:[#allocation8 + $0xf8] sm:$0xff] }
 0x353   :  { %v7020_v18 = vadd.f32 %v1720_v49, %v1719_v5  ;;  %2050 = vmatpush1.msra.mxu0 %v7022_v62  ;;  %2121 = vmatpush1.msra.mxu1 %v7025_v27  ;;  %9924 = vst [vmem:[#allocation90_spill] sm:$0xff] %v7028_v36  ;;  %9925 = vst [vmem:[#allocation91_spill] sm:$0xff] %v7031_v25  ;;  %v7035_v5 = vld [vmem:[#allocation8 + $0xe0] sm:$0xff]  ;;  %v7038_v49 = vld [vmem:[#allocation8 + $0xf0] sm:$0xff] }
 0x354   :  { %2051 = vmatprep.subr.mxu0 %v7028_v36  ;;  %2122 = vmatprep.subr.mxu1 %v7031_v25  ;;  %9926 = vst [vmem:[#allocation92_spill] sm:$0xff] %v7035_v5  ;;  %9927 = vst [vmem:[#allocation93_spill] sm:$0xff] %v7038_v49  ;;  %v7041_v62 = vld [vmem:[#allocation8 + $0xc8] sm:$0xff]  ;;  %v7044_v27 = vld [vmem:[#allocation8 + $0xd8] sm:$0xff] }
 0x355   :  { %9921 = vst [vmem:[#allocation87_spill] sm:$0xff] %v7020_v18  ;;  %4630 = vtanh.f32 %v7020_v18  ;;  %2052 = vmatpush1.msra.mxu0 %v7035_v5  ;;  %2123 = vmatpush1.msra.mxu1 %v7038_v49  ;;  %9928 = vst [vmem:[#allocation94_spill] sm:$0xff] %v7041_v62  ;;  %v7047_v36 = vld [vmem:[#allocation8 + $0xc0] sm:$0xff]  ;;  %v7050_v25 = vld [vmem:[#allocation8 + $0xd0] sm:$0xff] }
 0x356   :  { %2053 = vmatprep.subr.mxu0 %v7041_v62  ;;  %9929 = vst [vmem:[#allocation95_spill] sm:$0xff] %v7044_v27  ;;  %2124 = vmatprep.subr.mxu1 %v7044_v27  ;;  %9930 = vst [vmem:[#allocation96_spill] sm:$0xff] %v7047_v36  ;;  %v7053_v5 = vld [vmem:[#allocation8 + $0xa8] sm:$0xff]  ;;  %v7056_v49 = vld [vmem:[#allocation8 + $0xb8] sm:$0xff] }
 0x357   :  { %2054 = vmatpush1.msra.mxu0 %v7047_v36  ;;  %9931 = vst [vmem:[#allocation97_spill] sm:$0xff] %v7050_v25  ;;  %2125 = vmatpush1.msra.mxu1 %v7050_v25  ;;  %9932 = vst [vmem:[#allocation98_spill] sm:$0xff] %v7053_v5  ;;  %v7059_v62 = vld [vmem:[#allocation8 + $0xa0] sm:$0xff]  ;;  %v7062_v27 = vld [vmem:[#allocation8 + $0xb0] sm:$0xff]  ;;  %v4629_v36 = vpop.eup %4628 }
 0x358   :  { %2055 = vmatprep.subr.mxu0 %v7053_v5  ;;  %9933 = vst [vmem:[#allocation99_spill] sm:$0xff] %v7056_v49  ;;  %2126 = vmatprep.subr.mxu1 %v7056_v49  ;;  %9934 = vst [vmem:[#allocation100_spill] sm:$0xff] %v7059_v62  ;;  %v7065_v53 = vld [vmem:[#allocation8 + $0x88] sm:$0xff]  ;;  %v7068_v25 = vld [vmem:[#allocation8 + $0x98] sm:$0xff] }
 0x359   :  { %2056 = vmatpush1.msra.mxu0 %v7059_v62  ;;  %9935 = vst [vmem:[#allocation101_spill] sm:$0xff] %v7062_v27  ;;  %2127 = vmatpush1.msra.mxu1 %v7062_v27  ;;  %9936 = vst [vmem:[#allocation102_spill] sm:$0xff] %v7065_v53  ;;  %v7071_v5 = vld [vmem:[#allocation8 + $0x80] sm:$0xff]  ;;  %v7074_v49 = vld [vmem:[#allocation8 + $0x90] sm:$0xff] }
 0x35a   :  { %2057 = vmatprep.subr.mxu0 %v7065_v53  ;;  %9937 = vst [vmem:[#allocation103_spill] sm:$0xff] %v7068_v25  ;;  %2128 = vmatprep.subr.mxu1 %v7068_v25  ;;  %9938 = vst [vmem:[#allocation104_spill] sm:$0xff] %v7071_v5  ;;  %v7077_v62 = vld [vmem:[#allocation8 + $0x68] sm:$0xff]  ;;  %v7080_v27 = vld [vmem:[#allocation8 + $0x78] sm:$0xff]  ;;  %v1717_v53 = vmul.f32 0.5, %v4629_v36 }
 0x35b   :  { %2058 = vmatpush1.msra.mxu0 %v7071_v5  ;;  %9939 = vst [vmem:[#allocation105_spill] sm:$0xff] %v7074_v49  ;;  %2129 = vmatpush1.msra.mxu1 %v7074_v49  ;;  %9940 = vst [vmem:[#allocation106_spill] sm:$0xff] %v7077_v62  ;;  %v7083_v21 = vld [vmem:[#allocation8 + $0x60] sm:$0xff]  ;;  %v7086_v25 = vld [vmem:[#allocation8 + $0x70] sm:$0xff] }
 0x35c   :  { %2059 = vmatprep.subr.mxu0 %v7077_v62  ;;  %9941 = vst [vmem:[#allocation107_spill] sm:$0xff] %v7080_v27  ;;  %2130 = vmatprep.subr.mxu1 %v7080_v27  ;;  %9942 = vst [vmem:[#allocation108_spill] sm:$0xff] %v7083_v21  ;;  %v7089_v5 = vld [vmem:[#allocation8 + $0x48] sm:$0xff]  ;;  %v7092_v49 = vld [vmem:[#allocation8 + $0x58] sm:$0xff] }
 0x35d   :  { %2060 = vmatpush1.msra.mxu0 %v7083_v21  ;;  %9943 = vst [vmem:[#allocation109_spill] sm:$0xff] %v7086_v25  ;;  %2131 = vmatpush1.msra.mxu1 %v7086_v25  ;;  %9944 = vst [vmem:[#allocation110_spill] sm:$0xff] %v7089_v5  ;;  %v7095_v62 = vld [vmem:[#allocation8 + $0x40] sm:$0xff]  ;;  %v7098_v36 = vld [vmem:[#allocation8 + $0x50] sm:$0xff] }
 0x35e   :  { %2061 = vmatprep.subr.mxu0 %v7089_v5  ;;  %9945 = vst [vmem:[#allocation111_spill] sm:$0xff] %v7092_v49  ;;  %2132 = vmatprep.subr.mxu1 %v7092_v49  ;;  %9946 = vst [vmem:[#allocation112_spill] sm:$0xff] %v7095_v62  ;;  %v7101_v21 = vld [vmem:[#allocation8 + $0x28] sm:$0xff]  ;;  %v7104_v25 = vld [vmem:[#allocation8 + $0x38] sm:$0xff]  ;;  %v1718_v5 = vadd.f32 0.5, %v1717_v53 }
 0x35f   :  { %2062 = vmatpush1.msra.mxu0 %v7095_v62  ;;  %9947 = vst [vmem:[#allocation113_spill] sm:$0xff] %v7098_v36  ;;  %2133 = vmatpush1.msra.mxu1 %v7098_v36  ;;  %9948 = vst [vmem:[#allocation114_spill] sm:$0xff] %v7101_v21  ;;  %v7107_v27 = vld [vmem:[#allocation8 + $0x20] sm:$0xff]  ;;  %v7110_v49 = vld [vmem:[#allocation8 + $0x30] sm:$0xff] }
 0x360   :  { %2063 = vmatprep.subr.mxu0 %v7101_v21  ;;  %9949 = vst [vmem:[#allocation115_spill] sm:$0xff] %v7104_v25  ;;  %2134 = vmatprep.subr.mxu1 %v7104_v25  ;;  %9950 = vst [vmem:[#allocation116_spill] sm:$0xff] %v7107_v27  ;;  %v7113_v30 = vld [vmem:[#allocation8 + $0x8] sm:$0xff]  ;;  %v7116_v36 = vld [vmem:[#allocation8 + $0x18] sm:$0xff] }
 0x361   :  { %2064 = vmatpush1.msra.mxu0 %v7107_v27  ;;  %9951 = vst [vmem:[#allocation117_spill] sm:$0xff] %v7110_v49  ;;  %2135 = vmatpush1.msra.mxu1 %v7110_v49  ;;  %9952 = vst [vmem:[#allocation118_spill] sm:$0xff] %v7113_v30  ;;  %v7119_v21 = vld [vmem:[#allocation8] sm:$0xff]  ;;  %v7123_v27 = vld [vmem:[#allocation8 + $0x10] sm:$0xff] }
 0x362   :  { %v4631_v62 = vpop.eup %4630  ;;  %2065 = vmatprep.subr.mxu0 %v7113_v30  ;;  %9953 = vst [vmem:[#allocation119_spill] sm:$0xff] %v7116_v36  ;;  %2136 = vmatprep.subr.mxu1 %v7116_v36  ;;  %9954 = vst [vmem:[#allocation120_spill] sm:$0xff] %v7119_v21  ;;  %v7127_v30 = vld [vmem:[#allocation4 + $0x1e8] sm:$0xff]  ;;  %v7130_v36 = vld [vmem:[#allocation4 + $0x1f8] sm:$0xff] }
 0x363   :  { %2066 = vmatpush1.msra.mxu0 %v7119_v21  ;;  %2099 = vmatprep.mubr.f32.mxu0 %v9738_v1  ;;  %v1723_v53 = vmul.f32 %v4631_v62, %v1718_v5  ;;  %9955 = vst [vmem:[#allocation121_spill] sm:$0xff] %v7123_v27  ;;  %9956 = vst [vmem:[#allocation122_spill] sm:$0xff] %v7127_v30  ;;  %v7133_v21 = vld [vmem:[#allocation4 + $0x1e0] sm:$0xff]  ;;  %v7136_v62 = vld [vmem:[#allocation4 + $0x1f0] sm:$0xff] }
 0x364   :  { %2137 = vmatpush1.msra.mxu1 %v7123_v27  ;;  %2170 = vmatprep.mubr.f32.mxu1 %v9738_v1  ;;  %9957 = vst [vmem:[#allocation123_spill] sm:$0xff] %v7130_v36  ;;  %9958 = vst [vmem:[#allocation124_spill] sm:$0xff] %v7133_v21  ;;  %v7139_v5 = vld [vmem:[#allocation4 + $0x1c8] sm:$0xff]  ;;  %v10020_v49 = vld [vmem:[#allocation17_spill] sm:$0xff] }
 0x365   :  { %2100 = vmatmul.mubr.f32.vlgmr.msra.gmra.mxu0 %v1723_v53  ;;  %2171 = vmatmul.mubr.f32.vlgmr.msra.gmra.mxu1 %v1723_v53  ;;  %9959 = vst [vmem:[#allocation125_spill] sm:$0xff] %v7136_v62  ;;  %9960 = vst [vmem:[#allocation126_spill] sm:$0xff] %v7139_v5  ;;  %v7142_v53 = vld [vmem:[#allocation4 + $0x1d8] sm:$0xff] }
 0x366   :  { %2204 = vmatprep.subr.mxu0 %v7127_v30  ;;  %2275 = vmatprep.subr.mxu1 %v7130_v36  ;;  %9961 = vst [vmem:[#allocation127_spill] sm:$0xff] %v7142_v53  ;;  %v7145_v30 = vld [vmem:[#allocation4 + $0x1c0] sm:$0xff]  ;;  %v7148_v36 = vld [vmem:[#allocation4 + $0x1d0] sm:$0xff] }
 0x367   :  { %2205 = vmatpush1.msra.mxu0 %v7133_v21  ;;  %2276 = vmatpush1.msra.mxu1 %v7136_v62  ;;  %9962 = vst [vmem:[#allocation128_spill] sm:$0xff] %v7145_v30  ;;  %9963 = vst [vmem:[#allocation129_spill] sm:$0xff] %v7148_v36  ;;  %v7151_v21 = vld [vmem:[#allocation4 + $0x1a8] sm:$0xff]  ;;  %v7154_v62 = vld [vmem:[#allocation4 + $0x1b8] sm:$0xff] }
 0x368   :  { %2206 = vmatprep.subr.mxu0 %v7139_v5  ;;  %2277 = vmatprep.subr.mxu1 %v7142_v53  ;;  %9964 = vst [vmem:[#allocation130_spill] sm:$0xff] %v7151_v21  ;;  %9965 = vst [vmem:[#allocation131_spill] sm:$0xff] %v7154_v62  ;;  %v7157_v5 = vld [vmem:[#allocation4 + $0x1a0] sm:$0xff]  ;;  %v7160_v53 = vld [vmem:[#allocation4 + $0x1b0] sm:$0xff] }
 0x369   :  { %2207 = vmatpush1.msra.mxu0 %v7145_v30  ;;  %2278 = vmatpush1.msra.mxu1 %v7148_v36  ;;  %9966 = vst [vmem:[#allocation132_spill] sm:$0xff] %v7157_v5  ;;  %9967 = vst [vmem:[#allocation133_spill] sm:$0xff] %v7160_v53  ;;  %v7163_v30 = vld [vmem:[#allocation4 + $0x188] sm:$0xff]  ;;  %v7166_v36 = vld [vmem:[#allocation4 + $0x198] sm:$0xff] }
 0x36a   :  { %2208 = vmatprep.subr.mxu0 %v7151_v21  ;;  %2279 = vmatprep.subr.mxu1 %v7154_v62  ;;  %9968 = vst [vmem:[#allocation134_spill] sm:$0xff] %v7163_v30  ;;  %9969 = vst [vmem:[#allocation135_spill] sm:$0xff] %v7166_v36  ;;  %v7169_v21 = vld [vmem:[#allocation4 + $0x180] sm:$0xff]  ;;  %v7172_v62 = vld [vmem:[#allocation4 + $0x190] sm:$0xff] }
 0x36b   :  { %2209 = vmatpush1.msra.mxu0 %v7157_v5  ;;  %2280 = vmatpush1.msra.mxu1 %v7160_v53  ;;  %9970 = vst [vmem:[#allocation136_spill] sm:$0xff] %v7169_v21  ;;  %9971 = vst [vmem:[#allocation137_spill] sm:$0xff] %v7172_v62  ;;  %v7175_v5 = vld [vmem:[#allocation4 + $0x168] sm:$0xff]  ;;  %v7178_v53 = vld [vmem:[#allocation4 + $0x178] sm:$0xff] }
 0x36c   :  { %2210 = vmatprep.subr.mxu0 %v7163_v30  ;;  %2281 = vmatprep.subr.mxu1 %v7166_v36  ;;  %9972 = vst [vmem:[#allocation138_spill] sm:$0xff] %v7175_v5  ;;  %9973 = vst [vmem:[#allocation139_spill] sm:$0xff] %v7178_v53  ;;  %v7181_v30 = vld [vmem:[#allocation4 + $0x160] sm:$0xff]  ;;  %v7184_v36 = vld [vmem:[#allocation4 + $0x170] sm:$0xff] }
 0x36d   :  { %2211 = vmatpush1.msra.mxu0 %v7169_v21  ;;  %2282 = vmatpush1.msra.mxu1 %v7172_v62  ;;  %9974 = vst [vmem:[#allocation140_spill] sm:$0xff] %v7181_v30  ;;  %9975 = vst [vmem:[#allocation141_spill] sm:$0xff] %v7184_v36  ;;  %v7187_v21 = vld [vmem:[#allocation4 + $0x148] sm:$0xff]  ;;  %v7190_v62 = vld [vmem:[#allocation4 + $0x158] sm:$0xff] }
 0x36e   :  { %2212 = vmatprep.subr.mxu0 %v7175_v5  ;;  %2283 = vmatprep.subr.mxu1 %v7178_v53  ;;  %9976 = vst [vmem:[#allocation142_spill] sm:$0xff] %v7187_v21  ;;  %9977 = vst [vmem:[#allocation143_spill] sm:$0xff] %v7190_v62  ;;  %v7193_v5 = vld [vmem:[#allocation4 + $0x140] sm:$0xff]  ;;  %v7196_v53 = vld [vmem:[#allocation4 + $0x150] sm:$0xff] }
 0x36f   :  { %2213 = vmatpush1.msra.mxu0 %v7181_v30  ;;  %2284 = vmatpush1.msra.mxu1 %v7184_v36  ;;  %9978 = vst [vmem:[#allocation144_spill] sm:$0xff] %v7193_v5  ;;  %9979 = vst [vmem:[#allocation145_spill] sm:$0xff] %v7196_v53  ;;  %v7199_v30 = vld [vmem:[#allocation4 + $0x128] sm:$0xff]  ;;  %v7202_v36 = vld [vmem:[#allocation4 + $0x138] sm:$0xff] }
 0x370   :  { %2214 = vmatprep.subr.mxu0 %v7187_v21  ;;  %2285 = vmatprep.subr.mxu1 %v7190_v62  ;;  %9980 = vst [vmem:[#allocation146_spill] sm:$0xff] %v7199_v30  ;;  %9981 = vst [vmem:[#allocation147_spill] sm:$0xff] %v7202_v36  ;;  %v7205_v21 = vld [vmem:[#allocation4 + $0x120] sm:$0xff]  ;;  %v7208_v62 = vld [vmem:[#allocation4 + $0x130] sm:$0xff] }
 0x371   :  { %2215 = vmatpush1.msra.mxu0 %v7193_v5  ;;  %2286 = vmatpush1.msra.mxu1 %v7196_v53  ;;  %9982 = vst [vmem:[#allocation148_spill] sm:$0xff] %v7205_v21  ;;  %9983 = vst [vmem:[#allocation149_spill] sm:$0xff] %v7208_v62  ;;  %v7211_v5 = vld [vmem:[#allocation4 + $0x108] sm:$0xff]  ;;  %v7214_v53 = vld [vmem:[#allocation4 + $0x118] sm:$0xff] }
 0x372   :  { %2216 = vmatprep.subr.mxu0 %v7199_v30  ;;  %2287 = vmatprep.subr.mxu1 %v7202_v36  ;;  %9984 = vst [vmem:[#allocation150_spill] sm:$0xff] %v7211_v5  ;;  %9985 = vst [vmem:[#allocation151_spill] sm:$0xff] %v7214_v53  ;;  %v7217_v30 = vld [vmem:[#allocation4 + $0x100] sm:$0xff]  ;;  %v7220_v36 = vld [vmem:[#allocation4 + $0x110] sm:$0xff] }
 0x373   :  { %2217 = vmatpush1.msra.mxu0 %v7205_v21  ;;  %2288 = vmatpush1.msra.mxu1 %v7208_v62  ;;  %9986 = vst [vmem:[#allocation152_spill] sm:$0xff] %v7217_v30  ;;  %9987 = vst [vmem:[#allocation153_spill] sm:$0xff] %v7220_v36  ;;  %v7223_v21 = vld [vmem:[#allocation4 + $0xe8] sm:$0xff]  ;;  %v7226_v62 = vld [vmem:[#allocation4 + $0xf8] sm:$0xff] }
 0x374   :  { %2218 = vmatprep.subr.mxu0 %v7211_v5  ;;  %2289 = vmatprep.subr.mxu1 %v7214_v53  ;;  %9988 = vst [vmem:[#allocation154_spill] sm:$0xff] %v7223_v21  ;;  %9989 = vst [vmem:[#allocation155_spill] sm:$0xff] %v7226_v62  ;;  %v7229_v5 = vld [vmem:[#allocation4 + $0xe0] sm:$0xff]  ;;  %v7232_v53 = vld [vmem:[#allocation4 + $0xf0] sm:$0xff] }
 0x375   :  { %2219 = vmatpush1.msra.mxu0 %v7217_v30  ;;  %2290 = vmatpush1.msra.mxu1 %v7220_v36  ;;  %9990 = vst [vmem:[#allocation156_spill] sm:$0xff] %v7229_v5  ;;  %9991 = vst [vmem:[#allocation157_spill] sm:$0xff] %v7232_v53  ;;  %v7235_v30 = vld [vmem:[#allocation4 + $0xc8] sm:$0xff]  ;;  %v7238_v36 = vld [vmem:[#allocation4 + $0xd8] sm:$0xff] }
 0x376   :  { %2220 = vmatprep.subr.mxu0 %v7223_v21  ;;  %2291 = vmatprep.subr.mxu1 %v7226_v62  ;;  %9992 = vst [vmem:[#allocation158_spill] sm:$0xff] %v7235_v30  ;;  %9993 = vst [vmem:[#allocation159_spill] sm:$0xff] %v7238_v36  ;;  %v7241_v21 = vld [vmem:[#allocation4 + $0xc0] sm:$0xff]  ;;  %v7244_v62 = vld [vmem:[#allocation4 + $0xd0] sm:$0xff] }
 0x377   :  { %2221 = vmatpush1.msra.mxu0 %v7229_v5  ;;  %2292 = vmatpush1.msra.mxu1 %v7232_v53  ;;  %9994 = vst [vmem:[#allocation160_spill] sm:$0xff] %v7241_v21  ;;  %9995 = vst [vmem:[#allocation161_spill] sm:$0xff] %v7244_v62  ;;  %v7247_v5 = vld [vmem:[#allocation4 + $0xa8] sm:$0xff]  ;;  %v7250_v53 = vld [vmem:[#allocation4 + $0xb8] sm:$0xff] }
 0x378   :  { %2222 = vmatprep.subr.mxu0 %v7235_v30  ;;  %2293 = vmatprep.subr.mxu1 %v7238_v36  ;;  %9996 = vst [vmem:[#allocation162_spill] sm:$0xff] %v7247_v5  ;;  %9997 = vst [vmem:[#allocation163_spill] sm:$0xff] %v7250_v53  ;;  %v7253_v30 = vld [vmem:[#allocation4 + $0xa0] sm:$0xff]  ;;  %v7256_v36 = vld [vmem:[#allocation4 + $0xb0] sm:$0xff] }
 0x379   :  { %2223 = vmatpush1.msra.mxu0 %v7241_v21  ;;  %2294 = vmatpush1.msra.mxu1 %v7244_v62  ;;  %9998 = vst [vmem:[#allocation164_spill] sm:$0xff] %v7253_v30  ;;  %9999 = vst [vmem:[#allocation165_spill] sm:$0xff] %v7256_v36  ;;  %v7259_v21 = vld [vmem:[#allocation4 + $0x88] sm:$0xff]  ;;  %v7262_v62 = vld [vmem:[#allocation4 + $0x98] sm:$0xff] }
 0x37a   :  { %2224 = vmatprep.subr.mxu0 %v7247_v5  ;;  %2295 = vmatprep.subr.mxu1 %v7250_v53  ;;  %10000 = vst [vmem:[#allocation166_spill] sm:$0xff] %v7259_v21  ;;  %10001 = vst [vmem:[#allocation167_spill] sm:$0xff] %v7262_v62  ;;  %v7265_v5 = vld [vmem:[#allocation4 + $0x80] sm:$0xff]  ;;  %v7268_v53 = vld [vmem:[#allocation4 + $0x90] sm:$0xff] }
 0x37b   :  { %2225 = vmatpush1.msra.mxu0 %v7253_v30  ;;  %2296 = vmatpush1.msra.mxu1 %v7256_v36  ;;  %10002 = vst [vmem:[#allocation168_spill] sm:$0xff] %v7265_v5  ;;  %10003 = vst [vmem:[#allocation169_spill] sm:$0xff] %v7268_v53  ;;  %v7271_v30 = vld [vmem:[#allocation4 + $0x68] sm:$0xff]  ;;  %v7274_v36 = vld [vmem:[#allocation4 + $0x78] sm:$0xff] }
 0x37c   :  { %2226 = vmatprep.subr.mxu0 %v7259_v21  ;;  %2297 = vmatprep.subr.mxu1 %v7262_v62  ;;  %10004 = vst [vmem:[#allocation170_spill] sm:$0xff] %v7271_v30  ;;  %10005 = vst [vmem:[#allocation171_spill] sm:$0xff] %v7274_v36  ;;  %v7277_v21 = vld [vmem:[#allocation4 + $0x60] sm:$0xff]  ;;  %v7280_v62 = vld [vmem:[#allocation4 + $0x70] sm:$0xff] }
 0x37d   :  { %2227 = vmatpush1.msra.mxu0 %v7265_v5  ;;  %2298 = vmatpush1.msra.mxu1 %v7268_v53  ;;  %10006 = vst [vmem:[#allocation172_spill] sm:$0xff] %v7277_v21  ;;  %10007 = vst [vmem:[#allocation173_spill] sm:$0xff] %v7280_v62  ;;  %v7283_v5 = vld [vmem:[#allocation4 + $0x48] sm:$0xff]  ;;  %v7286_v53 = vld [vmem:[#allocation4 + $0x58] sm:$0xff] }
 0x37e   :  { %2228 = vmatprep.subr.mxu0 %v7271_v30  ;;  %2299 = vmatprep.subr.mxu1 %v7274_v36  ;;  %10008 = vst [vmem:[#allocation174_spill] sm:$0xff] %v7283_v5  ;;  %10009 = vst [vmem:[#allocation175_spill] sm:$0xff] %v7286_v53  ;;  %v7289_v30 = vld [vmem:[#allocation4 + $0x40] sm:$0xff]  ;;  %v7292_v36 = vld [vmem:[#allocation4 + $0x50] sm:$0xff] }
 0x37f   :  { %2229 = vmatpush1.msra.mxu0 %v7277_v21  ;;  %2300 = vmatpush1.msra.mxu1 %v7280_v62  ;;  %10010 = vst [vmem:[#allocation176_spill] sm:$0xff] %v7289_v30  ;;  %10011 = vst [vmem:[#allocation177_spill] sm:$0xff] %v7292_v36  ;;  %v7295_v21 = vld [vmem:[#allocation4 + $0x28] sm:$0xff]  ;;  %v7298_v62 = vld [vmem:[#allocation4 + $0x38] sm:$0xff] }
 0x380   :  { %2230 = vmatprep.subr.mxu0 %v7283_v5  ;;  %2301 = vmatprep.subr.mxu1 %v7286_v53  ;;  %10012 = vst [vmem:[#allocation178_spill] sm:$0xff] %v7295_v21  ;;  %10013 = vst [vmem:[#allocation179_spill] sm:$0xff] %v7298_v62  ;;  %v7301_v5 = vld [vmem:[#allocation4 + $0x20] sm:$0xff]  ;;  %v7304_v53 = vld [vmem:[#allocation4 + $0x30] sm:$0xff] }
 0x381   :  { %2231 = vmatpush1.msra.mxu0 %v7289_v30  ;;  %2302 = vmatpush1.msra.mxu1 %v7292_v36  ;;  %10014 = vst [vmem:[#allocation180_spill] sm:$0xff] %v7301_v5  ;;  %10015 = vst [vmem:[#allocation181_spill] sm:$0xff] %v7304_v53  ;;  %v7307_v30 = vld [vmem:[#allocation4 + $0x8] sm:$0xff]  ;;  %v7310_v36 = vld [vmem:[#allocation4 + $0x18] sm:$0xff] }
 0x382   :  { %2232 = vmatprep.subr.mxu0 %v7295_v21  ;;  %2303 = vmatprep.subr.mxu1 %v7298_v62  ;;  %10016 = vst [vmem:[#allocation11_spill] sm:$0xff] %v7307_v30  ;;  %10017 = vst [vmem:[#allocation13_spill] sm:$0xff] %v7310_v36  ;;  %v7313_v21 = vld [vmem:[#allocation4] sm:$0xff] }
 0x383   :  { %2233 = vmatpush1.msra.mxu0 %v7301_v5  ;;  %2304 = vmatpush1.msra.mxu1 %v7304_v53  ;;  %10018 = vst [vmem:[#allocation12_spill] sm:$0xff] %v7313_v21 }
 0x384   :  { %2234 = vmatprep.subr.mxu0 %v7307_v30  ;;  %2305 = vmatprep.subr.mxu1 %v7310_v36  ;;  %v10019_v30 = vld [vmem:[#allocation15_spill] sm:$0xff] }
 0x385   :  { %2235 = vmatpush1.msra.mxu0 %v7313_v21  ;;  %2306 = vmatpush1.msra.mxu1 %v6712_v31  ;;  %v10021_v21 = vld [vmem:[#allocation16_spill] sm:$0xff] }
 0x386   :  { %2268 = vmatprep.mubr.f32.mxu0 %v9738_v1  ;;  %2339 = vmatprep.mubr.f32.mxu1 %v9738_v1 }
 0x387   :  { %2368 = vmatprep.subr.mxu0 %v6717_v15  ;;  %2439 = vmatprep.subr.mxu1 %v6720_v35 }
 0x3e2   :  { %v1795_v53 = vpop.f32.mrf.mxu0  ;;  %v1866_v62 = vpop.f32.mrf.mxu1 }
 0x3e3   :  { %v1871_v5 = vadd.f32 %v1795_v53, %v10019_v30  ;;  %v1873_v10 = vadd.f32 %v1866_v62, %v10021_v21  ;;  %v10054_v62 = vld [vmem:[#allocation64_spill] sm:$0xff] }
 0x3e4   :  { %v1797_v27 = vpop.f32.mrf.mxu0  ;;  %v1868_v18 = vpop.f32.mrf.mxu1 }
 0x3e5   :  { %v1875_v36 = vmul.f32 0.5, %v1871_v5  ;;  %v1872_v25 = vadd.f32 %v1797_v27, %v10020_v49  ;;  %v1874_v1 = vadd.f32 %v1868_v18, %v10022_v17  ;;  %v10052_v18 = vld [vmem:[#allocation62_spill] sm:$0xff] }
 0x3e7   :  { %4632 = vtanh.f32 %v1875_v36  ;;  %v1879_v31 = vmul.f32 0.5, %v1872_v25  ;;  %v1884_v15 = vmul.f32 0.5, %v1874_v1  ;;  %v10053_v36 = vld [vmem:[#allocation63_spill] sm:$0xff] }
 0x3e9   :  { %4634 = vtanh.f32 %v1879_v31  ;;  %v10055_v31 = vld [vmem:[#allocation65_spill] sm:$0xff] }
 0x3ea   :  { %4636 = vtanh.f32 %v1873_v10 }
 0x3eb   :  { %4638 = vtanh.f32 %v1884_v15  ;;  %v10056_v15 = vld [vmem:[#allocation66_spill] sm:$0xff] }
 0x3f4   :  { %v4633_v12 = vpop.eup %4632 }
 0x3f5   :  { %v1877_v35 = vmul.f32 0.5, %v4633_v12  ;;  %v10051_v12 = vld [vmem:[#allocation61_spill] sm:$0xff] }
 0x3f6   :  { %v4635_v14 = vpop.eup %4634 }
 0x3f7   :  { %v1878_v48 = vadd.f32 0.5, %v1877_v35  ;;  %v1881_v30 = vmul.f32 0.5, %v4635_v14  ;;  %v4637_v53 = vpop.eup %4636 }
 0x3f8   :  { %v4639_v10 = vpop.eup %4638 }
 0x3f9   :  { %v1882_v5 = vadd.f32 0.5, %v1881_v30  ;;  %v1889_v24 = vmul.f32 %v4637_v53, %v1878_v48  ;;  %v1886_v21 = vmul.f32 0.5, %v4639_v10  ;;  %v10050_v48 = vld [vmem:[#allocation60_spill] sm:$0xff]  ;;  %v10057_v30 = vld [vmem:[#allocation67_spill] sm:$0xff]  ;;  %v10060_v10 = vld [vmem:[#allocation70_spill] sm:$0xff] }
 0x3fa   :  { %v10058_v53 = vld [vmem:[#allocation68_spill] sm:$0xff] }
 0x3fb   :  { %v1888_v27 = vmul.f32 %v1882_v5, %v6728_v11  ;;  %v1887_v25 = vadd.f32 0.5, %v1886_v21 }
 0x3fd   :  { %v7326_v49 = vadd.f32 %v1889_v24, %v1888_v27  ;;  %v10059_v27 = vld [vmem:[#allocation69_spill] sm:$0xff] }
 0x3ff   :  { %4640 = vtanh.f32 %v7326_v49 }
 0x403   :  { %v1959_v14 = vpop.f32.mrf.mxu0  ;;  %v2030_v24 = vpop.f32.mrf.mxu1 }
 0x405   :  { %v1961_v11 = vpop.f32.mrf.mxu0 }
 0x40c   :  { %v4641_v17 = vpop.eup %4640 }
 0x40d   :  { %v7329_v1 = vmul.f32 %v4641_v17, %v1887_v25  ;;  %v10061_v25 = vld [vmem:[#allocation71_spill] sm:$0xff]  ;;  %v10062_v17 = vld [vmem:[#allocation72_spill] sm:$0xff] }
 0x40f   :  { %2269 = vmatmul.mubr.f32.vlgmr.msra.gmra.mxu0 %v7329_v1  ;;  %2340 = vmatmul.mubr.f32.vlgmr.msra.gmra.mxu1 %v7329_v1 }
 0x410   :  { %2369 = vmatpush1.msra.mxu0 %v6735_v8  ;;  %2440 = vmatpush1.msra.mxu1 %v6738_v9  ;;  %v1960_v8 = vadd.f32 %v1959_v14, %v6528_v20  ;;  %v10023_v9 = vld [vmem:[#allocation37_spill] sm:$0xff] }
 0x411   :  { %2370 = vmatprep.subr.mxu0 %v6741_v41  ;;  %2441 = vmatprep.subr.mxu1 %v6744_v28  ;;  %v10024_v41 = vld [vmem:[#allocation38_spill] sm:$0xff]  ;;  %v10063_v14 = vld [vmem:[#allocation73_spill] sm:$0xff] }
 0x412   :  { %2371 = vmatpush1.msra.mxu0 %v6747_v43  ;;  %2442 = vmatpush1.msra.mxu1 %v6750_v47  ;;  %v10025_v43 = vld [vmem:[#allocation39_spill] sm:$0xff] }
 0x413   :  { %2372 = vmatprep.subr.mxu0 %v6753_v32  ;;  %2443 = vmatprep.subr.mxu1 %v6756_v29  ;;  %v10026_v47 = vld [vmem:[#allocation183_spill] sm:$0xff] }
 0x414   :  { %2373 = vmatpush1.msra.mxu0 %v6759_v37  ;;  %2444 = vmatpush1.msra.mxu1 %v6762_v46  ;;  %v1962_v32 = vadd.f32 %v1961_v11, %v10026_v47  ;;  %v10027_v37 = vld [vmem:[#allocation40_spill] sm:$0xff]  ;;  %v10028_v46 = vld [vmem:[#allocation41_spill] sm:$0xff] }
 0x415   :  { %2374 = vmatprep.subr.mxu0 %v6765_v34  ;;  %2445 = vmatprep.subr.mxu1 %v6768_v50  ;;  %v2032_v34 = vpop.f32.mrf.mxu1 }
 0x416   :  { %2375 = vmatpush1.msra.mxu0 %v6771_v6  ;;  %2446 = vmatpush1.msra.mxu1 %v6774_v38  ;;  %v10029_v6 = vld [vmem:[#allocation42_spill] sm:$0xff] }
 0x417   :  { %2376 = vmatprep.subr.mxu0 %v6777_v52  ;;  %2447 = vmatprep.subr.mxu1 %v6780_v13  ;;  %v10030_v13 = vld [vmem:[#allocation43_spill] sm:$0xff] }
 0x418   :  { %2377 = vmatpush1.msra.mxu0 %v6783_v19  ;;  %2448 = vmatpush1.msra.mxu1 %v6786_v55  ;;  %v10031_v19 = vld [vmem:[#allocation44_spill] sm:$0xff] }
 0x419   :  { %2378 = vmatprep.subr.mxu0 %v6789_v56  ;;  %2449 = vmatprep.subr.mxu1 %v6792_v59  ;;  %v10032_v56 = vld [vmem:[#allocation45_spill] sm:$0xff]  ;;  %v10033_v59 = vld [vmem:[#allocation46_spill] sm:$0xff] }
 0x41a   :  { %2379 = vmatpush1.msra.mxu0 %v6795_v60  ;;  %2450 = vmatpush1.msra.mxu1 %v6798_v16  ;;  %v10034_v60 = vld [vmem:[#allocation35_spill] sm:$0xff] }
 0x41b   :  { %2380 = vmatprep.subr.mxu0 %v6801_v51  ;;  %2451 = vmatprep.subr.mxu1 %v6804_v23  ;;  %v2031_v16 = vadd.f32 %v2030_v24, %v10034_v60  ;;  %v10035_v23 = vld [vmem:[#allocation47_spill] sm:$0xff]  ;;  %v10064_v24 = vld [vmem:[#allocation74_spill] sm:$0xff] }
 0x41c   :  { %2381 = vmatpush1.msra.mxu0 %v6807_v2  ;;  %2452 = vmatpush1.msra.mxu1 %v6810_v0  ;;  %v10036_v2 = vld [vmem:[#allocation48_spill] sm:$0xff]  ;;  %v10037_v0 = vld [vmem:[#allocation49_spill] sm:$0xff] }
 0x41d   :  { %2382 = vmatprep.subr.mxu0 %v6813_v40  ;;  %2453 = vmatprep.subr.mxu1 %v6816_v61  ;;  %v10038_v40 = vld [vmem:[#allocation50_spill] sm:$0xff] }
 0x41e   :  { %2383 = vmatpush1.msra.mxu0 %v6819_v44  ;;  %2454 = vmatpush1.msra.mxu1 %v6822_v39  ;;  %v10039_v44 = vld [vmem:[#allocation51_spill] sm:$0xff]  ;;  %v10040_v39 = vld [vmem:[#allocation52_spill] sm:$0xff] }
 0x41f   :  { %2384 = vmatprep.subr.mxu0 %v6825_v54  ;;  %2455 = vmatprep.subr.mxu1 %v6828_v57  ;;  %v10041_v54 = vld [vmem:[#allocation53_spill] sm:$0xff]  ;;  %v10042_v57 = vld [vmem:[#allocation54_spill] sm:$0xff] }
 0x420   :  { %2385 = vmatpush1.msra.mxu0 %v6831_v58  ;;  %2456 = vmatpush1.msra.mxu1 %v6834_v63  ;;  %v10043_v58 = vld [vmem:[#allocation55_spill] sm:$0xff]  ;;  %v10044_v63 = vmov 0.0  }
 0x421   :  { %2386 = vmatprep.subr.mxu0 %v6837_v3  ;;  %2457 = vmatprep.subr.mxu1 %v6840_v4  ;;  %v10045_v4 = vld [vmem:[#allocation56_spill] sm:$0xff] }
 0x422   :  { %2387 = vmatpush1.msra.mxu0 %v6843_v33  ;;  %2458 = vmatpush1.msra.mxu1 %v6846_v42  ;;  %v10046_v33 = vld [vmem:[#allocation36_spill] sm:$0xff] }
 0x423   :  { %2388 = vmatprep.subr.mxu0 %v6849_v26  ;;  %2459 = vmatprep.subr.mxu1 %v6852_v7  ;;  %v2033_v42 = vadd.f32 %v2032_v34, %v10046_v33  ;;  %v10047_v26 = vld [vmem:[#allocation57_spill] sm:$0xff]  ;;  %v10048_v7 = vld [vmem:[#allocation58_spill] sm:$0xff] }
 0x424   :  { %2389 = vmatpush1.msra.mxu0 %v10023_v9  ;;  %2460 = vmatpush1.msra.mxu1 %v10024_v41  ;;  %v10065_v9 = vld [vmem:[#allocation75_spill] sm:$0xff]  ;;  %v10066_v41 = vld [vmem:[#allocation76_spill] sm:$0xff]  ;;  %v10071_v34 = vld [vmem:[#allocation81_spill] sm:$0xff] }
 0x425   :  { %v2101_v28 = vpop.f32.mrf.mxu0  ;;  %2390 = vmatprep.subr.mxu0 %v10025_v43  ;;  %2461 = vmatprep.subr.mxu1 %v6865_v45  ;;  %v2172_v55 = vpop.f32.mrf.mxu1  ;;  %v10049_v45 = vld [vmem:[#allocation59_spill] sm:$0xff]  ;;  %v10068_v43 = vld [vmem:[#allocation78_spill] sm:$0xff] }
 0x426   :  { %v2177_v29 = vadd.f32 %v2101_v28, %v1960_v8  ;;  %2391 = vmatpush1.msra.mxu0 %v10027_v37  ;;  %2462 = vmatpush1.msra.mxu1 %v10028_v46  ;;  %v2179_v61 = vadd.f32 %v2172_v55, %v2031_v16  ;;  %v10067_v28 = vld [vmem:[#allocation77_spill] sm:$0xff]  ;;  %v10070_v37 = vld [vmem:[#allocation80_spill] sm:$0xff] }
 0x427   :  { %v2103_v50 = vpop.f32.mrf.mxu0  ;;  %2392 = vmatprep.subr.mxu0 %v10029_v6  ;;  %2463 = vmatprep.subr.mxu1 %v6878_v22  ;;  %v2174_v3 = vpop.f32.mrf.mxu1  ;;  %v10073_v6 = vld [vmem:[#allocation87_spill] sm:$0xff]  ;;  %v10076_v55 = vld [vmem:[#allocation85_spill] sm:$0xff]  ;;  %v10078_v16 = vld [vmem:[#allocation88_spill] sm:$0xff] }
 0x428   :  { %v2181_v38 = vmul.f32 0.5, %v2177_v29  ;;  %v2178_v52 = vadd.f32 %v2103_v50, %v1962_v32  ;;  %2393 = vmatpush1.msra.mxu0 %v10030_v13  ;;  %2464 = vmatpush1.msra.mxu1 %v10031_v19  ;;  %v2180_v22 = vadd.f32 %v2174_v3, %v2033_v42  ;;  %v10069_v29 = vld [vmem:[#allocation79_spill] sm:$0xff]  ;;  %v10072_v50 = vld [vmem:[#allocation82_spill] sm:$0xff]  ;;  %v10075_v19 = vld [vmem:[#allocation84_spill] sm:$0xff] }
 0x429   :  { %2394 = vmatprep.subr.mxu0 %v10032_v56  ;;  %2465 = vmatprep.subr.mxu1 %v10033_v59  ;;  %v10074_v13 = vld [vmem:[#allocation83_spill] sm:$0xff]  ;;  %v10077_v56 = vld [vmem:[#allocation86_spill] sm:$0xff]  ;;  %v10090_v3 = vld [vmem:[#allocation100_spill] sm:$0xff] }
 0x42a   :  { %4642 = vtanh.f32 %v2181_v38  ;;  %v2185_v51 = vmul.f32 0.5, %v2178_v52  ;;  %2395 = vmatpush1.msra.mxu0 %v10035_v23  ;;  %2466 = vmatpush1.msra.mxu1 %v10036_v2  ;;  %v2190_v35 = vmul.f32 0.5, %v2180_v22  ;;  %v10080_v23 = vld [vmem:[#allocation90_spill] sm:$0xff]  ;;  %v10081_v2 = vld [vmem:[#allocation91_spill] sm:$0xff]  ;;  %v10094_v22 = vld [vmem:[#allocation104_spill] sm:$0xff] }
 0x42b   :  { %2396 = vmatprep.subr.mxu0 %v10037_v0  ;;  %2467 = vmatprep.subr.mxu1 %v10038_v40  ;;  %v10082_v0 = vld [vmem:[#allocation92_spill] sm:$0xff]  ;;  %v10083_v40 = vld [vmem:[#allocation93_spill] sm:$0xff] }
 0x42c   :  { %4644 = vtanh.f32 %v2185_v51  ;;  %2397 = vmatpush1.msra.mxu0 %v10039_v44  ;;  %2468 = vmatpush1.msra.mxu1 %v10040_v39  ;;  %v10079_v51 = vld [vmem:[#allocation89_spill] sm:$0xff]  ;;  %v10085_v44 = vld [vmem:[#allocation95_spill] sm:$0xff]  ;;  %v10086_v39 = vld [vmem:[#allocation96_spill] sm:$0xff] }
 0x42d   :  { %2398 = vmatprep.subr.mxu0 %v10041_v54  ;;  %2469 = vmatprep.subr.mxu1 %v10042_v57  ;;  %4646 = vtanh.f32 %v2179_v61  ;;  %v10084_v61 = vld [vmem:[#allocation94_spill] sm:$0xff]  ;;  %v10087_v54 = vld [vmem:[#allocation97_spill] sm:$0xff] }
 0x42e   :  { %2399 = vmatpush1.msra.mxu0 %v10043_v58  ;;  %2432 = vmatprep.mubr.f32.mxu0 %v10044_v63  ;;  %4648 = vtanh.f32 %v2190_v35  ;;  %v10088_v57 = vld [vmem:[#allocation98_spill] sm:$0xff]  ;;  %v10089_v58 = vld [vmem:[#allocation99_spill] sm:$0xff]  ;;  %v10102_v35 = vld [vmem:[#allocation112_spill] sm:$0xff] }
 0x42f   :  { %2470 = vmatpush1.msra.mxu1 %v10045_v4  ;;  %2503 = vmatprep.mubr.f32.mxu1 %v10044_v63  ;;  %v10091_v4 = vld [vmem:[#allocation101_spill] sm:$0xff] }
 0x430   :  { %2433 = vmatmul.mubr.f32.vlgmr.msra.gmra.mxu0 %v7329_v1  ;;  %2504 = vmatmul.mubr.f32.vlgmr.msra.gmra.mxu1 %v7329_v1 }
 0x431   :  { %2510 = vmatprep.subr.mxu0 %v10047_v26  ;;  %2581 = vmatprep.subr.mxu1 %v10048_v7  ;;  %v10092_v26 = vld [vmem:[#allocation102_spill] sm:$0xff]  ;;  %v10093_v7 = vld [vmem:[#allocation103_spill] sm:$0xff] }
 0x432   :  { %2511 = vmatpush1.msra.mxu0 %v10049_v45  ;;  %2582 = vmatpush1.msra.mxu1 %v10050_v48  ;;  %v10095_v45 = vld [vmem:[#allocation105_spill] sm:$0xff]  ;;  %v10096_v48 = vld [vmem:[#allocation106_spill] sm:$0xff] }
 0x433   :  { %2512 = vmatprep.subr.mxu0 %v10051_v12  ;;  %2583 = vmatprep.subr.mxu1 %v10052_v18  ;;  %v10097_v12 = vld [vmem:[#allocation107_spill] sm:$0xff] }
 0x434   :  { %2513 = vmatpush1.msra.mxu0 %v10053_v36  ;;  %2584 = vmatpush1.msra.mxu1 %v10054_v62  ;;  %v10098_v36 = vld [vmem:[#allocation108_spill] sm:$0xff]  ;;  %v10099_v62 = vld [vmem:[#allocation109_spill] sm:$0xff] }
 0x435   :  { %2514 = vmatprep.subr.mxu0 %v10055_v31  ;;  %2585 = vmatprep.subr.mxu1 %v10056_v15  ;;  %v10100_v31 = vld [vmem:[#allocation110_spill] sm:$0xff]  ;;  %v10101_v15 = vld [vmem:[#allocation111_spill] sm:$0xff] }
 0x436   :  { %2515 = vmatpush1.msra.mxu0 %v10057_v30  ;;  %2586 = vmatpush1.msra.mxu1 %v10058_v53  ;;  %v10103_v30 = vld [vmem:[#allocation113_spill] sm:$0xff]  ;;  %v10104_v53 = vld [vmem:[#allocation114_spill] sm:$0xff] }
 0x437   :  { %v4643_v5 = vpop.eup %4642  ;;  %2516 = vmatprep.subr.mxu0 %v10059_v27  ;;  %2587 = vmatprep.subr.mxu1 %v10060_v10  ;;  %v10106_v10 = vld [vmem:[#allocation116_spill] sm:$0xff] }
 0x438   :  { %v2183_v21 = vmul.f32 0.5, %v4643_v5  ;;  %2517 = vmatpush1.msra.mxu0 %v10061_v25  ;;  %2588 = vmatpush1.msra.mxu1 %v10062_v17  ;;  %v10105_v5 = vld [vmem:[#allocation115_spill] sm:$0xff]  ;;  %v10108_v17 = vld [vmem:[#allocation118_spill] sm:$0xff] }
 0x439   :  { %v4645_v1 = vpop.eup %4644  ;;  %2518 = vmatprep.subr.mxu0 %v10063_v14  ;;  %2589 = vmatprep.subr.mxu1 %v10064_v24  ;;  %v10110_v14 = vld [vmem:[#allocation120_spill] sm:$0xff] }
 0x43a   :  { %v2184_v11 = vadd.f32 0.5, %v2183_v21  ;;  %v2187_v8 = vmul.f32 0.5, %v4645_v1  ;;  %2519 = vmatpush1.msra.mxu0 %v10065_v9  ;;  %2590 = vmatpush1.msra.mxu1 %v10066_v41  ;;  %v4647_v46 = vpop.eup %4646  ;;  %v10107_v21 = vld [vmem:[#allocation117_spill] sm:$0xff]  ;;  %v10109_v1 = vld [vmem:[#allocation119_spill] sm:$0xff]  ;;  %v10114_v41 = vld [vmem:[#allocation124_spill] sm:$0xff] }
 0x43b   :  { %2520 = vmatprep.subr.mxu0 %v10067_v28  ;;  %2591 = vmatprep.subr.mxu1 %v10068_v43  ;;  %v4649_v42 = vpop.eup %4648  ;;  %v10113_v9 = vld [vmem:[#allocation123_spill] sm:$0xff]  ;;  %v10115_v28 = vld [vmem:[#allocation125_spill] sm:$0xff]  ;;  %v10116_v43 = vld [vmem:[#allocation126_spill] sm:$0xff] }
 0x43c   :  { %v2188_v32 = vadd.f32 0.5, %v2187_v8  ;;  %2521 = vmatpush1.msra.mxu0 %v10069_v29  ;;  %2592 = vmatpush1.msra.mxu1 %v10070_v37  ;;  %v2195_v52 = vmul.f32 %v4647_v46, %v2184_v11  ;;  %v2192_v18 = vmul.f32 0.5, %v4649_v42  ;;  %v10111_v11 = vld [vmem:[#allocation121_spill] sm:$0xff]  ;;  %v10112_v8 = vld [vmem:[#allocation122_spill] sm:$0xff]  ;;  %v10118_v29 = vld [vmem:[#allocation128_spill] sm:$0xff] }
 0x43d   :  { %2522 = vmatprep.subr.mxu0 %v10071_v34  ;;  %2593 = vmatprep.subr.mxu1 %v10072_v50  ;;  %v10119_v37 = vld [vmem:[#allocation129_spill] sm:$0xff]  ;;  %v10120_v46 = vld [vmem:[#allocation130_spill] sm:$0xff]  ;;  %v10121_v34 = vld [vmem:[#allocation131_spill] sm:$0xff] }
 0x43e   :  { %v2194_v38 = vmul.f32 %v2188_v32, %v10073_v6  ;;  %2523 = vmatpush1.msra.mxu0 %v10074_v13  ;;  %2594 = vmatpush1.msra.mxu1 %v10075_v19  ;;  %v2193_v27 = vadd.f32 0.5, %v2192_v18  ;;  %v10117_v32 = vld [vmem:[#allocation127_spill] sm:$0xff]  ;;  %v10122_v50 = vld [vmem:[#allocation132_spill] sm:$0xff]  ;;  %v10123_v6 = vld [vmem:[#allocation133_spill] sm:$0xff] }
 0x43f   :  { %2524 = vmatprep.subr.mxu0 %v10076_v55  ;;  %2595 = vmatprep.subr.mxu1 %v10077_v56  ;;  %v10126_v13 = vld [vmem:[#allocation136_spill] sm:$0xff]  ;;  %v10127_v19 = vld [vmem:[#allocation137_spill] sm:$0xff]  ;;  %v10128_v55 = vld [vmem:[#allocation138_spill] sm:$0xff] }
 0x440   :  { %v7434_v59 = vadd.f32 %v2195_v52, %v2194_v38  ;;  %2525 = vmatpush1.msra.mxu0 %v10078_v16  ;;  %2596 = vmatpush1.msra.mxu1 %v10079_v51  ;;  %v10124_v38 = vld [vmem:[#allocation134_spill] sm:$0xff]  ;;  %v10125_v52 = vld [vmem:[#allocation135_spill] sm:$0xff]  ;;  %v10130_v16 = vld [vmem:[#allocation140_spill] sm:$0xff] }
 0x441   :  { %2526 = vmatprep.subr.mxu0 %v10080_v23  ;;  %2597 = vmatprep.subr.mxu1 %v10081_v2  ;;  %v10129_v56 = vld [vmem:[#allocation139_spill] sm:$0xff]  ;;  %v10131_v51 = vld [vmem:[#allocation141_spill] sm:$0xff]  ;;  %v10132_v23 = vld [vmem:[#allocation142_spill] sm:$0xff] }
 0x442   :  { %4650 = vtanh.f32 %v7434_v59  ;;  %2527 = vmatpush1.msra.mxu0 %v10082_v0  ;;  %2598 = vmatpush1.msra.mxu1 %v10083_v40  ;;  %v10133_v2 = vld [vmem:[#allocation143_spill] sm:$0xff]  ;;  %v10134_v0 = vld [vmem:[#allocation144_spill] sm:$0xff]  ;;  %v10135_v40 = vld [vmem:[#allocation145_spill] sm:$0xff] }
 0x443   :  { %2528 = vmatprep.subr.mxu0 %v10084_v61  ;;  %2599 = vmatprep.subr.mxu1 %v10085_v44  ;;  %v10136_v61 = vld [vmem:[#allocation146_spill] sm:$0xff]  ;;  %v10137_v44 = vld [vmem:[#allocation147_spill] sm:$0xff]  ;;  %v10151_v18 = vld [vmem:[#allocation161_spill] sm:$0xff] }
 0x444   :  { %2529 = vmatpush1.msra.mxu0 %v10086_v39  ;;  %2600 = vmatpush1.msra.mxu1 %v10087_v54  ;;  %v10138_v39 = vld [vmem:[#allocation148_spill] sm:$0xff]  ;;  %v10139_v54 = vld [vmem:[#allocation149_spill] sm:$0xff]  ;;  %v10144_v42 = vld [vmem:[#allocation154_spill] sm:$0xff] }
 0x445   :  { %2530 = vmatprep.subr.mxu0 %v10088_v57  ;;  %2601 = vmatprep.subr.mxu1 %v10089_v58  ;;  %v10140_v57 = vld [vmem:[#allocation150_spill] sm:$0xff]  ;;  %v10141_v58 = vld [vmem:[#allocation151_spill] sm:$0xff] }
 0x446   :  { %2531 = vmatpush1.msra.mxu0 %v10090_v3  ;;  %2602 = vmatpush1.msra.mxu1 %v10091_v4  ;;  %v10142_v3 = vld [vmem:[#allocation152_spill] sm:$0xff]  ;;  %v10143_v4 = vld [vmem:[#allocation153_spill] sm:$0xff] }
 0x447   :  { %2532 = vmatprep.subr.mxu0 %v10092_v26  ;;  %2603 = vmatprep.subr.mxu1 %v10093_v7  ;;  %v10145_v26 = vld [vmem:[#allocation155_spill] sm:$0xff]  ;;  %v10146_v7 = vld [vmem:[#allocation156_spill] sm:$0xff] }
 0x448   :  { %2533 = vmatpush1.msra.mxu0 %v10094_v22  ;;  %2604 = vmatpush1.msra.mxu1 %v10095_v45  ;;  %v10147_v22 = vld [vmem:[#allocation157_spill] sm:$0xff]  ;;  %v10148_v45 = vld [vmem:[#allocation158_spill] sm:$0xff] }
 0x449   :  { %2534 = vmatprep.subr.mxu0 %v10096_v48  ;;  %2605 = vmatprep.subr.mxu1 %v10097_v12  ;;  %v10149_v48 = vld [vmem:[#allocation159_spill] sm:$0xff]  ;;  %v10150_v12 = vld [vmem:[#allocation160_spill] sm:$0xff] }
 0x44a   :  { %2535 = vmatpush1.msra.mxu0 %v10098_v36  ;;  %2606 = vmatpush1.msra.mxu1 %v10099_v62  ;;  %v10152_v36 = vld [vmem:[#allocation162_spill] sm:$0xff]  ;;  %v10153_v62 = vld [vmem:[#allocation163_spill] sm:$0xff] }
 0x44b   :  { %2536 = vmatprep.subr.mxu0 %v10100_v31  ;;  %2607 = vmatprep.subr.mxu1 %v10101_v15  ;;  %v10154_v31 = vld [vmem:[#allocation164_spill] sm:$0xff]  ;;  %v10155_v15 = vld [vmem:[#allocation165_spill] sm:$0xff] }
 0x44c   :  { %2537 = vmatpush1.msra.mxu0 %v10102_v35  ;;  %2608 = vmatpush1.msra.mxu1 %v10103_v30  ;;  %v10156_v35 = vld [vmem:[#allocation166_spill] sm:$0xff]  ;;  %v10157_v30 = vld [vmem:[#allocation167_spill] sm:$0xff] }
 0x44d   :  { %2538 = vmatprep.subr.mxu0 %v10104_v53  ;;  %2609 = vmatprep.subr.mxu1 %v10105_v5  ;;  %v10158_v53 = vld [vmem:[#allocation168_spill] sm:$0xff]  ;;  %v10159_v5 = vld [vmem:[#allocation169_spill] sm:$0xff] }
 0x44e   :  { %2539 = vmatpush1.msra.mxu0 %v10106_v10  ;;  %2610 = vmatpush1.msra.mxu1 %v10107_v21  ;;  %v10161_v10 = vld [vmem:[#allocation171_spill] sm:$0xff]  ;;  %v10162_v21 = vld [vmem:[#allocation172_spill] sm:$0xff] }
 0x44f   :  { %v4651_v25 = vpop.eup %4650  ;;  %2540 = vmatprep.subr.mxu0 %v10108_v17  ;;  %2611 = vmatprep.subr.mxu1 %v10109_v1  ;;  %v10164_v17 = vld [vmem:[#allocation174_spill] sm:$0xff]  ;;  %v10165_v1 = vld [vmem:[#allocation175_spill] sm:$0xff] }
 0x450   :  { %2541 = vmatpush1.msra.mxu0 %v10110_v14  ;;  %2574 = vmatprep.mubr.f32.mxu0 %v10044_v63  ;;  %v2198_v24 = vmul.f32 %v4651_v25, %v2193_v27  ;;  %v10160_v27 = vld [vmem:[#allocation170_spill] sm:$0xff]  ;;  %v10163_v25 = vld [vmem:[#allocation173_spill] sm:$0xff]  ;;  %v10166_v14 = vld [vmem:[#allocation176_spill] sm:$0xff] }
 0x451   :  { %2612 = vmatpush1.msra.mxu1 %v10111_v11  ;;  %2645 = vmatprep.mubr.f32.mxu1 %v10044_v63  ;;  %v10168_v11 = vld [vmem:[#allocation178_spill] sm:$0xff] }
 0x452   :  { %2575 = vmatmul.mubr.f32.vlgmr.msra.gmra.mxu0 %v2198_v24  ;;  %2646 = vmatmul.mubr.f32.vlgmr.msra.gmra.mxu1 %v2198_v24  ;;  %v10167_v24 = vld [vmem:[#allocation177_spill] sm:$0xff] }
 0x453   :  { %2679 = vmatprep.subr.mxu0 %v10112_v8  ;;  %2750 = vmatprep.subr.mxu1 %v10113_v9  ;;  %v10169_v8 = vld [vmem:[#allocation179_spill] sm:$0xff]  ;;  %v10170_v9 = vld [vmem:[#allocation180_spill] sm:$0xff] }
 0x454   :  { %2680 = vmatpush1.msra.mxu0 %v10114_v41  ;;  %2751 = vmatpush1.msra.mxu1 %v10115_v28  ;;  %v10171_v41 = vld [vmem:[#allocation181_spill] sm:$0xff]  ;;  %v10172_v28 = vld [vmem:[#allocation11_spill] sm:$0xff] }
 0x455   :  { %2681 = vmatprep.subr.mxu0 %v10116_v43  ;;  %2752 = vmatprep.subr.mxu1 %v10117_v32  ;;  %v10173_v43 = vld [vmem:[#allocation13_spill] sm:$0xff]  ;;  %v10174_v32 = vld [vmem:[#allocation12_spill] sm:$0xff] }
 0x456   :  { %2682 = vmatpush1.msra.mxu0 %v10118_v29  ;;  %2753 = vmatpush1.msra.mxu1 %v10119_v37  ;;  %v7536_v29 = vld [vmem:[#allocation4 + $0x10] sm:$0xff]  ;;  %v7541_v37 = vld [vmem:[#allocation6 + $0x1e8] sm:$0xff] }
 0x457   :  { %2683 = vmatprep.subr.mxu0 %v10120_v46  ;;  %2754 = vmatprep.subr.mxu1 %v10121_v34  ;;  %v7544_v46 = vld [vmem:[#allocation6 + $0x1f8] sm:$0xff] }
 0x458   :  { %2684 = vmatpush1.msra.mxu0 %v10122_v50  ;;  %2755 = vmatpush1.msra.mxu1 %v10123_v6  ;;  %v10175_v50 = vld [vmem:[#allocation19_spill] sm:$0xff] }
 0x459   :  { %2685 = vmatprep.subr.mxu0 %v10124_v38  ;;  %2756 = vmatprep.subr.mxu1 %v10125_v52 }
 0x45a   :  { %2686 = vmatpush1.msra.mxu0 %v10126_v13  ;;  %2757 = vmatpush1.msra.mxu1 %v10127_v19  ;;  %v10176_v19 = vld [vmem:[#allocation21_spill] sm:$0xff] }
 0x45b   :  { %2687 = vmatprep.subr.mxu0 %v10128_v55  ;;  %2758 = vmatprep.subr.mxu1 %v10129_v56  ;;  %v10177_v56 = vld [vmem:[#allocation20_spill] sm:$0xff] }
 0x45c   :  { %2688 = vmatpush1.msra.mxu0 %v10130_v16  ;;  %2759 = vmatpush1.msra.mxu1 %v10131_v51 }
 0x45d   :  { %2689 = vmatprep.subr.mxu0 %v10132_v23  ;;  %2760 = vmatprep.subr.mxu1 %v10133_v2  ;;  %v10178_v2 = vld [vmem:[#allocation22_spill] sm:$0xff] }
 0x45e   :  { %2690 = vmatpush1.msra.mxu0 %v10134_v0  ;;  %2761 = vmatpush1.msra.mxu1 %v10135_v40 }
 0x45f   :  { %2691 = vmatprep.subr.mxu0 %v10136_v61  ;;  %2762 = vmatprep.subr.mxu1 %v10137_v44 }
 0x460   :  { %2692 = vmatpush1.msra.mxu0 %v10138_v39  ;;  %2763 = vmatpush1.msra.mxu1 %v10139_v54 }
 0x461   :  { %2693 = vmatprep.subr.mxu0 %v10140_v57  ;;  %2764 = vmatprep.subr.mxu1 %v10141_v58 }
 0x462   :  { %2694 = vmatpush1.msra.mxu0 %v10142_v3  ;;  %2765 = vmatpush1.msra.mxu1 %v10143_v4 }
 0x463   :  { %2695 = vmatprep.subr.mxu0 %v10144_v42  ;;  %2766 = vmatprep.subr.mxu1 %v10145_v26 }
 0x464   :  { %2696 = vmatpush1.msra.mxu0 %v10146_v7  ;;  %2767 = vmatpush1.msra.mxu1 %v10147_v22 }
 0x465   :  { %2697 = vmatprep.subr.mxu0 %v10148_v45  ;;  %2768 = vmatprep.subr.mxu1 %v10149_v48 }
 0x466   :  { %2698 = vmatpush1.msra.mxu0 %v10150_v12  ;;  %2769 = vmatpush1.msra.mxu1 %v10151_v18  ;;  %v7559_v18 = vld [vmem:[#allocation6 + $0x1e0] sm:$0xff] }
 0x467   :  { %2699 = vmatprep.subr.mxu0 %v10152_v36  ;;  %2770 = vmatprep.subr.mxu1 %v10153_v62  ;;  %v7562_v36 = vld [vmem:[#allocation6 + $0x1f0] sm:$0xff]  ;;  %v7568_v62 = vld [vmem:[#allocation6 + $0x1d8] sm:$0xff] }
 0x468   :  { %2700 = vmatpush1.msra.mxu0 %v10154_v31  ;;  %2771 = vmatpush1.msra.mxu1 %v10155_v15  ;;  %v7571_v31 = vld [vmem:[#allocation6 + $0x1c0] sm:$0xff]  ;;  %v7574_v15 = vld [vmem:[#allocation6 + $0x1d0] sm:$0xff] }
 0x469   :  { %2701 = vmatprep.subr.mxu0 %v10156_v35  ;;  %2772 = vmatprep.subr.mxu1 %v10157_v30  ;;  %v7577_v35 = vld [vmem:[#allocation6 + $0x1a8] sm:$0xff]  ;;  %v7580_v30 = vld [vmem:[#allocation6 + $0x1b8] sm:$0xff] }
 0x46a   :  { %2702 = vmatpush1.msra.mxu0 %v10158_v53  ;;  %2773 = vmatpush1.msra.mxu1 %v10159_v5  ;;  %v7583_v53 = vld [vmem:[#allocation6 + $0x1a0] sm:$0xff]  ;;  %v7586_v5 = vld [vmem:[#allocation6 + $0x1b0] sm:$0xff] }
 0x46b   :  { %2703 = vmatprep.subr.mxu0 %v10160_v27  ;;  %2774 = vmatprep.subr.mxu1 %v10161_v10  ;;  %v7589_v27 = vld [vmem:[#allocation6 + $0x188] sm:$0xff]  ;;  %v7592_v10 = vld [vmem:[#allocation6 + $0x198] sm:$0xff] }
 0x46c   :  { %2704 = vmatpush1.msra.mxu0 %v10162_v21  ;;  %2775 = vmatpush1.msra.mxu1 %v10163_v25  ;;  %v7595_v21 = vld [vmem:[#allocation6 + $0x180] sm:$0xff]  ;;  %v7598_v25 = vld [vmem:[#allocation6 + $0x190] sm:$0xff] }
 0x46d   :  { %2705 = vmatprep.subr.mxu0 %v10164_v17  ;;  %2776 = vmatprep.subr.mxu1 %v10165_v1  ;;  %v7601_v17 = vld [vmem:[#allocation6 + $0x168] sm:$0xff]  ;;  %v7604_v1 = vld [vmem:[#allocation6 + $0x178] sm:$0xff] }
 0x46e   :  { %2706 = vmatpush1.msra.mxu0 %v10166_v14  ;;  %2777 = vmatpush1.msra.mxu1 %v10167_v24  ;;  %v7607_v14 = vld [vmem:[#allocation6 + $0x160] sm:$0xff]  ;;  %v7610_v24 = vld [vmem:[#allocation6 + $0x170] sm:$0xff] }
 0x46f   :  { %2707 = vmatprep.subr.mxu0 %v10168_v11  ;;  %2778 = vmatprep.subr.mxu1 %v10169_v8  ;;  %v7613_v11 = vld [vmem:[#allocation6 + $0x148] sm:$0xff]  ;;  %v7616_v8 = vld [vmem:[#allocation6 + $0x158] sm:$0xff] }
 0x470   :  { %2708 = vmatpush1.msra.mxu0 %v10170_v9  ;;  %2779 = vmatpush1.msra.mxu1 %v10171_v41  ;;  %v7619_v9 = vld [vmem:[#allocation6 + $0x140] sm:$0xff]  ;;  %v7622_v41 = vld [vmem:[#allocation6 + $0x150] sm:$0xff] }
 0x471   :  { %2709 = vmatprep.subr.mxu0 %v10172_v28  ;;  %2780 = vmatprep.subr.mxu1 %v10173_v43  ;;  %v7625_v28 = vld [vmem:[#allocation6 + $0x128] sm:$0xff]  ;;  %v7628_v43 = vld [vmem:[#allocation6 + $0x138] sm:$0xff] }
 0x472   :  { %2710 = vmatpush1.msra.mxu0 %v10174_v32  ;;  %2781 = vmatpush1.msra.mxu1 %v7536_v29  ;;  %v7631_v32 = vld [vmem:[#allocation6 + $0x120] sm:$0xff] }
 0x473   :  { %2743 = vmatprep.mubr.f32.mxu0 %v10044_v63  ;;  %2814 = vmatprep.mubr.f32.mxu1 %v10044_v63 }
 0x474   :  { %2843 = vmatprep.subr.mxu0 %v7541_v37  ;;  %2914 = vmatprep.subr.mxu1 %v7544_v46 }
 0x4cf   :  { %v2270_v34 = vpop.f32.mrf.mxu0  ;;  %v2341_v38 = vpop.f32.mrf.mxu1 }
 0x4d0   :  { %v2346_v6 = vadd.f32 %v2270_v34, %v10175_v50  ;;  %v2348_v16 = vadd.f32 %v2341_v38, %v10177_v56  ;;  %v7634_v34 = vld [vmem:[#allocation6 + $0x130] sm:$0xff]  ;;  %v7637_v50 = vld [vmem:[#allocation6 + $0x108] sm:$0xff]  ;;  %v7643_v38 = vld [vmem:[#allocation6 + $0x100] sm:$0xff] }
 0x4d1   :  { %v2272_v52 = vpop.f32.mrf.mxu0  ;;  %v2343_v23 = vpop.f32.mrf.mxu1  ;;  %v7655_v56 = vld [vmem:[#allocation6 + $0xe0] sm:$0xff] }
 0x4d2   :  { %v2350_v13 = vmul.f32 0.5, %v2346_v6  ;;  %v2347_v55 = vadd.f32 %v2272_v52, %v10176_v19  ;;  %v2349_v0 = vadd.f32 %v2343_v23, %v10178_v2  ;;  %v7640_v6 = vld [vmem:[#allocation6 + $0x118] sm:$0xff]  ;;  %v7646_v52 = vld [vmem:[#allocation6 + $0x110] sm:$0xff]  ;;  %v7649_v19 = vld [vmem:[#allocation6 + $0xe8] sm:$0xff] }
 0x4d3   :  { %v7664_v23 = vld [vmem:[#allocation6 + $0xd8] sm:$0xff]  ;;  %v7667_v2 = vld [vmem:[#allocation6 + $0xc0] sm:$0xff] }
 0x4d4   :  { %4652 = vtanh.f32 %v2350_v13  ;;  %v2354_v51 = vmul.f32 0.5, %v2347_v55  ;;  %v2359_v40 = vmul.f32 0.5, %v2349_v0  ;;  %v7652_v55 = vld [vmem:[#allocation6 + $0xf8] sm:$0xff]  ;;  %v7670_v0 = vld [vmem:[#allocation6 + $0xd0] sm:$0xff] }
 0x4d6   :  { %4654 = vtanh.f32 %v2354_v51  ;;  %v7661_v51 = vld [vmem:[#allocation6 + $0xc8] sm:$0xff] }
 0x4d7   :  { %4656 = vtanh.f32 %v2348_v16  ;;  %v7658_v16 = vld [vmem:[#allocation6 + $0xf0] sm:$0xff] }
 0x4d8   :  { %4658 = vtanh.f32 %v2359_v40 }
 0x4e1   :  { %v4653_v61 = vpop.eup %4652 }
 0x4e2   :  { %v2352_v44 = vmul.f32 0.5, %v4653_v61 }
 0x4e3   :  { %v4655_v39 = vpop.eup %4654 }
 0x4e4   :  { %v2353_v54 = vadd.f32 0.5, %v2352_v44  ;;  %v2356_v57 = vmul.f32 0.5, %v4655_v39  ;;  %v4657_v58 = vpop.eup %4656  ;;  %v7673_v44 = vld [vmem:[#allocation6 + $0xa8] sm:$0xff]  ;;  %v7676_v39 = vld [vmem:[#allocation6 + $0xb8] sm:$0xff] }
 0x4e5   :  { %v4659_v7 = vpop.eup %4658 }
 0x4e6   :  { %v2357_v3 = vadd.f32 0.5, %v2356_v57  ;;  %v2364_v4 = vmul.f32 %v4657_v58, %v2353_v54  ;;  %v2361_v22 = vmul.f32 0.5, %v4659_v7  ;;  %v7680_v57 = vld [vmem:[#allocation6 + $0xa0] sm:$0xff]  ;;  %v7683_v58 = vld [vmem:[#allocation6 + $0xb0] sm:$0xff] }
 0x4e7   :  { %10179 = vst [vmem:[#allocation14_spill] sm:$0xff] %v7680_v57  ;;  %10180 = vst [vmem:[#allocation15_spill] sm:$0xff] %v7683_v58 }
 0x4e8   :  { %v2363_v42 = vmul.f32 %v2357_v3, %v7326_v49  ;;  %v2362_v45 = vadd.f32 0.5, %v2361_v22  ;;  %v7565_v49 = vld [vmem:[#allocation6 + $0x1c8] sm:$0xff] }
 0x4ea   :  { %v7552_v26 = vadd.f32 %v2364_v4, %v2363_v42  ;;  %v7686_v4 = vld [vmem:[#allocation6 + $0x88] sm:$0xff]  ;;  %v7689_v42 = vld [vmem:[#allocation6 + $0x98] sm:$0xff] }
 0x4eb   :  { %10181 = vst [vmem:[#allocation17_spill] sm:$0xff] %v7686_v4 }
 0x4ec   :  { %4660 = vtanh.f32 %v7552_v26 }
 0x4f0   :  { %v2434_v13 = vpop.f32.mrf.mxu0  ;;  %v2505_v40 = vpop.f32.mrf.mxu1 }
 0x4f1   :  { %v2435_v54 = vadd.f32 %v2434_v13, %v6528_v20 }
 0x4f2   :  { %v2436_v61 = vpop.f32.mrf.mxu0  ;;  %v2507_v13 = vpop.f32.mrf.mxu1 }
 0x4f3   :  { %v2437_v7 = vadd.f32 %v2436_v61, %v10026_v47  ;;  %v7711_v47 = vld [vmem:[#allocation6 + $0x48] sm:$0xff] }
 0x4f4   :  { %10187 = vst [vmem:[#allocation40_spill] sm:$0xff] %v7711_v47 }
 0x4f9   :  { %v4661_v48 = vpop.eup %4660 }
 0x4fa   :  { %v7555_v12 = vmul.f32 %v4661_v48, %v2362_v45  ;;  %v7693_v45 = vld [vmem:[#allocation6 + $0x80] sm:$0xff]  ;;  %v7696_v48 = vld [vmem:[#allocation6 + $0x90] sm:$0xff] }
 0x4fb   :  { %10182 = vst [vmem:[#allocation16_spill] sm:$0xff] %v7693_v45  ;;  %10183 = vst [vmem:[#allocation18_spill] sm:$0xff] %v7696_v48 }
 0x4fc   :  { %2744 = vmatmul.mubr.f32.vlgmr.msra.gmra.mxu0 %v7555_v12  ;;  %2815 = vmatmul.mubr.f32.vlgmr.msra.gmra.mxu1 %v7555_v12 }
 0x4fd   :  { %2844 = vmatpush1.msra.mxu0 %v7559_v18  ;;  %2915 = vmatpush1.msra.mxu1 %v7562_v36 }
 0x4fe   :  { %2845 = vmatprep.subr.mxu0 %v7565_v49  ;;  %2916 = vmatprep.subr.mxu1 %v7568_v62 }
 0x4ff   :  { %2846 = vmatpush1.msra.mxu0 %v7571_v31  ;;  %2917 = vmatpush1.msra.mxu1 %v7574_v15 }
 0x500   :  { %2847 = vmatprep.subr.mxu0 %v7577_v35  ;;  %2918 = vmatprep.subr.mxu1 %v7580_v30 }
 0x501   :  { %2848 = vmatpush1.msra.mxu0 %v7583_v53  ;;  %2919 = vmatpush1.msra.mxu1 %v7586_v5 }
 0x502   :  { %2849 = vmatprep.subr.mxu0 %v7589_v27  ;;  %2920 = vmatprep.subr.mxu1 %v7592_v10 }
 0x503   :  { %2850 = vmatpush1.msra.mxu0 %v7595_v21  ;;  %2921 = vmatpush1.msra.mxu1 %v7598_v25 }
 0x504   :  { %2851 = vmatprep.subr.mxu0 %v7601_v17  ;;  %2922 = vmatprep.subr.mxu1 %v7604_v1 }
 0x505   :  { %2852 = vmatpush1.msra.mxu0 %v7607_v14  ;;  %2923 = vmatpush1.msra.mxu1 %v7610_v24 }
 0x506   :  { %2853 = vmatprep.subr.mxu0 %v7613_v11  ;;  %2924 = vmatprep.subr.mxu1 %v7616_v8 }
 0x507   :  { %2854 = vmatpush1.msra.mxu0 %v7619_v9  ;;  %2925 = vmatpush1.msra.mxu1 %v7622_v41 }
 0x508   :  { %2855 = vmatprep.subr.mxu0 %v7625_v28  ;;  %2926 = vmatprep.subr.mxu1 %v7628_v43 }
 0x509   :  { %2856 = vmatpush1.msra.mxu0 %v7631_v32  ;;  %2927 = vmatpush1.msra.mxu1 %v7634_v34 }
 0x50a   :  { %2857 = vmatprep.subr.mxu0 %v7637_v50  ;;  %2928 = vmatprep.subr.mxu1 %v7640_v6 }
 0x50b   :  { %2858 = vmatpush1.msra.mxu0 %v7643_v38  ;;  %2929 = vmatpush1.msra.mxu1 %v7646_v52 }
 0x50c   :  { %2859 = vmatprep.subr.mxu0 %v7649_v19  ;;  %2930 = vmatprep.subr.mxu1 %v7652_v55 }
 0x50d   :  { %2860 = vmatpush1.msra.mxu0 %v7655_v56  ;;  %2931 = vmatpush1.msra.mxu1 %v7658_v16 }
 0x50e   :  { %2861 = vmatprep.subr.mxu0 %v7661_v51  ;;  %2932 = vmatprep.subr.mxu1 %v7664_v23 }
 0x50f   :  { %2862 = vmatpush1.msra.mxu0 %v7667_v2  ;;  %2933 = vmatpush1.msra.mxu1 %v7670_v0 }
 0x510   :  { %2863 = vmatprep.subr.mxu0 %v7673_v44  ;;  %2934 = vmatprep.subr.mxu1 %v7676_v39 }
 0x511   :  { %2864 = vmatpush1.msra.mxu0 %v7680_v57  ;;  %2935 = vmatpush1.msra.mxu1 %v7683_v58  ;;  %v7699_v57 = vld [vmem:[#allocation6 + $0x68] sm:$0xff] }
 0x512   :  { %v2576_v3 = vpop.f32.mrf.mxu0  ;;  %2865 = vmatprep.subr.mxu0 %v7686_v4  ;;  %2936 = vmatprep.subr.mxu1 %v7689_v42  ;;  %10184 = vst [vmem:[#allocation37_spill] sm:$0xff] %v7699_v57  ;;  %v7702_v4 = vld [vmem:[#allocation6 + $0x78] sm:$0xff] }
 0x513   :  { %v2652_v22 = vadd.f32 %v2576_v3, %v2435_v54  ;;  %2866 = vmatpush1.msra.mxu0 %v7693_v45  ;;  %2937 = vmatpush1.msra.mxu1 %v7696_v48  ;;  %v7705_v3 = vld [vmem:[#allocation6 + $0x60] sm:$0xff]  ;;  %v7708_v45 = vld [vmem:[#allocation6 + $0x70] sm:$0xff]  ;;  %v2647_v48 = vpop.f32.mrf.mxu1 }
 0x514   :  { %v2578_v58 = vpop.f32.mrf.mxu0  ;;  %2867 = vmatprep.subr.mxu0 %v7699_v57  ;;  %2938 = vmatprep.subr.mxu1 %v7702_v4  ;;  %10185 = vst [vmem:[#allocation38_spill] sm:$0xff] %v7705_v3  ;;  %10186 = vst [vmem:[#allocation39_spill] sm:$0xff] %v7708_v45  ;;  %v7714_v57 = vld [vmem:[#allocation6 + $0x58] sm:$0xff] }
 0x515   :  { %v2656_v61 = vmul.f32 0.5, %v2652_v22  ;;  %v2653_v54 = vadd.f32 %v2578_v58, %v2437_v7  ;;  %2868 = vmatpush1.msra.mxu0 %v7705_v3  ;;  %2939 = vmatpush1.msra.mxu1 %v7708_v45  ;;  %10188 = vst [vmem:[#allocation41_spill] sm:$0xff] %v7714_v57  ;;  %v2506_v22 = vadd.f32 %v2505_v40, %v10034_v60  ;;  %v7718_v7 = vld [vmem:[#allocation6 + $0x40] sm:$0xff]  ;;  %v7721_v3 = vld [vmem:[#allocation6 + $0x50] sm:$0xff]  ;;  %v7724_v45 = vld [vmem:[#allocation6 + $0x28] sm:$0xff] }
 0x516   :  { %2869 = vmatprep.subr.mxu0 %v7711_v47  ;;  %2940 = vmatprep.subr.mxu1 %v7714_v57  ;;  %10189 = vst [vmem:[#allocation42_spill] sm:$0xff] %v7718_v7  ;;  %10190 = vst [vmem:[#allocation43_spill] sm:$0xff] %v7721_v3  ;;  %v7727_v47 = vld [vmem:[#allocation6 + $0x38] sm:$0xff]  ;;  %v7730_v40 = vld [vmem:[#allocation6 + $0x20] sm:$0xff] }
 0x517   :  { %4662 = vtanh.f32 %v2656_v61  ;;  %v2660_v58 = vmul.f32 0.5, %v2653_v54  ;;  %2870 = vmatpush1.msra.mxu0 %v7718_v7  ;;  %2941 = vmatpush1.msra.mxu1 %v7721_v3  ;;  %10191 = vst [vmem:[#allocation44_spill] sm:$0xff] %v7724_v45  ;;  %10192 = vst [vmem:[#allocation45_spill] sm:$0xff] %v7727_v47  ;;  %v2654_v57 = vadd.f32 %v2647_v48, %v2506_v22  ;;  %v7733_v61 = vld [vmem:[#allocation6 + $0x30] sm:$0xff]  ;;  %v7736_v54 = vld [vmem:[#allocation6 + $0x8] sm:$0xff]  ;;  %v2649_v48 = vpop.f32.mrf.mxu1 }
 0x518   :  { %2871 = vmatprep.subr.mxu0 %v7724_v45  ;;  %2942 = vmatprep.subr.mxu1 %v7727_v47  ;;  %10193 = vst [vmem:[#allocation46_spill] sm:$0xff] %v7730_v40  ;;  %10194 = vst [vmem:[#allocation47_spill] sm:$0xff] %v7733_v61  ;;  %v7739_v3 = vld [vmem:[#allocation6 + $0x18] sm:$0xff]  ;;  %v7742_v45 = vld [vmem:[#allocation6] sm:$0xff] }
 0x519   :  { %4664 = vtanh.f32 %v2660_v58  ;;  %2872 = vmatpush1.msra.mxu0 %v7730_v40  ;;  %2943 = vmatpush1.msra.mxu1 %v7733_v61  ;;  %10195 = vst [vmem:[#allocation48_spill] sm:$0xff] %v7736_v54  ;;  %10196 = vst [vmem:[#allocation49_spill] sm:$0xff] %v7739_v3  ;;  %v7746_v22 = vld [vmem:[#allocation6 + $0x10] sm:$0xff]  ;;  %v2508_v58 = vadd.f32 %v2507_v13, %v10046_v33  ;;  %v7759_v61 = vld [vmem:[#allocation8 + $0x1e0] sm:$0xff] }
 0x51a   :  { %2873 = vmatprep.subr.mxu0 %v7736_v54  ;;  %2944 = vmatprep.subr.mxu1 %v7739_v3  ;;  %10197 = vst [vmem:[#allocation50_spill] sm:$0xff] %v7742_v45  ;;  %10198 = vst [vmem:[#allocation51_spill] sm:$0xff] %v7746_v22  ;;  %4666 = vtanh.f32 %v2654_v57  ;;  %v7753_v3 = vld [vmem:[#allocation8 + $0x1e8] sm:$0xff]  ;;  %v7771_v13 = vld [vmem:[#allocation8 + $0x1c0] sm:$0xff] }
 0x51b   :  { %2874 = vmatpush1.msra.mxu0 %v7742_v45  ;;  %2907 = vmatprep.mubr.f32.mxu0 %v10044_v63  ;;  %10199 = vst [vmem:[#allocation52_spill] sm:$0xff] %v7753_v3  ;;  %v7756_v45 = vld [vmem:[#allocation8 + $0x1f8] sm:$0xff]  ;;  %v2655_v54 = vadd.f32 %v2649_v48, %v2508_v58  ;;  %10201 = vst [vmem:[#allocation54_spill] sm:$0xff] %v7759_v61  ;;  %v7765_v57 = vld [vmem:[#allocation8 + $0x1c8] sm:$0xff] }
 0x51c   :  { %2945 = vmatpush1.msra.mxu1 %v7746_v22  ;;  %2978 = vmatprep.mubr.f32.mxu1 %v10044_v63  ;;  %10200 = vst [vmem:[#allocation53_spill] sm:$0xff] %v7756_v45  ;;  %v7762_v22 = vld [vmem:[#allocation8 + $0x1f0] sm:$0xff]  ;;  %10203 = vst [vmem:[#allocation56_spill] sm:$0xff] %v7765_v57  ;;  %v7777_v58 = vld [vmem:[#allocation8 + $0x1a8] sm:$0xff] }
 0x51d   :  { %2908 = vmatmul.mubr.f32.vlgmr.msra.gmra.mxu0 %v7555_v12  ;;  %2979 = vmatmul.mubr.f32.vlgmr.msra.gmra.mxu1 %v7555_v12  ;;  %10202 = vst [vmem:[#allocation55_spill] sm:$0xff] %v7762_v22  ;;  %v7768_v12 = vld [vmem:[#allocation8 + $0x1d8] sm:$0xff]  ;;  %10205 = vst [vmem:[#allocation58_spill] sm:$0xff] %v7771_v13  ;;  %v7774_v48 = vld [vmem:[#allocation8 + $0x1d0] sm:$0xff] }
 0x51e   :  { %2985 = vmatprep.subr.mxu0 %v7753_v3  ;;  %3056 = vmatprep.subr.mxu1 %v7756_v45  ;;  %10204 = vst [vmem:[#allocation57_spill] sm:$0xff] %v7768_v12  ;;  %10206 = vst [vmem:[#allocation59_spill] sm:$0xff] %v7774_v48  ;;  %v7789_v45 = vld [vmem:[#allocation8 + $0x188] sm:$0xff]  ;;  %v7804_v3 = vld [vmem:[#allocation8 + $0x178] sm:$0xff] }
 0x51f   :  { %2986 = vmatpush1.msra.mxu0 %v7759_v61  ;;  %3057 = vmatpush1.msra.mxu1 %v7762_v22  ;;  %10207 = vst [vmem:[#allocation60_spill] sm:$0xff] %v7777_v58  ;;  %v7780_v22 = vld [vmem:[#allocation8 + $0x1b8] sm:$0xff]  ;;  %v7783_v61 = vld [vmem:[#allocation8 + $0x1a0] sm:$0xff]  ;;  %10211 = vst [vmem:[#allocation64_spill] sm:$0xff] %v7789_v45 }
 0x520   :  { %2987 = vmatprep.subr.mxu0 %v7765_v57  ;;  %3058 = vmatprep.subr.mxu1 %v7768_v12  ;;  %10208 = vst [vmem:[#allocation61_spill] sm:$0xff] %v7780_v22  ;;  %v2665_v57 = vmul.f32 0.5, %v2655_v54  ;;  %10209 = vst [vmem:[#allocation62_spill] sm:$0xff] %v7783_v61  ;;  %v7786_v12 = vld [vmem:[#allocation8 + $0x1b0] sm:$0xff]  ;;  %v10330_v33 = vld [vmem:[#allocation26_spill] sm:$0xff] }
 0x521   :  { %2988 = vmatpush1.msra.mxu0 %v7771_v13  ;;  %3059 = vmatpush1.msra.mxu1 %v7774_v48  ;;  %10210 = vst [vmem:[#allocation63_spill] sm:$0xff] %v7786_v12  ;;  %v7792_v48 = vld [vmem:[#allocation8 + $0x198] sm:$0xff]  ;;  %v7798_v54 = vld [vmem:[#allocation8 + $0x190] sm:$0xff]  ;;  %10216 = vst [vmem:[#allocation69_spill] sm:$0xff] %v7804_v3 }
 0x522   :  { %2989 = vmatprep.subr.mxu0 %v7777_v58  ;;  %3060 = vmatprep.subr.mxu1 %v7780_v22  ;;  %10212 = vst [vmem:[#allocation65_spill] sm:$0xff] %v7792_v48  ;;  %v7795_v22 = vld [vmem:[#allocation8 + $0x180] sm:$0xff]  ;;  %10214 = vst [vmem:[#allocation67_spill] sm:$0xff] %v7798_v54  ;;  %4668 = vtanh.f32 %v2665_v57 }
 0x523   :  { %2990 = vmatpush1.msra.mxu0 %v7783_v61  ;;  %3061 = vmatpush1.msra.mxu1 %v7786_v12  ;;  %10213 = vst [vmem:[#allocation66_spill] sm:$0xff] %v7795_v22  ;;  %v7801_v12 = vld [vmem:[#allocation8 + $0x168] sm:$0xff] }
 0x524   :  { %v4663_v13 = vpop.eup %4662  ;;  %2991 = vmatprep.subr.mxu0 %v7789_v45  ;;  %3062 = vmatprep.subr.mxu1 %v7792_v48  ;;  %10215 = vst [vmem:[#allocation68_spill] sm:$0xff] %v7801_v12 }
 0x525   :  { %v2658_v58 = vmul.f32 0.5, %v4663_v13  ;;  %2992 = vmatpush1.msra.mxu0 %v7795_v22  ;;  %3063 = vmatpush1.msra.mxu1 %v7798_v54  ;;  %v7807_v13 = vld [vmem:[#allocation8 + $0x160] sm:$0xff]  ;;  %v7810_v22 = vld [vmem:[#allocation8 + $0x170] sm:$0xff]  ;;  %v7813_v54 = vld [vmem:[#allocation8 + $0x148] sm:$0xff] }
 0x526   :  { %v4665_v61 = vpop.eup %4664  ;;  %2993 = vmatprep.subr.mxu0 %v7801_v12  ;;  %3064 = vmatprep.subr.mxu1 %v7804_v3  ;;  %10217 = vst [vmem:[#allocation70_spill] sm:$0xff] %v7807_v13  ;;  %10218 = vst [vmem:[#allocation71_spill] sm:$0xff] %v7810_v22  ;;  %v7816_v12 = vld [vmem:[#allocation8 + $0x158] sm:$0xff] }
 0x527   :  { %v2659_v45 = vadd.f32 0.5, %v2658_v58  ;;  %v2662_v48 = vmul.f32 0.5, %v4665_v61  ;;  %2994 = vmatpush1.msra.mxu0 %v7807_v13  ;;  %3065 = vmatpush1.msra.mxu1 %v7810_v22  ;;  %10219 = vst [vmem:[#allocation72_spill] sm:$0xff] %v7813_v54  ;;  %10220 = vst [vmem:[#allocation73_spill] sm:$0xff] %v7816_v12  ;;  %v7819_v58 = vld [vmem:[#allocation8 + $0x140] sm:$0xff]  ;;  %v7822_v61 = vld [vmem:[#allocation8 + $0x150] sm:$0xff]  ;;  %v4667_v57 = vpop.eup %4666 }
 0x528   :  { %2995 = vmatprep.subr.mxu0 %v7813_v54  ;;  %3066 = vmatprep.subr.mxu1 %v7816_v12  ;;  %10221 = vst [vmem:[#allocation74_spill] sm:$0xff] %v7819_v58  ;;  %10222 = vst [vmem:[#allocation75_spill] sm:$0xff] %v7822_v61  ;;  %v7825_v13 = vld [vmem:[#allocation8 + $0x128] sm:$0xff]  ;;  %v7828_v22 = vld [vmem:[#allocation8 + $0x138] sm:$0xff] }
 0x529   :  { %v2663_v3 = vadd.f32 0.5, %v2662_v48  ;;  %2996 = vmatpush1.msra.mxu0 %v7819_v58  ;;  %3067 = vmatpush1.msra.mxu1 %v7822_v61  ;;  %10223 = vst [vmem:[#allocation76_spill] sm:$0xff] %v7825_v13  ;;  %10224 = vst [vmem:[#allocation77_spill] sm:$0xff] %v7828_v22  ;;  %v2670_v48 = vmul.f32 %v4667_v57, %v2659_v45  ;;  %v7832_v54 = vld [vmem:[#allocation8 + $0x120] sm:$0xff]  ;;  %v7835_v58 = vld [vmem:[#allocation8 + $0x130] sm:$0xff] }
 0x52a   :  { %2997 = vmatprep.subr.mxu0 %v7825_v13  ;;  %3068 = vmatprep.subr.mxu1 %v7828_v22  ;;  %10225 = vst [vmem:[#allocation78_spill] sm:$0xff] %v7832_v54  ;;  %10226 = vst [vmem:[#allocation79_spill] sm:$0xff] %v7835_v58  ;;  %v7838_v61 = vld [vmem:[#allocation8 + $0x108] sm:$0xff]  ;;  %v7841_v13 = vld [vmem:[#allocation8 + $0x118] sm:$0xff] }
 0x52b   :  { %v2669_v12 = vmul.f32 %v2663_v3, %v7434_v59  ;;  %2998 = vmatpush1.msra.mxu0 %v7832_v54  ;;  %3069 = vmatpush1.msra.mxu1 %v7835_v58  ;;  %10227 = vst [vmem:[#allocation80_spill] sm:$0xff] %v7838_v61  ;;  %10228 = vst [vmem:[#allocation81_spill] sm:$0xff] %v7841_v13  ;;  %v7846_v59 = vld [vmem:[#allocation8 + $0x100] sm:$0xff]  ;;  %v7849_v45 = vld [vmem:[#allocation8 + $0x110] sm:$0xff] }
 0x52c   :  { %2999 = vmatprep.subr.mxu0 %v7838_v61  ;;  %3070 = vmatprep.subr.mxu1 %v7841_v13  ;;  %10230 = vst [vmem:[#allocation87_spill] sm:$0xff] %v7846_v59  ;;  %10231 = vst [vmem:[#allocation83_spill] sm:$0xff] %v7849_v45  ;;  %v7852_v3 = vld [vmem:[#allocation8 + $0xe8] sm:$0xff]  ;;  %v7855_v57 = vld [vmem:[#allocation8 + $0xf8] sm:$0xff] }
 0x52d   :  { %v7844_v22 = vadd.f32 %v2670_v48, %v2669_v12  ;;  %3000 = vmatpush1.msra.mxu0 %v7846_v59  ;;  %3071 = vmatpush1.msra.mxu1 %v7849_v45  ;;  %10232 = vst [vmem:[#allocation84_spill] sm:$0xff] %v7852_v3  ;;  %10233 = vst [vmem:[#allocation85_spill] sm:$0xff] %v7855_v57  ;;  %v7859_v12 = vld [vmem:[#allocation8 + $0xe0] sm:$0xff]  ;;  %v7862_v48 = vld [vmem:[#allocation8 + $0xf0] sm:$0xff] }
 0x52e   :  { %3001 = vmatprep.subr.mxu0 %v7852_v3  ;;  %3072 = vmatprep.subr.mxu1 %v7855_v57  ;;  %10234 = vst [vmem:[#allocation86_spill] sm:$0xff] %v7859_v12  ;;  %10235 = vst [vmem:[#allocation88_spill] sm:$0xff] %v7862_v48  ;;  %v7865_v59 = vld [vmem:[#allocation8 + $0xc8] sm:$0xff]  ;;  %v7868_v45 = vld [vmem:[#allocation8 + $0xd8] sm:$0xff] }
 0x52f   :  { %10229 = vst [vmem:[#allocation82_spill] sm:$0xff] %v7844_v22  ;;  %4670 = vtanh.f32 %v7844_v22  ;;  %3002 = vmatpush1.msra.mxu0 %v7859_v12  ;;  %3073 = vmatpush1.msra.mxu1 %v7862_v48  ;;  %10236 = vst [vmem:[#allocation89_spill] sm:$0xff] %v7865_v59  ;;  %v7871_v3 = vld [vmem:[#allocation8 + $0xc0] sm:$0xff]  ;;  %v7874_v57 = vld [vmem:[#allocation8 + $0xd0] sm:$0xff] }
 0x530   :  { %3003 = vmatprep.subr.mxu0 %v7865_v59  ;;  %10237 = vst [vmem:[#allocation90_spill] sm:$0xff] %v7868_v45  ;;  %3074 = vmatprep.subr.mxu1 %v7868_v45  ;;  %10238 = vst [vmem:[#allocation91_spill] sm:$0xff] %v7871_v3  ;;  %v7877_v12 = vld [vmem:[#allocation8 + $0xa8] sm:$0xff]  ;;  %v7880_v48 = vld [vmem:[#allocation8 + $0xb8] sm:$0xff] }
 0x531   :  { %3004 = vmatpush1.msra.mxu0 %v7871_v3  ;;  %10239 = vst [vmem:[#allocation92_spill] sm:$0xff] %v7874_v57  ;;  %3075 = vmatpush1.msra.mxu1 %v7874_v57  ;;  %10240 = vst [vmem:[#allocation93_spill] sm:$0xff] %v7877_v12  ;;  %v7883_v59 = vld [vmem:[#allocation8 + $0xa0] sm:$0xff]  ;;  %v7886_v45 = vld [vmem:[#allocation8 + $0xb0] sm:$0xff]  ;;  %v4669_v3 = vpop.eup %4668 }
 0x532   :  { %3005 = vmatprep.subr.mxu0 %v7877_v12  ;;  %10241 = vst [vmem:[#allocation94_spill] sm:$0xff] %v7880_v48  ;;  %3076 = vmatprep.subr.mxu1 %v7880_v48  ;;  %10242 = vst [vmem:[#allocation95_spill] sm:$0xff] %v7883_v59  ;;  %v7889_v13 = vld [vmem:[#allocation8 + $0x88] sm:$0xff]  ;;  %v7892_v57 = vld [vmem:[#allocation8 + $0x98] sm:$0xff] }
 0x533   :  { %3006 = vmatpush1.msra.mxu0 %v7883_v59  ;;  %10243 = vst [vmem:[#allocation96_spill] sm:$0xff] %v7886_v45  ;;  %3077 = vmatpush1.msra.mxu1 %v7886_v45  ;;  %10244 = vst [vmem:[#allocation97_spill] sm:$0xff] %v7889_v13  ;;  %v7895_v12 = vld [vmem:[#allocation8 + $0x80] sm:$0xff]  ;;  %v7898_v48 = vld [vmem:[#allocation8 + $0x90] sm:$0xff] }
 0x534   :  { %3007 = vmatprep.subr.mxu0 %v7889_v13  ;;  %10245 = vst [vmem:[#allocation98_spill] sm:$0xff] %v7892_v57  ;;  %3078 = vmatprep.subr.mxu1 %v7892_v57  ;;  %10246 = vst [vmem:[#allocation99_spill] sm:$0xff] %v7895_v12  ;;  %v7901_v59 = vld [vmem:[#allocation8 + $0x68] sm:$0xff]  ;;  %v7904_v45 = vld [vmem:[#allocation8 + $0x78] sm:$0xff]  ;;  %v2667_v13 = vmul.f32 0.5, %v4669_v3 }
 0x535   :  { %3008 = vmatpush1.msra.mxu0 %v7895_v12  ;;  %10247 = vst [vmem:[#allocation100_spill] sm:$0xff] %v7898_v48  ;;  %3079 = vmatpush1.msra.mxu1 %v7898_v48  ;;  %10248 = vst [vmem:[#allocation101_spill] sm:$0xff] %v7901_v59  ;;  %v7907_v61 = vld [vmem:[#allocation8 + $0x60] sm:$0xff]  ;;  %v7910_v57 = vld [vmem:[#allocation8 + $0x70] sm:$0xff] }
 0x536   :  { %3009 = vmatprep.subr.mxu0 %v7901_v59  ;;  %10249 = vst [vmem:[#allocation102_spill] sm:$0xff] %v7904_v45  ;;  %3080 = vmatprep.subr.mxu1 %v7904_v45  ;;  %10250 = vst [vmem:[#allocation103_spill] sm:$0xff] %v7907_v61  ;;  %v7913_v12 = vld [vmem:[#allocation8 + $0x48] sm:$0xff]  ;;  %v7916_v48 = vld [vmem:[#allocation8 + $0x58] sm:$0xff] }
 0x537   :  { %3010 = vmatpush1.msra.mxu0 %v7907_v61  ;;  %10251 = vst [vmem:[#allocation104_spill] sm:$0xff] %v7910_v57  ;;  %3081 = vmatpush1.msra.mxu1 %v7910_v57  ;;  %10252 = vst [vmem:[#allocation105_spill] sm:$0xff] %v7913_v12  ;;  %v7919_v59 = vld [vmem:[#allocation8 + $0x40] sm:$0xff]  ;;  %v7922_v3 = vld [vmem:[#allocation8 + $0x50] sm:$0xff] }
 0x538   :  { %3011 = vmatprep.subr.mxu0 %v7913_v12  ;;  %10253 = vst [vmem:[#allocation106_spill] sm:$0xff] %v7916_v48  ;;  %3082 = vmatprep.subr.mxu1 %v7916_v48  ;;  %10254 = vst [vmem:[#allocation107_spill] sm:$0xff] %v7919_v59  ;;  %v7925_v61 = vld [vmem:[#allocation8 + $0x28] sm:$0xff]  ;;  %v7928_v57 = vld [vmem:[#allocation8 + $0x38] sm:$0xff]  ;;  %v2668_v12 = vadd.f32 0.5, %v2667_v13 }
 0x539   :  { %3012 = vmatpush1.msra.mxu0 %v7919_v59  ;;  %10255 = vst [vmem:[#allocation108_spill] sm:$0xff] %v7922_v3  ;;  %3083 = vmatpush1.msra.mxu1 %v7922_v3  ;;  %10256 = vst [vmem:[#allocation109_spill] sm:$0xff] %v7925_v61  ;;  %v7931_v45 = vld [vmem:[#allocation8 + $0x20] sm:$0xff]  ;;  %v7934_v48 = vld [vmem:[#allocation8 + $0x30] sm:$0xff] }
 0x53a   :  { %3013 = vmatprep.subr.mxu0 %v7925_v61  ;;  %10257 = vst [vmem:[#allocation110_spill] sm:$0xff] %v7928_v57  ;;  %3084 = vmatprep.subr.mxu1 %v7928_v57  ;;  %10258 = vst [vmem:[#allocation111_spill] sm:$0xff] %v7931_v45  ;;  %v7937_v58 = vld [vmem:[#allocation8 + $0x8] sm:$0xff]  ;;  %v7940_v3 = vld [vmem:[#allocation8 + $0x18] sm:$0xff] }
 0x53b   :  { %3014 = vmatpush1.msra.mxu0 %v7931_v45  ;;  %10259 = vst [vmem:[#allocation112_spill] sm:$0xff] %v7934_v48  ;;  %3085 = vmatpush1.msra.mxu1 %v7934_v48  ;;  %10260 = vst [vmem:[#allocation113_spill] sm:$0xff] %v7937_v58  ;;  %v7943_v61 = vld [vmem:[#allocation8] sm:$0xff]  ;;  %v7947_v45 = vld [vmem:[#allocation8 + $0x10] sm:$0xff] }
 0x53c   :  { %v4671_v59 = vpop.eup %4670  ;;  %3015 = vmatprep.subr.mxu0 %v7937_v58  ;;  %10261 = vst [vmem:[#allocation114_spill] sm:$0xff] %v7940_v3  ;;  %3086 = vmatprep.subr.mxu1 %v7940_v3  ;;  %10262 = vst [vmem:[#allocation115_spill] sm:$0xff] %v7943_v61  ;;  %v7951_v58 = vld [vmem:[#allocation4 + $0x1e8] sm:$0xff]  ;;  %v7954_v3 = vld [vmem:[#allocation4 + $0x1f8] sm:$0xff] }
 0x53d   :  { %3016 = vmatpush1.msra.mxu0 %v7943_v61  ;;  %3049 = vmatprep.mubr.f32.mxu0 %v10044_v63  ;;  %v2673_v13 = vmul.f32 %v4671_v59, %v2668_v12  ;;  %10263 = vst [vmem:[#allocation116_spill] sm:$0xff] %v7947_v45  ;;  %10264 = vst [vmem:[#allocation117_spill] sm:$0xff] %v7951_v58  ;;  %v7957_v61 = vld [vmem:[#allocation4 + $0x1e0] sm:$0xff]  ;;  %v7960_v59 = vld [vmem:[#allocation4 + $0x1f0] sm:$0xff] }
 0x53e   :  { %3087 = vmatpush1.msra.mxu1 %v7947_v45  ;;  %3120 = vmatprep.mubr.f32.mxu1 %v10044_v63  ;;  %10265 = vst [vmem:[#allocation118_spill] sm:$0xff] %v7954_v3  ;;  %10266 = vst [vmem:[#allocation119_spill] sm:$0xff] %v7957_v61  ;;  %v7963_v12 = vld [vmem:[#allocation4 + $0x1c8] sm:$0xff]  ;;  %v10328_v48 = vld [vmem:[#allocation25_spill] sm:$0xff] }
 0x53f   :  { %3050 = vmatmul.mubr.f32.vlgmr.msra.gmra.mxu0 %v2673_v13  ;;  %3121 = vmatmul.mubr.f32.vlgmr.msra.gmra.mxu1 %v2673_v13  ;;  %10267 = vst [vmem:[#allocation120_spill] sm:$0xff] %v7960_v59  ;;  %10268 = vst [vmem:[#allocation121_spill] sm:$0xff] %v7963_v12  ;;  %v7966_v13 = vld [vmem:[#allocation4 + $0x1d8] sm:$0xff] }
 0x540   :  { %3154 = vmatprep.subr.mxu0 %v7951_v58  ;;  %3225 = vmatprep.subr.mxu1 %v7954_v3  ;;  %10269 = vst [vmem:[#allocation122_spill] sm:$0xff] %v7966_v13  ;;  %v7969_v58 = vld [vmem:[#allocation4 + $0x1c0] sm:$0xff]  ;;  %v7972_v3 = vld [vmem:[#allocation4 + $0x1d0] sm:$0xff] }
 0x541   :  { %3155 = vmatpush1.msra.mxu0 %v7957_v61  ;;  %3226 = vmatpush1.msra.mxu1 %v7960_v59  ;;  %10270 = vst [vmem:[#allocation123_spill] sm:$0xff] %v7969_v58  ;;  %10271 = vst [vmem:[#allocation124_spill] sm:$0xff] %v7972_v3  ;;  %v7975_v61 = vld [vmem:[#allocation4 + $0x1a8] sm:$0xff]  ;;  %v7978_v59 = vld [vmem:[#allocation4 + $0x1b8] sm:$0xff] }
 0x542   :  { %3156 = vmatprep.subr.mxu0 %v7963_v12  ;;  %3227 = vmatprep.subr.mxu1 %v7966_v13  ;;  %10272 = vst [vmem:[#allocation125_spill] sm:$0xff] %v7975_v61  ;;  %10273 = vst [vmem:[#allocation126_spill] sm:$0xff] %v7978_v59  ;;  %v7981_v12 = vld [vmem:[#allocation4 + $0x1a0] sm:$0xff]  ;;  %v7984_v13 = vld [vmem:[#allocation4 + $0x1b0] sm:$0xff] }
 0x543   :  { %3157 = vmatpush1.msra.mxu0 %v7969_v58  ;;  %3228 = vmatpush1.msra.mxu1 %v7972_v3  ;;  %10274 = vst [vmem:[#allocation127_spill] sm:$0xff] %v7981_v12  ;;  %10275 = vst [vmem:[#allocation128_spill] sm:$0xff] %v7984_v13  ;;  %v7987_v58 = vld [vmem:[#allocation4 + $0x188] sm:$0xff]  ;;  %v7990_v3 = vld [vmem:[#allocation4 + $0x198] sm:$0xff] }
 0x544   :  { %3158 = vmatprep.subr.mxu0 %v7975_v61  ;;  %3229 = vmatprep.subr.mxu1 %v7978_v59  ;;  %10276 = vst [vmem:[#allocation129_spill] sm:$0xff] %v7987_v58  ;;  %10277 = vst [vmem:[#allocation130_spill] sm:$0xff] %v7990_v3  ;;  %v7993_v61 = vld [vmem:[#allocation4 + $0x180] sm:$0xff]  ;;  %v7996_v59 = vld [vmem:[#allocation4 + $0x190] sm:$0xff] }
 0x545   :  { %3159 = vmatpush1.msra.mxu0 %v7981_v12  ;;  %3230 = vmatpush1.msra.mxu1 %v7984_v13  ;;  %10278 = vst [vmem:[#allocation131_spill] sm:$0xff] %v7993_v61  ;;  %10279 = vst [vmem:[#allocation132_spill] sm:$0xff] %v7996_v59  ;;  %v7999_v12 = vld [vmem:[#allocation4 + $0x168] sm:$0xff]  ;;  %v8002_v13 = vld [vmem:[#allocation4 + $0x178] sm:$0xff] }
 0x546   :  { %3160 = vmatprep.subr.mxu0 %v7987_v58  ;;  %3231 = vmatprep.subr.mxu1 %v7990_v3  ;;  %10280 = vst [vmem:[#allocation133_spill] sm:$0xff] %v7999_v12  ;;  %10281 = vst [vmem:[#allocation134_spill] sm:$0xff] %v8002_v13  ;;  %v8005_v58 = vld [vmem:[#allocation4 + $0x160] sm:$0xff]  ;;  %v8008_v3 = vld [vmem:[#allocation4 + $0x170] sm:$0xff] }
 0x547   :  { %3161 = vmatpush1.msra.mxu0 %v7993_v61  ;;  %3232 = vmatpush1.msra.mxu1 %v7996_v59  ;;  %10282 = vst [vmem:[#allocation135_spill] sm:$0xff] %v8005_v58  ;;  %10283 = vst [vmem:[#allocation136_spill] sm:$0xff] %v8008_v3  ;;  %v8011_v61 = vld [vmem:[#allocation4 + $0x148] sm:$0xff]  ;;  %v8014_v59 = vld [vmem:[#allocation4 + $0x158] sm:$0xff] }
 0x548   :  { %3162 = vmatprep.subr.mxu0 %v7999_v12  ;;  %3233 = vmatprep.subr.mxu1 %v8002_v13  ;;  %10284 = vst [vmem:[#allocation137_spill] sm:$0xff] %v8011_v61  ;;  %10285 = vst [vmem:[#allocation138_spill] sm:$0xff] %v8014_v59  ;;  %v8017_v12 = vld [vmem:[#allocation4 + $0x140] sm:$0xff]  ;;  %v8020_v13 = vld [vmem:[#allocation4 + $0x150] sm:$0xff] }
 0x549   :  { %3163 = vmatpush1.msra.mxu0 %v8005_v58  ;;  %3234 = vmatpush1.msra.mxu1 %v8008_v3  ;;  %10286 = vst [vmem:[#allocation139_spill] sm:$0xff] %v8017_v12  ;;  %10287 = vst [vmem:[#allocation140_spill] sm:$0xff] %v8020_v13  ;;  %v8023_v58 = vld [vmem:[#allocation4 + $0x128] sm:$0xff]  ;;  %v8026_v3 = vld [vmem:[#allocation4 + $0x138] sm:$0xff] }
 0x54a   :  { %3164 = vmatprep.subr.mxu0 %v8011_v61  ;;  %3235 = vmatprep.subr.mxu1 %v8014_v59  ;;  %10288 = vst [vmem:[#allocation141_spill] sm:$0xff] %v8023_v58  ;;  %10289 = vst [vmem:[#allocation142_spill] sm:$0xff] %v8026_v3  ;;  %v8029_v61 = vld [vmem:[#allocation4 + $0x120] sm:$0xff]  ;;  %v8032_v59 = vld [vmem:[#allocation4 + $0x130] sm:$0xff] }
 0x54b   :  { %3165 = vmatpush1.msra.mxu0 %v8017_v12  ;;  %3236 = vmatpush1.msra.mxu1 %v8020_v13  ;;  %10290 = vst [vmem:[#allocation143_spill] sm:$0xff] %v8029_v61  ;;  %10291 = vst [vmem:[#allocation144_spill] sm:$0xff] %v8032_v59  ;;  %v8035_v12 = vld [vmem:[#allocation4 + $0x108] sm:$0xff]  ;;  %v8038_v13 = vld [vmem:[#allocation4 + $0x118] sm:$0xff] }
 0x54c   :  { %3166 = vmatprep.subr.mxu0 %v8023_v58  ;;  %3237 = vmatprep.subr.mxu1 %v8026_v3  ;;  %10292 = vst [vmem:[#allocation145_spill] sm:$0xff] %v8035_v12  ;;  %10293 = vst [vmem:[#allocation146_spill] sm:$0xff] %v8038_v13  ;;  %v8041_v58 = vld [vmem:[#allocation4 + $0x100] sm:$0xff]  ;;  %v8044_v3 = vld [vmem:[#allocation4 + $0x110] sm:$0xff] }
 0x54d   :  { %3167 = vmatpush1.msra.mxu0 %v8029_v61  ;;  %3238 = vmatpush1.msra.mxu1 %v8032_v59  ;;  %10294 = vst [vmem:[#allocation147_spill] sm:$0xff] %v8041_v58  ;;  %10295 = vst [vmem:[#allocation148_spill] sm:$0xff] %v8044_v3  ;;  %v8047_v61 = vld [vmem:[#allocation4 + $0xe8] sm:$0xff]  ;;  %v8050_v59 = vld [vmem:[#allocation4 + $0xf8] sm:$0xff] }
 0x54e   :  { %3168 = vmatprep.subr.mxu0 %v8035_v12  ;;  %3239 = vmatprep.subr.mxu1 %v8038_v13  ;;  %10296 = vst [vmem:[#allocation149_spill] sm:$0xff] %v8047_v61  ;;  %10297 = vst [vmem:[#allocation150_spill] sm:$0xff] %v8050_v59  ;;  %v8053_v12 = vld [vmem:[#allocation4 + $0xe0] sm:$0xff]  ;;  %v8056_v13 = vld [vmem:[#allocation4 + $0xf0] sm:$0xff] }
 0x54f   :  { %3169 = vmatpush1.msra.mxu0 %v8041_v58  ;;  %3240 = vmatpush1.msra.mxu1 %v8044_v3  ;;  %10298 = vst [vmem:[#allocation151_spill] sm:$0xff] %v8053_v12  ;;  %10299 = vst [vmem:[#allocation152_spill] sm:$0xff] %v8056_v13  ;;  %v8059_v58 = vld [vmem:[#allocation4 + $0xc8] sm:$0xff]  ;;  %v8062_v3 = vld [vmem:[#allocation4 + $0xd8] sm:$0xff] }
 0x550   :  { %3170 = vmatprep.subr.mxu0 %v8047_v61  ;;  %3241 = vmatprep.subr.mxu1 %v8050_v59  ;;  %10300 = vst [vmem:[#allocation153_spill] sm:$0xff] %v8059_v58  ;;  %10301 = vst [vmem:[#allocation154_spill] sm:$0xff] %v8062_v3  ;;  %v8065_v61 = vld [vmem:[#allocation4 + $0xc0] sm:$0xff]  ;;  %v8068_v59 = vld [vmem:[#allocation4 + $0xd0] sm:$0xff] }
 0x551   :  { %3171 = vmatpush1.msra.mxu0 %v8053_v12  ;;  %3242 = vmatpush1.msra.mxu1 %v8056_v13  ;;  %10302 = vst [vmem:[#allocation155_spill] sm:$0xff] %v8065_v61  ;;  %10303 = vst [vmem:[#allocation156_spill] sm:$0xff] %v8068_v59  ;;  %v8071_v12 = vld [vmem:[#allocation4 + $0xa8] sm:$0xff]  ;;  %v8074_v13 = vld [vmem:[#allocation4 + $0xb8] sm:$0xff] }
 0x552   :  { %3172 = vmatprep.subr.mxu0 %v8059_v58  ;;  %3243 = vmatprep.subr.mxu1 %v8062_v3  ;;  %10304 = vst [vmem:[#allocation157_spill] sm:$0xff] %v8071_v12  ;;  %10305 = vst [vmem:[#allocation158_spill] sm:$0xff] %v8074_v13  ;;  %v8077_v58 = vld [vmem:[#allocation4 + $0xa0] sm:$0xff]  ;;  %v8080_v3 = vld [vmem:[#allocation4 + $0xb0] sm:$0xff] }
 0x553   :  { %3173 = vmatpush1.msra.mxu0 %v8065_v61  ;;  %3244 = vmatpush1.msra.mxu1 %v8068_v59  ;;  %10306 = vst [vmem:[#allocation159_spill] sm:$0xff] %v8077_v58  ;;  %10307 = vst [vmem:[#allocation160_spill] sm:$0xff] %v8080_v3  ;;  %v8083_v61 = vld [vmem:[#allocation4 + $0x88] sm:$0xff]  ;;  %v8086_v59 = vld [vmem:[#allocation4 + $0x98] sm:$0xff] }
 0x554   :  { %3174 = vmatprep.subr.mxu0 %v8071_v12  ;;  %3245 = vmatprep.subr.mxu1 %v8074_v13  ;;  %10308 = vst [vmem:[#allocation161_spill] sm:$0xff] %v8083_v61  ;;  %10309 = vst [vmem:[#allocation162_spill] sm:$0xff] %v8086_v59  ;;  %v8089_v12 = vld [vmem:[#allocation4 + $0x80] sm:$0xff]  ;;  %v8092_v13 = vld [vmem:[#allocation4 + $0x90] sm:$0xff] }
 0x555   :  { %3175 = vmatpush1.msra.mxu0 %v8077_v58  ;;  %3246 = vmatpush1.msra.mxu1 %v8080_v3  ;;  %10310 = vst [vmem:[#allocation163_spill] sm:$0xff] %v8089_v12  ;;  %10311 = vst [vmem:[#allocation164_spill] sm:$0xff] %v8092_v13  ;;  %v8095_v58 = vld [vmem:[#allocation4 + $0x68] sm:$0xff]  ;;  %v8098_v3 = vld [vmem:[#allocation4 + $0x78] sm:$0xff] }
 0x556   :  { %3176 = vmatprep.subr.mxu0 %v8083_v61  ;;  %3247 = vmatprep.subr.mxu1 %v8086_v59  ;;  %10312 = vst [vmem:[#allocation165_spill] sm:$0xff] %v8095_v58  ;;  %10313 = vst [vmem:[#allocation166_spill] sm:$0xff] %v8098_v3  ;;  %v8101_v61 = vld [vmem:[#allocation4 + $0x60] sm:$0xff]  ;;  %v8104_v59 = vld [vmem:[#allocation4 + $0x70] sm:$0xff] }
 0x557   :  { %3177 = vmatpush1.msra.mxu0 %v8089_v12  ;;  %3248 = vmatpush1.msra.mxu1 %v8092_v13  ;;  %10314 = vst [vmem:[#allocation167_spill] sm:$0xff] %v8101_v61  ;;  %10315 = vst [vmem:[#allocation168_spill] sm:$0xff] %v8104_v59  ;;  %v8107_v12 = vld [vmem:[#allocation4 + $0x48] sm:$0xff]  ;;  %v8110_v13 = vld [vmem:[#allocation4 + $0x58] sm:$0xff] }
 0x558   :  { %3178 = vmatprep.subr.mxu0 %v8095_v58  ;;  %3249 = vmatprep.subr.mxu1 %v8098_v3  ;;  %10316 = vst [vmem:[#allocation169_spill] sm:$0xff] %v8107_v12  ;;  %10317 = vst [vmem:[#allocation170_spill] sm:$0xff] %v8110_v13  ;;  %v8113_v58 = vld [vmem:[#allocation4 + $0x40] sm:$0xff]  ;;  %v8116_v3 = vld [vmem:[#allocation4 + $0x50] sm:$0xff] }
 0x559   :  { %3179 = vmatpush1.msra.mxu0 %v8101_v61  ;;  %3250 = vmatpush1.msra.mxu1 %v8104_v59  ;;  %10318 = vst [vmem:[#allocation171_spill] sm:$0xff] %v8113_v58  ;;  %10319 = vst [vmem:[#allocation172_spill] sm:$0xff] %v8116_v3  ;;  %v8119_v61 = vld [vmem:[#allocation4 + $0x28] sm:$0xff]  ;;  %v8122_v59 = vld [vmem:[#allocation4 + $0x38] sm:$0xff] }
 0x55a   :  { %3180 = vmatprep.subr.mxu0 %v8107_v12  ;;  %3251 = vmatprep.subr.mxu1 %v8110_v13  ;;  %10320 = vst [vmem:[#allocation173_spill] sm:$0xff] %v8119_v61  ;;  %10321 = vst [vmem:[#allocation174_spill] sm:$0xff] %v8122_v59  ;;  %v8125_v12 = vld [vmem:[#allocation4 + $0x20] sm:$0xff]  ;;  %v8128_v13 = vld [vmem:[#allocation4 + $0x30] sm:$0xff] }
 0x55b   :  { %3181 = vmatpush1.msra.mxu0 %v8113_v58  ;;  %3252 = vmatpush1.msra.mxu1 %v8116_v3  ;;  %10322 = vst [vmem:[#allocation175_spill] sm:$0xff] %v8125_v12  ;;  %10323 = vst [vmem:[#allocation176_spill] sm:$0xff] %v8128_v13  ;;  %v8131_v58 = vld [vmem:[#allocation4 + $0x8] sm:$0xff]  ;;  %v8134_v3 = vld [vmem:[#allocation4 + $0x18] sm:$0xff] }
 0x55c   :  { %3182 = vmatprep.subr.mxu0 %v8119_v61  ;;  %3253 = vmatprep.subr.mxu1 %v8122_v59  ;;  %10324 = vst [vmem:[#allocation177_spill] sm:$0xff] %v8131_v58  ;;  %10325 = vst [vmem:[#allocation178_spill] sm:$0xff] %v8134_v3  ;;  %v8137_v61 = vld [vmem:[#allocation4] sm:$0xff] }
 0x55d   :  { %3183 = vmatpush1.msra.mxu0 %v8125_v12  ;;  %3254 = vmatpush1.msra.mxu1 %v8128_v13  ;;  %10326 = vst [vmem:[#allocation179_spill] sm:$0xff] %v8137_v61 }
 0x55e   :  { %3184 = vmatprep.subr.mxu0 %v8131_v58  ;;  %3255 = vmatprep.subr.mxu1 %v8134_v3  ;;  %v10327_v58 = vld [vmem:[#allocation23_spill] sm:$0xff] }
 0x55f   :  { %3185 = vmatpush1.msra.mxu0 %v8137_v61  ;;  %3256 = vmatpush1.msra.mxu1 %v7536_v29  ;;  %v10329_v61 = vld [vmem:[#allocation24_spill] sm:$0xff] }
 0x560   :  { %3218 = vmatprep.mubr.f32.mxu0 %v10044_v63  ;;  %3289 = vmatprep.mubr.f32.mxu1 %v10044_v63 }
 0x561   :  { %3318 = vmatprep.subr.mxu0 %v7541_v37  ;;  %3389 = vmatprep.subr.mxu1 %v7544_v46 }
 0x5bc   :  { %v2745_v13 = vpop.f32.mrf.mxu0  ;;  %v2816_v59 = vpop.f32.mrf.mxu1 }
 0x5bd   :  { %v2821_v12 = vadd.f32 %v2745_v13, %v10327_v58  ;;  %v2823_v54 = vadd.f32 %v2816_v59, %v10329_v61  ;;  %v10362_v59 = vld [vmem:[#allocation59_spill] sm:$0xff] }
 0x5be   :  { %v2747_v45 = vpop.f32.mrf.mxu0  ;;  %v2818_v22 = vpop.f32.mrf.mxu1 }
 0x5bf   :  { %v2825_v3 = vmul.f32 0.5, %v2821_v12  ;;  %v2822_v57 = vadd.f32 %v2747_v45, %v10328_v48  ;;  %v2824_v63 = vadd.f32 %v2818_v22, %v10330_v33  ;;  %v10360_v22 = vld [vmem:[#allocation57_spill] sm:$0xff] }
 0x5c1   :  { %4672 = vtanh.f32 %v2825_v3  ;;  %v2829_v29 = vmul.f32 0.5, %v2822_v57  ;;  %v2834_v37 = vmul.f32 0.5, %v2824_v63  ;;  %v10361_v3 = vld [vmem:[#allocation58_spill] sm:$0xff] }
 0x5c3   :  { %4674 = vtanh.f32 %v2829_v29  ;;  %v10363_v29 = vld [vmem:[#allocation60_spill] sm:$0xff] }
 0x5c4   :  { %4676 = vtanh.f32 %v2823_v54 }
 0x5c5   :  { %4678 = vtanh.f32 %v2834_v37  ;;  %v10364_v37 = vld [vmem:[#allocation61_spill] sm:$0xff] }
 0x5ce   :  { %v4673_v40 = vpop.eup %4672 }
 0x5cf   :  { %v2827_v46 = vmul.f32 0.5, %v4673_v40  ;;  %v10359_v40 = vld [vmem:[#allocation56_spill] sm:$0xff] }
 0x5d0   :  { %v4675_v47 = vpop.eup %4674 }
 0x5d1   :  { %v2828_v7 = vadd.f32 0.5, %v2827_v46  ;;  %v2831_v58 = vmul.f32 0.5, %v4675_v47  ;;  %v4677_v13 = vpop.eup %4676 }
 0x5d2   :  { %v4679_v54 = vpop.eup %4678 }
 0x5d3   :  { %v2832_v12 = vadd.f32 0.5, %v2831_v58  ;;  %v2839_v60 = vmul.f32 %v4677_v13, %v2828_v7  ;;  %v2836_v61 = vmul.f32 0.5, %v4679_v54  ;;  %v10358_v7 = vld [vmem:[#allocation55_spill] sm:$0xff]  ;;  %v10365_v58 = vld [vmem:[#allocation62_spill] sm:$0xff]  ;;  %v10368_v54 = vld [vmem:[#allocation65_spill] sm:$0xff] }
 0x5d4   :  { %v10366_v13 = vld [vmem:[#allocation63_spill] sm:$0xff] }
 0x5d5   :  { %v2838_v45 = vmul.f32 %v2832_v12, %v7552_v26  ;;  %v2837_v57 = vadd.f32 0.5, %v2836_v61 }
 0x5d7   :  { %v8150_v48 = vadd.f32 %v2839_v60, %v2838_v45  ;;  %v10367_v45 = vld [vmem:[#allocation64_spill] sm:$0xff] }
 0x5d9   :  { %4680 = vtanh.f32 %v8150_v48 }
 0x5dd   :  { %v2909_v47 = vpop.f32.mrf.mxu0  ;;  %v2980_v60 = vpop.f32.mrf.mxu1 }
 0x5df   :  { %v2911_v26 = vpop.f32.mrf.mxu0 }
 0x5e6   :  { %v4681_v33 = vpop.eup %4680 }
 0x5e7   :  { %v8153_v63 = vmul.f32 %v4681_v33, %v2837_v57  ;;  %v10369_v57 = vld [vmem:[#allocation66_spill] sm:$0xff]  ;;  %v10370_v33 = vld [vmem:[#allocation67_spill] sm:$0xff] }
 0x5e9   :  { %3219 = vmatmul.mubr.f32.vlgmr.msra.gmra.mxu0 %v8153_v63  ;;  %3290 = vmatmul.mubr.f32.vlgmr.msra.gmra.mxu1 %v8153_v63 }
 0x5ea   :  { %3319 = vmatpush1.msra.mxu0 %v7559_v18  ;;  %3390 = vmatpush1.msra.mxu1 %v7562_v36  ;;  %v2910_v18 = vadd.f32 %v2909_v47, %v6528_v20  ;;  %v10331_v36 = vld [vmem:[#allocation14_spill] sm:$0xff]  ;;  %v10371_v47 = vld [vmem:[#allocation68_spill] sm:$0xff] }
 0x5eb   :  { %3320 = vmatprep.subr.mxu0 %v7565_v49  ;;  %3391 = vmatprep.subr.mxu1 %v7568_v62  ;;  %v10332_v49 = vld [vmem:[#allocation15_spill] sm:$0xff] }
 0x5ec   :  { %3321 = vmatpush1.msra.mxu0 %v7571_v31  ;;  %3392 = vmatpush1.msra.mxu1 %v7574_v15  ;;  %v10333_v31 = vld [vmem:[#allocation17_spill] sm:$0xff]  ;;  %v10334_v15 = vld [vmem:[#allocation183_spill] sm:$0xff] }
 0x5ed   :  { %3322 = vmatprep.subr.mxu0 %v7577_v35  ;;  %3393 = vmatprep.subr.mxu1 %v7580_v30  ;;  %v2912_v35 = vadd.f32 %v2911_v26, %v10334_v15 }
 0x5ee   :  { %3323 = vmatpush1.msra.mxu0 %v7583_v53  ;;  %3394 = vmatpush1.msra.mxu1 %v7586_v5  ;;  %v10335_v53 = vld [vmem:[#allocation16_spill] sm:$0xff]  ;;  %v10336_v5 = vld [vmem:[#allocation18_spill] sm:$0xff] }
 0x5ef   :  { %3324 = vmatprep.subr.mxu0 %v7589_v27  ;;  %3395 = vmatprep.subr.mxu1 %v7592_v10  ;;  %v2982_v27 = vpop.f32.mrf.mxu1 }
 0x5f0   :  { %3325 = vmatpush1.msra.mxu0 %v7595_v21  ;;  %3396 = vmatpush1.msra.mxu1 %v7598_v25  ;;  %v10337_v21 = vld [vmem:[#allocation37_spill] sm:$0xff] }
 0x5f1   :  { %3326 = vmatprep.subr.mxu0 %v7601_v17  ;;  %3397 = vmatprep.subr.mxu1 %v7604_v1  ;;  %v10338_v1 = vld [vmem:[#allocation38_spill] sm:$0xff] }
 0x5f2   :  { %3327 = vmatpush1.msra.mxu0 %v7607_v14  ;;  %3398 = vmatpush1.msra.mxu1 %v7610_v24  ;;  %v10339_v14 = vld [vmem:[#allocation39_spill] sm:$0xff] }
 0x5f3   :  { %3328 = vmatprep.subr.mxu0 %v7613_v11  ;;  %3399 = vmatprep.subr.mxu1 %v7616_v8  ;;  %v10340_v11 = vld [vmem:[#allocation40_spill] sm:$0xff]  ;;  %v10341_v8 = vld [vmem:[#allocation41_spill] sm:$0xff] }
 0x5f4   :  { %3329 = vmatpush1.msra.mxu0 %v7619_v9  ;;  %3400 = vmatpush1.msra.mxu1 %v7622_v41  ;;  %v10342_v9 = vld [vmem:[#allocation35_spill] sm:$0xff] }
 0x5f5   :  { %3330 = vmatprep.subr.mxu0 %v7625_v28  ;;  %3401 = vmatprep.subr.mxu1 %v7628_v43  ;;  %v2981_v41 = vadd.f32 %v2980_v60, %v10342_v9  ;;  %v10343_v43 = vld [vmem:[#allocation42_spill] sm:$0xff]  ;;  %v10372_v60 = vld [vmem:[#allocation69_spill] sm:$0xff] }
 0x5f6   :  { %3331 = vmatpush1.msra.mxu0 %v7631_v32  ;;  %3402 = vmatpush1.msra.mxu1 %v7634_v34  ;;  %v10344_v32 = vld [vmem:[#allocation43_spill] sm:$0xff]  ;;  %v10345_v34 = vld [vmem:[#allocation44_spill] sm:$0xff] }
 0x5f7   :  { %3332 = vmatprep.subr.mxu0 %v7637_v50  ;;  %3403 = vmatprep.subr.mxu1 %v7640_v6  ;;  %v10346_v50 = vld [vmem:[#allocation45_spill] sm:$0xff] }
 0x5f8   :  { %3333 = vmatpush1.msra.mxu0 %v7643_v38  ;;  %3404 = vmatpush1.msra.mxu1 %v7646_v52  ;;  %v10347_v38 = vld [vmem:[#allocation46_spill] sm:$0xff]  ;;  %v10348_v52 = vld [vmem:[#allocation47_spill] sm:$0xff] }
 0x5f9   :  { %3334 = vmatprep.subr.mxu0 %v7649_v19  ;;  %3405 = vmatprep.subr.mxu1 %v7652_v55  ;;  %v10349_v19 = vld [vmem:[#allocation48_spill] sm:$0xff]  ;;  %v10350_v55 = vld [vmem:[#allocation49_spill] sm:$0xff] }
 0x5fa   :  { %3335 = vmatpush1.msra.mxu0 %v7655_v56  ;;  %3406 = vmatpush1.msra.mxu1 %v7658_v16  ;;  %v10351_v56 = vld [vmem:[#allocation50_spill] sm:$0xff]  ;;  %v10352_v16 = vmov 0.0  }
 0x5fb   :  { %3336 = vmatprep.subr.mxu0 %v7661_v51  ;;  %3407 = vmatprep.subr.mxu1 %v7664_v23  ;;  %v10353_v23 = vld [vmem:[#allocation51_spill] sm:$0xff] }
 0x5fc   :  { %3337 = vmatpush1.msra.mxu0 %v7667_v2  ;;  %3408 = vmatpush1.msra.mxu1 %v7670_v0  ;;  %v10354_v2 = vld [vmem:[#allocation36_spill] sm:$0xff] }
 0x5fd   :  { %3338 = vmatprep.subr.mxu0 %v7673_v44  ;;  %3409 = vmatprep.subr.mxu1 %v7676_v39  ;;  %v2983_v0 = vadd.f32 %v2982_v27, %v10354_v2  ;;  %v10355_v44 = vld [vmem:[#allocation52_spill] sm:$0xff]  ;;  %v10356_v39 = vld [vmem:[#allocation53_spill] sm:$0xff] }
 0x5fe   :  { %3339 = vmatpush1.msra.mxu0 %v10331_v36  ;;  %3410 = vmatpush1.msra.mxu1 %v10332_v49  ;;  %v10373_v36 = vld [vmem:[#allocation70_spill] sm:$0xff]  ;;  %v10374_v49 = vld [vmem:[#allocation71_spill] sm:$0xff]  ;;  %v10379_v27 = vld [vmem:[#allocation76_spill] sm:$0xff] }
 0x5ff   :  { %v3051_v62 = vpop.f32.mrf.mxu0  ;;  %3340 = vmatprep.subr.mxu0 %v10333_v31  ;;  %3411 = vmatprep.subr.mxu1 %v7689_v42  ;;  %v3122_v24 = vpop.f32.mrf.mxu1  ;;  %v10357_v42 = vld [vmem:[#allocation54_spill] sm:$0xff]  ;;  %v10376_v31 = vld [vmem:[#allocation73_spill] sm:$0xff] }
 0x600   :  { %v3127_v30 = vadd.f32 %v3051_v62, %v2910_v18  ;;  %3341 = vmatpush1.msra.mxu0 %v10335_v53  ;;  %3412 = vmatpush1.msra.mxu1 %v10336_v5  ;;  %v3129_v6 = vadd.f32 %v3122_v24, %v2981_v41  ;;  %v10375_v62 = vld [vmem:[#allocation72_spill] sm:$0xff]  ;;  %v10378_v53 = vld [vmem:[#allocation75_spill] sm:$0xff] }
 0x601   :  { %v3053_v10 = vpop.f32.mrf.mxu0  ;;  %3342 = vmatprep.subr.mxu0 %v10337_v21  ;;  %3413 = vmatprep.subr.mxu1 %v7702_v4  ;;  %v3124_v51 = vpop.f32.mrf.mxu1  ;;  %v10381_v21 = vld [vmem:[#allocation82_spill] sm:$0xff]  ;;  %v10384_v24 = vld [vmem:[#allocation80_spill] sm:$0xff]  ;;  %v10386_v41 = vld [vmem:[#allocation87_spill] sm:$0xff] }
 0x602   :  { %v3131_v25 = vmul.f32 0.5, %v3127_v30  ;;  %v3128_v17 = vadd.f32 %v3053_v10, %v2912_v35  ;;  %3343 = vmatpush1.msra.mxu0 %v10338_v1  ;;  %3414 = vmatpush1.msra.mxu1 %v10339_v14  ;;  %v3130_v4 = vadd.f32 %v3124_v51, %v2983_v0  ;;  %v10377_v30 = vld [vmem:[#allocation74_spill] sm:$0xff]  ;;  %v10380_v10 = vld [vmem:[#allocation77_spill] sm:$0xff]  ;;  %v10383_v14 = vld [vmem:[#allocation79_spill] sm:$0xff] }
 0x603   :  { %3344 = vmatprep.subr.mxu0 %v10340_v11  ;;  %3415 = vmatprep.subr.mxu1 %v10341_v8  ;;  %v10382_v1 = vld [vmem:[#allocation78_spill] sm:$0xff]  ;;  %v10385_v11 = vld [vmem:[#allocation81_spill] sm:$0xff]  ;;  %v10398_v51 = vld [vmem:[#allocation95_spill] sm:$0xff] }
 0x604   :  { %4682 = vtanh.f32 %v3131_v25  ;;  %v3135_v28 = vmul.f32 0.5, %v3128_v17  ;;  %3345 = vmatpush1.msra.mxu0 %v10343_v43  ;;  %3416 = vmatpush1.msra.mxu1 %v10344_v32  ;;  %v3140_v46 = vmul.f32 0.5, %v3130_v4  ;;  %v10388_v43 = vld [vmem:[#allocation84_spill] sm:$0xff]  ;;  %v10389_v32 = vld [vmem:[#allocation85_spill] sm:$0xff]  ;;  %v10402_v4 = vld [vmem:[#allocation99_spill] sm:$0xff] }
 0x605   :  { %3346 = vmatprep.subr.mxu0 %v10345_v34  ;;  %3417 = vmatprep.subr.mxu1 %v10346_v50  ;;  %v10390_v34 = vld [vmem:[#allocation86_spill] sm:$0xff]  ;;  %v10391_v50 = vld [vmem:[#allocation88_spill] sm:$0xff] }
 0x606   :  { %4684 = vtanh.f32 %v3135_v28  ;;  %3347 = vmatpush1.msra.mxu0 %v10347_v38  ;;  %3418 = vmatpush1.msra.mxu1 %v10348_v52  ;;  %v10387_v28 = vld [vmem:[#allocation83_spill] sm:$0xff]  ;;  %v10393_v38 = vld [vmem:[#allocation90_spill] sm:$0xff] }
 0x607   :  { %3348 = vmatprep.subr.mxu0 %v10349_v19  ;;  %3419 = vmatprep.subr.mxu1 %v10350_v55  ;;  %4686 = vtanh.f32 %v3129_v6  ;;  %v10392_v6 = vld [vmem:[#allocation89_spill] sm:$0xff]  ;;  %v10394_v52 = vld [vmem:[#allocation91_spill] sm:$0xff]  ;;  %v10395_v19 = vld [vmem:[#allocation92_spill] sm:$0xff] }
 0x608   :  { %3349 = vmatpush1.msra.mxu0 %v10351_v56  ;;  %3382 = vmatprep.mubr.f32.mxu0 %v10352_v16  ;;  %4688 = vtanh.f32 %v3140_v46  ;;  %v10396_v55 = vld [vmem:[#allocation93_spill] sm:$0xff]  ;;  %v10397_v56 = vld [vmem:[#allocation94_spill] sm:$0xff]  ;;  %v10410_v46 = vld [vmem:[#allocation107_spill] sm:$0xff] }
 0x609   :  { %3420 = vmatpush1.msra.mxu1 %v10353_v23  ;;  %3453 = vmatprep.mubr.f32.mxu1 %v10352_v16  ;;  %v10399_v23 = vld [vmem:[#allocation96_spill] sm:$0xff] }
 0x60a   :  { %3383 = vmatmul.mubr.f32.vlgmr.msra.gmra.mxu0 %v8153_v63  ;;  %3454 = vmatmul.mubr.f32.vlgmr.msra.gmra.mxu1 %v8153_v63 }
 0x60b   :  { %3460 = vmatprep.subr.mxu0 %v10355_v44  ;;  %3531 = vmatprep.subr.mxu1 %v10356_v39  ;;  %v10400_v44 = vld [vmem:[#allocation97_spill] sm:$0xff]  ;;  %v10401_v39 = vld [vmem:[#allocation98_spill] sm:$0xff] }
 0x60c   :  { %3461 = vmatpush1.msra.mxu0 %v10357_v42  ;;  %3532 = vmatpush1.msra.mxu1 %v10358_v7  ;;  %v10403_v42 = vld [vmem:[#allocation100_spill] sm:$0xff]  ;;  %v10404_v7 = vld [vmem:[#allocation101_spill] sm:$0xff] }
 0x60d   :  { %3462 = vmatprep.subr.mxu0 %v10359_v40  ;;  %3533 = vmatprep.subr.mxu1 %v10360_v22  ;;  %v10405_v40 = vld [vmem:[#allocation102_spill] sm:$0xff] }
 0x60e   :  { %3463 = vmatpush1.msra.mxu0 %v10361_v3  ;;  %3534 = vmatpush1.msra.mxu1 %v10362_v59  ;;  %v10406_v3 = vld [vmem:[#allocation103_spill] sm:$0xff]  ;;  %v10407_v59 = vld [vmem:[#allocation104_spill] sm:$0xff] }
 0x60f   :  { %3464 = vmatprep.subr.mxu0 %v10363_v29  ;;  %3535 = vmatprep.subr.mxu1 %v10364_v37  ;;  %v10408_v29 = vld [vmem:[#allocation105_spill] sm:$0xff]  ;;  %v10409_v37 = vld [vmem:[#allocation106_spill] sm:$0xff] }
 0x610   :  { %3465 = vmatpush1.msra.mxu0 %v10365_v58  ;;  %3536 = vmatpush1.msra.mxu1 %v10366_v13  ;;  %v10411_v58 = vld [vmem:[#allocation108_spill] sm:$0xff]  ;;  %v10412_v13 = vld [vmem:[#allocation109_spill] sm:$0xff] }
 0x611   :  { %v4683_v12 = vpop.eup %4682  ;;  %3466 = vmatprep.subr.mxu0 %v10367_v45  ;;  %3537 = vmatprep.subr.mxu1 %v10368_v54  ;;  %v10414_v54 = vld [vmem:[#allocation111_spill] sm:$0xff] }
 0x612   :  { %v3133_v61 = vmul.f32 0.5, %v4683_v12  ;;  %3467 = vmatpush1.msra.mxu0 %v10369_v57  ;;  %3538 = vmatpush1.msra.mxu1 %v10370_v33  ;;  %v10413_v12 = vld [vmem:[#allocation110_spill] sm:$0xff]  ;;  %v10416_v33 = vld [vmem:[#allocation113_spill] sm:$0xff] }
 0x613   :  { %v4685_v63 = vpop.eup %4684  ;;  %3468 = vmatprep.subr.mxu0 %v10371_v47  ;;  %3539 = vmatprep.subr.mxu1 %v10372_v60  ;;  %v10418_v47 = vld [vmem:[#allocation115_spill] sm:$0xff] }
 0x614   :  { %v3134_v26 = vadd.f32 0.5, %v3133_v61  ;;  %v3137_v18 = vmul.f32 0.5, %v4685_v63  ;;  %3469 = vmatpush1.msra.mxu0 %v10373_v36  ;;  %3540 = vmatpush1.msra.mxu1 %v10374_v49  ;;  %v4687_v5 = vpop.eup %4686  ;;  %v10415_v61 = vld [vmem:[#allocation112_spill] sm:$0xff]  ;;  %v10417_v63 = vld [vmem:[#allocation114_spill] sm:$0xff]  ;;  %v10422_v49 = vld [vmem:[#allocation119_spill] sm:$0xff] }
 0x615   :  { %3470 = vmatprep.subr.mxu0 %v10375_v62  ;;  %3541 = vmatprep.subr.mxu1 %v10376_v31  ;;  %v4689_v0 = vpop.eup %4688  ;;  %v10421_v36 = vld [vmem:[#allocation118_spill] sm:$0xff]  ;;  %v10423_v62 = vld [vmem:[#allocation120_spill] sm:$0xff]  ;;  %v10424_v31 = vld [vmem:[#allocation121_spill] sm:$0xff] }
 0x616   :  { %v3138_v35 = vadd.f32 0.5, %v3137_v18  ;;  %3471 = vmatpush1.msra.mxu0 %v10377_v30  ;;  %3542 = vmatpush1.msra.mxu1 %v10378_v53  ;;  %v3145_v17 = vmul.f32 %v4687_v5, %v3134_v26  ;;  %v3142_v22 = vmul.f32 0.5, %v4689_v0  ;;  %v10419_v26 = vld [vmem:[#allocation116_spill] sm:$0xff]  ;;  %v10420_v18 = vld [vmem:[#allocation117_spill] sm:$0xff]  ;;  %v10426_v30 = vld [vmem:[#allocation123_spill] sm:$0xff] }
 0x617   :  { %3472 = vmatprep.subr.mxu0 %v10379_v27  ;;  %3543 = vmatprep.subr.mxu1 %v10380_v10  ;;  %v10427_v53 = vld [vmem:[#allocation124_spill] sm:$0xff]  ;;  %v10428_v5 = vld [vmem:[#allocation125_spill] sm:$0xff]  ;;  %v10429_v27 = vld [vmem:[#allocation126_spill] sm:$0xff] }
 0x618   :  { %v3144_v25 = vmul.f32 %v3138_v35, %v10381_v21  ;;  %3473 = vmatpush1.msra.mxu0 %v10382_v1  ;;  %3544 = vmatpush1.msra.mxu1 %v10383_v14  ;;  %v3143_v45 = vadd.f32 0.5, %v3142_v22  ;;  %v10425_v35 = vld [vmem:[#allocation122_spill] sm:$0xff]  ;;  %v10430_v10 = vld [vmem:[#allocation127_spill] sm:$0xff]  ;;  %v10431_v21 = vld [vmem:[#allocation128_spill] sm:$0xff] }
 0x619   :  { %3474 = vmatprep.subr.mxu0 %v10384_v24  ;;  %3545 = vmatprep.subr.mxu1 %v10385_v11  ;;  %v10434_v1 = vld [vmem:[#allocation131_spill] sm:$0xff]  ;;  %v10435_v14 = vld [vmem:[#allocation132_spill] sm:$0xff]  ;;  %v10436_v24 = vld [vmem:[#allocation133_spill] sm:$0xff] }
 0x61a   :  { %v8258_v8 = vadd.f32 %v3145_v17, %v3144_v25  ;;  %3475 = vmatpush1.msra.mxu0 %v10386_v41  ;;  %3546 = vmatpush1.msra.mxu1 %v10387_v28  ;;  %v10432_v25 = vld [vmem:[#allocation129_spill] sm:$0xff]  ;;  %v10433_v17 = vld [vmem:[#allocation130_spill] sm:$0xff]  ;;  %v10438_v41 = vld [vmem:[#allocation135_spill] sm:$0xff] }
 0x61b   :  { %3476 = vmatprep.subr.mxu0 %v10388_v43  ;;  %3547 = vmatprep.subr.mxu1 %v10389_v32  ;;  %v10437_v11 = vld [vmem:[#allocation134_spill] sm:$0xff]  ;;  %v10439_v28 = vld [vmem:[#allocation136_spill] sm:$0xff]  ;;  %v10440_v43 = vld [vmem:[#allocation137_spill] sm:$0xff] }
 0x61c   :  { %4690 = vtanh.f32 %v8258_v8  ;;  %3477 = vmatpush1.msra.mxu0 %v10390_v34  ;;  %3548 = vmatpush1.msra.mxu1 %v10391_v50  ;;  %v10441_v32 = vld [vmem:[#allocation138_spill] sm:$0xff]  ;;  %v10442_v34 = vld [vmem:[#allocation139_spill] sm:$0xff]  ;;  %v10443_v50 = vld [vmem:[#allocation140_spill] sm:$0xff] }
 0x61d   :  { %3478 = vmatprep.subr.mxu0 %v10392_v6  ;;  %3549 = vmatprep.subr.mxu1 %v10393_v38  ;;  %v10444_v6 = vld [vmem:[#allocation141_spill] sm:$0xff]  ;;  %v10445_v38 = vld [vmem:[#allocation142_spill] sm:$0xff]  ;;  %v10459_v22 = vld [vmem:[#allocation156_spill] sm:$0xff] }
 0x61e   :  { %3479 = vmatpush1.msra.mxu0 %v10394_v52  ;;  %3550 = vmatpush1.msra.mxu1 %v10395_v19  ;;  %v10446_v52 = vld [vmem:[#allocation143_spill] sm:$0xff]  ;;  %v10447_v19 = vld [vmem:[#allocation144_spill] sm:$0xff]  ;;  %v10452_v0 = vld [vmem:[#allocation149_spill] sm:$0xff] }
 0x61f   :  { %3480 = vmatprep.subr.mxu0 %v10396_v55  ;;  %3551 = vmatprep.subr.mxu1 %v10397_v56  ;;  %v10448_v55 = vld [vmem:[#allocation145_spill] sm:$0xff]  ;;  %v10449_v56 = vld [vmem:[#allocation146_spill] sm:$0xff] }
 0x620   :  { %3481 = vmatpush1.msra.mxu0 %v10398_v51  ;;  %3552 = vmatpush1.msra.mxu1 %v10399_v23  ;;  %v10450_v51 = vld [vmem:[#allocation147_spill] sm:$0xff]  ;;  %v10451_v23 = vld [vmem:[#allocation148_spill] sm:$0xff] }
 0x621   :  { %3482 = vmatprep.subr.mxu0 %v10400_v44  ;;  %3553 = vmatprep.subr.mxu1 %v10401_v39  ;;  %v10453_v44 = vld [vmem:[#allocation150_spill] sm:$0xff]  ;;  %v10454_v39 = vld [vmem:[#allocation151_spill] sm:$0xff] }
 0x622   :  { %3483 = vmatpush1.msra.mxu0 %v10402_v4  ;;  %3554 = vmatpush1.msra.mxu1 %v10403_v42  ;;  %v10455_v4 = vld [vmem:[#allocation152_spill] sm:$0xff]  ;;  %v10456_v42 = vld [vmem:[#allocation153_spill] sm:$0xff] }
 0x623   :  { %3484 = vmatprep.subr.mxu0 %v10404_v7  ;;  %3555 = vmatprep.subr.mxu1 %v10405_v40  ;;  %v10457_v7 = vld [vmem:[#allocation154_spill] sm:$0xff]  ;;  %v10458_v40 = vld [vmem:[#allocation155_spill] sm:$0xff] }
 0x624   :  { %3485 = vmatpush1.msra.mxu0 %v10406_v3  ;;  %3556 = vmatpush1.msra.mxu1 %v10407_v59  ;;  %v10460_v3 = vld [vmem:[#allocation157_spill] sm:$0xff]  ;;  %v10461_v59 = vld [vmem:[#allocation158_spill] sm:$0xff] }
 0x625   :  { %3486 = vmatprep.subr.mxu0 %v10408_v29  ;;  %3557 = vmatprep.subr.mxu1 %v10409_v37  ;;  %v10462_v29 = vld [vmem:[#allocation159_spill] sm:$0xff]  ;;  %v10463_v37 = vld [vmem:[#allocation160_spill] sm:$0xff] }
 0x626   :  { %3487 = vmatpush1.msra.mxu0 %v10410_v46  ;;  %3558 = vmatpush1.msra.mxu1 %v10411_v58  ;;  %v10464_v46 = vld [vmem:[#allocation161_spill] sm:$0xff]  ;;  %v10465_v58 = vld [vmem:[#allocation162_spill] sm:$0xff] }
 0x627   :  { %3488 = vmatprep.subr.mxu0 %v10412_v13  ;;  %3559 = vmatprep.subr.mxu1 %v10413_v12  ;;  %v10466_v13 = vld [vmem:[#allocation163_spill] sm:$0xff]  ;;  %v10467_v12 = vld [vmem:[#allocation164_spill] sm:$0xff] }
 0x628   :  { %3489 = vmatpush1.msra.mxu0 %v10414_v54  ;;  %3560 = vmatpush1.msra.mxu1 %v10415_v61  ;;  %v10469_v54 = vld [vmem:[#allocation166_spill] sm:$0xff]  ;;  %v10470_v61 = vld [vmem:[#allocation167_spill] sm:$0xff] }
 0x629   :  { %v4691_v57 = vpop.eup %4690  ;;  %3490 = vmatprep.subr.mxu0 %v10416_v33  ;;  %3561 = vmatprep.subr.mxu1 %v10417_v63  ;;  %v10472_v33 = vld [vmem:[#allocation169_spill] sm:$0xff]  ;;  %v10473_v63 = vld [vmem:[#allocation170_spill] sm:$0xff] }
 0x62a   :  { %3491 = vmatpush1.msra.mxu0 %v10418_v47  ;;  %3524 = vmatprep.mubr.f32.mxu0 %v10352_v16  ;;  %v3148_v60 = vmul.f32 %v4691_v57, %v3143_v45  ;;  %v10468_v45 = vld [vmem:[#allocation165_spill] sm:$0xff]  ;;  %v10471_v57 = vld [vmem:[#allocation168_spill] sm:$0xff]  ;;  %v10474_v47 = vld [vmem:[#allocation171_spill] sm:$0xff] }
 0x62b   :  { %3562 = vmatpush1.msra.mxu1 %v10419_v26  ;;  %3595 = vmatprep.mubr.f32.mxu1 %v10352_v16  ;;  %v10476_v26 = vld [vmem:[#allocation173_spill] sm:$0xff] }
 0x62c   :  { %3525 = vmatmul.mubr.f32.vlgmr.msra.gmra.mxu0 %v3148_v60  ;;  %3596 = vmatmul.mubr.f32.vlgmr.msra.gmra.mxu1 %v3148_v60  ;;  %v10475_v60 = vld [vmem:[#allocation172_spill] sm:$0xff] }
 0x62d   :  { %3629 = vmatprep.subr.mxu0 %v10420_v18  ;;  %3700 = vmatprep.subr.mxu1 %v10421_v36  ;;  %v10477_v18 = vld [vmem:[#allocation174_spill] sm:$0xff]  ;;  %v10478_v36 = vld [vmem:[#allocation175_spill] sm:$0xff] }
 0x62e   :  { %3630 = vmatpush1.msra.mxu0 %v10422_v49  ;;  %3701 = vmatpush1.msra.mxu1 %v10423_v62  ;;  %v10479_v49 = vld [vmem:[#allocation176_spill] sm:$0xff]  ;;  %v10480_v62 = vld [vmem:[#allocation177_spill] sm:$0xff] }
 0x62f   :  { %3631 = vmatprep.subr.mxu0 %v10424_v31  ;;  %3702 = vmatprep.subr.mxu1 %v10425_v35  ;;  %v10481_v31 = vld [vmem:[#allocation178_spill] sm:$0xff]  ;;  %v10482_v35 = vld [vmem:[#allocation179_spill] sm:$0xff] }
 0x630   :  { %3632 = vmatpush1.msra.mxu0 %v10426_v30  ;;  %3703 = vmatpush1.msra.mxu1 %v10427_v53  ;;  %v5189_v30 = vld [vmem:[#allocation4 + $0x10] sm:$0xff]  ;;  %v8362_v53 = vld [vmem:[#allocation6 + $0x1e8] sm:$0xff] }
 0x631   :  { %3633 = vmatprep.subr.mxu0 %v10428_v5  ;;  %3704 = vmatprep.subr.mxu1 %v10429_v27  ;;  %v8365_v5 = vld [vmem:[#allocation6 + $0x1f8] sm:$0xff] }
 0x632   :  { %3634 = vmatpush1.msra.mxu0 %v10430_v10  ;;  %3705 = vmatpush1.msra.mxu1 %v10431_v21  ;;  %v10483_v10 = vld [vmem:[#allocation27_spill] sm:$0xff] }
 0x633   :  { %3635 = vmatprep.subr.mxu0 %v10432_v25  ;;  %3706 = vmatprep.subr.mxu1 %v10433_v17 }
 0x634   :  { %3636 = vmatpush1.msra.mxu0 %v10434_v1  ;;  %3707 = vmatpush1.msra.mxu1 %v10435_v14  ;;  %v10484_v14 = vld [vmem:[#allocation29_spill] sm:$0xff] }
 0x635   :  { %3637 = vmatprep.subr.mxu0 %v10436_v24  ;;  %3708 = vmatprep.subr.mxu1 %v10437_v11  ;;  %v10485_v11 = vld [vmem:[#allocation28_spill] sm:$0xff] }
 0x636   :  { %3638 = vmatpush1.msra.mxu0 %v10438_v41  ;;  %3709 = vmatpush1.msra.mxu1 %v10439_v28 }
 0x637   :  { %3639 = vmatprep.subr.mxu0 %v10440_v43  ;;  %3710 = vmatprep.subr.mxu1 %v10441_v32  ;;  %v10486_v32 = vld [vmem:[#allocation30_spill] sm:$0xff] }
 0x638   :  { %3640 = vmatpush1.msra.mxu0 %v10442_v34  ;;  %3711 = vmatpush1.msra.mxu1 %v10443_v50 }
 0x639   :  { %3641 = vmatprep.subr.mxu0 %v10444_v6  ;;  %3712 = vmatprep.subr.mxu1 %v10445_v38 }
 0x63a   :  { %3642 = vmatpush1.msra.mxu0 %v10446_v52  ;;  %3713 = vmatpush1.msra.mxu1 %v10447_v19 }
 0x63b   :  { %3643 = vmatprep.subr.mxu0 %v10448_v55  ;;  %3714 = vmatprep.subr.mxu1 %v10449_v56 }
 0x63c   :  { %3644 = vmatpush1.msra.mxu0 %v10450_v51  ;;  %3715 = vmatpush1.msra.mxu1 %v10451_v23 }
 0x63d   :  { %3645 = vmatprep.subr.mxu0 %v10452_v0  ;;  %3716 = vmatprep.subr.mxu1 %v10453_v44 }
 0x63e   :  { %3646 = vmatpush1.msra.mxu0 %v10454_v39  ;;  %3717 = vmatpush1.msra.mxu1 %v10455_v4 }
 0x63f   :  { %3647 = vmatprep.subr.mxu0 %v10456_v42  ;;  %3718 = vmatprep.subr.mxu1 %v10457_v7 }
 0x640   :  { %3648 = vmatpush1.msra.mxu0 %v10458_v40  ;;  %3719 = vmatpush1.msra.mxu1 %v10459_v22  ;;  %v8380_v22 = vld [vmem:[#allocation6 + $0x1e0] sm:$0xff] }
 0x641   :  { %3649 = vmatprep.subr.mxu0 %v10460_v3  ;;  %3720 = vmatprep.subr.mxu1 %v10461_v59  ;;  %v8383_v3 = vld [vmem:[#allocation6 + $0x1f0] sm:$0xff]  ;;  %v8389_v59 = vld [vmem:[#allocation6 + $0x1d8] sm:$0xff] }
 0x642   :  { %3650 = vmatpush1.msra.mxu0 %v10462_v29  ;;  %3721 = vmatpush1.msra.mxu1 %v10463_v37  ;;  %v8392_v29 = vld [vmem:[#allocation6 + $0x1c0] sm:$0xff]  ;;  %v8395_v37 = vld [vmem:[#allocation6 + $0x1d0] sm:$0xff] }
 0x643   :  { %3651 = vmatprep.subr.mxu0 %v10464_v46  ;;  %3722 = vmatprep.subr.mxu1 %v10465_v58  ;;  %v8398_v46 = vld [vmem:[#allocation6 + $0x1a8] sm:$0xff]  ;;  %v8401_v58 = vld [vmem:[#allocation6 + $0x1b8] sm:$0xff] }
 0x644   :  { %3652 = vmatpush1.msra.mxu0 %v10466_v13  ;;  %3723 = vmatpush1.msra.mxu1 %v10467_v12  ;;  %v8404_v13 = vld [vmem:[#allocation6 + $0x1a0] sm:$0xff]  ;;  %v8407_v12 = vld [vmem:[#allocation6 + $0x1b0] sm:$0xff] }
 0x645   :  { %3653 = vmatprep.subr.mxu0 %v10468_v45  ;;  %3724 = vmatprep.subr.mxu1 %v10469_v54  ;;  %v8410_v45 = vld [vmem:[#allocation6 + $0x188] sm:$0xff]  ;;  %v8413_v54 = vld [vmem:[#allocation6 + $0x198] sm:$0xff] }
 0x646   :  { %3654 = vmatpush1.msra.mxu0 %v10470_v61  ;;  %3725 = vmatpush1.msra.mxu1 %v10471_v57  ;;  %v8416_v61 = vld [vmem:[#allocation6 + $0x180] sm:$0xff]  ;;  %v8419_v57 = vld [vmem:[#allocation6 + $0x190] sm:$0xff] }
 0x647   :  { %3655 = vmatprep.subr.mxu0 %v10472_v33  ;;  %3726 = vmatprep.subr.mxu1 %v10473_v63  ;;  %v8422_v33 = vld [vmem:[#allocation6 + $0x168] sm:$0xff]  ;;  %v8425_v63 = vld [vmem:[#allocation6 + $0x178] sm:$0xff] }
 0x648   :  { %3656 = vmatpush1.msra.mxu0 %v10474_v47  ;;  %3727 = vmatpush1.msra.mxu1 %v10475_v60  ;;  %v8428_v47 = vld [vmem:[#allocation6 + $0x160] sm:$0xff]  ;;  %v8431_v60 = vld [vmem:[#allocation6 + $0x170] sm:$0xff] }
 0x649   :  { %3657 = vmatprep.subr.mxu0 %v10476_v26  ;;  %3728 = vmatprep.subr.mxu1 %v10477_v18  ;;  %v8434_v26 = vld [vmem:[#allocation6 + $0x148] sm:$0xff]  ;;  %v8437_v18 = vld [vmem:[#allocation6 + $0x158] sm:$0xff] }
 0x64a   :  { %3658 = vmatpush1.msra.mxu0 %v10478_v36  ;;  %3729 = vmatpush1.msra.mxu1 %v10479_v49  ;;  %v8440_v36 = vld [vmem:[#allocation6 + $0x140] sm:$0xff]  ;;  %v8443_v49 = vld [vmem:[#allocation6 + $0x150] sm:$0xff] }
 0x64b   :  { %3659 = vmatprep.subr.mxu0 %v10480_v62  ;;  %3730 = vmatprep.subr.mxu1 %v10481_v31  ;;  %v8446_v62 = vld [vmem:[#allocation6 + $0x128] sm:$0xff]  ;;  %v8449_v31 = vld [vmem:[#allocation6 + $0x138] sm:$0xff] }
 0x64c   :  { %3660 = vmatpush1.msra.mxu0 %v10482_v35  ;;  %3731 = vmatpush1.msra.mxu1 %v5189_v30  ;;  %v8452_v35 = vld [vmem:[#allocation6 + $0x120] sm:$0xff]  ;;  %v8455_v30 = vld [vmem:[#allocation6 + $0x130] sm:$0xff] }
 0x64d   :  { %3693 = vmatprep.mubr.f32.mxu0 %v10352_v16  ;;  %3764 = vmatprep.mubr.f32.mxu1 %v10352_v16 }
 0x64e   :  { %3793 = vmatprep.subr.mxu0 %v8362_v53  ;;  %3864 = vmatprep.subr.mxu1 %v8365_v5 }
 0x6a9   :  { %v3220_v27 = vpop.f32.mrf.mxu0  ;;  %v3291_v25 = vpop.f32.mrf.mxu1 }
 0x6aa   :  { %v3296_v21 = vadd.f32 %v3220_v27, %v10483_v10  ;;  %v3298_v41 = vadd.f32 %v3291_v25, %v10485_v11  ;;  %v8458_v27 = vld [vmem:[#allocation6 + $0x108] sm:$0xff]  ;;  %v8461_v10 = vld [vmem:[#allocation6 + $0x118] sm:$0xff]  ;;  %v8467_v25 = vld [vmem:[#allocation6 + $0x110] sm:$0xff] }
 0x6ab   :  { %v3222_v17 = vpop.f32.mrf.mxu0  ;;  %v3293_v43 = vpop.f32.mrf.mxu1  ;;  %v8479_v11 = vld [vmem:[#allocation6 + $0xf0] sm:$0xff] }
 0x6ac   :  { %v3300_v1 = vmul.f32 0.5, %v3296_v21  ;;  %v3297_v24 = vadd.f32 %v3222_v17, %v10484_v14  ;;  %v3299_v34 = vadd.f32 %v3293_v43, %v10486_v32  ;;  %v8464_v21 = vld [vmem:[#allocation6 + $0x100] sm:$0xff]  ;;  %v8473_v14 = vld [vmem:[#allocation6 + $0xf8] sm:$0xff]  ;;  %v8491_v32 = vld [vmem:[#allocation6 + $0xd0] sm:$0xff] }
 0x6ad   :  { %v8488_v43 = vld [vmem:[#allocation6 + $0xc0] sm:$0xff] }
 0x6ae   :  { %4692 = vtanh.f32 %v3300_v1  ;;  %v3304_v28 = vmul.f32 0.5, %v3297_v24  ;;  %v3309_v50 = vmul.f32 0.5, %v3299_v34  ;;  %v8470_v1 = vld [vmem:[#allocation6 + $0xe8] sm:$0xff]  ;;  %v8476_v24 = vld [vmem:[#allocation6 + $0xe0] sm:$0xff] }
 0x6b0   :  { %4694 = vtanh.f32 %v3304_v28  ;;  %v8485_v28 = vld [vmem:[#allocation6 + $0xd8] sm:$0xff] }
 0x6b1   :  { %4696 = vtanh.f32 %v3298_v41  ;;  %v8482_v41 = vld [vmem:[#allocation6 + $0xc8] sm:$0xff] }
 0x6b2   :  { %4698 = vtanh.f32 %v3309_v50 }
 0x6bb   :  { %v4693_v6 = vpop.eup %4692 }
 0x6bc   :  { %v3302_v38 = vmul.f32 0.5, %v4693_v6  ;;  %v8494_v6 = vld [vmem:[#allocation6 + $0xa8] sm:$0xff] }
 0x6bd   :  { %v4695_v52 = vpop.eup %4694 }
 0x6be   :  { %v3303_v19 = vadd.f32 0.5, %v3302_v38  ;;  %v3306_v55 = vmul.f32 0.5, %v4695_v52  ;;  %v4697_v56 = vpop.eup %4696  ;;  %v8497_v38 = vld [vmem:[#allocation6 + $0xb8] sm:$0xff] }
 0x6bf   :  { %v4699_v39 = vpop.eup %4698 }
 0x6c0   :  { %v3307_v51 = vadd.f32 0.5, %v3306_v55  ;;  %v3314_v23 = vmul.f32 %v4697_v56, %v3303_v19  ;;  %v3311_v4 = vmul.f32 0.5, %v4699_v39  ;;  %v8501_v19 = vld [vmem:[#allocation6 + $0xa0] sm:$0xff]  ;;  %v8504_v55 = vld [vmem:[#allocation6 + $0xb0] sm:$0xff] }
 0x6c2   :  { %v3313_v0 = vmul.f32 %v3307_v51, %v8150_v48  ;;  %v3312_v42 = vadd.f32 0.5, %v3311_v4  ;;  %v8386_v48 = vld [vmem:[#allocation6 + $0x1c8] sm:$0xff]  ;;  %v8514_v4 = vld [vmem:[#allocation6 + $0x80] sm:$0xff] }
 0x6c3   :  { %v8507_v51 = vld [vmem:[#allocation6 + $0x88] sm:$0xff]  ;;  %10488 = vst [vmem:[#allocation181_spill] sm:$0xff] %v8514_v4 }
 0x6c4   :  { %v8373_v44 = vadd.f32 %v3314_v23, %v3313_v0  ;;  %v8510_v23 = vld [vmem:[#allocation6 + $0x98] sm:$0xff] }
 0x6c6   :  { %10487 = vst [vmem:[#allocation180_spill] sm:$0xff] %v8373_v44  ;;  %4700 = vtanh.f32 %v8373_v44  ;;  %v8523_v44 = vld [vmem:[#allocation6 + $0x78] sm:$0xff] }
 0x6ca   :  { %v3384_v17 = vpop.f32.mrf.mxu0  ;;  %v3455_v34 = vpop.f32.mrf.mxu1 }
 0x6cb   :  { %v3385_v52 = vadd.f32 %v3384_v17, %v6528_v20  ;;  %v8520_v20 = vld [vmem:[#allocation6 + $0x68] sm:$0xff] }
 0x6cc   :  { %v3386_v50 = vpop.f32.mrf.mxu0  ;;  %10490 = vst [vmem:[#allocation13_spill] sm:$0xff] %v8520_v20 }
 0x6cd   :  { %v3387_v0 = vadd.f32 %v3386_v50, %v10334_v15  ;;  %v8529_v15 = vld [vmem:[#allocation6 + $0x70] sm:$0xff] }
 0x6ce   :  { %10492 = vst [vmem:[#allocation19_spill] sm:$0xff] %v8529_v15 }
 0x6d3   :  { %v4701_v7 = vpop.eup %4700 }
 0x6d4   :  { %v8376_v40 = vmul.f32 %v4701_v7, %v3312_v42  ;;  %v8517_v42 = vld [vmem:[#allocation6 + $0x90] sm:$0xff]  ;;  %v3457_v7 = vpop.f32.mrf.mxu1 }
 0x6d5   :  { %10489 = vst [vmem:[#allocation11_spill] sm:$0xff] %v8517_v42 }
 0x6d6   :  { %3694 = vmatmul.mubr.f32.vlgmr.msra.gmra.mxu0 %v8376_v40  ;;  %3765 = vmatmul.mubr.f32.vlgmr.msra.gmra.mxu1 %v8376_v40 }
 0x6d7   :  { %3794 = vmatpush1.msra.mxu0 %v8380_v22  ;;  %3865 = vmatpush1.msra.mxu1 %v8383_v3 }
 0x6d8   :  { %3795 = vmatprep.subr.mxu0 %v8386_v48  ;;  %3866 = vmatprep.subr.mxu1 %v8389_v59 }
 0x6d9   :  { %3796 = vmatpush1.msra.mxu0 %v8392_v29  ;;  %3867 = vmatpush1.msra.mxu1 %v8395_v37 }
 0x6da   :  { %3797 = vmatprep.subr.mxu0 %v8398_v46  ;;  %3868 = vmatprep.subr.mxu1 %v8401_v58 }
 0x6db   :  { %3798 = vmatpush1.msra.mxu0 %v8404_v13  ;;  %3869 = vmatpush1.msra.mxu1 %v8407_v12 }
 0x6dc   :  { %3799 = vmatprep.subr.mxu0 %v8410_v45  ;;  %3870 = vmatprep.subr.mxu1 %v8413_v54 }
 0x6dd   :  { %3800 = vmatpush1.msra.mxu0 %v8416_v61  ;;  %3871 = vmatpush1.msra.mxu1 %v8419_v57 }
 0x6de   :  { %3801 = vmatprep.subr.mxu0 %v8422_v33  ;;  %3872 = vmatprep.subr.mxu1 %v8425_v63 }
 0x6df   :  { %3802 = vmatpush1.msra.mxu0 %v8428_v47  ;;  %3873 = vmatpush1.msra.mxu1 %v8431_v60 }
 0x6e0   :  { %3803 = vmatprep.subr.mxu0 %v8434_v26  ;;  %3874 = vmatprep.subr.mxu1 %v8437_v18 }
 0x6e1   :  { %3804 = vmatpush1.msra.mxu0 %v8440_v36  ;;  %3875 = vmatpush1.msra.mxu1 %v8443_v49 }
 0x6e2   :  { %3805 = vmatprep.subr.mxu0 %v8446_v62  ;;  %3876 = vmatprep.subr.mxu1 %v8449_v31 }
 0x6e3   :  { %3806 = vmatpush1.msra.mxu0 %v8452_v35  ;;  %3877 = vmatpush1.msra.mxu1 %v8455_v30 }
 0x6e4   :  { %3807 = vmatprep.subr.mxu0 %v8458_v27  ;;  %3878 = vmatprep.subr.mxu1 %v8461_v10 }
 0x6e5   :  { %3808 = vmatpush1.msra.mxu0 %v8464_v21  ;;  %3879 = vmatpush1.msra.mxu1 %v8467_v25 }
 0x6e6   :  { %3809 = vmatprep.subr.mxu0 %v8470_v1  ;;  %3880 = vmatprep.subr.mxu1 %v8473_v14 }
 0x6e7   :  { %3810 = vmatpush1.msra.mxu0 %v8476_v24  ;;  %3881 = vmatpush1.msra.mxu1 %v8479_v11 }
 0x6e8   :  { %3811 = vmatprep.subr.mxu0 %v8482_v41  ;;  %3882 = vmatprep.subr.mxu1 %v8485_v28 }
 0x6e9   :  { %3812 = vmatpush1.msra.mxu0 %v8488_v43  ;;  %3883 = vmatpush1.msra.mxu1 %v8491_v32 }
 0x6ea   :  { %3813 = vmatprep.subr.mxu0 %v8494_v6  ;;  %3884 = vmatprep.subr.mxu1 %v8497_v38 }
 0x6eb   :  { %3814 = vmatpush1.msra.mxu0 %v8501_v19  ;;  %3885 = vmatpush1.msra.mxu1 %v8504_v55 }
 0x6ec   :  { %v3526_v56 = vpop.f32.mrf.mxu0  ;;  %3815 = vmatprep.subr.mxu0 %v8507_v51  ;;  %3886 = vmatprep.subr.mxu1 %v8510_v23 }
 0x6ed   :  { %v3602_v39 = vadd.f32 %v3526_v56, %v3385_v52  ;;  %3816 = vmatpush1.msra.mxu0 %v8514_v4  ;;  %3887 = vmatpush1.msra.mxu1 %v8517_v42  ;;  %v8526_v56 = vld [vmem:[#allocation6 + $0x60] sm:$0xff]  ;;  %v3597_v42 = vpop.f32.mrf.mxu1  ;;  %v8532_v4 = vld [vmem:[#allocation6 + $0x48] sm:$0xff] }
 0x6ee   :  { %v3528_v17 = vpop.f32.mrf.mxu0  ;;  %3817 = vmatprep.subr.mxu0 %v8520_v20  ;;  %3888 = vmatprep.subr.mxu1 %v8523_v44  ;;  %10491 = vst [vmem:[#allocation12_spill] sm:$0xff] %v8526_v56  ;;  %10493 = vst [vmem:[#allocation21_spill] sm:$0xff] %v8532_v4  ;;  %v8535_v20 = vld [vmem:[#allocation6 + $0x58] sm:$0xff] }
 0x6ef   :  { %v3606_v50 = vmul.f32 0.5, %v3602_v39  ;;  %v3603_v52 = vadd.f32 %v3528_v17, %v3387_v0  ;;  %3818 = vmatpush1.msra.mxu0 %v8526_v56  ;;  %3889 = vmatpush1.msra.mxu1 %v8529_v15  ;;  %10494 = vst [vmem:[#allocation20_spill] sm:$0xff] %v8535_v20  ;;  %v3456_v39 = vadd.f32 %v3455_v34, %v10342_v9  ;;  %v8539_v17 = vld [vmem:[#allocation6 + $0x40] sm:$0xff]  ;;  %v8542_v56 = vld [vmem:[#allocation6 + $0x50] sm:$0xff]  ;;  %v8545_v15 = vld [vmem:[#allocation6 + $0x28] sm:$0xff] }
 0x6f0   :  { %3819 = vmatprep.subr.mxu0 %v8532_v4  ;;  %3890 = vmatprep.subr.mxu1 %v8535_v20  ;;  %10495 = vst [vmem:[#allocation22_spill] sm:$0xff] %v8545_v15  ;;  %v8548_v4 = vld [vmem:[#allocation6 + $0x38] sm:$0xff]  ;;  %v8551_v34 = vld [vmem:[#allocation6 + $0x20] sm:$0xff] }
 0x6f1   :  { %4702 = vtanh.f32 %v3606_v50  ;;  %v3610_v0 = vmul.f32 0.5, %v3603_v52  ;;  %3820 = vmatpush1.msra.mxu0 %v8539_v17  ;;  %3891 = vmatpush1.msra.mxu1 %v8542_v56  ;;  %v3604_v20 = vadd.f32 %v3597_v42, %v3456_v39  ;;  %v8554_v50 = vld [vmem:[#allocation6 + $0x30] sm:$0xff]  ;;  %v8557_v52 = vld [vmem:[#allocation6 + $0x8] sm:$0xff]  ;;  %v8560_v9 = vld [vmem:[#allocation6 + $0x18] sm:$0xff]  ;;  %v3599_v42 = vpop.f32.mrf.mxu1 }
 0x6f2   :  { %3821 = vmatprep.subr.mxu0 %v8545_v15  ;;  %3892 = vmatprep.subr.mxu1 %v8548_v4  ;;  %10496 = vst [vmem:[#allocation23_spill] sm:$0xff] %v8554_v50  ;;  %10497 = vst [vmem:[#allocation25_spill] sm:$0xff] %v8557_v52  ;;  %v8563_v15 = vld [vmem:[#allocation6] sm:$0xff]  ;;  %v8567_v39 = vld [vmem:[#allocation6 + $0x10] sm:$0xff] }
 0x6f3   :  { %4704 = vtanh.f32 %v3610_v0  ;;  %3822 = vmatpush1.msra.mxu0 %v8551_v34  ;;  %3893 = vmatpush1.msra.mxu1 %v8554_v50  ;;  %10498 = vst [vmem:[#allocation24_spill] sm:$0xff] %v8560_v9  ;;  %10499 = vst [vmem:[#allocation26_spill] sm:$0xff] %v8563_v15  ;;  %v3458_v0 = vadd.f32 %v3457_v7, %v10354_v2  ;;  %v8580_v50 = vld [vmem:[#allocation8 + $0x1e0] sm:$0xff]  ;;  %v8601_v2 = vld [vmem:[#allocation8 + $0x1b8] sm:$0xff] }
 0x6f4   :  { %3823 = vmatprep.subr.mxu0 %v8557_v52  ;;  %3894 = vmatprep.subr.mxu1 %v8560_v9  ;;  %10500 = vst [vmem:[#allocation14_spill] sm:$0xff] %v8567_v39  ;;  %4706 = vtanh.f32 %v3604_v20  ;;  %v8574_v9 = vld [vmem:[#allocation8 + $0x1e8] sm:$0xff]  ;;  %10502 = vst [vmem:[#allocation17_spill] sm:$0xff] %v8580_v50  ;;  %v8592_v7 = vld [vmem:[#allocation8 + $0x1c0] sm:$0xff] }
 0x6f5   :  { %3824 = vmatpush1.msra.mxu0 %v8563_v15  ;;  %3857 = vmatprep.mubr.f32.mxu0 %v10352_v16  ;;  %v8577_v15 = vld [vmem:[#allocation8 + $0x1f8] sm:$0xff]  ;;  %v3605_v52 = vadd.f32 %v3599_v42, %v3458_v0  ;;  %v8586_v20 = vld [vmem:[#allocation8 + $0x1c8] sm:$0xff]  ;;  %10506 = vst [vmem:[#allocation38_spill] sm:$0xff] %v8592_v7  ;;  %v8595_v42 = vld [vmem:[#allocation8 + $0x1d0] sm:$0xff] }
 0x6f6   :  { %3895 = vmatpush1.msra.mxu1 %v8567_v39  ;;  %3928 = vmatprep.mubr.f32.mxu1 %v10352_v16  ;;  %10501 = vst [vmem:[#allocation15_spill] sm:$0xff] %v8577_v15  ;;  %v8583_v39 = vld [vmem:[#allocation8 + $0x1f0] sm:$0xff]  ;;  %10504 = vst [vmem:[#allocation18_spill] sm:$0xff] %v8586_v20  ;;  %v8598_v0 = vld [vmem:[#allocation8 + $0x1a8] sm:$0xff] }
 0x6f7   :  { %3858 = vmatmul.mubr.f32.vlgmr.msra.gmra.mxu0 %v8376_v40  ;;  %3929 = vmatmul.mubr.f32.vlgmr.msra.gmra.mxu1 %v8376_v40  ;;  %10503 = vst [vmem:[#allocation16_spill] sm:$0xff] %v8583_v39  ;;  %v8589_v40 = vld [vmem:[#allocation8 + $0x1d8] sm:$0xff]  ;;  %10507 = vst [vmem:[#allocation39_spill] sm:$0xff] %v8595_v42 }
 0x6f8   :  { %3935 = vmatprep.subr.mxu0 %v8574_v9  ;;  %4006 = vmatprep.subr.mxu1 %v8577_v15  ;;  %10505 = vst [vmem:[#allocation37_spill] sm:$0xff] %v8589_v40  ;;  %10508 = vst [vmem:[#allocation40_spill] sm:$0xff] %v8598_v0  ;;  %v8625_v15 = vld [vmem:[#allocation8 + $0x178] sm:$0xff] }
 0x6f9   :  { %3936 = vmatpush1.msra.mxu0 %v8580_v50  ;;  %4007 = vmatpush1.msra.mxu1 %v8583_v39  ;;  %10509 = vst [vmem:[#allocation41_spill] sm:$0xff] %v8601_v2  ;;  %v8604_v39 = vld [vmem:[#allocation8 + $0x1a0] sm:$0xff]  ;;  %v8610_v50 = vld [vmem:[#allocation8 + $0x188] sm:$0xff]  ;;  %10517 = vst [vmem:[#allocation49_spill] sm:$0xff] %v8625_v15 }
 0x6fa   :  { %3937 = vmatprep.subr.mxu0 %v8586_v20  ;;  %4008 = vmatprep.subr.mxu1 %v8589_v40  ;;  %v3615_v20 = vmul.f32 0.5, %v3605_v52  ;;  %10510 = vst [vmem:[#allocation42_spill] sm:$0xff] %v8604_v39  ;;  %v8607_v40 = vld [vmem:[#allocation8 + $0x1b0] sm:$0xff]  ;;  %10512 = vst [vmem:[#allocation44_spill] sm:$0xff] %v8610_v50 }
 0x6fb   :  { %3938 = vmatpush1.msra.mxu0 %v8592_v7  ;;  %4009 = vmatpush1.msra.mxu1 %v8595_v42  ;;  %10511 = vst [vmem:[#allocation43_spill] sm:$0xff] %v8607_v40  ;;  %v8613_v42 = vld [vmem:[#allocation8 + $0x198] sm:$0xff]  ;;  %v8619_v52 = vld [vmem:[#allocation8 + $0x190] sm:$0xff] }
 0x6fc   :  { %3939 = vmatprep.subr.mxu0 %v8598_v0  ;;  %4010 = vmatprep.subr.mxu1 %v8601_v2  ;;  %10513 = vst [vmem:[#allocation45_spill] sm:$0xff] %v8613_v42  ;;  %v8616_v2 = vld [vmem:[#allocation8 + $0x180] sm:$0xff]  ;;  %10515 = vst [vmem:[#allocation47_spill] sm:$0xff] %v8619_v52  ;;  %4708 = vtanh.f32 %v3615_v20 }
 0x6fd   :  { %3940 = vmatpush1.msra.mxu0 %v8604_v39  ;;  %4011 = vmatpush1.msra.mxu1 %v8607_v40  ;;  %10514 = vst [vmem:[#allocation46_spill] sm:$0xff] %v8616_v2  ;;  %v8622_v40 = vld [vmem:[#allocation8 + $0x168] sm:$0xff] }
 0x6fe   :  { %v4703_v7 = vpop.eup %4702  ;;  %3941 = vmatprep.subr.mxu0 %v8610_v50  ;;  %4012 = vmatprep.subr.mxu1 %v8613_v42  ;;  %10516 = vst [vmem:[#allocation48_spill] sm:$0xff] %v8622_v40 }
 0x6ff   :  { %v3608_v0 = vmul.f32 0.5, %v4703_v7  ;;  %3942 = vmatpush1.msra.mxu0 %v8616_v2  ;;  %4013 = vmatpush1.msra.mxu1 %v8619_v52  ;;  %v8628_v7 = vld [vmem:[#allocation8 + $0x160] sm:$0xff]  ;;  %v8631_v2 = vld [vmem:[#allocation8 + $0x170] sm:$0xff]  ;;  %v8634_v52 = vld [vmem:[#allocation8 + $0x148] sm:$0xff] }
 0x700   :  { %v4705_v39 = vpop.eup %4704  ;;  %3943 = vmatprep.subr.mxu0 %v8622_v40  ;;  %4014 = vmatprep.subr.mxu1 %v8625_v15  ;;  %10518 = vst [vmem:[#allocation50_spill] sm:$0xff] %v8628_v7  ;;  %10519 = vst [vmem:[#allocation51_spill] sm:$0xff] %v8631_v2  ;;  %v8637_v40 = vld [vmem:[#allocation8 + $0x158] sm:$0xff] }
 0x701   :  { %v3609_v50 = vadd.f32 0.5, %v3608_v0  ;;  %v3612_v42 = vmul.f32 0.5, %v4705_v39  ;;  %3944 = vmatpush1.msra.mxu0 %v8628_v7  ;;  %4015 = vmatpush1.msra.mxu1 %v8631_v2  ;;  %10520 = vst [vmem:[#allocation52_spill] sm:$0xff] %v8634_v52  ;;  %10521 = vst [vmem:[#allocation53_spill] sm:$0xff] %v8637_v40  ;;  %v8640_v0 = vld [vmem:[#allocation8 + $0x140] sm:$0xff]  ;;  %v8643_v39 = vld [vmem:[#allocation8 + $0x150] sm:$0xff]  ;;  %v4707_v20 = vpop.eup %4706 }
 0x702   :  { %3945 = vmatprep.subr.mxu0 %v8634_v52  ;;  %4016 = vmatprep.subr.mxu1 %v8637_v40  ;;  %10522 = vst [vmem:[#allocation54_spill] sm:$0xff] %v8640_v0  ;;  %10523 = vst [vmem:[#allocation55_spill] sm:$0xff] %v8643_v39  ;;  %v8646_v7 = vld [vmem:[#allocation8 + $0x128] sm:$0xff]  ;;  %v8649_v2 = vld [vmem:[#allocation8 + $0x138] sm:$0xff] }
 0x703   :  { %v3613_v15 = vadd.f32 0.5, %v3612_v42  ;;  %3946 = vmatpush1.msra.mxu0 %v8640_v0  ;;  %4017 = vmatpush1.msra.mxu1 %v8643_v39  ;;  %10524 = vst [vmem:[#allocation56_spill] sm:$0xff] %v8646_v7  ;;  %10525 = vst [vmem:[#allocation57_spill] sm:$0xff] %v8649_v2  ;;  %v3620_v42 = vmul.f32 %v4707_v20, %v3609_v50  ;;  %v8653_v52 = vld [vmem:[#allocation8 + $0x120] sm:$0xff]  ;;  %v8656_v0 = vld [vmem:[#allocation8 + $0x130] sm:$0xff] }
 0x704   :  { %3947 = vmatprep.subr.mxu0 %v8646_v7  ;;  %4018 = vmatprep.subr.mxu1 %v8649_v2  ;;  %v8659_v39 = vld [vmem:[#allocation8 + $0x108] sm:$0xff]  ;;  %v8662_v7 = vld [vmem:[#allocation8 + $0x118] sm:$0xff] }
 0x705   :  { %v3619_v40 = vmul.f32 %v3613_v15, %v8258_v8  ;;  %3948 = vmatpush1.msra.mxu0 %v8653_v52  ;;  %4019 = vmatpush1.msra.mxu1 %v8656_v0  ;;  %10526 = vst [vmem:[#allocation58_spill] sm:$0xff] %v8659_v39  ;;  %10527 = vst [vmem:[#allocation59_spill] sm:$0xff] %v8662_v7  ;;  %v8667_v15 = vld [vmem:[#allocation8 + $0x100] sm:$0xff]  ;;  %v8670_v8 = vld [vmem:[#allocation8 + $0x110] sm:$0xff] }
 0x706   :  { %3949 = vmatprep.subr.mxu0 %v8659_v39  ;;  %4020 = vmatprep.subr.mxu1 %v8662_v7  ;;  %10529 = vst [vmem:[#allocation61_spill] sm:$0xff] %v8667_v15  ;;  %10530 = vst [vmem:[#allocation62_spill] sm:$0xff] %v8670_v8  ;;  %v8673_v50 = vld [vmem:[#allocation8 + $0xe8] sm:$0xff]  ;;  %v8676_v20 = vld [vmem:[#allocation8 + $0xf8] sm:$0xff] }
 0x707   :  { %v8665_v2 = vadd.f32 %v3620_v42, %v3619_v40  ;;  %3950 = vmatpush1.msra.mxu0 %v8667_v15  ;;  %4021 = vmatpush1.msra.mxu1 %v8670_v8  ;;  %10531 = vst [vmem:[#allocation63_spill] sm:$0xff] %v8673_v50  ;;  %10532 = vst [vmem:[#allocation64_spill] sm:$0xff] %v8676_v20  ;;  %v8680_v40 = vld [vmem:[#allocation8 + $0xe0] sm:$0xff]  ;;  %v8683_v42 = vld [vmem:[#allocation8 + $0xf0] sm:$0xff] }
 0x708   :  { %3951 = vmatprep.subr.mxu0 %v8673_v50  ;;  %4022 = vmatprep.subr.mxu1 %v8676_v20  ;;  %10533 = vst [vmem:[#allocation65_spill] sm:$0xff] %v8680_v40  ;;  %10534 = vst [vmem:[#allocation66_spill] sm:$0xff] %v8683_v42  ;;  %v8686_v15 = vld [vmem:[#allocation8 + $0xc8] sm:$0xff]  ;;  %v8689_v8 = vld [vmem:[#allocation8 + $0xd8] sm:$0xff] }
 0x709   :  { %10528 = vst [vmem:[#allocation60_spill] sm:$0xff] %v8665_v2  ;;  %4710 = vtanh.f32 %v8665_v2  ;;  %3952 = vmatpush1.msra.mxu0 %v8680_v40  ;;  %4023 = vmatpush1.msra.mxu1 %v8683_v42  ;;  %10535 = vst [vmem:[#allocation67_spill] sm:$0xff] %v8686_v15  ;;  %v8692_v50 = vld [vmem:[#allocation8 + $0xc0] sm:$0xff]  ;;  %v8695_v2 = vld [vmem:[#allocation8 + $0xd0] sm:$0xff] }
 0x70a   :  { %3953 = vmatprep.subr.mxu0 %v8686_v15  ;;  %10536 = vst [vmem:[#allocation68_spill] sm:$0xff] %v8689_v8  ;;  %4024 = vmatprep.subr.mxu1 %v8689_v8  ;;  %10537 = vst [vmem:[#allocation69_spill] sm:$0xff] %v8692_v50  ;;  %v8698_v40 = vld [vmem:[#allocation8 + $0xa8] sm:$0xff]  ;;  %v8701_v42 = vld [vmem:[#allocation8 + $0xb8] sm:$0xff] }
 0x70b   :  { %3954 = vmatpush1.msra.mxu0 %v8692_v50  ;;  %10538 = vst [vmem:[#allocation70_spill] sm:$0xff] %v8695_v2  ;;  %4025 = vmatpush1.msra.mxu1 %v8695_v2  ;;  %10539 = vst [vmem:[#allocation71_spill] sm:$0xff] %v8698_v40  ;;  %v8704_v15 = vld [vmem:[#allocation8 + $0xa0] sm:$0xff]  ;;  %v8707_v8 = vld [vmem:[#allocation8 + $0xb0] sm:$0xff]  ;;  %v4709_v50 = vpop.eup %4708 }
 0x70c   :  { %3955 = vmatprep.subr.mxu0 %v8698_v40  ;;  %10540 = vst [vmem:[#allocation72_spill] sm:$0xff] %v8701_v42  ;;  %4026 = vmatprep.subr.mxu1 %v8701_v42  ;;  %10541 = vst [vmem:[#allocation73_spill] sm:$0xff] %v8704_v15  ;;  %v8710_v20 = vld [vmem:[#allocation8 + $0x88] sm:$0xff]  ;;  %v8713_v2 = vld [vmem:[#allocation8 + $0x98] sm:$0xff] }
 0x70d   :  { %3956 = vmatpush1.msra.mxu0 %v8704_v15  ;;  %10542 = vst [vmem:[#allocation74_spill] sm:$0xff] %v8707_v8  ;;  %4027 = vmatpush1.msra.mxu1 %v8707_v8  ;;  %10543 = vst [vmem:[#allocation75_spill] sm:$0xff] %v8710_v20  ;;  %v8716_v40 = vld [vmem:[#allocation8 + $0x80] sm:$0xff]  ;;  %v8719_v42 = vld [vmem:[#allocation8 + $0x90] sm:$0xff] }
 0x70e   :  { %3957 = vmatprep.subr.mxu0 %v8710_v20  ;;  %10544 = vst [vmem:[#allocation76_spill] sm:$0xff] %v8713_v2  ;;  %4028 = vmatprep.subr.mxu1 %v8713_v2  ;;  %10545 = vst [vmem:[#allocation77_spill] sm:$0xff] %v8716_v40  ;;  %v8722_v15 = vld [vmem:[#allocation8 + $0x68] sm:$0xff]  ;;  %v8725_v8 = vld [vmem:[#allocation8 + $0x78] sm:$0xff]  ;;  %v3617_v20 = vmul.f32 0.5, %v4709_v50 }
 0x70f   :  { %3958 = vmatpush1.msra.mxu0 %v8716_v40  ;;  %10546 = vst [vmem:[#allocation82_spill] sm:$0xff] %v8719_v42  ;;  %4029 = vmatpush1.msra.mxu1 %v8719_v42  ;;  %10547 = vst [vmem:[#allocation78_spill] sm:$0xff] %v8722_v15  ;;  %v8728_v7 = vld [vmem:[#allocation8 + $0x60] sm:$0xff]  ;;  %v8731_v2 = vld [vmem:[#allocation8 + $0x70] sm:$0xff] }
 0x710   :  { %3959 = vmatprep.subr.mxu0 %v8722_v15  ;;  %10548 = vst [vmem:[#allocation79_spill] sm:$0xff] %v8725_v8  ;;  %4030 = vmatprep.subr.mxu1 %v8725_v8  ;;  %10549 = vst [vmem:[#allocation80_spill] sm:$0xff] %v8728_v7  ;;  %v8734_v40 = vld [vmem:[#allocation8 + $0x48] sm:$0xff]  ;;  %v8737_v42 = vld [vmem:[#allocation8 + $0x58] sm:$0xff] }
 0x711   :  { %3960 = vmatpush1.msra.mxu0 %v8728_v7  ;;  %10550 = vst [vmem:[#allocation81_spill] sm:$0xff] %v8731_v2  ;;  %4031 = vmatpush1.msra.mxu1 %v8731_v2  ;;  %10551 = vst [vmem:[#allocation87_spill] sm:$0xff] %v8734_v40  ;;  %v8740_v15 = vld [vmem:[#allocation8 + $0x40] sm:$0xff]  ;;  %v8743_v50 = vld [vmem:[#allocation8 + $0x50] sm:$0xff] }
 0x712   :  { %3961 = vmatprep.subr.mxu0 %v8734_v40  ;;  %10552 = vst [vmem:[#allocation83_spill] sm:$0xff] %v8737_v42  ;;  %4032 = vmatprep.subr.mxu1 %v8737_v42  ;;  %10553 = vst [vmem:[#allocation84_spill] sm:$0xff] %v8740_v15  ;;  %v8746_v7 = vld [vmem:[#allocation8 + $0x28] sm:$0xff]  ;;  %v8749_v2 = vld [vmem:[#allocation8 + $0x38] sm:$0xff]  ;;  %v3618_v40 = vadd.f32 0.5, %v3617_v20 }
 0x713   :  { %3962 = vmatpush1.msra.mxu0 %v8740_v15  ;;  %10554 = vst [vmem:[#allocation85_spill] sm:$0xff] %v8743_v50  ;;  %4033 = vmatpush1.msra.mxu1 %v8743_v50  ;;  %10555 = vst [vmem:[#allocation86_spill] sm:$0xff] %v8746_v7  ;;  %v8752_v8 = vld [vmem:[#allocation8 + $0x20] sm:$0xff]  ;;  %v8755_v42 = vld [vmem:[#allocation8 + $0x30] sm:$0xff] }
 0x714   :  { %3963 = vmatprep.subr.mxu0 %v8746_v7  ;;  %4034 = vmatprep.subr.mxu1 %v8749_v2  ;;  %10556 = vst [vmem:[#allocation88_spill] sm:$0xff] %v8752_v8  ;;  %v8758_v39 = vld [vmem:[#allocation8 + $0x8] sm:$0xff]  ;;  %v8761_v50 = vld [vmem:[#allocation8 + $0x18] sm:$0xff]  ;;  %v8764_v7 = vld [vmem:[#allocation8] sm:$0xff] }
 0x715   :  { %3964 = vmatpush1.msra.mxu0 %v8752_v8  ;;  %4035 = vmatpush1.msra.mxu1 %v8755_v42  ;;  %v8768_v8 = vld [vmem:[#allocation8 + $0x10] sm:$0xff] }
 0x716   :  { %v4711_v15 = vpop.eup %4710  ;;  %3965 = vmatprep.subr.mxu0 %v8758_v39  ;;  %4036 = vmatprep.subr.mxu1 %v8761_v50 }
 0x717   :  { %3966 = vmatpush1.msra.mxu0 %v8764_v7  ;;  %3999 = vmatprep.mubr.f32.mxu0 %v10352_v16  ;;  %v3623_v20 = vmul.f32 %v4711_v15, %v3618_v40  ;;  %v10583_v15 = vld [vmem:[#allocation41_spill] sm:$0xff]  ;;  %v10584_v40 = vld [vmem:[#allocation42_spill] sm:$0xff] }
 0x718   :  { %4037 = vmatpush1.msra.mxu1 %v8768_v8  ;;  %4070 = vmatprep.mubr.f32.mxu1 %v10352_v16 }
 0x719   :  { %4000 = vmatmul.mubr.f32.vlgmr.msra.gmra.mxu0 %v3623_v20  ;;  %4071 = vmatmul.mubr.f32.vlgmr.msra.gmra.mxu1 %v3623_v20  ;;  %v10585_v20 = vld [vmem:[#allocation43_spill] sm:$0xff] }
 0x71a   :  { %4099 = vmatprep.subr.mxu0 %v8362_v53  ;;  %4170 = vmatprep.subr.mxu1 %v8365_v5  ;;  %v10557_v53 = vld [vmem:[#allocation181_spill] sm:$0xff]  ;;  %v10558_v5 = vld [vmem:[#allocation11_spill] sm:$0xff] }
 0x71b   :  { %4100 = vmatpush1.msra.mxu0 %v8380_v22  ;;  %4171 = vmatpush1.msra.mxu1 %v8383_v3  ;;  %v10559_v22 = vld [vmem:[#allocation13_spill] sm:$0xff]  ;;  %v10560_v3 = vld [vmem:[#allocation12_spill] sm:$0xff] }
 0x71c   :  { %4101 = vmatprep.subr.mxu0 %v8386_v48  ;;  %4172 = vmatprep.subr.mxu1 %v8389_v59  ;;  %v10561_v48 = vld [vmem:[#allocation19_spill] sm:$0xff]  ;;  %v10562_v59 = vld [vmem:[#allocation21_spill] sm:$0xff] }
 0x71d   :  { %4102 = vmatpush1.msra.mxu0 %v8392_v29  ;;  %4173 = vmatpush1.msra.mxu1 %v8395_v37  ;;  %v10563_v29 = vld [vmem:[#allocation20_spill] sm:$0xff]  ;;  %v10564_v37 = vld [vmem:[#allocation22_spill] sm:$0xff] }
 0x71e   :  { %4103 = vmatprep.subr.mxu0 %v8398_v46  ;;  %4174 = vmatprep.subr.mxu1 %v8401_v58  ;;  %v10565_v46 = vld [vmem:[#allocation23_spill] sm:$0xff]  ;;  %v10567_v58 = vld [vmem:[#allocation24_spill] sm:$0xff] }
 0x71f   :  { %4104 = vmatpush1.msra.mxu0 %v8404_v13  ;;  %4175 = vmatpush1.msra.mxu1 %v8407_v12  ;;  %v10568_v13 = vld [vmem:[#allocation26_spill] sm:$0xff] }
 0x720   :  { %4105 = vmatprep.subr.mxu0 %v8410_v45  ;;  %4176 = vmatprep.subr.mxu1 %v8413_v54  ;;  %v10569_v12 = vld [vmem:[#allocation14_spill] sm:$0xff]  ;;  %v10570_v45 = vld [vmem:[#allocation15_spill] sm:$0xff] }
 0x721   :  { %4106 = vmatpush1.msra.mxu0 %v8416_v61  ;;  %4177 = vmatpush1.msra.mxu1 %v8419_v57  ;;  %v10571_v61 = vld [vmem:[#allocation31_spill] sm:$0xff] }
 0x722   :  { %4107 = vmatprep.subr.mxu0 %v8422_v33  ;;  %4178 = vmatprep.subr.mxu1 %v8425_v63 }
 0x723   :  { %4108 = vmatpush1.msra.mxu0 %v8428_v47  ;;  %4179 = vmatpush1.msra.mxu1 %v8431_v60  ;;  %v10572_v60 = vld [vmem:[#allocation33_spill] sm:$0xff] }
 0x724   :  { %4109 = vmatprep.subr.mxu0 %v8434_v26  ;;  %4180 = vmatprep.subr.mxu1 %v8437_v18  ;;  %v10573_v18 = vld [vmem:[#allocation32_spill] sm:$0xff] }
 0x725   :  { %4110 = vmatpush1.msra.mxu0 %v8440_v36  ;;  %4181 = vmatpush1.msra.mxu1 %v8443_v49 }
 0x726   :  { %4111 = vmatprep.subr.mxu0 %v8446_v62  ;;  %4182 = vmatprep.subr.mxu1 %v8449_v31  ;;  %v10574_v31 = vld [vmem:[#allocation34_spill] sm:$0xff] }
 0x727   :  { %4112 = vmatpush1.msra.mxu0 %v8452_v35  ;;  %4183 = vmatpush1.msra.mxu1 %v8455_v30 }
 0x728   :  { %4113 = vmatprep.subr.mxu0 %v8458_v27  ;;  %4184 = vmatprep.subr.mxu1 %v8461_v10 }
 0x729   :  { %4114 = vmatpush1.msra.mxu0 %v8464_v21  ;;  %4185 = vmatpush1.msra.mxu1 %v8467_v25 }
 0x72a   :  { %4115 = vmatprep.subr.mxu0 %v8470_v1  ;;  %4186 = vmatprep.subr.mxu1 %v8473_v14 }
 0x72b   :  { %4116 = vmatpush1.msra.mxu0 %v8476_v24  ;;  %4187 = vmatpush1.msra.mxu1 %v8479_v11  ;;  %v10575_v11 = vld [vmem:[#allocation180_spill] sm:$0xff] }
 0x72c   :  { %4117 = vmatprep.subr.mxu0 %v8482_v41  ;;  %4188 = vmatprep.subr.mxu1 %v8485_v28 }
 0x72d   :  { %4118 = vmatpush1.msra.mxu0 %v8488_v43  ;;  %4189 = vmatpush1.msra.mxu1 %v8491_v32 }
 0x72e   :  { %4119 = vmatprep.subr.mxu0 %v8494_v6  ;;  %4190 = vmatprep.subr.mxu1 %v8497_v38 }
 0x72f   :  { %4120 = vmatpush1.msra.mxu0 %v8501_v19  ;;  %4191 = vmatpush1.msra.mxu1 %v8504_v55  ;;  %v10576_v55 = vld [vmem:[#allocation17_spill] sm:$0xff] }
 0x730   :  { %4121 = vmatprep.subr.mxu0 %v8507_v51  ;;  %4192 = vmatprep.subr.mxu1 %v8510_v23  ;;  %v10577_v51 = vld [vmem:[#allocation16_spill] sm:$0xff]  ;;  %v10578_v23 = vld [vmem:[#allocation18_spill] sm:$0xff] }
 0x731   :  { %4122 = vmatpush1.msra.mxu0 %v10557_v53  ;;  %4193 = vmatpush1.msra.mxu1 %v10558_v5  ;;  %v10586_v53 = vld [vmem:[#allocation44_spill] sm:$0xff]  ;;  %v10587_v5 = vld [vmem:[#allocation45_spill] sm:$0xff] }
 0x732   :  { %4123 = vmatprep.subr.mxu0 %v10559_v22  ;;  %4194 = vmatprep.subr.mxu1 %v8523_v44  ;;  %v10566_v44 = vld [vmem:[#allocation25_spill] sm:$0xff]  ;;  %v10588_v22 = vld [vmem:[#allocation46_spill] sm:$0xff] }
 0x733   :  { %4124 = vmatpush1.msra.mxu0 %v10560_v3  ;;  %4195 = vmatpush1.msra.mxu1 %v10561_v48  ;;  %v10589_v3 = vld [vmem:[#allocation47_spill] sm:$0xff]  ;;  %v10590_v48 = vld [vmem:[#allocation48_spill] sm:$0xff] }
 0x734   :  { %4125 = vmatprep.subr.mxu0 %v10562_v59  ;;  %4196 = vmatprep.subr.mxu1 %v10563_v29  ;;  %v10591_v59 = vld [vmem:[#allocation49_spill] sm:$0xff]  ;;  %v10592_v29 = vld [vmem:[#allocation50_spill] sm:$0xff] }
 0x735   :  { %4126 = vmatpush1.msra.mxu0 %v8539_v17  ;;  %4197 = vmatpush1.msra.mxu1 %v8542_v56  ;;  %v10580_v56 = vld [vmem:[#allocation38_spill] sm:$0xff]  ;;  %v10581_v17 = vld [vmem:[#allocation39_spill] sm:$0xff] }
 0x736   :  { %4127 = vmatprep.subr.mxu0 %v10564_v37  ;;  %4198 = vmatprep.subr.mxu1 %v8548_v4  ;;  %v10579_v4 = vld [vmem:[#allocation37_spill] sm:$0xff]  ;;  %v10593_v37 = vld [vmem:[#allocation51_spill] sm:$0xff] }
 0x737   :  { %4128 = vmatpush1.msra.mxu0 %v8551_v34  ;;  %4199 = vmatpush1.msra.mxu1 %v10565_v46  ;;  %v10582_v34 = vld [vmem:[#allocation40_spill] sm:$0xff] }
 0x738   :  { %4129 = vmatprep.subr.mxu0 %v10566_v44  ;;  %4200 = vmatprep.subr.mxu1 %v10567_v58  ;;  %v10594_v46 = vld [vmem:[#allocation52_spill] sm:$0xff]  ;;  %v10595_v44 = vld [vmem:[#allocation53_spill] sm:$0xff]  ;;  %v10596_v58 = vld [vmem:[#allocation54_spill] sm:$0xff] }
 0x739   :  { %4130 = vmatpush1.msra.mxu0 %v10568_v13  ;;  %4163 = vmatprep.mubr.f32.mxu0 %v10352_v16  ;;  %v10597_v13 = vld [vmem:[#allocation55_spill] sm:$0xff] }
 0x73a   :  { %4201 = vmatpush1.msra.mxu1 %v10569_v12  ;;  %4234 = vmatprep.mubr.f32.mxu1 %v10352_v16  ;;  %v10598_v12 = vld [vmem:[#allocation56_spill] sm:$0xff] }
 0x73b   :  { %4241 = vmatprep.subr.mxu0 %v8574_v9  ;;  %4312 = vmatprep.subr.mxu1 %v10570_v45  ;;  %v10599_v45 = vld [vmem:[#allocation57_spill] sm:$0xff] }
 0x796   :  { %v3695_v54 = vpop.f32.mrf.mxu0  ;;  %v3766_v33 = vpop.f32.mrf.mxu1 }
 0x797   :  { %v3771_v57 = vadd.f32 %v3695_v54, %v10571_v61  ;;  %v3773_v36 = vadd.f32 %v3766_v33, %v10573_v18  ;;  %v10600_v54 = vld [vmem:[#allocation58_spill] sm:$0xff]  ;;  %v10601_v61 = vld [vmem:[#allocation59_spill] sm:$0xff] }
 0x798   :  { %v3697_v63 = vpop.f32.mrf.mxu0  ;;  %v3768_v62 = vpop.f32.mrf.mxu1  ;;  %v10603_v33 = vld [vmem:[#allocation62_spill] sm:$0xff] }
 0x799   :  { %v3775_v47 = vmul.f32 0.5, %v3771_v57  ;;  %v3772_v26 = vadd.f32 %v3697_v63, %v10572_v60  ;;  %v3774_v35 = vadd.f32 %v3768_v62, %v10574_v31  ;;  %v10602_v57 = vld [vmem:[#allocation61_spill] sm:$0xff]  ;;  %v10605_v60 = vld [vmem:[#allocation64_spill] sm:$0xff]  ;;  %v10607_v18 = vld [vmem:[#allocation66_spill] sm:$0xff] }
 0x79b   :  { %4712 = vtanh.f32 %v3775_v47  ;;  %v3779_v49 = vmul.f32 0.5, %v3772_v26  ;;  %v3784_v9 = vmul.f32 0.5, %v3774_v35  ;;  %v10604_v47 = vld [vmem:[#allocation63_spill] sm:$0xff]  ;;  %v10606_v26 = vld [vmem:[#allocation65_spill] sm:$0xff] }
 0x79c   :  { %v10612_v35 = vld [vmem:[#allocation71_spill] sm:$0xff] }
 0x79d   :  { %4714 = vtanh.f32 %v3779_v49  ;;  %v10611_v49 = vld [vmem:[#allocation70_spill] sm:$0xff] }
 0x79e   :  { %4716 = vtanh.f32 %v3773_v36  ;;  %v10610_v36 = vld [vmem:[#allocation69_spill] sm:$0xff] }
 0x79f   :  { %4718 = vtanh.f32 %v3784_v9  ;;  %v10613_v9 = vld [vmem:[#allocation72_spill] sm:$0xff] }
 0x7a8   :  { %v4713_v30 = vpop.eup %4712 }
 0x7a9   :  { %v3777_v27 = vmul.f32 0.5, %v4713_v30  ;;  %v10614_v30 = vld [vmem:[#allocation182_spill] sm:$0xff] }
 0x7aa   :  { %v4715_v10 = vpop.eup %4714 }
 0x7ab   :  { %v3778_v21 = vadd.f32 0.5, %v3777_v27  ;;  %v3781_v25 = vmul.f32 0.5, %v4715_v10  ;;  %v4717_v1 = vpop.eup %4716  ;;  %v10615_v10 = vld [vmem:[#allocation73_spill] sm:$0xff] }
 0x7ac   :  { %v4719_v43 = vpop.eup %4718 }
 0x7ad   :  { %v3782_v14 = vadd.f32 0.5, %v3781_v25  ;;  %v3789_v24 = vmul.f32 %v4717_v1, %v3778_v21  ;;  %v3786_v32 = vmul.f32 0.5, %v4719_v43  ;;  %v10616_v21 = vld [vmem:[#allocation74_spill] sm:$0xff]  ;;  %v10617_v1 = vld [vmem:[#allocation75_spill] sm:$0xff] }
 0x7ae   :  { %v10621_v43 = vld [vmem:[#allocation82_spill] sm:$0xff] }
 0x7af   :  { %v3788_v41 = vmul.f32 %v3782_v14, %v10575_v11  ;;  %v3787_v6 = vadd.f32 0.5, %v3786_v32  ;;  %v10618_v14 = vld [vmem:[#allocation76_spill] sm:$0xff] }
 0x7b1   :  { %v3790_v28 = vadd.f32 %v3789_v24, %v3788_v41  ;;  %v10619_v24 = vld [vmem:[#allocation183_spill] sm:$0xff] }
 0x7b3   :  { %4720 = vtanh.f32 %v3790_v28  ;;  %v10620_v28 = vld [vmem:[#allocation77_spill] sm:$0xff] }
 0x7b7   :  { %v3859_v63 = vpop.f32.mrf.mxu0  ;;  %v3930_v62 = vpop.f32.mrf.mxu1 }
 0x7b8   :  { %v3860_v27 = vadd.f32 %v3859_v63, %v10614_v30 }
 0x7b9   :  { %v3861_v31 = vpop.f32.mrf.mxu0  ;;  %v3932_v32 = vpop.f32.mrf.mxu1 }
 0x7ba   :  { %v3862_v11 = vadd.f32 %v3861_v31, %v10619_v24  ;;  %v4412_v31 = vld [vmem:[%s8997_s7 + $0x38] sm:$0xff] }
 0x7c0   :  { %v4721_v38 = vpop.eup %4720 }
 0x7c1   :  { %v3792_v19 = vmul.f32 %v4721_v38, %v3787_v6  ;;  %v10622_v38 = vld [vmem:[#allocation78_spill] sm:$0xff] }
 0x7c3   :  { %4164 = vmatmul.mubr.f32.vlgmr.msra.gmra.mxu0 %v3792_v19  ;;  %4235 = vmatmul.mubr.f32.vlgmr.msra.gmra.mxu1 %v3792_v19  ;;  %v10623_v19 = vld [vmem:[#allocation79_spill] sm:$0xff] }
 0x7c4   :  { %4242 = vmatpush1.msra.mxu0 %v10576_v55  ;;  %4313 = vmatpush1.msra.mxu1 %v10577_v51 }
 0x7c5   :  { %4243 = vmatprep.subr.mxu0 %v10578_v23  ;;  %4314 = vmatprep.subr.mxu1 %v10579_v4  ;;  %v10624_v23 = vld [vmem:[#allocation80_spill] sm:$0xff]  ;;  %v10625_v4 = vld [vmem:[#allocation81_spill] sm:$0xff] }
 0x7c6   :  { %4244 = vmatpush1.msra.mxu0 %v10580_v56  ;;  %4315 = vmatpush1.msra.mxu1 %v10581_v17  ;;  %v10626_v17 = vld [vmem:[#allocation87_spill] sm:$0xff] }
 0x7c7   :  { %4245 = vmatprep.subr.mxu0 %v10582_v34  ;;  %4316 = vmatprep.subr.mxu1 %v10583_v15  ;;  %v10627_v34 = vld [vmem:[#allocation83_spill] sm:$0xff] }
 0x7c8   :  { %4246 = vmatpush1.msra.mxu0 %v10584_v40  ;;  %4317 = vmatpush1.msra.mxu1 %v10585_v20  ;;  %v10628_v15 = vld [vmem:[#allocation35_spill] sm:$0xff] }
 0x7c9   :  { %4247 = vmatprep.subr.mxu0 %v10586_v53  ;;  %4318 = vmatprep.subr.mxu1 %v10587_v5  ;;  %v3931_v40 = vadd.f32 %v3930_v62, %v10628_v15  ;;  %v10629_v53 = vld [vmem:[#allocation84_spill] sm:$0xff]  ;;  %v10630_v5 = vld [vmem:[#allocation85_spill] sm:$0xff]  ;;  %v4413_v62 = vld [vmem:[%s8997_s7 + $0x40] sm:$0xff] }
 0x7ca   :  { %4248 = vmatpush1.msra.mxu0 %v10588_v22  ;;  %4319 = vmatpush1.msra.mxu1 %v10589_v3  ;;  %v10631_v22 = vld [vmem:[#allocation86_spill] sm:$0xff] }
 0x7cb   :  { %4249 = vmatprep.subr.mxu0 %v10590_v48  ;;  %4320 = vmatprep.subr.mxu1 %v10591_v59  ;;  %v10632_v48 = vld [vmem:[#allocation88_spill] sm:$0xff] }
 0x7cc   :  { %4250 = vmatpush1.msra.mxu0 %v10592_v29  ;;  %4321 = vmatpush1.msra.mxu1 %v10593_v37 }
 0x7cd   :  { %4251 = vmatprep.subr.mxu0 %v10594_v46  ;;  %4322 = vmatprep.subr.mxu1 %v10595_v44 }
 0x7ce   :  { %4252 = vmatpush1.msra.mxu0 %v10596_v58  ;;  %4323 = vmatpush1.msra.mxu1 %v10597_v13 }
 0x7cf   :  { %4253 = vmatprep.subr.mxu0 %v10598_v12  ;;  %4324 = vmatprep.subr.mxu1 %v10599_v45  ;;  %v10634_v12 = vld [vmem:[#allocation60_spill] sm:$0xff] }
 0x7d0   :  { %4254 = vmatpush1.msra.mxu0 %v8653_v52  ;;  %4325 = vmatpush1.msra.mxu1 %v8656_v0  ;;  %v10608_v52 = vld [vmem:[#allocation67_spill] sm:$0xff]  ;;  %v10609_v0 = vld [vmem:[#allocation68_spill] sm:$0xff] }
 0x7d1   :  { %4255 = vmatprep.subr.mxu0 %v10600_v54  ;;  %4326 = vmatprep.subr.mxu1 %v10601_v61 }
 0x7d2   :  { %4256 = vmatpush1.msra.mxu0 %v10602_v57  ;;  %4327 = vmatpush1.msra.mxu1 %v10603_v33 }
 0x7d3   :  { %4257 = vmatprep.subr.mxu0 %v10604_v47  ;;  %4328 = vmatprep.subr.mxu1 %v10605_v60  ;;  %v4420_v60 = vld [vmem:[%s8997_s7 + $0x78] sm:$0xff] }
 0x7d4   :  { %4258 = vmatpush1.msra.mxu0 %v10606_v26  ;;  %4329 = vmatpush1.msra.mxu1 %v10607_v18  ;;  %v4419_v26 = vld [vmem:[%s8997_s7 + $0x70] sm:$0xff]  ;;  %v4418_v18 = vld [vmem:[%s8997_s7 + $0x68] sm:$0xff] }
 0x7d5   :  { %4259 = vmatprep.subr.mxu0 %v10608_v52  ;;  %4330 = vmatprep.subr.mxu1 %v10609_v0  ;;  %v4417_v52 = vld [vmem:[%s8997_s7 + $0x60] sm:$0xff]  ;;  %v4416_v0 = vld [vmem:[%s8997_s7 + $0x58] sm:$0xff] }
 0x7d6   :  { %4260 = vmatpush1.msra.mxu0 %v10610_v36  ;;  %4331 = vmatpush1.msra.mxu1 %v10611_v49  ;;  %v4415_v36 = vld [vmem:[%s8997_s7 + $0x50] sm:$0xff]  ;;  %v4414_v49 = vld [vmem:[%s8997_s7 + $0x48] sm:$0xff] }
 0x7d7   :  { %4261 = vmatprep.subr.mxu0 %v10612_v35  ;;  %4332 = vmatprep.subr.mxu1 %v10613_v9  ;;  %v4411_v35 = vld [vmem:[%s8997_s7 + $0x30] sm:$0xff]  ;;  %v4410_v9 = vld [vmem:[%s8997_s7 + $0x28] sm:$0xff] }
 0x7d8   :  { %4262 = vmatpush1.msra.mxu0 %v10615_v10  ;;  %4333 = vmatpush1.msra.mxu1 %v10616_v21  ;;  %v4408_v10 = vld [vmem:[%s8997_s7 + $0x18] sm:$0xff]  ;;  %v4407_v21 = vld [vmem:[%s8997_s7 + $0x10] sm:$0xff] }
 0x7d9   :  { %v4001_v25 = vpop.f32.mrf.mxu0  ;;  %4263 = vmatprep.subr.mxu0 %v10617_v1  ;;  %4334 = vmatprep.subr.mxu1 %v10618_v14  ;;  %v4072_v56 = vpop.f32.mrf.mxu1  ;;  %v4405_v1 = vld [vmem:[%s8997_s7] sm:$0xff] }
 0x7da   :  { %v4077_v41 = vadd.f32 %v4001_v25, %v3860_v27  ;;  %4264 = vmatpush1.msra.mxu0 %v10620_v28  ;;  %4335 = vmatpush1.msra.mxu1 %v10621_v43  ;;  %v4079_v3 = vadd.f32 %v4072_v56, %v3931_v40  ;;  %v4409_v27 = vld [vmem:[%s8997_s7 + $0x20] sm:$0xff]  ;;  %v4406_v25 = vld [vmem:[%s8997_s7 + $0x8] sm:$0xff] }
 0x7db   :  { %v4003_v6 = vpop.f32.mrf.mxu0  ;;  %4265 = vmatprep.subr.mxu0 %v10622_v38  ;;  %4336 = vmatprep.subr.mxu1 %v10623_v19  ;;  %v4074_v59 = vpop.f32.mrf.mxu1 }
 0x7dc   :  { %v4081_v55 = vmul.f32 0.5, %v4077_v41  ;;  %v4078_v51 = vadd.f32 %v4003_v6, %v3862_v11  ;;  %4266 = vmatpush1.msra.mxu0 %v10624_v23  ;;  %4337 = vmatpush1.msra.mxu1 %v10625_v4 }
 0x7dd   :  { %4267 = vmatprep.subr.mxu0 %v10626_v17  ;;  %4338 = vmatprep.subr.mxu1 %v10627_v34 }
 0x7de   :  { %4722 = vtanh.f32 %v4081_v55  ;;  %v4085_v20 = vmul.f32 0.5, %v4078_v51  ;;  %4268 = vmatpush1.msra.mxu0 %v10629_v53  ;;  %4339 = vmatpush1.msra.mxu1 %v10630_v5 }
 0x7df   :  { %4269 = vmatprep.subr.mxu0 %v10631_v22  ;;  %4340 = vmatprep.subr.mxu1 %v8749_v2  ;;  %v10633_v2 = vld [vmem:[#allocation36_spill] sm:$0xff] }
 0x7e0   :  { %4724 = vtanh.f32 %v4085_v20  ;;  %4270 = vmatpush1.msra.mxu0 %v10632_v48  ;;  %4341 = vmatpush1.msra.mxu1 %v8755_v42  ;;  %v3933_v29 = vadd.f32 %v3932_v32, %v10633_v2 }
 0x7e1   :  { %4271 = vmatprep.subr.mxu0 %v8758_v39  ;;  %4342 = vmatprep.subr.mxu1 %v8761_v50  ;;  %4726 = vtanh.f32 %v4079_v3 }
 0x7e2   :  { %4272 = vmatpush1.msra.mxu0 %v8764_v7  ;;  %4305 = vmatprep.mubr.f32.mxu0 %v10352_v16  ;;  %v4080_v37 = vadd.f32 %v4074_v59, %v3933_v29 }
 0x7e3   :  { %4343 = vmatpush1.msra.mxu1 %v8768_v8  ;;  %4376 = vmatprep.mubr.f32.mxu1 %v10352_v16 }
 0x7e4   :  { %4540 = vmatprep.subr.mxu0 %v10352_v16  ;;  %v4090_v42 = vmul.f32 0.5, %v4080_v37 }
 0x7e6   :  { %4728 = vtanh.f32 %v4090_v42 }
 0x7eb   :  { %v4723_v46 = vpop.eup %4722 }
 0x7ec   :  { %v4083_v39 = vmul.f32 0.5, %v4723_v46 }
 0x7ed   :  { %v4725_v44 = vpop.eup %4724 }
 0x7ee   :  { %v4084_v50 = vadd.f32 0.5, %v4083_v39  ;;  %v4087_v58 = vmul.f32 0.5, %v4725_v44  ;;  %v4727_v13 = vpop.eup %4726  ;;  %v4522_v44 = vld [vmem:[#allocation3] ss:$0 sm:$0xff] }
 0x7f0   :  { %v4088_v7 = vadd.f32 0.5, %v4087_v58  ;;  %v4095_v8 = vmul.f32 %v4727_v13, %v4084_v50 }
 0x7f2   :  { %v4094_v45 = vmul.f32 %v4088_v7, %v10634_v12 }
 0x7f3   :  { %v4729_v61 = vpop.eup %4728 }
 0x7f4   :  { %v8915_v54 = vadd.f32 %v4095_v8, %v4094_v45  ;;  %v4092_v57 = vmul.f32 0.5, %v4729_v61 }
 0x7f6   :  { %4730 = vtanh.f32 %v8915_v54  ;;  %v4093_v33 = vadd.f32 0.5, %v4092_v57 }
 0x803   :  { %v4731_v63 = vpop.eup %4730 }
 0x804   :  { %v4098_v47 = vmul.f32 %v4731_v63, %v4093_v33 }
 0x806   :  { %4306 = vmatmul.mubr.f32.vlgmr.msra.gmra.mxu0 %v4098_v47  ;;  %4377 = vmatmul.mubr.f32.vlgmr.msra.gmra.mxu1 %v4098_v47 }
 0x807   :  { %4541 = vmatpush3.msra.mxu0 %v4420_v60  ;;  %4572 = vmatprep.mubr.msk.f32.mxu0 %vm5388_vm1, %v10352_v16 }
 0x808   :  { %4542 = vmatprep.subr.mxu0 %v10352_v16 }
 0x809   :  { %4543 = vmatpush3.msra.mxu0 %v4419_v26 }
 0x80a   :  { %4544 = vmatprep.subr.mxu0 %v10352_v16 }
 0x80b   :  { %4545 = vmatpush3.msra.mxu0 %v4418_v18 }
 0x80c   :  { %4546 = vmatprep.subr.mxu0 %v10352_v16 }
 0x80d   :  { %4547 = vmatpush3.msra.mxu0 %v4417_v52 }
 0x80e   :  { %4548 = vmatprep.subr.mxu0 %v10352_v16 }
 0x80f   :  { %4549 = vmatpush3.msra.mxu0 %v4416_v0 }
 0x810   :  { %4550 = vmatprep.subr.mxu0 %v10352_v16 }
 0x811   :  { %4551 = vmatpush3.msra.mxu0 %v4415_v36 }
 0x812   :  { %4552 = vmatprep.subr.mxu0 %v10352_v16 }
 0x813   :  { %4553 = vmatpush3.msra.mxu0 %v4414_v49 }
 0x814   :  { %4554 = vmatprep.subr.mxu0 %v10352_v16 }
 0x815   :  { %4555 = vmatpush3.msra.mxu0 %v4413_v62 }
 0x816   :  { %4556 = vmatprep.subr.mxu0 %v10352_v16 }
 0x817   :  { %4557 = vmatpush3.msra.mxu0 %v4412_v31 }
 0x818   :  { %4558 = vmatprep.subr.mxu0 %v10352_v16 }
 0x819   :  { %4559 = vmatpush3.msra.mxu0 %v4411_v35 }
 0x81a   :  { %4560 = vmatprep.subr.mxu0 %v10352_v16 }
 0x81b   :  { %4561 = vmatpush3.msra.mxu0 %v4410_v9 }
 0x81c   :  { %4562 = vmatprep.subr.mxu0 %v10352_v16 }
 0x81d   :  { %4563 = vmatpush3.msra.mxu0 %v4409_v27 }
 0x81e   :  { %4564 = vmatprep.subr.mxu0 %v10352_v16 }
 0x81f   :  { %4565 = vmatpush3.msra.mxu0 %v4408_v10 }
 0x820   :  { %4566 = vmatprep.subr.mxu0 %v10352_v16 }
 0x821   :  { %4567 = vmatpush3.msra.mxu0 %v4407_v21 }
 0x822   :  { %4568 = vmatprep.subr.mxu0 %v10352_v16 }
 0x823   :  { %4569 = vmatpush3.msra.mxu0 %v4406_v25 }
 0x824   :  { %4570 = vmatprep.subr.mxu0 %v10352_v16 }
 0x825   :  { %4571 = vmatpush3.msra.mxu0 %v4405_v1 }
 0x883   :  { %v4165_v14 = vpop.f32.mrf.mxu0  ;;  %v4236_v11 = vpop.f32.mrf.mxu1 }
 0x884   :  { %v4166_v28 = vadd.f32 %v4165_v14, %v10614_v30  ;;  %v4237_v4 = vadd.f32 %v4236_v11, %v10628_v15 }
 0x885   :  { %v4167_v41 = vpop.f32.mrf.mxu0  ;;  %v4238_v38 = vpop.f32.mrf.mxu1 }
 0x886   :  { %v4168_v32 = vadd.f32 %v4167_v41, %v10619_v24  ;;  %v4239_v34 = vadd.f32 %v4238_v38, %v10633_v2 }
 0x8c6   :  { %v4307_v43 = vpop.f32.mrf.mxu0  ;;  %v4378_v23 = vpop.f32.mrf.mxu1 }
 0x8c7   :  { %v4383_v6 = vadd.f32 %v4307_v43, %v4166_v28  ;;  %v4385_v16 = vadd.f32 %v4378_v23, %v4237_v4 }
 0x8c8   :  { %v4309_v19 = vpop.f32.mrf.mxu0  ;;  %v4380_v17 = vpop.f32.mrf.mxu1 }
 0x8c9   :  { %v4387_v55 = vmul.f32 0.5, %v4383_v6  ;;  %v4384_v51 = vadd.f32 %v4309_v19, %v4168_v32  ;;  %v4386_v30 = vadd.f32 %v4380_v17, %v4239_v34 }
 0x8cb   :  { %4732 = vtanh.f32 %v4387_v55  ;;  %v4391_v56 = vmul.f32 0.5, %v4384_v51  ;;  %v4396_v40 = vmul.f32 0.5, %v4386_v30 }
 0x8cd   :  { %4734 = vtanh.f32 %v4391_v56 }
 0x8ce   :  { %4736 = vtanh.f32 %v4385_v16 }
 0x8cf   :  { %4738 = vtanh.f32 %v4396_v40 }
 0x8d8   :  { %v4733_v20 = vpop.eup %4732 }
 0x8d9   :  { %v4389_v24 = vmul.f32 0.5, %v4733_v20 }
 0x8da   :  { %v4735_v53 = vpop.eup %4734 }
 0x8db   :  { %v4390_v5 = vadd.f32 0.5, %v4389_v24  ;;  %v4393_v22 = vmul.f32 0.5, %v4735_v53  ;;  %v4737_v48 = vpop.eup %4736 }
 0x8dc   :  { %v4739_v37 = vpop.eup %4738 }
 0x8dd   :  { %v4394_v3 = vadd.f32 0.5, %v4393_v22  ;;  %v4401_v59 = vmul.f32 %v4737_v48, %v4390_v5  ;;  %v4398_v42 = vmul.f32 0.5, %v4739_v37 }
 0x8df   :  { %v4400_v15 = vmul.f32 %v4394_v3, %v8915_v54  ;;  %v4399_v46 = vadd.f32 0.5, %v4398_v42 }
 0x8e1   :  { %v4402_v29 = vadd.f32 %v4401_v59, %v4400_v15 }
 0x8e3   :  { %4740 = vtanh.f32 %v4402_v29 }
 0x8f0   :  { %v4741_v2 = vpop.eup %4740 }
 0x8f1   :  { %v4404_v39 = vmul.f32 %v4741_v2, %v4399_v46 }
 0x8f3   :  { %4573 = vmatmul.mubr.f32.vlgmr.msra.gmra.mxu0 %v4404_v39 }
 0x9b3   :  { %v4494_v50 = vpop.f32.mrf.mxu0 }
 0x9b4   :  { %v4495_v58 = vadd.f32 %v4522_v44, %v4494_v50 }
 0x9b5   :  { %v4574_v7 = vpop.f32.mrf.mxu0 }
 0x9b6   :  { %4499 = vst.msk [vmem:[%s8999_s9] sm:$0xff] %vm4498_vm2, %v4495_v58 }
 0x9b7   :  { %4504 = vsyncpa [#allocation5], 1 }
 0x9b8   :  { %4505 = vsyncpa [#allocation7], 1 }

</bundles_post_ra>
